<compile_context>
chip_gen: v7x
topology: tpu7x:2x2x1
jax: 0.10.0
libtpu: 0.0.40
codegen_flags: <defaults>
</compile_context>

<pallas_src>
import functools

import jax
import jax.numpy as jnp
from jax import lax
from jax.experimental import pallas as pl
from jax.experimental.pallas import tpu as pltpu


def _round_up(n, m):
    return ((n + m - 1) // m) * m


def sequence_kernel(x_ref, wih0_ref, whh0_ref, wl_ref, b_ref, h0_ref, c0_ref,
                    wfc_ref, bfc_ref, out_ref, gx_ref,
                    *, numlayers, hidden_size, seq_len, batch):
    """Whole sequence in one kernel invocation; time loop is an in-kernel fori_loop."""
    H = hidden_size
    L = numlayers
    B = batch

    # --- One-shot layer-0 input projection for ALL timesteps (no recurrence dependence).
    # x_ref: (T*B, Dp) bf16; wih0_ref: (Dp, 4H) bf16 (gate-permuted, i/f/o pre-scaled 0.5).
    # Layer-0 bias is folded in here once.
    gx_ref[...] = (jnp.dot(x_ref[...], wih0_ref[...],
                           preferred_element_type=jnp.float32)
                   + b_ref[0])

    # --- Hoisted, pre-broadcast biases for layers 1..L-1 (one broadcast per layer).
    b_bcast = [jnp.broadcast_to(b_ref[l], (B, 4 * H)) for l in range(1, L)]

    def cell_update(gates, c_prev):
        # Gate columns are (i, f, o, g); i/f/o columns were pre-scaled by 0.5 at weight-prep
        # time, so sigmoid(orig) == 0.5*tanh(gates_ifo) + 0.5 (single EUP region, no 0.5*x).
        sig = 0.5 * jnp.tanh(gates[:, :3 * H]) + 0.5
        g_g = jnp.tanh(gates[:, 3 * H:])
        i_g = sig[:, 0:H]
        f_g = sig[:, H:2 * H]
        o_g = sig[:, 2 * H:3 * H]
        c_new = f_g * c_prev + i_g * g_g          # f32 state math
        h_new = o_g * jnp.tanh(c_new)
        return h_new.astype(jnp.bfloat16), c_new  # single f32->bf16 cast of h

    def step(t, carry):
        hs, cs = carry                             # hs: bf16 (B,H); cs: f32 (B,H)
        row = t * B
        if B % 8 == 0:
            row = pl.multiple_of(row, 8)           # sublane-aligned dynamic slice
        gx_t = gx_ref[pl.ds(row, B), :]            # (B, 4H) precomputed x-proj + bias

        # Layer 0: only the h-projection is on the per-step critical path.
        gates = jnp.dot(hs[0], whh0_ref[...], preferred_element_type=jnp.float32) + gx_t
        h_new, c_new = cell_update(gates, cs[0])
        new_hs, new_cs = [h_new], [c_new]
        inp = h_new

        # Layers 1..L-1: fused [h_below | h_prev] @ [W_ih; W_hh] (K = 2H) per layer.
        for l in range(1, L):
            cat = jnp.concatenate([inp, hs[l]], axis=-1)          # (B, 2H) bf16
            gates = (jnp.dot(cat, wl_ref[l - 1], preferred_element_type=jnp.float32)
                     + b_bcast[l - 1])
            h_new, c_new = cell_update(gates, cs[l])
            new_hs.append(h_new)
            new_cs.append(c_new)
            inp = h_new
        return tuple(new_hs), tuple(new_cs)

    h_init = tuple(h0_ref[l].astype(jnp.bfloat16) for l in range(L))
    c_init = tuple(c0_ref[l] for l in range(L))
    # T is small here; keep the full unroll (cap / partial-unroll only needed for large T).
    hs, _ = lax.fori_loop(0, seq_len, step, (h_init, c_init), unroll=True)

    # fc_enc(h[-1]) at the final timestep only (earlier outputs are overwritten in PyTorch).
    out_ref[...] = (jnp.dot(hs[L - 1], wfc_ref[...], preferred_element_type=jnp.float32)
                    + bfc_ref[...])


def _permute_and_prescale_gates(w):
    """Reorder last-dim gate columns (i, f, g, o) -> (i, f, o, g) and pre-scale the
    sigmoid gates (i, f, o) by 0.5 so the kernel sigmoid is 0.5*tanh(x)+0.5."""
    i_c, f_c, g_c, o_c = jnp.split(w, 4, axis=-1)
    return jnp.concatenate([0.5 * i_c, 0.5 * f_c, 0.5 * o_c, g_c], axis=-1)


def prepare_sequence_params(wih0, wihL, whh, b, wfc, bfc,
                            *, numlayers, hidden_size, input_dim, output_dim):
    """One-time (parameter-load time) weight preprocessing: padding, gate permutation,
    W_ih/W_hh fusion, 0.5 pre-scale, bf16 cast.  NOT on the per-forward-call path."""
    H = hidden_size
    L = numlayers
    D = input_dim
    assert L >= 2
    # Layout assert: each gate must occupy whole 128-lane tiles for the kernel slicing.
    assert H % 128 == 0, "hidden_size must be a multiple of 128 for this kernel"

    Dp = _round_up(D, 128)                 # lane-align layer-0 input width
    OUTP = _round_up(output_dim, 128)      # lane-dense output store

    wih0_pad = jnp.zeros((Dp, 4 * H), jnp.float32).at[:D].set(wih0)
    wih0_p = _permute_and_prescale_gates(wih0_pad).astype(jnp.bfloat16)         # (Dp, 4H)
    whh0_p = _permute_and_prescale_gates(whh[0]).astype(jnp.bfloat16)           # (H, 4H)
    wl_cat = _permute_and_prescale_gates(
        jnp.concatenate([wihL, whh[1:]], axis=1)).astype(jnp.bfloat16)          # (L-1, 2H, 4H)
    b_p = _permute_and_prescale_gates(b)[:, None, :].astype(jnp.float32)        # (L, 1, 4H)
    wfc_pad = jnp.zeros((H, OUTP), jnp.float32).at[:, :output_dim].set(wfc).astype(jnp.bfloat16)
    bfc_pad = jnp.zeros((1, OUTP), jnp.float32).at[:, :output_dim].set(bfc)

    return dict(wih0=wih0_p, whh0=whh0_p, wl=wl_cat, b=b_p,
                wfc=wfc_pad, bfc=bfc_pad, Dp=Dp, OUTP=OUTP)


def sequence_forward(x, h0, c0, params, *, numlayers, hidden_size, output_dim):
    """Per-call wrapper: pads/casts x only, then a single pallas_call (grid=(1,))."""
    T, B, D = x.shape
    H = hidden_size
    L = numlayers
    Dp = params["Dp"]
    OUTP = params["OUTP"]

    # Per-call layout plumbing limited to x: flatten time*batch and lane-pad.
    x_pad = jnp.zeros((T * B, Dp), jnp.float32).at[:, :D].set(
        x.reshape(T * B, D)).astype(jnp.bfloat16)

    kernel = functools.partial(sequence_kernel,
                               numlayers=L, hidden_size=H, seq_len=T, batch=B)

    out = pl.pallas_call(
        kernel,
        out_shape=jax.ShapeDtypeStruct((B, OUTP), jnp.float32),
        grid_spec=pltpu.PrefetchScalarGridSpec(
            num_scalar_prefetch=0,
            grid=(1,),   # single grid step; the time loop lives inside the kernel
            in_specs=[
                pl.BlockSpec((T * B, Dp), lambda i: (0, 0)),        # x       (T*B, Dp) bf16
                pl.BlockSpec((Dp, 4 * H), lambda i: (0, 0)),        # W_ih0   (Dp, 4H)  bf16
                pl.BlockSpec((H, 4 * H), lambda i: (0, 0)),         # W_hh0   (H, 4H)   bf16
                pl.BlockSpec((L - 1, 2 * H, 4 * H),
                             lambda i: (0, 0, 0)),                  # layers  (L-1,2H,4H) bf16
                pl.BlockSpec((L, 1, 4 * H), lambda i: (0, 0, 0)),   # biases  (L, 1, 4H) f32
                pl.BlockSpec((L, B, H), lambda i: (0, 0, 0)),       # h0      (L, B, H)  f32
                pl.BlockSpec((L, B, H), lambda i: (0, 0, 0)),       # c0      (L, B, H)  f32
                pl.BlockSpec((H, OUTP), lambda i: (0, 0)),          # fc W    (H, OUTP)  bf16
                pl.BlockSpec((1, OUTP), lambda i: (0, 0)),          # fc b    (1, OUTP)  f32
            ],
            out_specs=pl.BlockSpec((B, OUTP), lambda i: (0, 0)),
            scratch_shapes=[pltpu.VMEM((T * B, 4 * H), jnp.float32)],  # gates_x precompute
        ),
        compiler_params=pltpu.CompilerParams(
            dimension_semantics=("arbitrary",)),
    )(x_pad, params["wih0"], params["whh0"], params["wl"], params["b"],
      h0, c0, params["wfc"], params["bfc"])

    return out[:, :output_dim]


def sequence_reference(x, wih0, wihL, whh, b, h0, c0, wfc, bfc,
                       *, numlayers, hidden_size):
    """Pure-jnp f32 reference mirroring nn.LSTMCell / the PyTorch forward (eval mode)."""
    H = hidden_size
    T = x.shape[0]
    h = [h0[l] for l in range(numlayers)]
    c = [c0[l] for l in range(numlayers)]
    out = None
    for t in range(T):
        for l in range(numlayers):
            inp = x[t] if l == 0 else h[l - 1]
            w_in = wih0 if l == 0 else wihL[l - 1]
            gates = inp @ w_in + h[l] @ whh[l] + b[l]
            i_g = jax.nn.sigmoid(gates[:, 0:H])
            f_g = jax.nn.sigmoid(gates[:, H:2 * H])
            g_g = jnp.tanh(gates[:, 2 * H:3 * H])
            o_g = jax.nn.sigmoid(gates[:, 3 * H:4 * H])
            c[l] = f_g * c[l] + i_g * g_g
            h[l] = o_g * jnp.tanh(c[l])
        out = h[-1] @ wfc + bfc
    return out


if __name__ == "__main__":
    # Small, module-consistent shapes.
    T = 8            # sequence length (input.size(0))
    B = 8            # batch           (input.shape[1])
    input_dim = 8
    hidden_size = 128
    numlayers = 3
    output_dim = 3

    key = jax.random.PRNGKey(0)
    ks = jax.random.split(key, 10)
    s = 0.1
    x    = jax.random.normal(ks[0], (T, B, input_dim), jnp.float32)
    wih0 = s * jax.random.normal(ks[1], (input_dim, 4 * hidden_size), jnp.float32)
    wihL = s * jax.random.normal(ks[2], (numlayers - 1, hidden_size, 4 * hidden_size), jnp.float32)
    whh  = s * jax.random.normal(ks[3], (numlayers, hidden_size, 4 * hidden_size), jnp.float32)
    b    = s * jax.random.normal(ks[4], (numlayers, 4 * hidden_size), jnp.float32)  # b_ih + b_hh
    h0   = s * jax.random.normal(ks[5], (numlayers, B, hidden_size), jnp.float32)
    c0   = s * jax.random.normal(ks[6], (numlayers, B, hidden_size), jnp.float32)
    wfc  = s * jax.random.normal(ks[7], (hidden_size, output_dim), jnp.float32)
    bfc  = s * jax.random.normal(ks[8], (1, output_dim), jnp.float32)

    # One-time weight prep (parameter-load time), NOT on the per-call path.
    params = prepare_sequence_params(wih0, wihL, whh, b, wfc, bfc,
                                     numlayers=numlayers, hidden_size=hidden_size,
                                     input_dim=input_dim, output_dim=output_dim)
    params = jax.tree_util.tree_map(
        lambda a: jax.block_until_ready(a) if isinstance(a, jax.Array) else a, params)

    out = sequence_forward(x, h0, c0, params,
                           numlayers=numlayers, hidden_size=hidden_size,
                           output_dim=output_dim)
    out = jax.block_until_ready(out)

    ref = sequence_reference(x, wih0, wihL, whh, b, h0, c0, wfc, bfc,
                             numlayers=numlayers, hidden_size=hidden_size)
    assert out.shape == (B, output_dim)
    # bf16 MXU operands -> slightly looser tolerance than a pure-f32 version.
    assert jnp.allclose(out, ref, atol=2e-2, rtol=2e-2), (out, ref)
    print("KERNEL_OK")
</pallas_src>

<mosaic_0001>
module attributes {stable_mosaic.version = 11 : i64} {
  func.func @sequence_kernel(%arg0: i32, %arg1: memref<64x128xbf16, #tpu.memory_space<vmem>>, %arg2: memref<128x512xbf16, #tpu.memory_space<vmem>>, %arg3: memref<128x512xbf16, #tpu.memory_space<vmem>>, %arg4: memref<2x256x512xbf16, #tpu.memory_space<vmem>>, %arg5: memref<3x1x512xf32, #tpu.memory_space<vmem>>, %arg6: memref<3x8x128xf32, #tpu.memory_space<vmem>>, %arg7: memref<3x8x128xf32, #tpu.memory_space<vmem>>, %arg8: memref<128x128xbf16, #tpu.memory_space<vmem>>, %arg9: memref<1x128xf32, #tpu.memory_space<vmem>>, %arg10: memref<8x128xf32, #tpu.memory_space<vmem>>, %arg11: memref<64x512xf32, #tpu.memory_space<vmem>>) attributes {dimension_semantics = [#tpu.dimension_semantics<arbitrary>], iteration_bounds = array<i64: 1>, scalar_prefetch = 0 : i64, scratch_operands = 1 : i64, tpu.core_type = #tpu.core_type<tc>, window_params = [{pipeline_mode = #tpu.pipeline_mode<synchronous>, transform_indices = @transform_0, window_bounds = array<i64: 64, 128>}, {pipeline_mode = #tpu.pipeline_mode<synchronous>, transform_indices = @transform_1, window_bounds = array<i64: 128, 512>}, {pipeline_mode = #tpu.pipeline_mode<synchronous>, transform_indices = @transform_2, window_bounds = array<i64: 128, 512>}, {pipeline_mode = #tpu.pipeline_mode<synchronous>, transform_indices = @transform_3, window_bounds = array<i64: 2, 256, 512>}, {pipeline_mode = #tpu.pipeline_mode<synchronous>, transform_indices = @transform_4, window_bounds = array<i64: 3, 1, 512>}, {pipeline_mode = #tpu.pipeline_mode<synchronous>, transform_indices = @transform_5, window_bounds = array<i64: 3, 8, 128>}, {pipeline_mode = #tpu.pipeline_mode<synchronous>, transform_indices = @transform_6, window_bounds = array<i64: 3, 8, 128>}, {pipeline_mode = #tpu.pipeline_mode<synchronous>, transform_indices = @transform_7, window_bounds = array<i64: 128, 128>}, {pipeline_mode = #tpu.pipeline_mode<synchronous>, transform_indices = @transform_8, window_bounds = array<i64: 1, 128>}, {pipeline_mode = #tpu.pipeline_mode<synchronous>, transform_indices = @transform_9, window_bounds = array<i64: 8, 128>}]} {
    %c0 = arith.constant 0 : index
    %c0_0 = arith.constant 0 : index
    %0 = vector.load %arg1[%c0, %c0_0] : memref<64x128xbf16, #tpu.memory_space<vmem>>, vector<64x128xbf16>
    %c0_1 = arith.constant 0 : index
    %c0_2 = arith.constant 0 : index
    %1 = vector.load %arg2[%c0_1, %c0_2] : memref<128x512xbf16, #tpu.memory_space<vmem>>, vector<128x512xbf16>
    %cst = arith.constant dense<0.000000e+00> : vector<64x512xf32>
    %2 = tpu.matmul %0, %1, %cst {dimension_numbers = #tpu.dot_dimension_numbers<[1], [0], [0], [1], [0, 0, 1, 1], [], []>} : vector<64x128xbf16>, vector<128x512xbf16>, vector<64x512xf32> -> vector<64x512xf32>
    %c0_3 = arith.constant 0 : index
    %c0_4 = arith.constant 0 : index
    %c0_5 = arith.constant 0 : index
    %3 = vector.load %arg5[%c0_3, %c0_4, %c0_5] : memref<3x1x512xf32, #tpu.memory_space<vmem>>, vector<1x1x512xf32>
    %4 = vector.shape_cast %3 : vector<1x1x512xf32> to vector<1x512xf32>
    %5 = vector.broadcast %4 : vector<1x512xf32> to vector<64x512xf32>
    %6 = arith.addf %2, %5 : vector<64x512xf32>
    %c0_6 = arith.constant 0 : index
    %c0_7 = arith.constant 0 : index
    %7 = vector.load %arg11[%c0_6, %c0_7] : memref<64x512xf32, #tpu.memory_space<vmem>>, vector<64x512xf32>
    tpu.vector_store %arg11[%c0_6, %c0_7], %6 {strides = array<i32>} : memref<64x512xf32, #tpu.memory_space<vmem>>, vector<64x512xf32>,
    %c1 = arith.constant 1 : index
    %c0_8 = arith.constant 0 : index
    %c0_9 = arith.constant 0 : index
    %8 = vector.load %arg5[%c1, %c0_8, %c0_9] : memref<3x1x512xf32, #tpu.memory_space<vmem>>, vector<1x1x512xf32>
    %9 = vector.shape_cast %8 : vector<1x1x512xf32> to vector<1x512xf32>
    %10 = vector.shape_cast %9 : vector<1x512xf32> to vector<1x512xf32>
    %11 = vector.broadcast %10 : vector<1x512xf32> to vector<8x512xf32>
    %c2 = arith.constant 2 : index
    %c0_10 = arith.constant 0 : index
    %c0_11 = arith.constant 0 : index
    %12 = vector.load %arg5[%c2, %c0_10, %c0_11] : memref<3x1x512xf32, #tpu.memory_space<vmem>>, vector<1x1x512xf32>
    %13 = vector.shape_cast %12 : vector<1x1x512xf32> to vector<1x512xf32>
    %14 = vector.shape_cast %13 : vector<1x512xf32> to vector<1x512xf32>
    %15 = vector.broadcast %14 : vector<1x512xf32> to vector<8x512xf32>
    %c0_12 = arith.constant 0 : index
    %c0_13 = arith.constant 0 : index
    %c0_14 = arith.constant 0 : index
    %16 = vector.load %arg6[%c0_12, %c0_13, %c0_14] : memref<3x8x128xf32, #tpu.memory_space<vmem>>, vector<1x8x128xf32>
    %17 = vector.shape_cast %16 : vector<1x8x128xf32> to vector<8x128xf32>
    %18 = arith.truncf %17 : vector<8x128xf32> to vector<8x128xbf16>
    %c1_15 = arith.constant 1 : index
    %c0_16 = arith.constant 0 : index
    %c0_17 = arith.constant 0 : index
    %19 = vector.load %arg6[%c1_15, %c0_16, %c0_17] : memref<3x8x128xf32, #tpu.memory_space<vmem>>, vector<1x8x128xf32>
    %20 = vector.shape_cast %19 : vector<1x8x128xf32> to vector<8x128xf32>
    %21 = arith.truncf %20 : vector<8x128xf32> to vector<8x128xbf16>
    %c2_18 = arith.constant 2 : index
    %c0_19 = arith.constant 0 : index
    %c0_20 = arith.constant 0 : index
    %22 = vector.load %arg6[%c2_18, %c0_19, %c0_20] : memref<3x8x128xf32, #tpu.memory_space<vmem>>, vector<1x8x128xf32>
    %23 = vector.shape_cast %22 : vector<1x8x128xf32> to vector<8x128xf32>
    %24 = arith.truncf %23 : vector<8x128xf32> to vector<8x128xbf16>
    %c0_21 = arith.constant 0 : index
    %c0_22 = arith.constant 0 : index
    %c0_23 = arith.constant 0 : index
    %25 = vector.load %arg7[%c0_21, %c0_22, %c0_23] : memref<3x8x128xf32, #tpu.memory_space<vmem>>, vector<1x8x128xf32>
    %26 = vector.shape_cast %25 : vector<1x8x128xf32> to vector<8x128xf32>
    %c1_24 = arith.constant 1 : index
    %c0_25 = arith.constant 0 : index
    %c0_26 = arith.constant 0 : index
    %27 = vector.load %arg7[%c1_24, %c0_25, %c0_26] : memref<3x8x128xf32, #tpu.memory_space<vmem>>, vector<1x8x128xf32>
    %28 = vector.shape_cast %27 : vector<1x8x128xf32> to vector<8x128xf32>
    %c2_27 = arith.constant 2 : index
    %c0_28 = arith.constant 0 : index
    %c0_29 = arith.constant 0 : index
    %29 = vector.load %arg7[%c2_27, %c0_28, %c0_29] : memref<3x8x128xf32, #tpu.memory_space<vmem>>, vector<1x8x128xf32>
    %30 = vector.shape_cast %29 : vector<1x8x128xf32> to vector<8x128xf32>
    %c0_i32 = arith.constant 0 : i32
    %c8_i32 = arith.constant 8 : i32
    %31 = arith.muli %c0_i32, %c8_i32 : i32
    %32 = tpu.assume_multiple %31, 8 : i32
    %33 = arith.index_cast %32 : i32 to index
    %c0_30 = arith.constant 0 : index
    %34 = vector.load %arg11[%33, %c0_30] : memref<64x512xf32, #tpu.memory_space<vmem>>, vector<8x512xf32>
    %c0_31 = arith.constant 0 : index
    %c0_32 = arith.constant 0 : index
    %35 = vector.load %arg3[%c0_31, %c0_32] : memref<128x512xbf16, #tpu.memory_space<vmem>>, vector<128x512xbf16>
    %cst_33 = arith.constant dense<0.000000e+00> : vector<8x512xf32>
    %36 = tpu.matmul %18, %35, %cst_33 {dimension_numbers = #tpu.dot_dimension_numbers<[1], [0], [0], [1], [0, 0, 1, 1], [], []>} : vector<8x128xbf16>, vector<128x512xbf16>, vector<8x512xf32> -> vector<8x512xf32>
    %37 = arith.addf %36, %34 : vector<8x512xf32>
    %38 = vector.extract_strided_slice %37 {offsets = [0, 0], sizes = [8, 384], strides = [1, 1]} : vector<8x512xf32> to vector<8x384xf32>
    %39 = math.tanh %38 : vector<8x384xf32>
    %cst_34 = arith.constant 5.000000e-01 : f32
    %40 = vector.broadcast %cst_34 : f32 to vector<8x384xf32>
    %41 = arith.mulf %40, %39 : vector<8x384xf32>
    %cst_35 = arith.constant 5.000000e-01 : f32
    %42 = vector.broadcast %cst_35 : f32 to vector<8x384xf32>
    %43 = arith.addf %41, %42 : vector<8x384xf32>
    %44 = vector.extract_strided_slice %37 {offsets = [0, 384], sizes = [8, 128], strides = [1, 1]} : vector<8x512xf32> to vector<8x128xf32>
    %45 = math.tanh %44 : vector<8x128xf32>
    %46 = vector.extract_strided_slice %43 {offsets = [0, 0], sizes = [8, 128], strides = [1, 1]} : vector<8x384xf32> to vector<8x128xf32>
    %47 = vector.extract_strided_slice %43 {offsets = [0, 128], sizes = [8, 128], strides = [1, 1]} : vector<8x384xf32> to vector<8x128xf32>
    %48 = vector.extract_strided_slice %43 {offsets = [0, 256], sizes = [8, 128], strides = [1, 1]} : vector<8x384xf32> to vector<8x128xf32>
    %49 = arith.mulf %47, %26 : vector<8x128xf32>
    %50 = arith.mulf %46, %45 : vector<8x128xf32>
    %51 = arith.addf %49, %50 : vector<8x128xf32>
    %52 = math.tanh %51 : vector<8x128xf32>
    %53 = arith.mulf %48, %52 : vector<8x128xf32>
    %54 = arith.truncf %53 : vector<8x128xf32> to vector<8x128xbf16>
    %55 = tpu.concatenate %54, %21 in 1 : vector<8x128xbf16>, vector<8x128xbf16> -> vector<8x256xbf16>
    %c0_36 = arith.constant 0 : index
    %c0_37 = arith.constant 0 : index
    %c0_38 = arith.constant 0 : index
    %56 = vector.load %arg4[%c0_36, %c0_37, %c0_38] : memref<2x256x512xbf16, #tpu.memory_space<vmem>>, vector<1x256x512xbf16>
    %57 = vector.shape_cast %56 : vector<1x256x512xbf16> to vector<256x512xbf16>
    %cst_39 = arith.constant dense<0.000000e+00> : vector<8x512xf32>
    %58 = tpu.matmul %55, %57, %cst_39 {dimension_numbers = #tpu.dot_dimension_numbers<[1], [0], [0], [1], [0, 0, 1, 1], [], []>} : vector<8x256xbf16>, vector<256x512xbf16>, vector<8x512xf32> -> vector<8x512xf32>
    %59 = arith.addf %58, %11 : vector<8x512xf32>
    %60 = vector.extract_strided_slice %59 {offsets = [0, 0], sizes = [8, 384], strides = [1, 1]} : vector<8x512xf32> to vector<8x384xf32>
    %61 = math.tanh %60 : vector<8x384xf32>
    %cst_40 = arith.constant 5.000000e-01 : f32
    %62 = vector.broadcast %cst_40 : f32 to vector<8x384xf32>
    %63 = arith.mulf %62, %61 : vector<8x384xf32>
    %cst_41 = arith.constant 5.000000e-01 : f32
    %64 = vector.broadcast %cst_41 : f32 to vector<8x384xf32>
    %65 = arith.addf %63, %64 : vector<8x384xf32>
    %66 = vector.extract_strided_slice %59 {offsets = [0, 384], sizes = [8, 128], strides = [1, 1]} : vector<8x512xf32> to vector<8x128xf32>
    %67 = math.tanh %66 : vector<8x128xf32>
    %68 = vector.extract_strided_slice %65 {offsets = [0, 0], sizes = [8, 128], strides = [1, 1]} : vector<8x384xf32> to vector<8x128xf32>
    %69 = vector.extract_strided_slice %65 {offsets = [0, 128], sizes = [8, 128], strides = [1, 1]} : vector<8x384xf32> to vector<8x128xf32>
    %70 = vector.extract_strided_slice %65 {offsets = [0, 256], sizes = [8, 128], strides = [1, 1]} : vector<8x384xf32> to vector<8x128xf32>
    %71 = arith.mulf %69, %28 : vector<8x128xf32>
    %72 = arith.mulf %68, %67 : vector<8x128xf32>
    %73 = arith.addf %71, %72 : vector<8x128xf32>
    %74 = math.tanh %73 : vector<8x128xf32>
    %75 = arith.mulf %70, %74 : vector<8x128xf32>
    %76 = arith.truncf %75 : vector<8x128xf32> to vector<8x128xbf16>
    %77 = tpu.concatenate %76, %24 in 1 : vector<8x128xbf16>, vector<8x128xbf16> -> vector<8x256xbf16>
    %c1_42 = arith.constant 1 : index
    %c0_43 = arith.constant 0 : index
    %c0_44 = arith.constant 0 : index
    %78 = vector.load %arg4[%c1_42, %c0_43, %c0_44] : memref<2x256x512xbf16, #tpu.memory_space<vmem>>, vector<1x256x512xbf16>
    %79 = vector.shape_cast %78 : vector<1x256x512xbf16> to vector<256x512xbf16>
    %cst_45 = arith.constant dense<0.000000e+00> : vector<8x512xf32>
    %80 = tpu.matmul %77, %79, %cst_45 {dimension_numbers = #tpu.dot_dimension_numbers<[1], [0], [0], [1], [0, 0, 1, 1], [], []>} : vector<8x256xbf16>, vector<256x512xbf16>, vector<8x512xf32> -> vector<8x512xf32>
    %81 = arith.addf %80, %15 : vector<8x512xf32>
    %82 = vector.extract_strided_slice %81 {offsets = [0, 0], sizes = [8, 384], strides = [1, 1]} : vector<8x512xf32> to vector<8x384xf32>
    %83 = math.tanh %82 : vector<8x384xf32>
    %cst_46 = arith.constant 5.000000e-01 : f32
    %84 = vector.broadcast %cst_46 : f32 to vector<8x384xf32>
    %85 = arith.mulf %84, %83 : vector<8x384xf32>
    %cst_47 = arith.constant 5.000000e-01 : f32
    %86 = vector.broadcast %cst_47 : f32 to vector<8x384xf32>
    %87 = arith.addf %85, %86 : vector<8x384xf32>
    %88 = vector.extract_strided_slice %81 {offsets = [0, 384], sizes = [8, 128], strides = [1, 1]} : vector<8x512xf32> to vector<8x128xf32>
    %89 = math.tanh %88 : vector<8x128xf32>
    %90 = vector.extract_strided_slice %87 {offsets = [0, 0], sizes = [8, 128], strides = [1, 1]} : vector<8x384xf32> to vector<8x128xf32>
    %91 = vector.extract_strided_slice %87 {offsets = [0, 128], sizes = [8, 128], strides = [1, 1]} : vector<8x384xf32> to vector<8x128xf32>
    %92 = vector.extract_strided_slice %87 {offsets = [0, 256], sizes = [8, 128], strides = [1, 1]} : vector<8x384xf32> to vector<8x128xf32>
    %93 = arith.mulf %91, %30 : vector<8x128xf32>
    %94 = arith.mulf %90, %89 : vector<8x128xf32>
    %95 = arith.addf %93, %94 : vector<8x128xf32>
    %96 = math.tanh %95 : vector<8x128xf32>
    %97 = arith.mulf %92, %96 : vector<8x128xf32>
    %98 = arith.truncf %97 : vector<8x128xf32> to vector<8x128xbf16>
    %c1_i32 = arith.constant 1 : i32
    %c8_i32_48 = arith.constant 8 : i32
    %99 = arith.muli %c1_i32, %c8_i32_48 : i32
    %100 = tpu.assume_multiple %99, 8 : i32
    %101 = arith.index_cast %100 : i32 to index
    %c0_49 = arith.constant 0 : index
    %102 = vector.load %arg11[%101, %c0_49] : memref<64x512xf32, #tpu.memory_space<vmem>>, vector<8x512xf32>
    %c0_50 = arith.constant 0 : index
    %c0_51 = arith.constant 0 : index
    %103 = vector.load %arg3[%c0_50, %c0_51] : memref<128x512xbf16, #tpu.memory_space<vmem>>, vector<128x512xbf16>
    %cst_52 = arith.constant dense<0.000000e+00> : vector<8x512xf32>
    %104 = tpu.matmul %54, %103, %cst_52 {dimension_numbers = #tpu.dot_dimension_numbers<[1], [0], [0], [1], [0, 0, 1, 1], [], []>} : vector<8x128xbf16>, vector<128x512xbf16>, vector<8x512xf32> -> vector<8x512xf32>
    %105 = arith.addf %104, %102 : vector<8x512xf32>
    %106 = vector.extract_strided_slice %105 {offsets = [0, 0], sizes = [8, 384], strides = [1, 1]} : vector<8x512xf32> to vector<8x384xf32>
    %107 = math.tanh %106 : vector<8x384xf32>
    %cst_53 = arith.constant 5.000000e-01 : f32
    %108 = vector.broadcast %cst_53 : f32 to vector<8x384xf32>
    %109 = arith.mulf %108, %107 : vector<8x384xf32>
    %cst_54 = arith.constant 5.000000e-01 : f32
    %110 = vector.broadcast %cst_54 : f32 to vector<8x384xf32>
    %111 = arith.addf %109, %110 : vector<8x384xf32>
    %112 = vector.extract_strided_slice %105 {offsets = [0, 384], sizes = [8, 128], strides = [1, 1]} : vector<8x512xf32> to vector<8x128xf32>
    %113 = math.tanh %112 : vector<8x128xf32>
    %114 = vector.extract_strided_slice %111 {offsets = [0, 0], sizes = [8, 128], strides = [1, 1]} : vector<8x384xf32> to vector<8x128xf32>
    %115 = vector.extract_strided_slice %111 {offsets = [0, 128], sizes = [8, 128], strides = [1, 1]} : vector<8x384xf32> to vector<8x128xf32>
    %116 = vector.extract_strided_slice %111 {offsets = [0, 256], sizes = [8, 128], strides = [1, 1]} : vector<8x384xf32> to vector<8x128xf32>
    %117 = arith.mulf %115, %51 : vector<8x128xf32>
    %118 = arith.mulf %114, %113 : vector<8x128xf32>
    %119 = arith.addf %117, %118 : vector<8x128xf32>
    %120 = math.tanh %119 : vector<8x128xf32>
    %121 = arith.mulf %116, %120 : vector<8x128xf32>
    %122 = arith.truncf %121 : vector<8x128xf32> to vector<8x128xbf16>
    %123 = tpu.concatenate %122, %76 in 1 : vector<8x128xbf16>, vector<8x128xbf16> -> vector<8x256xbf16>
    %c0_55 = arith.constant 0 : index
    %c0_56 = arith.constant 0 : index
    %c0_57 = arith.constant 0 : index
    %124 = vector.load %arg4[%c0_55, %c0_56, %c0_57] : memref<2x256x512xbf16, #tpu.memory_space<vmem>>, vector<1x256x512xbf16>
    %125 = vector.shape_cast %124 : vector<1x256x512xbf16> to vector<256x512xbf16>
    %cst_58 = arith.constant dense<0.000000e+00> : vector<8x512xf32>
    %126 = tpu.matmul %123, %125, %cst_58 {dimension_numbers = #tpu.dot_dimension_numbers<[1], [0], [0], [1], [0, 0, 1, 1], [], []>} : vector<8x256xbf16>, vector<256x512xbf16>, vector<8x512xf32> -> vector<8x512xf32>
    %127 = arith.addf %126, %11 : vector<8x512xf32>
    %128 = vector.extract_strided_slice %127 {offsets = [0, 0], sizes = [8, 384], strides = [1, 1]} : vector<8x512xf32> to vector<8x384xf32>
    %129 = math.tanh %128 : vector<8x384xf32>
    %cst_59 = arith.constant 5.000000e-01 : f32
    %130 = vector.broadcast %cst_59 : f32 to vector<8x384xf32>
    %131 = arith.mulf %130, %129 : vector<8x384xf32>
    %cst_60 = arith.constant 5.000000e-01 : f32
    %132 = vector.broadcast %cst_60 : f32 to vector<8x384xf32>
    %133 = arith.addf %131, %132 : vector<8x384xf32>
    %134 = vector.extract_strided_slice %127 {offsets = [0, 384], sizes = [8, 128], strides = [1, 1]} : vector<8x512xf32> to vector<8x128xf32>
    %135 = math.tanh %134 : vector<8x128xf32>
    %136 = vector.extract_strided_slice %133 {offsets = [0, 0], sizes = [8, 128], strides = [1, 1]} : vector<8x384xf32> to vector<8x128xf32>
    %137 = vector.extract_strided_slice %133 {offsets = [0, 128], sizes = [8, 128], strides = [1, 1]} : vector<8x384xf32> to vector<8x128xf32>
    %138 = vector.extract_strided_slice %133 {offsets = [0, 256], sizes = [8, 128], strides = [1, 1]} : vector<8x384xf32> to vector<8x128xf32>
    %139 = arith.mulf %137, %73 : vector<8x128xf32>
    %140 = arith.mulf %136, %135 : vector<8x128xf32>
    %141 = arith.addf %139, %140 : vector<8x128xf32>
    %142 = math.tanh %141 : vector<8x128xf32>
    %143 = arith.mulf %138, %142 : vector<8x128xf32>
    %144 = arith.truncf %143 : vector<8x128xf32> to vector<8x128xbf16>
    %145 = tpu.concatenate %144, %98 in 1 : vector<8x128xbf16>, vector<8x128xbf16> -> vector<8x256xbf16>
    %c1_61 = arith.constant 1 : index
    %c0_62 = arith.constant 0 : index
    %c0_63 = arith.constant 0 : index
    %146 = vector.load %arg4[%c1_61, %c0_62, %c0_63] : memref<2x256x512xbf16, #tpu.memory_space<vmem>>, vector<1x256x512xbf16>
    %147 = vector.shape_cast %146 : vector<1x256x512xbf16> to vector<256x512xbf16>
    %cst_64 = arith.constant dense<0.000000e+00> : vector<8x512xf32>
    %148 = tpu.matmul %145, %147, %cst_64 {dimension_numbers = #tpu.dot_dimension_numbers<[1], [0], [0], [1], [0, 0, 1, 1], [], []>} : vector<8x256xbf16>, vector<256x512xbf16>, vector<8x512xf32> -> vector<8x512xf32>
    %149 = arith.addf %148, %15 : vector<8x512xf32>
    %150 = vector.extract_strided_slice %149 {offsets = [0, 0], sizes = [8, 384], strides = [1, 1]} : vector<8x512xf32> to vector<8x384xf32>
    %151 = math.tanh %150 : vector<8x384xf32>
    %cst_65 = arith.constant 5.000000e-01 : f32
    %152 = vector.broadcast %cst_65 : f32 to vector<8x384xf32>
    %153 = arith.mulf %152, %151 : vector<8x384xf32>
    %cst_66 = arith.constant 5.000000e-01 : f32
    %154 = vector.broadcast %cst_66 : f32 to vector<8x384xf32>
    %155 = arith.addf %153, %154 : vector<8x384xf32>
    %156 = vector.extract_strided_slice %149 {offsets = [0, 384], sizes = [8, 128], strides = [1, 1]} : vector<8x512xf32> to vector<8x128xf32>
    %157 = math.tanh %156 : vector<8x128xf32>
    %158 = vector.extract_strided_slice %155 {offsets = [0, 0], sizes = [8, 128], strides = [1, 1]} : vector<8x384xf32> to vector<8x128xf32>
    %159 = vector.extract_strided_slice %155 {offsets = [0, 128], sizes = [8, 128], strides = [1, 1]} : vector<8x384xf32> to vector<8x128xf32>
    %160 = vector.extract_strided_slice %155 {offsets = [0, 256], sizes = [8, 128], strides = [1, 1]} : vector<8x384xf32> to vector<8x128xf32>
    %161 = arith.mulf %159, %95 : vector<8x128xf32>
    %162 = arith.mulf %158, %157 : vector<8x128xf32>
    %163 = arith.addf %161, %162 : vector<8x128xf32>
    %164 = math.tanh %163 : vector<8x128xf32>
    %165 = arith.mulf %160, %164 : vector<8x128xf32>
    %166 = arith.truncf %165 : vector<8x128xf32> to vector<8x128xbf16>
    %c2_i32 = arith.constant 2 : i32
    %c8_i32_67 = arith.constant 8 : i32
    %167 = arith.muli %c2_i32, %c8_i32_67 : i32
    %168 = tpu.assume_multiple %167, 8 : i32
    %169 = arith.index_cast %168 : i32 to index
    %c0_68 = arith.constant 0 : index
    %170 = vector.load %arg11[%169, %c0_68] : memref<64x512xf32, #tpu.memory_space<vmem>>, vector<8x512xf32>
    %c0_69 = arith.constant 0 : index
    %c0_70 = arith.constant 0 : index
    %171 = vector.load %arg3[%c0_69, %c0_70] : memref<128x512xbf16, #tpu.memory_space<vmem>>, vector<128x512xbf16>
    %cst_71 = arith.constant dense<0.000000e+00> : vector<8x512xf32>
    %172 = tpu.matmul %122, %171, %cst_71 {dimension_numbers = #tpu.dot_dimension_numbers<[1], [0], [0], [1], [0, 0, 1, 1], [], []>} : vector<8x128xbf16>, vector<128x512xbf16>, vector<8x512xf32> -> vector<8x512xf32>
    %173 = arith.addf %172, %170 : vector<8x512xf32>
    %174 = vector.extract_strided_slice %173 {offsets = [0, 0], sizes = [8, 384], strides = [1, 1]} : vector<8x512xf32> to vector<8x384xf32>
    %175 = math.tanh %174 : vector<8x384xf32>
    %cst_72 = arith.constant 5.000000e-01 : f32
    %176 = vector.broadcast %cst_72 : f32 to vector<8x384xf32>
    %177 = arith.mulf %176, %175 : vector<8x384xf32>
    %cst_73 = arith.constant 5.000000e-01 : f32
    %178 = vector.broadcast %cst_73 : f32 to vector<8x384xf32>
    %179 = arith.addf %177, %178 : vector<8x384xf32>
    %180 = vector.extract_strided_slice %173 {offsets = [0, 384], sizes = [8, 128], strides = [1, 1]} : vector<8x512xf32> to vector<8x128xf32>
    %181 = math.tanh %180 : vector<8x128xf32>
    %182 = vector.extract_strided_slice %179 {offsets = [0, 0], sizes = [8, 128], strides = [1, 1]} : vector<8x384xf32> to vector<8x128xf32>
    %183 = vector.extract_strided_slice %179 {offsets = [0, 128], sizes = [8, 128], strides = [1, 1]} : vector<8x384xf32> to vector<8x128xf32>
    %184 = vector.extract_strided_slice %179 {offsets = [0, 256], sizes = [8, 128], strides = [1, 1]} : vector<8x384xf32> to vector<8x128xf32>
    %185 = arith.mulf %183, %119 : vector<8x128xf32>
    %186 = arith.mulf %182, %181 : vector<8x128xf32>
    %187 = arith.addf %185, %186 : vector<8x128xf32>
    %188 = math.tanh %187 : vector<8x128xf32>
    %189 = arith.mulf %184, %188 : vector<8x128xf32>
    %190 = arith.truncf %189 : vector<8x128xf32> to vector<8x128xbf16>
    %191 = tpu.concatenate %190, %144 in 1 : vector<8x128xbf16>, vector<8x128xbf16> -> vector<8x256xbf16>
    %c0_74 = arith.constant 0 : index
    %c0_75 = arith.constant 0 : index
    %c0_76 = arith.constant 0 : index
    %192 = vector.load %arg4[%c0_74, %c0_75, %c0_76] : memref<2x256x512xbf16, #tpu.memory_space<vmem>>, vector<1x256x512xbf16>
    %193 = vector.shape_cast %192 : vector<1x256x512xbf16> to vector<256x512xbf16>
    %cst_77 = arith.constant dense<0.000000e+00> : vector<8x512xf32>
    %194 = tpu.matmul %191, %193, %cst_77 {dimension_numbers = #tpu.dot_dimension_numbers<[1], [0], [0], [1], [0, 0, 1, 1], [], []>} : vector<8x256xbf16>, vector<256x512xbf16>, vector<8x512xf32> -> vector<8x512xf32>
    %195 = arith.addf %194, %11 : vector<8x512xf32>
    %196 = vector.extract_strided_slice %195 {offsets = [0, 0], sizes = [8, 384], strides = [1, 1]} : vector<8x512xf32> to vector<8x384xf32>
    %197 = math.tanh %196 : vector<8x384xf32>
    %cst_78 = arith.constant 5.000000e-01 : f32
    %198 = vector.broadcast %cst_78 : f32 to vector<8x384xf32>
    %199 = arith.mulf %198, %197 : vector<8x384xf32>
    %cst_79 = arith.constant 5.000000e-01 : f32
    %200 = vector.broadcast %cst_79 : f32 to vector<8x384xf32>
    %201 = arith.addf %199, %200 : vector<8x384xf32>
    %202 = vector.extract_strided_slice %195 {offsets = [0, 384], sizes = [8, 128], strides = [1, 1]} : vector<8x512xf32> to vector<8x128xf32>
    %203 = math.tanh %202 : vector<8x128xf32>
    %204 = vector.extract_strided_slice %201 {offsets = [0, 0], sizes = [8, 128], strides = [1, 1]} : vector<8x384xf32> to vector<8x128xf32>
    %205 = vector.extract_strided_slice %201 {offsets = [0, 128], sizes = [8, 128], strides = [1, 1]} : vector<8x384xf32> to vector<8x128xf32>
    %206 = vector.extract_strided_slice %201 {offsets = [0, 256], sizes = [8, 128], strides = [1, 1]} : vector<8x384xf32> to vector<8x128xf32>
    %207 = arith.mulf %205, %141 : vector<8x128xf32>
    %208 = arith.mulf %204, %203 : vector<8x128xf32>
    %209 = arith.addf %207, %208 : vector<8x128xf32>
    %210 = math.tanh %209 : vector<8x128xf32>
    %211 = arith.mulf %206, %210 : vector<8x128xf32>
    %212 = arith.truncf %211 : vector<8x128xf32> to vector<8x128xbf16>
    %213 = tpu.concatenate %212, %166 in 1 : vector<8x128xbf16>, vector<8x128xbf16> -> vector<8x256xbf16>
    %c1_80 = arith.constant 1 : index
    %c0_81 = arith.constant 0 : index
    %c0_82 = arith.constant 0 : index
    %214 = vector.load %arg4[%c1_80, %c0_81, %c0_82] : memref<2x256x512xbf16, #tpu.memory_space<vmem>>, vector<1x256x512xbf16>
    %215 = vector.shape_cast %214 : vector<1x256x512xbf16> to vector<256x512xbf16>
    %cst_83 = arith.constant dense<0.000000e+00> : vector<8x512xf32>
    %216 = tpu.matmul %213, %215, %cst_83 {dimension_numbers = #tpu.dot_dimension_numbers<[1], [0], [0], [1], [0, 0, 1, 1], [], []>} : vector<8x256xbf16>, vector<256x512xbf16>, vector<8x512xf32> -> vector<8x512xf32>
    %217 = arith.addf %216, %15 : vector<8x512xf32>
    %218 = vector.extract_strided_slice %217 {offsets = [0, 0], sizes = [8, 384], strides = [1, 1]} : vector<8x512xf32> to vector<8x384xf32>
    %219 = math.tanh %218 : vector<8x384xf32>
    %cst_84 = arith.constant 5.000000e-01 : f32
    %220 = vector.broadcast %cst_84 : f32 to vector<8x384xf32>
    %221 = arith.mulf %220, %219 : vector<8x384xf32>
    %cst_85 = arith.constant 5.000000e-01 : f32
    %222 = vector.broadcast %cst_85 : f32 to vector<8x384xf32>
    %223 = arith.addf %221, %222 : vector<8x384xf32>
    %224 = vector.extract_strided_slice %217 {offsets = [0, 384], sizes = [8, 128], strides = [1, 1]} : vector<8x512xf32> to vector<8x128xf32>
    %225 = math.tanh %224 : vector<8x128xf32>
    %226 = vector.extract_strided_slice %223 {offsets = [0, 0], sizes = [8, 128], strides = [1, 1]} : vector<8x384xf32> to vector<8x128xf32>
    %227 = vector.extract_strided_slice %223 {offsets = [0, 128], sizes = [8, 128], strides = [1, 1]} : vector<8x384xf32> to vector<8x128xf32>
    %228 = vector.extract_strided_slice %223 {offsets = [0, 256], sizes = [8, 128], strides = [1, 1]} : vector<8x384xf32> to vector<8x128xf32>
    %229 = arith.mulf %227, %163 : vector<8x128xf32>
    %230 = arith.mulf %226, %225 : vector<8x128xf32>
    %231 = arith.addf %229, %230 : vector<8x128xf32>
    %232 = math.tanh %231 : vector<8x128xf32>
    %233 = arith.mulf %228, %232 : vector<8x128xf32>
    %234 = arith.truncf %233 : vector<8x128xf32> to vector<8x128xbf16>
    %c3_i32 = arith.constant 3 : i32
    %c8_i32_86 = arith.constant 8 : i32
    %235 = arith.muli %c3_i32, %c8_i32_86 : i32
    %236 = tpu.assume_multiple %235, 8 : i32
    %237 = arith.index_cast %236 : i32 to index
    %c0_87 = arith.constant 0 : index
    %238 = vector.load %arg11[%237, %c0_87] : memref<64x512xf32, #tpu.memory_space<vmem>>, vector<8x512xf32>
    %c0_88 = arith.constant 0 : index
    %c0_89 = arith.constant 0 : index
    %239 = vector.load %arg3[%c0_88, %c0_89] : memref<128x512xbf16, #tpu.memory_space<vmem>>, vector<128x512xbf16>
    %cst_90 = arith.constant dense<0.000000e+00> : vector<8x512xf32>
    %240 = tpu.matmul %190, %239, %cst_90 {dimension_numbers = #tpu.dot_dimension_numbers<[1], [0], [0], [1], [0, 0, 1, 1], [], []>} : vector<8x128xbf16>, vector<128x512xbf16>, vector<8x512xf32> -> vector<8x512xf32>
    %241 = arith.addf %240, %238 : vector<8x512xf32>
    %242 = vector.extract_strided_slice %241 {offsets = [0, 0], sizes = [8, 384], strides = [1, 1]} : vector<8x512xf32> to vector<8x384xf32>
    %243 = math.tanh %242 : vector<8x384xf32>
    %cst_91 = arith.constant 5.000000e-01 : f32
    %244 = vector.broadcast %cst_91 : f32 to vector<8x384xf32>
    %245 = arith.mulf %244, %243 : vector<8x384xf32>
    %cst_92 = arith.constant 5.000000e-01 : f32
    %246 = vector.broadcast %cst_92 : f32 to vector<8x384xf32>
    %247 = arith.addf %245, %246 : vector<8x384xf32>
    %248 = vector.extract_strided_slice %241 {offsets = [0, 384], sizes = [8, 128], strides = [1, 1]} : vector<8x512xf32> to vector<8x128xf32>
    %249 = math.tanh %248 : vector<8x128xf32>
    %250 = vector.extract_strided_slice %247 {offsets = [0, 0], sizes = [8, 128], strides = [1, 1]} : vector<8x384xf32> to vector<8x128xf32>
    %251 = vector.extract_strided_slice %247 {offsets = [0, 128], sizes = [8, 128], strides = [1, 1]} : vector<8x384xf32> to vector<8x128xf32>
    %252 = vector.extract_strided_slice %247 {offsets = [0, 256], sizes = [8, 128], strides = [1, 1]} : vector<8x384xf32> to vector<8x128xf32>
    %253 = arith.mulf %251, %187 : vector<8x128xf32>
    %254 = arith.mulf %250, %249 : vector<8x128xf32>
    %255 = arith.addf %253, %254 : vector<8x128xf32>
    %256 = math.tanh %255 : vector<8x128xf32>
    %257 = arith.mulf %252, %256 : vector<8x128xf32>
    %258 = arith.truncf %257 : vector<8x128xf32> to vector<8x128xbf16>
    %259 = tpu.concatenate %258, %212 in 1 : vector<8x128xbf16>, vector<8x128xbf16> -> vector<8x256xbf16>
    %c0_93 = arith.constant 0 : index
    %c0_94 = arith.constant 0 : index
    %c0_95 = arith.constant 0 : index
    %260 = vector.load %arg4[%c0_93, %c0_94, %c0_95] : memref<2x256x512xbf16, #tpu.memory_space<vmem>>, vector<1x256x512xbf16>
    %261 = vector.shape_cast %260 : vector<1x256x512xbf16> to vector<256x512xbf16>
    %cst_96 = arith.constant dense<0.000000e+00> : vector<8x512xf32>
    %262 = tpu.matmul %259, %261, %cst_96 {dimension_numbers = #tpu.dot_dimension_numbers<[1], [0], [0], [1], [0, 0, 1, 1], [], []>} : vector<8x256xbf16>, vector<256x512xbf16>, vector<8x512xf32> -> vector<8x512xf32>
    %263 = arith.addf %262, %11 : vector<8x512xf32>
    %264 = vector.extract_strided_slice %263 {offsets = [0, 0], sizes = [8, 384], strides = [1, 1]} : vector<8x512xf32> to vector<8x384xf32>
    %265 = math.tanh %264 : vector<8x384xf32>
    %cst_97 = arith.constant 5.000000e-01 : f32
    %266 = vector.broadcast %cst_97 : f32 to vector<8x384xf32>
    %267 = arith.mulf %266, %265 : vector<8x384xf32>
    %cst_98 = arith.constant 5.000000e-01 : f32
    %268 = vector.broadcast %cst_98 : f32 to vector<8x384xf32>
    %269 = arith.addf %267, %268 : vector<8x384xf32>
    %270 = vector.extract_strided_slice %263 {offsets = [0, 384], sizes = [8, 128], strides = [1, 1]} : vector<8x512xf32> to vector<8x128xf32>
    %271 = math.tanh %270 : vector<8x128xf32>
    %272 = vector.extract_strided_slice %269 {offsets = [0, 0], sizes = [8, 128], strides = [1, 1]} : vector<8x384xf32> to vector<8x128xf32>
    %273 = vector.extract_strided_slice %269 {offsets = [0, 128], sizes = [8, 128], strides = [1, 1]} : vector<8x384xf32> to vector<8x128xf32>
    %274 = vector.extract_strided_slice %269 {offsets = [0, 256], sizes = [8, 128], strides = [1, 1]} : vector<8x384xf32> to vector<8x128xf32>
    %275 = arith.mulf %273, %209 : vector<8x128xf32>
    %276 = arith.mulf %272, %271 : vector<8x128xf32>
    %277 = arith.addf %275, %276 : vector<8x128xf32>
    %278 = math.tanh %277 : vector<8x128xf32>
    %279 = arith.mulf %274, %278 : vector<8x128xf32>
    %280 = arith.truncf %279 : vector<8x128xf32> to vector<8x128xbf16>
    %281 = tpu.concatenate %280, %234 in 1 : vector<8x128xbf16>, vector<8x128xbf16> -> vector<8x256xbf16>
    %c1_99 = arith.constant 1 : index
    %c0_100 = arith.constant 0 : index
    %c0_101 = arith.constant 0 : index
    %282 = vector.load %arg4[%c1_99, %c0_100, %c0_101] : memref<2x256x512xbf16, #tpu.memory_space<vmem>>, vector<1x256x512xbf16>
    %283 = vector.shape_cast %282 : vector<1x256x512xbf16> to vector<256x512xbf16>
    %cst_102 = arith.constant dense<0.000000e+00> : vector<8x512xf32>
    %284 = tpu.matmul %281, %283, %cst_102 {dimension_numbers = #tpu.dot_dimension_numbers<[1], [0], [0], [1], [0, 0, 1, 1], [], []>} : vector<8x256xbf16>, vector<256x512xbf16>, vector<8x512xf32> -> vector<8x512xf32>
    %285 = arith.addf %284, %15 : vector<8x512xf32>
    %286 = vector.extract_strided_slice %285 {offsets = [0, 0], sizes = [8, 384], strides = [1, 1]} : vector<8x512xf32> to vector<8x384xf32>
    %287 = math.tanh %286 : vector<8x384xf32>
    %cst_103 = arith.constant 5.000000e-01 : f32
    %288 = vector.broadcast %cst_103 : f32 to vector<8x384xf32>
    %289 = arith.mulf %288, %287 : vector<8x384xf32>
    %cst_104 = arith.constant 5.000000e-01 : f32
    %290 = vector.broadcast %cst_104 : f32 to vector<8x384xf32>
    %291 = arith.addf %289, %290 : vector<8x384xf32>
    %292 = vector.extract_strided_slice %285 {offsets = [0, 384], sizes = [8, 128], strides = [1, 1]} : vector<8x512xf32> to vector<8x128xf32>
    %293 = math.tanh %292 : vector<8x128xf32>
    %294 = vector.extract_strided_slice %291 {offsets = [0, 0], sizes = [8, 128], strides = [1, 1]} : vector<8x384xf32> to vector<8x128xf32>
    %295 = vector.extract_strided_slice %291 {offsets = [0, 128], sizes = [8, 128], strides = [1, 1]} : vector<8x384xf32> to vector<8x128xf32>
    %296 = vector.extract_strided_slice %291 {offsets = [0, 256], sizes = [8, 128], strides = [1, 1]} : vector<8x384xf32> to vector<8x128xf32>
    %297 = arith.mulf %295, %231 : vector<8x128xf32>
    %298 = arith.mulf %294, %293 : vector<8x128xf32>
    %299 = arith.addf %297, %298 : vector<8x128xf32>
    %300 = math.tanh %299 : vector<8x128xf32>
    %301 = arith.mulf %296, %300 : vector<8x128xf32>
    %302 = arith.truncf %301 : vector<8x128xf32> to vector<8x128xbf16>
    %c4_i32 = arith.constant 4 : i32
    %c8_i32_105 = arith.constant 8 : i32
    %303 = arith.muli %c4_i32, %c8_i32_105 : i32
    %304 = tpu.assume_multiple %303, 8 : i32
    %305 = arith.index_cast %304 : i32 to index
    %c0_106 = arith.constant 0 : index
    %306 = vector.load %arg11[%305, %c0_106] : memref<64x512xf32, #tpu.memory_space<vmem>>, vector<8x512xf32>
    %c0_107 = arith.constant 0 : index
    %c0_108 = arith.constant 0 : index
    %307 = vector.load %arg3[%c0_107, %c0_108] : memref<128x512xbf16, #tpu.memory_space<vmem>>, vector<128x512xbf16>
    %cst_109 = arith.constant dense<0.000000e+00> : vector<8x512xf32>
    %308 = tpu.matmul %258, %307, %cst_109 {dimension_numbers = #tpu.dot_dimension_numbers<[1], [0], [0], [1], [0, 0, 1, 1], [], []>} : vector<8x128xbf16>, vector<128x512xbf16>, vector<8x512xf32> -> vector<8x512xf32>
    %309 = arith.addf %308, %306 : vector<8x512xf32>
    %310 = vector.extract_strided_slice %309 {offsets = [0, 0], sizes = [8, 384], strides = [1, 1]} : vector<8x512xf32> to vector<8x384xf32>
    %311 = math.tanh %310 : vector<8x384xf32>
    %cst_110 = arith.constant 5.000000e-01 : f32
    %312 = vector.broadcast %cst_110 : f32 to vector<8x384xf32>
    %313 = arith.mulf %312, %311 : vector<8x384xf32>
    %cst_111 = arith.constant 5.000000e-01 : f32
    %314 = vector.broadcast %cst_111 : f32 to vector<8x384xf32>
    %315 = arith.addf %313, %314 : vector<8x384xf32>
    %316 = vector.extract_strided_slice %309 {offsets = [0, 384], sizes = [8, 128], strides = [1, 1]} : vector<8x512xf32> to vector<8x128xf32>
    %317 = math.tanh %316 : vector<8x128xf32>
    %318 = vector.extract_strided_slice %315 {offsets = [0, 0], sizes = [8, 128], strides = [1, 1]} : vector<8x384xf32> to vector<8x128xf32>
    %319 = vector.extract_strided_slice %315 {offsets = [0, 128], sizes = [8, 128], strides = [1, 1]} : vector<8x384xf32> to vector<8x128xf32>
    %320 = vector.extract_strided_slice %315 {offsets = [0, 256], sizes = [8, 128], strides = [1, 1]} : vector<8x384xf32> to vector<8x128xf32>
    %321 = arith.mulf %319, %255 : vector<8x128xf32>
    %322 = arith.mulf %318, %317 : vector<8x128xf32>
    %323 = arith.addf %321, %322 : vector<8x128xf32>
    %324 = math.tanh %323 : vector<8x128xf32>
    %325 = arith.mulf %320, %324 : vector<8x128xf32>
    %326 = arith.truncf %325 : vector<8x128xf32> to vector<8x128xbf16>
    %327 = tpu.concatenate %326, %280 in 1 : vector<8x128xbf16>, vector<8x128xbf16> -> vector<8x256xbf16>
    %c0_112 = arith.constant 0 : index
    %c0_113 = arith.constant 0 : index
    %c0_114 = arith.constant 0 : index
    %328 = vector.load %arg4[%c0_112, %c0_113, %c0_114] : memref<2x256x512xbf16, #tpu.memory_space<vmem>>, vector<1x256x512xbf16>
    %329 = vector.shape_cast %328 : vector<1x256x512xbf16> to vector<256x512xbf16>
    %cst_115 = arith.constant dense<0.000000e+00> : vector<8x512xf32>
    %330 = tpu.matmul %327, %329, %cst_115 {dimension_numbers = #tpu.dot_dimension_numbers<[1], [0], [0], [1], [0, 0, 1, 1], [], []>} : vector<8x256xbf16>, vector<256x512xbf16>, vector<8x512xf32> -> vector<8x512xf32>
    %331 = arith.addf %330, %11 : vector<8x512xf32>
    %332 = vector.extract_strided_slice %331 {offsets = [0, 0], sizes = [8, 384], strides = [1, 1]} : vector<8x512xf32> to vector<8x384xf32>
    %333 = math.tanh %332 : vector<8x384xf32>
    %cst_116 = arith.constant 5.000000e-01 : f32
    %334 = vector.broadcast %cst_116 : f32 to vector<8x384xf32>
    %335 = arith.mulf %334, %333 : vector<8x384xf32>
    %cst_117 = arith.constant 5.000000e-01 : f32
    %336 = vector.broadcast %cst_117 : f32 to vector<8x384xf32>
    %337 = arith.addf %335, %336 : vector<8x384xf32>
    %338 = vector.extract_strided_slice %331 {offsets = [0, 384], sizes = [8, 128], strides = [1, 1]} : vector<8x512xf32> to vector<8x128xf32>
    %339 = math.tanh %338 : vector<8x128xf32>
    %340 = vector.extract_strided_slice %337 {offsets = [0, 0], sizes = [8, 128], strides = [1, 1]} : vector<8x384xf32> to vector<8x128xf32>
    %341 = vector.extract_strided_slice %337 {offsets = [0, 128], sizes = [8, 128], strides = [1, 1]} : vector<8x384xf32> to vector<8x128xf32>
    %342 = vector.extract_strided_slice %337 {offsets = [0, 256], sizes = [8, 128], strides = [1, 1]} : vector<8x384xf32> to vector<8x128xf32>
    %343 = arith.mulf %341, %277 : vector<8x128xf32>
    %344 = arith.mulf %340, %339 : vector<8x128xf32>
    %345 = arith.addf %343, %344 : vector<8x128xf32>
    %346 = math.tanh %345 : vector<8x128xf32>
    %347 = arith.mulf %342, %346 : vector<8x128xf32>
    %348 = arith.truncf %347 : vector<8x128xf32> to vector<8x128xbf16>
    %349 = tpu.concatenate %348, %302 in 1 : vector<8x128xbf16>, vector<8x128xbf16> -> vector<8x256xbf16>
    %c1_118 = arith.constant 1 : index
    %c0_119 = arith.constant 0 : index
    %c0_120 = arith.constant 0 : index
    %350 = vector.load %arg4[%c1_118, %c0_119, %c0_120] : memref<2x256x512xbf16, #tpu.memory_space<vmem>>, vector<1x256x512xbf16>
    %351 = vector.shape_cast %350 : vector<1x256x512xbf16> to vector<256x512xbf16>
    %cst_121 = arith.constant dense<0.000000e+00> : vector<8x512xf32>
    %352 = tpu.matmul %349, %351, %cst_121 {dimension_numbers = #tpu.dot_dimension_numbers<[1], [0], [0], [1], [0, 0, 1, 1], [], []>} : vector<8x256xbf16>, vector<256x512xbf16>, vector<8x512xf32> -> vector<8x512xf32>
    %353 = arith.addf %352, %15 : vector<8x512xf32>
    %354 = vector.extract_strided_slice %353 {offsets = [0, 0], sizes = [8, 384], strides = [1, 1]} : vector<8x512xf32> to vector<8x384xf32>
    %355 = math.tanh %354 : vector<8x384xf32>
    %cst_122 = arith.constant 5.000000e-01 : f32
    %356 = vector.broadcast %cst_122 : f32 to vector<8x384xf32>
    %357 = arith.mulf %356, %355 : vector<8x384xf32>
    %cst_123 = arith.constant 5.000000e-01 : f32
    %358 = vector.broadcast %cst_123 : f32 to vector<8x384xf32>
    %359 = arith.addf %357, %358 : vector<8x384xf32>
    %360 = vector.extract_strided_slice %353 {offsets = [0, 384], sizes = [8, 128], strides = [1, 1]} : vector<8x512xf32> to vector<8x128xf32>
    %361 = math.tanh %360 : vector<8x128xf32>
    %362 = vector.extract_strided_slice %359 {offsets = [0, 0], sizes = [8, 128], strides = [1, 1]} : vector<8x384xf32> to vector<8x128xf32>
    %363 = vector.extract_strided_slice %359 {offsets = [0, 128], sizes = [8, 128], strides = [1, 1]} : vector<8x384xf32> to vector<8x128xf32>
    %364 = vector.extract_strided_slice %359 {offsets = [0, 256], sizes = [8, 128], strides = [1, 1]} : vector<8x384xf32> to vector<8x128xf32>
    %365 = arith.mulf %363, %299 : vector<8x128xf32>
    %366 = arith.mulf %362, %361 : vector<8x128xf32>
    %367 = arith.addf %365, %366 : vector<8x128xf32>
    %368 = math.tanh %367 : vector<8x128xf32>
    %369 = arith.mulf %364, %368 : vector<8x128xf32>
    %370 = arith.truncf %369 : vector<8x128xf32> to vector<8x128xbf16>
    %c5_i32 = arith.constant 5 : i32
    %c8_i32_124 = arith.constant 8 : i32
    %371 = arith.muli %c5_i32, %c8_i32_124 : i32
    %372 = tpu.assume_multiple %371, 8 : i32
    %373 = arith.index_cast %372 : i32 to index
    %c0_125 = arith.constant 0 : index
    %374 = vector.load %arg11[%373, %c0_125] : memref<64x512xf32, #tpu.memory_space<vmem>>, vector<8x512xf32>
    %c0_126 = arith.constant 0 : index
    %c0_127 = arith.constant 0 : index
    %375 = vector.load %arg3[%c0_126, %c0_127] : memref<128x512xbf16, #tpu.memory_space<vmem>>, vector<128x512xbf16>
    %cst_128 = arith.constant dense<0.000000e+00> : vector<8x512xf32>
    %376 = tpu.matmul %326, %375, %cst_128 {dimension_numbers = #tpu.dot_dimension_numbers<[1], [0], [0], [1], [0, 0, 1, 1], [], []>} : vector<8x128xbf16>, vector<128x512xbf16>, vector<8x512xf32> -> vector<8x512xf32>
    %377 = arith.addf %376, %374 : vector<8x512xf32>
    %378 = vector.extract_strided_slice %377 {offsets = [0, 0], sizes = [8, 384], strides = [1, 1]} : vector<8x512xf32> to vector<8x384xf32>
    %379 = math.tanh %378 : vector<8x384xf32>
    %cst_129 = arith.constant 5.000000e-01 : f32
    %380 = vector.broadcast %cst_129 : f32 to vector<8x384xf32>
    %381 = arith.mulf %380, %379 : vector<8x384xf32>
    %cst_130 = arith.constant 5.000000e-01 : f32
    %382 = vector.broadcast %cst_130 : f32 to vector<8x384xf32>
    %383 = arith.addf %381, %382 : vector<8x384xf32>
    %384 = vector.extract_strided_slice %377 {offsets = [0, 384], sizes = [8, 128], strides = [1, 1]} : vector<8x512xf32> to vector<8x128xf32>
    %385 = math.tanh %384 : vector<8x128xf32>
    %386 = vector.extract_strided_slice %383 {offsets = [0, 0], sizes = [8, 128], strides = [1, 1]} : vector<8x384xf32> to vector<8x128xf32>
    %387 = vector.extract_strided_slice %383 {offsets = [0, 128], sizes = [8, 128], strides = [1, 1]} : vector<8x384xf32> to vector<8x128xf32>
    %388 = vector.extract_strided_slice %383 {offsets = [0, 256], sizes = [8, 128], strides = [1, 1]} : vector<8x384xf32> to vector<8x128xf32>
    %389 = arith.mulf %387, %323 : vector<8x128xf32>
    %390 = arith.mulf %386, %385 : vector<8x128xf32>
    %391 = arith.addf %389, %390 : vector<8x128xf32>
    %392 = math.tanh %391 : vector<8x128xf32>
    %393 = arith.mulf %388, %392 : vector<8x128xf32>
    %394 = arith.truncf %393 : vector<8x128xf32> to vector<8x128xbf16>
    %395 = tpu.concatenate %394, %348 in 1 : vector<8x128xbf16>, vector<8x128xbf16> -> vector<8x256xbf16>
    %c0_131 = arith.constant 0 : index
    %c0_132 = arith.constant 0 : index
    %c0_133 = arith.constant 0 : index
    %396 = vector.load %arg4[%c0_131, %c0_132, %c0_133] : memref<2x256x512xbf16, #tpu.memory_space<vmem>>, vector<1x256x512xbf16>
    %397 = vector.shape_cast %396 : vector<1x256x512xbf16> to vector<256x512xbf16>
    %cst_134 = arith.constant dense<0.000000e+00> : vector<8x512xf32>
    %398 = tpu.matmul %395, %397, %cst_134 {dimension_numbers = #tpu.dot_dimension_numbers<[1], [0], [0], [1], [0, 0, 1, 1], [], []>} : vector<8x256xbf16>, vector<256x512xbf16>, vector<8x512xf32> -> vector<8x512xf32>
    %399 = arith.addf %398, %11 : vector<8x512xf32>
    %400 = vector.extract_strided_slice %399 {offsets = [0, 0], sizes = [8, 384], strides = [1, 1]} : vector<8x512xf32> to vector<8x384xf32>
    %401 = math.tanh %400 : vector<8x384xf32>
    %cst_135 = arith.constant 5.000000e-01 : f32
    %402 = vector.broadcast %cst_135 : f32 to vector<8x384xf32>
    %403 = arith.mulf %402, %401 : vector<8x384xf32>
    %cst_136 = arith.constant 5.000000e-01 : f32
    %404 = vector.broadcast %cst_136 : f32 to vector<8x384xf32>
    %405 = arith.addf %403, %404 : vector<8x384xf32>
    %406 = vector.extract_strided_slice %399 {offsets = [0, 384], sizes = [8, 128], strides = [1, 1]} : vector<8x512xf32> to vector<8x128xf32>
    %407 = math.tanh %406 : vector<8x128xf32>
    %408 = vector.extract_strided_slice %405 {offsets = [0, 0], sizes = [8, 128], strides = [1, 1]} : vector<8x384xf32> to vector<8x128xf32>
    %409 = vector.extract_strided_slice %405 {offsets = [0, 128], sizes = [8, 128], strides = [1, 1]} : vector<8x384xf32> to vector<8x128xf32>
    %410 = vector.extract_strided_slice %405 {offsets = [0, 256], sizes = [8, 128], strides = [1, 1]} : vector<8x384xf32> to vector<8x128xf32>
    %411 = arith.mulf %409, %345 : vector<8x128xf32>
    %412 = arith.mulf %408, %407 : vector<8x128xf32>
    %413 = arith.addf %411, %412 : vector<8x128xf32>
    %414 = math.tanh %413 : vector<8x128xf32>
    %415 = arith.mulf %410, %414 : vector<8x128xf32>
    %416 = arith.truncf %415 : vector<8x128xf32> to vector<8x128xbf16>
    %417 = tpu.concatenate %416, %370 in 1 : vector<8x128xbf16>, vector<8x128xbf16> -> vector<8x256xbf16>
    %c1_137 = arith.constant 1 : index
    %c0_138 = arith.constant 0 : index
    %c0_139 = arith.constant 0 : index
    %418 = vector.load %arg4[%c1_137, %c0_138, %c0_139] : memref<2x256x512xbf16, #tpu.memory_space<vmem>>, vector<1x256x512xbf16>
    %419 = vector.shape_cast %418 : vector<1x256x512xbf16> to vector<256x512xbf16>
    %cst_140 = arith.constant dense<0.000000e+00> : vector<8x512xf32>
    %420 = tpu.matmul %417, %419, %cst_140 {dimension_numbers = #tpu.dot_dimension_numbers<[1], [0], [0], [1], [0, 0, 1, 1], [], []>} : vector<8x256xbf16>, vector<256x512xbf16>, vector<8x512xf32> -> vector<8x512xf32>
    %421 = arith.addf %420, %15 : vector<8x512xf32>
    %422 = vector.extract_strided_slice %421 {offsets = [0, 0], sizes = [8, 384], strides = [1, 1]} : vector<8x512xf32> to vector<8x384xf32>
    %423 = math.tanh %422 : vector<8x384xf32>
    %cst_141 = arith.constant 5.000000e-01 : f32
    %424 = vector.broadcast %cst_141 : f32 to vector<8x384xf32>
    %425 = arith.mulf %424, %423 : vector<8x384xf32>
    %cst_142 = arith.constant 5.000000e-01 : f32
    %426 = vector.broadcast %cst_142 : f32 to vector<8x384xf32>
    %427 = arith.addf %425, %426 : vector<8x384xf32>
    %428 = vector.extract_strided_slice %421 {offsets = [0, 384], sizes = [8, 128], strides = [1, 1]} : vector<8x512xf32> to vector<8x128xf32>
    %429 = math.tanh %428 : vector<8x128xf32>
    %430 = vector.extract_strided_slice %427 {offsets = [0, 0], sizes = [8, 128], strides = [1, 1]} : vector<8x384xf32> to vector<8x128xf32>
    %431 = vector.extract_strided_slice %427 {offsets = [0, 128], sizes = [8, 128], strides = [1, 1]} : vector<8x384xf32> to vector<8x128xf32>
    %432 = vector.extract_strided_slice %427 {offsets = [0, 256], sizes = [8, 128], strides = [1, 1]} : vector<8x384xf32> to vector<8x128xf32>
    %433 = arith.mulf %431, %367 : vector<8x128xf32>
    %434 = arith.mulf %430, %429 : vector<8x128xf32>
    %435 = arith.addf %433, %434 : vector<8x128xf32>
    %436 = math.tanh %435 : vector<8x128xf32>
    %437 = arith.mulf %432, %436 : vector<8x128xf32>
    %438 = arith.truncf %437 : vector<8x128xf32> to vector<8x128xbf16>
    %c6_i32 = arith.constant 6 : i32
    %c8_i32_143 = arith.constant 8 : i32
    %439 = arith.muli %c6_i32, %c8_i32_143 : i32
    %440 = tpu.assume_multiple %439, 8 : i32
    %441 = arith.index_cast %440 : i32 to index
    %c0_144 = arith.constant 0 : index
    %442 = vector.load %arg11[%441, %c0_144] : memref<64x512xf32, #tpu.memory_space<vmem>>, vector<8x512xf32>
    %c0_145 = arith.constant 0 : index
    %c0_146 = arith.constant 0 : index
    %443 = vector.load %arg3[%c0_145, %c0_146] : memref<128x512xbf16, #tpu.memory_space<vmem>>, vector<128x512xbf16>
    %cst_147 = arith.constant dense<0.000000e+00> : vector<8x512xf32>
    %444 = tpu.matmul %394, %443, %cst_147 {dimension_numbers = #tpu.dot_dimension_numbers<[1], [0], [0], [1], [0, 0, 1, 1], [], []>} : vector<8x128xbf16>, vector<128x512xbf16>, vector<8x512xf32> -> vector<8x512xf32>
    %445 = arith.addf %444, %442 : vector<8x512xf32>
    %446 = vector.extract_strided_slice %445 {offsets = [0, 0], sizes = [8, 384], strides = [1, 1]} : vector<8x512xf32> to vector<8x384xf32>
    %447 = math.tanh %446 : vector<8x384xf32>
    %cst_148 = arith.constant 5.000000e-01 : f32
    %448 = vector.broadcast %cst_148 : f32 to vector<8x384xf32>
    %449 = arith.mulf %448, %447 : vector<8x384xf32>
    %cst_149 = arith.constant 5.000000e-01 : f32
    %450 = vector.broadcast %cst_149 : f32 to vector<8x384xf32>
    %451 = arith.addf %449, %450 : vector<8x384xf32>
    %452 = vector.extract_strided_slice %445 {offsets = [0, 384], sizes = [8, 128], strides = [1, 1]} : vector<8x512xf32> to vector<8x128xf32>
    %453 = math.tanh %452 : vector<8x128xf32>
    %454 = vector.extract_strided_slice %451 {offsets = [0, 0], sizes = [8, 128], strides = [1, 1]} : vector<8x384xf32> to vector<8x128xf32>
    %455 = vector.extract_strided_slice %451 {offsets = [0, 128], sizes = [8, 128], strides = [1, 1]} : vector<8x384xf32> to vector<8x128xf32>
    %456 = vector.extract_strided_slice %451 {offsets = [0, 256], sizes = [8, 128], strides = [1, 1]} : vector<8x384xf32> to vector<8x128xf32>
    %457 = arith.mulf %455, %391 : vector<8x128xf32>
    %458 = arith.mulf %454, %453 : vector<8x128xf32>
    %459 = arith.addf %457, %458 : vector<8x128xf32>
    %460 = math.tanh %459 : vector<8x128xf32>
    %461 = arith.mulf %456, %460 : vector<8x128xf32>
    %462 = arith.truncf %461 : vector<8x128xf32> to vector<8x128xbf16>
    %463 = tpu.concatenate %462, %416 in 1 : vector<8x128xbf16>, vector<8x128xbf16> -> vector<8x256xbf16>
    %c0_150 = arith.constant 0 : index
    %c0_151 = arith.constant 0 : index
    %c0_152 = arith.constant 0 : index
    %464 = vector.load %arg4[%c0_150, %c0_151, %c0_152] : memref<2x256x512xbf16, #tpu.memory_space<vmem>>, vector<1x256x512xbf16>
    %465 = vector.shape_cast %464 : vector<1x256x512xbf16> to vector<256x512xbf16>
    %cst_153 = arith.constant dense<0.000000e+00> : vector<8x512xf32>
    %466 = tpu.matmul %463, %465, %cst_153 {dimension_numbers = #tpu.dot_dimension_numbers<[1], [0], [0], [1], [0, 0, 1, 1], [], []>} : vector<8x256xbf16>, vector<256x512xbf16>, vector<8x512xf32> -> vector<8x512xf32>
    %467 = arith.addf %466, %11 : vector<8x512xf32>
    %468 = vector.extract_strided_slice %467 {offsets = [0, 0], sizes = [8, 384], strides = [1, 1]} : vector<8x512xf32> to vector<8x384xf32>
    %469 = math.tanh %468 : vector<8x384xf32>
    %cst_154 = arith.constant 5.000000e-01 : f32
    %470 = vector.broadcast %cst_154 : f32 to vector<8x384xf32>
    %471 = arith.mulf %470, %469 : vector<8x384xf32>
    %cst_155 = arith.constant 5.000000e-01 : f32
    %472 = vector.broadcast %cst_155 : f32 to vector<8x384xf32>
    %473 = arith.addf %471, %472 : vector<8x384xf32>
    %474 = vector.extract_strided_slice %467 {offsets = [0, 384], sizes = [8, 128], strides = [1, 1]} : vector<8x512xf32> to vector<8x128xf32>
    %475 = math.tanh %474 : vector<8x128xf32>
    %476 = vector.extract_strided_slice %473 {offsets = [0, 0], sizes = [8, 128], strides = [1, 1]} : vector<8x384xf32> to vector<8x128xf32>
    %477 = vector.extract_strided_slice %473 {offsets = [0, 128], sizes = [8, 128], strides = [1, 1]} : vector<8x384xf32> to vector<8x128xf32>
    %478 = vector.extract_strided_slice %473 {offsets = [0, 256], sizes = [8, 128], strides = [1, 1]} : vector<8x384xf32> to vector<8x128xf32>
    %479 = arith.mulf %477, %413 : vector<8x128xf32>
    %480 = arith.mulf %476, %475 : vector<8x128xf32>
    %481 = arith.addf %479, %480 : vector<8x128xf32>
    %482 = math.tanh %481 : vector<8x128xf32>
    %483 = arith.mulf %478, %482 : vector<8x128xf32>
    %484 = arith.truncf %483 : vector<8x128xf32> to vector<8x128xbf16>
    %485 = tpu.concatenate %484, %438 in 1 : vector<8x128xbf16>, vector<8x128xbf16> -> vector<8x256xbf16>
    %c1_156 = arith.constant 1 : index
    %c0_157 = arith.constant 0 : index
    %c0_158 = arith.constant 0 : index
    %486 = vector.load %arg4[%c1_156, %c0_157, %c0_158] : memref<2x256x512xbf16, #tpu.memory_space<vmem>>, vector<1x256x512xbf16>
    %487 = vector.shape_cast %486 : vector<1x256x512xbf16> to vector<256x512xbf16>
    %cst_159 = arith.constant dense<0.000000e+00> : vector<8x512xf32>
    %488 = tpu.matmul %485, %487, %cst_159 {dimension_numbers = #tpu.dot_dimension_numbers<[1], [0], [0], [1], [0, 0, 1, 1], [], []>} : vector<8x256xbf16>, vector<256x512xbf16>, vector<8x512xf32> -> vector<8x512xf32>
    %489 = arith.addf %488, %15 : vector<8x512xf32>
    %490 = vector.extract_strided_slice %489 {offsets = [0, 0], sizes = [8, 384], strides = [1, 1]} : vector<8x512xf32> to vector<8x384xf32>
    %491 = math.tanh %490 : vector<8x384xf32>
    %cst_160 = arith.constant 5.000000e-01 : f32
    %492 = vector.broadcast %cst_160 : f32 to vector<8x384xf32>
    %493 = arith.mulf %492, %491 : vector<8x384xf32>
    %cst_161 = arith.constant 5.000000e-01 : f32
    %494 = vector.broadcast %cst_161 : f32 to vector<8x384xf32>
    %495 = arith.addf %493, %494 : vector<8x384xf32>
    %496 = vector.extract_strided_slice %489 {offsets = [0, 384], sizes = [8, 128], strides = [1, 1]} : vector<8x512xf32> to vector<8x128xf32>
    %497 = math.tanh %496 : vector<8x128xf32>
    %498 = vector.extract_strided_slice %495 {offsets = [0, 0], sizes = [8, 128], strides = [1, 1]} : vector<8x384xf32> to vector<8x128xf32>
    %499 = vector.extract_strided_slice %495 {offsets = [0, 128], sizes = [8, 128], strides = [1, 1]} : vector<8x384xf32> to vector<8x128xf32>
    %500 = vector.extract_strided_slice %495 {offsets = [0, 256], sizes = [8, 128], strides = [1, 1]} : vector<8x384xf32> to vector<8x128xf32>
    %501 = arith.mulf %499, %435 : vector<8x128xf32>
    %502 = arith.mulf %498, %497 : vector<8x128xf32>
    %503 = arith.addf %501, %502 : vector<8x128xf32>
    %504 = math.tanh %503 : vector<8x128xf32>
    %505 = arith.mulf %500, %504 : vector<8x128xf32>
    %506 = arith.truncf %505 : vector<8x128xf32> to vector<8x128xbf16>
    %c7_i32 = arith.constant 7 : i32
    %c8_i32_162 = arith.constant 8 : i32
    %507 = arith.muli %c7_i32, %c8_i32_162 : i32
    %508 = tpu.assume_multiple %507, 8 : i32
    %509 = arith.index_cast %508 : i32 to index
    %c0_163 = arith.constant 0 : index
    %510 = vector.load %arg11[%509, %c0_163] : memref<64x512xf32, #tpu.memory_space<vmem>>, vector<8x512xf32>
    %c0_164 = arith.constant 0 : index
    %c0_165 = arith.constant 0 : index
    %511 = vector.load %arg3[%c0_164, %c0_165] : memref<128x512xbf16, #tpu.memory_space<vmem>>, vector<128x512xbf16>
    %cst_166 = arith.constant dense<0.000000e+00> : vector<8x512xf32>
    %512 = tpu.matmul %462, %511, %cst_166 {dimension_numbers = #tpu.dot_dimension_numbers<[1], [0], [0], [1], [0, 0, 1, 1], [], []>} : vector<8x128xbf16>, vector<128x512xbf16>, vector<8x512xf32> -> vector<8x512xf32>
    %513 = arith.addf %512, %510 : vector<8x512xf32>
    %514 = vector.extract_strided_slice %513 {offsets = [0, 0], sizes = [8, 384], strides = [1, 1]} : vector<8x512xf32> to vector<8x384xf32>
    %515 = math.tanh %514 : vector<8x384xf32>
    %cst_167 = arith.constant 5.000000e-01 : f32
    %516 = vector.broadcast %cst_167 : f32 to vector<8x384xf32>
    %517 = arith.mulf %516, %515 : vector<8x384xf32>
    %cst_168 = arith.constant 5.000000e-01 : f32
    %518 = vector.broadcast %cst_168 : f32 to vector<8x384xf32>
    %519 = arith.addf %517, %518 : vector<8x384xf32>
    %520 = vector.extract_strided_slice %513 {offsets = [0, 384], sizes = [8, 128], strides = [1, 1]} : vector<8x512xf32> to vector<8x128xf32>
    %521 = math.tanh %520 : vector<8x128xf32>
    %522 = vector.extract_strided_slice %519 {offsets = [0, 0], sizes = [8, 128], strides = [1, 1]} : vector<8x384xf32> to vector<8x128xf32>
    %523 = vector.extract_strided_slice %519 {offsets = [0, 128], sizes = [8, 128], strides = [1, 1]} : vector<8x384xf32> to vector<8x128xf32>
    %524 = vector.extract_strided_slice %519 {offsets = [0, 256], sizes = [8, 128], strides = [1, 1]} : vector<8x384xf32> to vector<8x128xf32>
    %525 = arith.mulf %523, %459 : vector<8x128xf32>
    %526 = arith.mulf %522, %521 : vector<8x128xf32>
    %527 = arith.addf %525, %526 : vector<8x128xf32>
    %528 = math.tanh %527 : vector<8x128xf32>
    %529 = arith.mulf %524, %528 : vector<8x128xf32>
    %530 = arith.truncf %529 : vector<8x128xf32> to vector<8x128xbf16>
    %531 = tpu.concatenate %530, %484 in 1 : vector<8x128xbf16>, vector<8x128xbf16> -> vector<8x256xbf16>
    %c0_169 = arith.constant 0 : index
    %c0_170 = arith.constant 0 : index
    %c0_171 = arith.constant 0 : index
    %532 = vector.load %arg4[%c0_169, %c0_170, %c0_171] : memref<2x256x512xbf16, #tpu.memory_space<vmem>>, vector<1x256x512xbf16>
    %533 = vector.shape_cast %532 : vector<1x256x512xbf16> to vector<256x512xbf16>
    %cst_172 = arith.constant dense<0.000000e+00> : vector<8x512xf32>
    %534 = tpu.matmul %531, %533, %cst_172 {dimension_numbers = #tpu.dot_dimension_numbers<[1], [0], [0], [1], [0, 0, 1, 1], [], []>} : vector<8x256xbf16>, vector<256x512xbf16>, vector<8x512xf32> -> vector<8x512xf32>
    %535 = arith.addf %534, %11 : vector<8x512xf32>
    %536 = vector.extract_strided_slice %535 {offsets = [0, 0], sizes = [8, 384], strides = [1, 1]} : vector<8x512xf32> to vector<8x384xf32>
    %537 = math.tanh %536 : vector<8x384xf32>
    %cst_173 = arith.constant 5.000000e-01 : f32
    %538 = vector.broadcast %cst_173 : f32 to vector<8x384xf32>
    %539 = arith.mulf %538, %537 : vector<8x384xf32>
    %cst_174 = arith.constant 5.000000e-01 : f32
    %540 = vector.broadcast %cst_174 : f32 to vector<8x384xf32>
    %541 = arith.addf %539, %540 : vector<8x384xf32>
    %542 = vector.extract_strided_slice %535 {offsets = [0, 384], sizes = [8, 128], strides = [1, 1]} : vector<8x512xf32> to vector<8x128xf32>
    %543 = math.tanh %542 : vector<8x128xf32>
    %544 = vector.extract_strided_slice %541 {offsets = [0, 0], sizes = [8, 128], strides = [1, 1]} : vector<8x384xf32> to vector<8x128xf32>
    %545 = vector.extract_strided_slice %541 {offsets = [0, 128], sizes = [8, 128], strides = [1, 1]} : vector<8x384xf32> to vector<8x128xf32>
    %546 = vector.extract_strided_slice %541 {offsets = [0, 256], sizes = [8, 128], strides = [1, 1]} : vector<8x384xf32> to vector<8x128xf32>
    %547 = arith.mulf %545, %481 : vector<8x128xf32>
    %548 = arith.mulf %544, %543 : vector<8x128xf32>
    %549 = arith.addf %547, %548 : vector<8x128xf32>
    %550 = math.tanh %549 : vector<8x128xf32>
    %551 = arith.mulf %546, %550 : vector<8x128xf32>
    %552 = arith.truncf %551 : vector<8x128xf32> to vector<8x128xbf16>
    %553 = tpu.concatenate %552, %506 in 1 : vector<8x128xbf16>, vector<8x128xbf16> -> vector<8x256xbf16>
    %c1_175 = arith.constant 1 : index
    %c0_176 = arith.constant 0 : index
    %c0_177 = arith.constant 0 : index
    %554 = vector.load %arg4[%c1_175, %c0_176, %c0_177] : memref<2x256x512xbf16, #tpu.memory_space<vmem>>, vector<1x256x512xbf16>
    %555 = vector.shape_cast %554 : vector<1x256x512xbf16> to vector<256x512xbf16>
    %cst_178 = arith.constant dense<0.000000e+00> : vector<8x512xf32>
    %556 = tpu.matmul %553, %555, %cst_178 {dimension_numbers = #tpu.dot_dimension_numbers<[1], [0], [0], [1], [0, 0, 1, 1], [], []>} : vector<8x256xbf16>, vector<256x512xbf16>, vector<8x512xf32> -> vector<8x512xf32>
    %557 = arith.addf %556, %15 : vector<8x512xf32>
    %558 = vector.extract_strided_slice %557 {offsets = [0, 0], sizes = [8, 384], strides = [1, 1]} : vector<8x512xf32> to vector<8x384xf32>
    %559 = math.tanh %558 : vector<8x384xf32>
    %cst_179 = arith.constant 5.000000e-01 : f32
    %560 = vector.broadcast %cst_179 : f32 to vector<8x384xf32>
    %561 = arith.mulf %560, %559 : vector<8x384xf32>
    %cst_180 = arith.constant 5.000000e-01 : f32
    %562 = vector.broadcast %cst_180 : f32 to vector<8x384xf32>
    %563 = arith.addf %561, %562 : vector<8x384xf32>
    %564 = vector.extract_strided_slice %557 {offsets = [0, 384], sizes = [8, 128], strides = [1, 1]} : vector<8x512xf32> to vector<8x128xf32>
    %565 = math.tanh %564 : vector<8x128xf32>
    %566 = vector.extract_strided_slice %563 {offsets = [0, 0], sizes = [8, 128], strides = [1, 1]} : vector<8x384xf32> to vector<8x128xf32>
    %567 = vector.extract_strided_slice %563 {offsets = [0, 128], sizes = [8, 128], strides = [1, 1]} : vector<8x384xf32> to vector<8x128xf32>
    %568 = vector.extract_strided_slice %563 {offsets = [0, 256], sizes = [8, 128], strides = [1, 1]} : vector<8x384xf32> to vector<8x128xf32>
    %569 = arith.mulf %567, %503 : vector<8x128xf32>
    %570 = arith.mulf %566, %565 : vector<8x128xf32>
    %571 = arith.addf %569, %570 : vector<8x128xf32>
    %572 = math.tanh %571 : vector<8x128xf32>
    %573 = arith.mulf %568, %572 : vector<8x128xf32>
    %574 = arith.truncf %573 : vector<8x128xf32> to vector<8x128xbf16>
    %c8_i32_181 = arith.constant 8 : i32
    %c0_182 = arith.constant 0 : index
    %c0_183 = arith.constant 0 : index
    %575 = vector.load %arg8[%c0_182, %c0_183] : memref<128x128xbf16, #tpu.memory_space<vmem>>, vector<128x128xbf16>
    %cst_184 = arith.constant dense<0.000000e+00> : vector<8x128xf32>
    %576 = tpu.matmul %574, %575, %cst_184 {dimension_numbers = #tpu.dot_dimension_numbers<[1], [0], [0], [1], [0, 0, 1, 1], [], []>} : vector<8x128xbf16>, vector<128x128xbf16>, vector<8x128xf32> -> vector<8x128xf32>
    %c0_185 = arith.constant 0 : index
    %c0_186 = arith.constant 0 : index
    %577 = vector.load %arg9[%c0_185, %c0_186] : memref<1x128xf32, #tpu.memory_space<vmem>>, vector<1x128xf32>
    %578 = vector.broadcast %577 : vector<1x128xf32> to vector<8x128xf32>
    %579 = arith.addf %576, %578 : vector<8x128xf32>
    %c0_187 = arith.constant 0 : index
    %c0_188 = arith.constant 0 : index
    %580 = vector.load %arg10[%c0_187, %c0_188] : memref<8x128xf32, #tpu.memory_space<vmem>>, vector<8x128xf32>
    tpu.vector_store %arg10[%c0_187, %c0_188], %579 {strides = array<i32>} : memref<8x128xf32, #tpu.memory_space<vmem>>, vector<8x128xf32>,
    return
  }
  func.func @transform_0(%arg0: i32) -> (i32, i32) {
    %c0_i32 = arith.constant 0 : i32
    %c0_i32_0 = arith.constant 0 : i32
    %c0_i32_1 = arith.constant 0 : i32
    return %c0_i32, %c0_i32_0 : i32, i32
  }
  func.func @transform_1(%arg0: i32) -> (i32, i32) {
    %c0_i32 = arith.constant 0 : i32
    %c0_i32_0 = arith.constant 0 : i32
    %c0_i32_1 = arith.constant 0 : i32
    return %c0_i32, %c0_i32_0 : i32, i32
  }
  func.func @transform_2(%arg0: i32) -> (i32, i32) {
    %c0_i32 = arith.constant 0 : i32
    %c0_i32_0 = arith.constant 0 : i32
    %c0_i32_1 = arith.constant 0 : i32
    return %c0_i32, %c0_i32_0 : i32, i32
  }
  func.func @transform_3(%arg0: i32) -> (i32, i32, i32) {
    %c0_i32 = arith.constant 0 : i32
    %c0_i32_0 = arith.constant 0 : i32
    %c0_i32_1 = arith.constant 0 : i32
    %c0_i32_2 = arith.constant 0 : i32
    return %c0_i32, %c0_i32_0, %c0_i32_1 : i32, i32, i32
  }
  func.func @transform_4(%arg0: i32) -> (i32, i32, i32) {
    %c0_i32 = arith.constant 0 : i32
    %c0_i32_0 = arith.constant 0 : i32
    %c0_i32_1 = arith.constant 0 : i32
    %c0_i32_2 = arith.constant 0 : i32
    return %c0_i32, %c0_i32_0, %c0_i32_1 : i32, i32, i32
  }
  func.func @transform_5(%arg0: i32) -> (i32, i32, i32) {
    %c0_i32 = arith.constant 0 : i32
    %c0_i32_0 = arith.constant 0 : i32
    %c0_i32_1 = arith.constant 0 : i32
    %c0_i32_2 = arith.constant 0 : i32
    return %c0_i32, %c0_i32_0, %c0_i32_1 : i32, i32, i32
  }
  func.func @transform_6(%arg0: i32) -> (i32, i32, i32) {
    %c0_i32 = arith.constant 0 : i32
    %c0_i32_0 = arith.constant 0 : i32
    %c0_i32_1 = arith.constant 0 : i32
    %c0_i32_2 = arith.constant 0 : i32
    return %c0_i32, %c0_i32_0, %c0_i32_1 : i32, i32, i32
  }
  func.func @transform_7(%arg0: i32) -> (i32, i32) {
    %c0_i32 = arith.constant 0 : i32
    %c0_i32_0 = arith.constant 0 : i32
    %c0_i32_1 = arith.constant 0 : i32
    return %c0_i32, %c0_i32_0 : i32, i32
  }
  func.func @transform_8(%arg0: i32) -> (i32, i32) {
    %c0_i32 = arith.constant 0 : i32
    %c0_i32_0 = arith.constant 0 : i32
    %c0_i32_1 = arith.constant 0 : i32
    return %c0_i32, %c0_i32_0 : i32, i32
  }
  func.func @transform_9(%arg0: i32) -> (i32, i32) {
    %c0_i32 = arith.constant 0 : i32
    %c0_i32_0 = arith.constant 0 : i32
    %c0_i32_1 = arith.constant 0 : i32
    return %c0_i32, %c0_i32_0 : i32, i32
  }
}

</mosaic_0001>

<bundles_post_ra>
// kernel: tpu_custom_call.1
= control target key start
LH: loop header
LB: loop body
LE: loop exit
PB: predicated region body
PF: predicated region fallthrough
CT: control target
= control target key end

     0   :  { %14 = vsyncpa [#allocation4], 0  ;;  %s8635_s0 = inlined_call_operand.hbm [shape: bf16[64,128], index: 0, kind: input, shape index: {}]   ;;  %s8636_s1 = inlined_call_operand.hbm [shape: bf16[128,512], index: 1, kind: input, shape index: {}]   ;;  %s8637_s2 = inlined_call_operand.hbm [shape: bf16[128,512], index: 2, kind: input, shape index: {}]   ;;  %s8638_s3 = inlined_call_operand.hbm [shape: bf16[2,256,512], index: 3, kind: input, shape index: {}]   ;;  %s8639_s4 = inlined_call_operand.vmem [shape: f32[3,1,512], index: 4, kind: input, shape index: {}]   ;;  %s8640_s5 = inlined_call_operand.hbm [shape: f32[3,8,128], index: 5, kind: input, shape index: {}]   ;;  %s8641_s6 = inlined_call_operand.hbm [shape: f32[3,8,128], index: 6, kind: input, shape index: {}]   ;;  %s8642_s7 = inlined_call_operand.hbm [shape: bf16[128,128], index: 7, kind: input, shape index: {}]   ;;  %s8643_s8 = inlined_call_operand.vmem [shape: f32[1,128], index: 8, kind: input, shape index: {}]   ;;  %s8644_s9 = inlined_call_operand.hbm [shape: f32[8,128], index: 9, kind: output, shape index: {}]  }
   0x1   :  { %15 = vsyncpa [#allocation7], 0 }
   0x2   :  { %16 = vsyncpa [#allocation10], 0 }
   0x3   :  { %17 = vsyncpa [#allocation13], 0 }
   0x4   :  { %18 = vsyncpa [#allocation5], 0  ;;  %s5609_s30 = smov [#allocation6]   ;;  %s5423_s13 = scalar_lea.hbm %s8636_s1, 4096 }
   0x5   :  { %s36_s10 = sshll.u32 %s5609_s30, 4  ;;  %p5424_p0 = scmp.ne.s32.totalorder %s8636_s1, %s5423_s13  ;;  %s37_s10 = int_to_ptr.vmem [resolvable:$true] %s36_s10 }
   0x6   :  { %p5427_p1 = scmp.lt.u32.totalorder %s5423_s13, %s8636_s1 }
   0x8   :  { %p5429_p2 = pnand %p5427_p1, %p5424_p0 }
   0xa   :  { %5432 = shalt.err (!%p5429_p2)
}
   0xb   :  { %s5433_s18 = scalar_lea.vmem %s37_s10, 4096  ;;  %p5438_p4 = scmp.lt.s32.totalorder %s37_s10, %s37_s10 }
   0xc   :  { %p5434_p3 = scmp.ne.s32.totalorder %s37_s10, %s5433_s18  ;;  %p5439_p5 = scmp.lt.s32.totalorder %s5433_s18, %s5433_s18 }
   0xe   :  { %p5440_p6 = por %p5439_p5, %p5438_p4 }
  0x10   :  { %p5441_p7 = pnand %p5440_p6, %p5434_p3 }
  0x12   :  { %5444 = shalt.err (!%p5441_p7)
}
  0x13   :  { %s5610_s19 = smov 256   ;;  %s5611_s20 = smov 16  }
  0x14   :  { %42 = dma.hbm_to_vmem [thread:$0]  %s8636_s1, 4096, %s37_s10, [#allocation7], %s5610_s19, %s5610_s19, %s5611_s20  }
  0x15   :  { %s5612_s23 = smov [#allocation9]   ;;  %s5445_s27 = scalar_lea.hbm %s8638_s3, 16384 }
  0x16   :  { %s60_s24 = sshll.u32 %s5612_s23, 4  ;;  %p5446_p8 = scmp.ne.s32.totalorder %s8638_s3, %s5445_s27  ;;  %s61_s24 = int_to_ptr.vmem [resolvable:$true] %s60_s24 }
  0x17   :  { %p5449_p9 = scmp.lt.u32.totalorder %s5445_s27, %s8638_s3 }
  0x19   :  { %p5451_p10 = pnand %p5449_p9, %p5446_p8 }
  0x1b   :  { %5454 = shalt.err (!%p5451_p10)
}
  0x1c   :  { %s5455_s12 = scalar_lea.vmem %s61_s24, 16384  ;;  %p5460_p12 = scmp.lt.s32.totalorder %s61_s24, %s61_s24 }
  0x1d   :  { %p5456_p11 = scmp.ne.s32.totalorder %s61_s24, %s5455_s12  ;;  %p5461_p13 = scmp.lt.s32.totalorder %s5455_s12, %s5455_s12 }
  0x1f   :  { %p5462_p0 = por %p5461_p13, %p5460_p12 }
  0x21   :  { %p5463_p1 = pnand %p5462_p0, %p5456_p11 }
  0x23   :  { %5466 = shalt.err (!%p5463_p1)
}
  0x24   :  { %66 = dma.hbm_to_vmem [thread:$0]  %s8638_s3, 16384, %s61_s24, [#allocation10], %s5610_s19, %s5610_s19, %s5611_s20  }
  0x25   :  { %s5613_s13 = smov [#allocation12]   ;;  %s5614_s15 = smov [#allocation3]  }
  0x26   :  { %s86_s14 = sshll.u32 %s5613_s13, 4  ;;  %s24_s16 = sshll.u32 %s5614_s15, 4  ;;  %s87_s14 = int_to_ptr.vmem [resolvable:$true] %s86_s14  ;;  %s5706_s16 = int_to_ptr.vmem [resolvable:$true] %s24_s16 }
  0x27   :  { %s5467_s21 = scalar_lea.hbm %s8641_s6, 384 }
  0x28   :  { %p5468_p2 = scmp.ne.s32.totalorder %s8641_s6, %s5467_s21  ;;  %p5471_p3 = scmp.lt.u32.totalorder %s5467_s21, %s8641_s6 }
  0x2a   :  { %p5473_p4 = pnand %p5471_p3, %p5468_p2 }
  0x2c   :  { %5476 = shalt.err (!%p5473_p4)
}
  0x2d   :  { %s5477_s3 = scalar_lea.vmem %s87_s14, 384  ;;  %p5482_p6 = scmp.lt.s32.totalorder %s87_s14, %s87_s14 }
  0x2e   :  { %p5478_p5 = scmp.ne.s32.totalorder %s87_s14, %s5477_s3  ;;  %p5483_p7 = scmp.lt.s32.totalorder %s5477_s3, %s5477_s3 }
  0x30   :  { %p5484_p8 = por %p5483_p7, %p5482_p6 }
  0x32   :  { %p5485_p9 = pnand %p5484_p8, %p5478_p5 }
  0x34   :  { %5488 = shalt.err (!%p5485_p9)
}
  0x35   :  { %s5615_s24 = smov 128   ;;  %s5616_s27 = smov 8  }
  0x36   :  { %92 = dma.hbm_to_vmem [thread:$0]  %s8641_s6, 384, %s87_s14, [#allocation13], %s5615_s24, %s5615_s24, %s5616_s27  }
  0x37   :  { %s5489_s12 = scalar_lea.hbm %s8635_s0, 512 }
  0x38   :  { %p5490_p10 = scmp.ne.s32.totalorder %s8635_s0, %s5489_s12  ;;  %p5493_p11 = scmp.lt.u32.totalorder %s5489_s12, %s8635_s0 }
  0x3a   :  { %p5495_p12 = pnand %p5493_p11, %p5490_p10 }
  0x3c   :  { %5498 = shalt.err (!%p5495_p12)
}
  0x3d   :  { %s5499_s17 = scalar_lea.vmem %s5706_s16, 512  ;;  %p5504_p0 = scmp.lt.s32.totalorder %s5706_s16, %s5706_s16 }
  0x3e   :  { %p5500_p13 = scmp.ne.s32.totalorder %s5706_s16, %s5499_s17  ;;  %p5505_p1 = scmp.lt.s32.totalorder %s5499_s17, %s5499_s17 }
  0x40   :  { %p5506_p2 = por %p5505_p1, %p5504_p0 }
  0x42   :  { %p5507_p3 = pnand %p5506_p2, %p5500_p13 }
  0x44   :  { %5510 = shalt.err (!%p5507_p3)
}
  0x45   :  { %s5617_s6 = smov 64   ;;  %s5618_s14 = smov 4  }
  0x46   :  { %30 = dma.hbm_to_vmem [thread:$0]  %s8635_s0, 512, %s5706_s16, [#allocation4], %s5617_s6, %s5617_s6, %s5618_s14  }
  0x47   :  { %s5619_s22 = smov [#allocation8]   ;;  %s5620_s25 = smov [#allocation11]  }
  0x48   :  { %s48_s23 = sshll.u32 %s5619_s22, 4  ;;  %s74_s26 = sshll.u32 %s5620_s25, 4  ;;  %s49_s23 = int_to_ptr.vmem [resolvable:$true] %s48_s23  ;;  %s5743_s26 = int_to_ptr.vmem [resolvable:$true] %s74_s26 }
  0x49   :  { %s5511_s29 = scalar_lea.hbm %s8637_s2, 4096 }
  0x4a   :  { %p5512_p4 = scmp.ne.s32.totalorder %s8637_s2, %s5511_s29  ;;  %p5515_p5 = scmp.lt.u32.totalorder %s5511_s29, %s8637_s2 }
  0x4c   :  { %p5517_p6 = pnand %p5515_p5, %p5512_p4 }
  0x4e   :  { %5520 = shalt.err (!%p5517_p6)
}
  0x4f   :  { %s5521_s0 = scalar_lea.vmem %s49_s23, 4096  ;;  %p5526_p8 = scmp.lt.s32.totalorder %s49_s23, %s49_s23 }
  0x50   :  { %p5522_p7 = scmp.ne.s32.totalorder %s49_s23, %s5521_s0  ;;  %p5527_p9 = scmp.lt.s32.totalorder %s5521_s0, %s5521_s0 }
  0x52   :  { %p5528_p10 = por %p5527_p9, %p5526_p8 }
  0x54   :  { %p5529_p11 = pnand %p5528_p10, %p5522_p7 }
  0x56   :  { %5532 = shalt.err (!%p5529_p11)
}
  0x57   :  { %54 = dma.hbm_to_vmem [thread:$0]  %s8637_s2, 4096, %s49_s23, [#allocation7], %s5610_s19, %s5610_s19, %s5611_s20  }
  0x58   :  { %s5533_s17 = scalar_lea.hbm %s8640_s5, 384 }
  0x59   :  { %p5534_p12 = scmp.ne.s32.totalorder %s8640_s5, %s5533_s17  ;;  %p5537_p13 = scmp.lt.u32.totalorder %s5533_s17, %s8640_s5 }
  0x5b   :  { %p5539_p0 = pnand %p5537_p13, %p5534_p12 }
  0x5d   :  { %5542 = shalt.err (!%p5539_p0)
}
  0x5e   :  { %s5543_s3 = scalar_lea.vmem %s5743_s26, 384  ;;  %p5548_p2 = scmp.lt.s32.totalorder %s5743_s26, %s5743_s26 }
  0x5f   :  { %p5544_p1 = scmp.ne.s32.totalorder %s5743_s26, %s5543_s3  ;;  %p5549_p3 = scmp.lt.s32.totalorder %s5543_s3, %s5543_s3 }
  0x61   :  { %p5550_p4 = por %p5549_p3, %p5548_p2 }
  0x63   :  { %p5551_p5 = pnand %p5550_p4, %p5544_p1 }
  0x65   :  { %5554 = shalt.err (!%p5551_p5)
}
  0x66   :  { %80 = dma.hbm_to_vmem [thread:$0]  %s8640_s5, 384, %s5743_s26, [#allocation10], %s5615_s24, %s5615_s24, %s5616_s27  }
  0x67   :  { %s5621_s20 = smov [#allocation14]   ;;  %s5555_s30 = scalar_lea.hbm %s8642_s7, 1024 }
  0x68   :  { %s98_s23 = sshll.u32 %s5621_s20, 4  ;;  %p5556_p6 = scmp.ne.s32.totalorder %s8642_s7, %s5555_s30  ;;  %s99_s23 = int_to_ptr.vmem [resolvable:$true] %s98_s23 }
  0x69   :  { %p5559_p7 = scmp.lt.u32.totalorder %s5555_s30, %s8642_s7 }
  0x6b   :  { %p5561_p8 = pnand %p5559_p7, %p5556_p6 }
  0x6d   :  { %5564 = shalt.err (!%p5561_p8)
}
  0x6e   :  { %s5565_s16 = scalar_lea.vmem %s99_s23, 1024  ;;  %p5570_p10 = scmp.lt.s32.totalorder %s99_s23, %s99_s23 }
  0x6f   :  { %p5566_p9 = scmp.ne.s32.totalorder %s99_s23, %s5565_s16  ;;  %p5571_p11 = scmp.lt.s32.totalorder %s5565_s16, %s5565_s16 }
  0x71   :  { %p5572_p12 = por %p5571_p11, %p5570_p10 }
  0x73   :  { %p5573_p13 = pnand %p5572_p12, %p5566_p9 }
  0x75   :  { %5576 = shalt.err (!%p5573_p13)
}
  0x76   :  { %104 = dma.hbm_to_vmem [thread:$0]  %s8642_s7, 1024, %s99_s23, [#allocation13], %s5617_s6, %s5617_s6, %s5618_s14  }
  0x77   :  { %5599 = dma.done.wait [#allocation4], 512  }
  0x78   :  { %5600 = vsyncadd [#allocation4], 4294966784 }
  0x79   :  { %5601 = dma.done.wait [#allocation7], 8192  }
  0x7a   :  { %5602 = vsyncadd [#allocation7], 4294959104 }
  0x7b   :  { %5603 = dma.done.wait [#allocation10], 16768  }
  0x7c   :  { %5604 = vsyncadd [#allocation10], 4294950528 }
  0x7d   :  { %5605 = dma.done.wait [#allocation13], 1408  }
  0x7e   :  { %5606 = vsyncadd [#allocation13], 4294965888  ;;  %v8645_v0 = vmov 0   ;;  %v4371_v1 = vld [vmem:[#allocation6 + $0x4] ss:$16 sps:$4 sm:$0xff]   ;;  %v4432_v44 = vld [vmem:[#allocation3 + $0x8] sm:$0xff]  }
  0x7f   :  { %407 = vmatprep.mubr.bf16.mxu0 %v8645_v0  ;;  %480 = vmatprep.mubr.bf16.mxu1 %v8645_v0  ;;  %v4373_v2 = vld [vmem:[#allocation6 + $0xc] ss:$16 sps:$4 sm:$0xff]   ;;  %v4375_v3 = vld [vmem:[#allocation6] ss:$16 sps:$4 sm:$0xff]   ;;  %v4376_v4 = vld [vmem:[#allocation6 + $0x8] ss:$16 sps:$4 sm:$0xff]  }
  0x80   :  { %375 = vmatprep.subr.bf16.mxu0 %v4371_v1  ;;  %448 = vmatprep.subr.bf16.mxu1 %v4373_v2  ;;  %v4377_v5 = vld [vmem:[#allocation6 + $0x24] ss:$16 sps:$4 sm:$0xff]   ;;  %v4379_v6 = vld [vmem:[#allocation6 + $0x2c] ss:$16 sps:$4 sm:$0xff]   ;;  %v4381_v7 = vld [vmem:[#allocation6 + $0x20] ss:$16 sps:$4 sm:$0xff]  }
  0x81   :  { %376 = vmatpush1.bf16.msra.mxu0 %v4375_v3  ;;  %449 = vmatpush1.bf16.msra.mxu1 %v4376_v4  ;;  %v4382_v8 = vld [vmem:[#allocation6 + $0x28] ss:$16 sps:$4 sm:$0xff]   ;;  %v4383_v9 = vld [vmem:[#allocation6 + $0x44] ss:$16 sps:$4 sm:$0xff]   ;;  %v4385_v10 = vld [vmem:[#allocation6 + $0x4c] ss:$16 sps:$4 sm:$0xff]  }
  0x82   :  { %377 = vmatprep.subr.bf16.mxu0 %v4377_v5  ;;  %450 = vmatprep.subr.bf16.mxu1 %v4379_v6  ;;  %v4387_v11 = vld [vmem:[#allocation6 + $0x40] ss:$16 sps:$4 sm:$0xff]   ;;  %v4388_v12 = vld [vmem:[#allocation6 + $0x48] ss:$16 sps:$4 sm:$0xff]   ;;  %v4389_v13 = vld [vmem:[#allocation6 + $0x64] ss:$16 sps:$4 sm:$0xff]  }
  0x83   :  { %v4391_v14 = vld [vmem:[#allocation6 + $0x6c] ss:$16 sps:$4 sm:$0xff]   ;;  %v4393_v15 = vld [vmem:[#allocation6 + $0x60] ss:$16 sps:$4 sm:$0xff]   ;;  %v4394_v16 = vld [vmem:[#allocation6 + $0x68] ss:$16 sps:$4 sm:$0xff]  }
  0x84   :  { %v4395_v17 = vld [vmem:[#allocation6 + $0x84] ss:$16 sps:$4 sm:$0xff]   ;;  %v4397_v18 = vld [vmem:[#allocation6 + $0x8c] ss:$16 sps:$4 sm:$0xff]   ;;  %v4399_v19 = vld [vmem:[#allocation6 + $0x80] ss:$16 sps:$4 sm:$0xff]  }
  0x85   :  { %378 = vmatpush1.bf16.msra.mxu0 %v4381_v7  ;;  %451 = vmatpush1.bf16.msra.mxu1 %v4382_v8  ;;  %v4400_v20 = vld [vmem:[#allocation6 + $0x88] ss:$16 sps:$4 sm:$0xff]   ;;  %v4401_v21 = vld [vmem:[#allocation6 + $0xa4] ss:$16 sps:$4 sm:$0xff]   ;;  %v4403_v22 = vld [vmem:[#allocation6 + $0xac] ss:$16 sps:$4 sm:$0xff]  }
  0x86   :  { %379 = vmatprep.subr.bf16.mxu0 %v4383_v9  ;;  %452 = vmatprep.subr.bf16.mxu1 %v4385_v10  ;;  %v4405_v23 = vld [vmem:[#allocation6 + $0xa0] ss:$16 sps:$4 sm:$0xff]   ;;  %v4406_v24 = vld [vmem:[#allocation6 + $0xa8] ss:$16 sps:$4 sm:$0xff]   ;;  %v4407_v25 = vld [vmem:[#allocation6 + $0xc4] ss:$16 sps:$4 sm:$0xff]  }
  0x87   :  { %v4409_v26 = vld [vmem:[#allocation6 + $0xcc] ss:$16 sps:$4 sm:$0xff]   ;;  %v4411_v27 = vld [vmem:[#allocation6 + $0xc0] ss:$16 sps:$4 sm:$0xff]   ;;  %v4412_v28 = vld [vmem:[#allocation6 + $0xc8] ss:$16 sps:$4 sm:$0xff]  }
  0x88   :  { %v4413_v29 = vld [vmem:[#allocation6 + $0xe4] ss:$16 sps:$4 sm:$0xff]   ;;  %v4415_v30 = vld [vmem:[#allocation6 + $0xec] ss:$16 sps:$4 sm:$0xff]   ;;  %v4417_v31 = vld [vmem:[#allocation6 + $0xe0] ss:$16 sps:$4 sm:$0xff]  }
  0x89   :  { %380 = vmatpush1.bf16.msra.mxu0 %v4387_v11  ;;  %453 = vmatpush1.bf16.msra.mxu1 %v4388_v12  ;;  %v4418_v32 = vld [vmem:[#allocation6 + $0xe8] ss:$16 sps:$4 sm:$0xff]   ;;  %v4420_v33 = vld [vmem:[#allocation8 + $0x4] ss:$16 sps:$4 sm:$0xff]   ;;  %v4422_v34 = vld [vmem:[#allocation8 + $0xc] ss:$16 sps:$4 sm:$0xff]  }
  0x8a   :  { %381 = vmatprep.subr.bf16.mxu0 %v4389_v13  ;;  %454 = vmatprep.subr.bf16.mxu1 %v4391_v14  ;;  %v4419_v35 = vld [vmem:[#allocation3] sm:$0xff]   ;;  %v4425_v37 = vld [vmem:[#allocation8 + $0x8] ss:$16 sps:$4 sm:$0xff]   ;;  %v4428_v39 = vld [vmem:[#allocation8 + $0x2c] ss:$16 sps:$4 sm:$0xff]   ;;  %vm5624_vm0 = vmmov 0  }
  0x8b   :  { %v4424_v36 = vld [vmem:[#allocation8] ss:$16 sps:$4 sm:$0xff]   ;;  %v4426_v38 = vld [vmem:[#allocation8 + $0x24] ss:$16 sps:$4 sm:$0xff]   ;;  %v4431_v41 = vld [vmem:[#allocation8 + $0x28] ss:$16 sps:$4 sm:$0xff]  }
  0x8c   :  { %v4430_v40 = vld [vmem:[#allocation8 + $0x20] ss:$16 sps:$4 sm:$0xff]   ;;  %v4433_v42 = vld [vmem:[#allocation8 + $0x44] ss:$16 sps:$4 sm:$0xff]   ;;  %v4435_v43 = vld [vmem:[#allocation8 + $0x4c] ss:$16 sps:$4 sm:$0xff]  }
  0x8d   :  { %382 = vmatpush1.bf16.msra.mxu0 %v4393_v15  ;;  %455 = vmatpush1.bf16.msra.mxu1 %v4394_v16  ;;  %v4437_v45 = vld [vmem:[#allocation8 + $0x40] ss:$16 sps:$4 sm:$0xff]   ;;  %v4438_v46 = vld [vmem:[#allocation8 + $0x48] ss:$16 sps:$4 sm:$0xff]   ;;  %v4439_v47 = vld [vmem:[#allocation8 + $0x64] ss:$16 sps:$4 sm:$0xff]  }
  0x8e   :  { %383 = vmatprep.subr.bf16.mxu0 %v4395_v17  ;;  %456 = vmatprep.subr.bf16.mxu1 %v4397_v18  ;;  %v4441_v48 = vld [vmem:[#allocation8 + $0x6c] ss:$16 sps:$4 sm:$0xff]   ;;  %v4443_v49 = vld [vmem:[#allocation8 + $0x60] ss:$16 sps:$4 sm:$0xff]   ;;  %v4444_v50 = vld [vmem:[#allocation8 + $0x68] ss:$16 sps:$4 sm:$0xff]  }
  0x8f   :  { %v4446_v51 = vld [vmem:[#allocation8 + $0x84] ss:$16 sps:$4 sm:$0xff]   ;;  %v4448_v52 = vld [vmem:[#allocation8 + $0x8c] ss:$16 sps:$4 sm:$0xff]   ;;  %v4450_v54 = vld [vmem:[#allocation8 + $0x80] ss:$16 sps:$4 sm:$0xff]  }
  0x90   :  { %v4445_v53 = vld [vmem:[#allocation3 + $0x10] sm:$0xff]   ;;  %v4451_v55 = vld [vmem:[#allocation8 + $0x88] ss:$16 sps:$4 sm:$0xff]   ;;  %v4454_v57 = vld [vmem:[#allocation8 + $0xac] ss:$16 sps:$4 sm:$0xff]   ;;  %s5625_s15 = smov [#allocation15]  }
  0x91   :  { %384 = vmatpush1.bf16.msra.mxu0 %v4399_v19  ;;  %457 = vmatpush1.bf16.msra.mxu1 %v4400_v20  ;;  %v4452_v56 = vld [vmem:[#allocation8 + $0xa4] ss:$16 sps:$4 sm:$0xff]   ;;  %v4456_v58 = vld [vmem:[#allocation8 + $0xa0] ss:$16 sps:$4 sm:$0xff]   ;;  %v4457_v59 = vld [vmem:[#allocation8 + $0xa8] ss:$16 sps:$4 sm:$0xff]  }
  0x92   :  { %385 = vmatprep.subr.bf16.mxu0 %v4401_v21  ;;  %458 = vmatprep.subr.bf16.mxu1 %v4403_v22  ;;  %v4459_v60 = vld [vmem:[#allocation8 + $0xc4] ss:$16 sps:$4 sm:$0xff]   ;;  %v4461_v61 = vld [vmem:[#allocation8 + $0xcc] ss:$16 sps:$4 sm:$0xff]   ;;  %v4463_v63 = vld [vmem:[#allocation8 + $0xc0] ss:$16 sps:$4 sm:$0xff]  }
  0x93   :  { %v4458_v62 = vld [vmem:[#allocation3 + $0x18] sm:$0xff]   ;;  %v4465_v2 = vld [vmem:[#allocation8 + $0xe4] ss:$16 sps:$4 sm:$0xff]   ;;  %v4469_v4 = vld [vmem:[#allocation8 + $0xe0] ss:$16 sps:$4 sm:$0xff]   ;;  %s4099_s17 = sshll.u32 %s5625_s15, 4  ;;  %s4100_s17 = int_to_ptr.vmem [resolvable:$true] %s4099_s17 }
  0x94   :  { %v4464_v1 = vld [vmem:[#allocation8 + $0xc8] ss:$16 sps:$4 sm:$0xff]   ;;  %v4467_v3 = vld [vmem:[#allocation8 + $0xec] ss:$16 sps:$4 sm:$0xff]   ;;  %v599_v6 = vld [vmem:[#allocation11] sm:$0xff]  ;;  %s5577_s18 = scalar_lea.vmem %s4100_s17, 128  ;;  %p5582_p1 = scmp.lt.s32.totalorder %s4100_s17, %s4100_s17 }
  0x95   :  { %386 = vmatpush1.bf16.msra.mxu0 %v4405_v23  ;;  %459 = vmatpush1.bf16.msra.mxu1 %v4406_v24  ;;  %v4470_v5 = vld [vmem:[#allocation8 + $0xe8] ss:$16 sps:$4 sm:$0xff]   ;;  %v600_v7 = vpack.c.bf16 %v599_v6, %v599_v6  ;;  %v5805_v8 = vld [vmem:[#allocation9 + $0x4] ss:$16 sps:$4 sm:$0xff]   ;;  %v5807_v9 = vld [vmem:[#allocation9 + $0xc] ss:$16 sps:$4 sm:$0xff]   ;;  %p5578_p0 = scmp.ne.s32.totalorder %s4100_s17, %s5577_s18  ;;  %p5583_p2 = scmp.lt.s32.totalorder %s5577_s18, %s5577_s18 }
  0x96   :  { %387 = vmatprep.subr.bf16.mxu0 %v4407_v25  ;;  %460 = vmatprep.subr.bf16.mxu1 %v4409_v26  ;;  %v5809_v10 = vld [vmem:[#allocation9] ss:$16 sps:$4 sm:$0xff]   ;;  %v5811_v11 = vld [vmem:[#allocation9 + $0x8] ss:$16 sps:$4 sm:$0xff]   ;;  %v5817_v12 = vld [vmem:[#allocation9 + $0x24] ss:$16 sps:$4 sm:$0xff]  }
  0x97   :  { %v5819_v13 = vld [vmem:[#allocation9 + $0x2c] ss:$16 sps:$4 sm:$0xff]   ;;  %v5821_v14 = vld [vmem:[#allocation9 + $0x20] ss:$16 sps:$4 sm:$0xff]   ;;  %v5823_v15 = vld [vmem:[#allocation9 + $0x28] ss:$16 sps:$4 sm:$0xff]   ;;  %p5584_p3 = por %p5583_p2, %p5582_p1 }
  0x98   :  { %v5829_v16 = vld [vmem:[#allocation9 + $0x44] ss:$16 sps:$4 sm:$0xff]   ;;  %v5831_v17 = vld [vmem:[#allocation9 + $0x4c] ss:$16 sps:$4 sm:$0xff]   ;;  %v5833_v18 = vld [vmem:[#allocation9 + $0x40] ss:$16 sps:$4 sm:$0xff]  }
  0x99   :  { %388 = vmatpush1.bf16.msra.mxu0 %v4411_v27  ;;  %461 = vmatpush1.bf16.msra.mxu1 %v4412_v28  ;;  %v5835_v19 = vld [vmem:[#allocation9 + $0x48] ss:$16 sps:$4 sm:$0xff]   ;;  %v5841_v20 = vld [vmem:[#allocation9 + $0x64] ss:$16 sps:$4 sm:$0xff]   ;;  %v5843_v21 = vld [vmem:[#allocation9 + $0x6c] ss:$16 sps:$4 sm:$0xff]   ;;  %p5585_p4 = pnand %p5584_p3, %p5578_p0 }
  0x9a   :  { %389 = vmatprep.subr.bf16.mxu0 %v4413_v29  ;;  %462 = vmatprep.subr.bf16.mxu1 %v4415_v30  ;;  %v5845_v22 = vld [vmem:[#allocation9 + $0x60] ss:$16 sps:$4 sm:$0xff]   ;;  %v5847_v23 = vld [vmem:[#allocation9 + $0x68] ss:$16 sps:$4 sm:$0xff]   ;;  %v5853_v24 = vld [vmem:[#allocation9 + $0x84] ss:$16 sps:$4 sm:$0xff]  }
  0x9b   :  { %v5855_v25 = vld [vmem:[#allocation9 + $0x8c] ss:$16 sps:$4 sm:$0xff]   ;;  %v5857_v26 = vld [vmem:[#allocation9 + $0x80] ss:$16 sps:$4 sm:$0xff]   ;;  %v5859_v27 = vld [vmem:[#allocation9 + $0x88] ss:$16 sps:$4 sm:$0xff]  }
  0x9c   :  { %v5865_v28 = vld [vmem:[#allocation9 + $0xa4] ss:$16 sps:$4 sm:$0xff]   ;;  %v5867_v29 = vld [vmem:[#allocation9 + $0xac] ss:$16 sps:$4 sm:$0xff]   ;;  %v5869_v30 = vld [vmem:[#allocation9 + $0xa0] ss:$16 sps:$4 sm:$0xff]  }
  0x9d   :  { %390 = vmatpush1.bf16.msra.mxu0 %v4417_v31  ;;  %463 = vmatpush1.bf16.msra.mxu1 %v4418_v32  ;;  %v5871_v31 = vld [vmem:[#allocation9 + $0xa8] ss:$16 sps:$4 sm:$0xff]   ;;  %v5877_v32 = vld [vmem:[#allocation9 + $0xc4] ss:$16 sps:$4 sm:$0xff]  }
  0x9e   :  { %811 = vmatprep.subr.bf16.mxu0 %v4420_v33  ;;  %852 = vmatprep.subr.bf16.mxu1 %v4422_v34  ;;  %v5879_v33 = vld [vmem:[#allocation9 + $0xcc] ss:$16 sps:$4 sm:$0xff]   ;;  %v5881_v34 = vld [vmem:[#allocation9 + $0xc0] ss:$16 sps:$4 sm:$0xff]  }
  0xa0   :  { %408 = vmatmul.mubr.bf16.vlgmr.msra.gmra.mrb[0].mxu0 %v4419_v35  ;;  %481 = vmatmul.mubr.bf16.vlgmr.msra.gmra.mrb[0].mxu1 %v4419_v35  ;;  %v5883_v35 = vld [vmem:[#allocation9 + $0xc8] ss:$16 sps:$4 sm:$0xff]  }
  0xa1   :  { %812 = vmatpush1.bf16.msra.mxu0 %v4424_v36  ;;  %853 = vmatpush1.bf16.msra.mxu1 %v4425_v37  ;;  %v5889_v36 = vld [vmem:[#allocation9 + $0xe4] ss:$16 sps:$4 sm:$0xff]   ;;  %v5891_v37 = vld [vmem:[#allocation9 + $0xec] ss:$16 sps:$4 sm:$0xff]  }
  0xa2   :  { %813 = vmatprep.subr.bf16.mxu0 %v4426_v38  ;;  %854 = vmatprep.subr.bf16.mxu1 %v4428_v39  ;;  %v5893_v38 = vld [vmem:[#allocation9 + $0xe0] ss:$16 sps:$4 sm:$0xff]   ;;  %v5895_v39 = vld [vmem:[#allocation9 + $0xe8] ss:$16 sps:$4 sm:$0xff]  }
  0xa3   :  { %417 = vmatprep.mubr.bf16.mxu0 %v8645_v0  ;;  %490 = vmatprep.mubr.bf16.mxu1 %v8645_v0 }
  0xa5   :  { %814 = vmatpush1.bf16.msra.mxu0 %v4430_v40  ;;  %855 = vmatpush1.bf16.msra.mxu1 %v4431_v41  ;;  %v5901_v40 = vld [vmem:[#allocation9 + $0x104] ss:$16 sps:$4 sm:$0xff]   ;;  %v5903_v41 = vld [vmem:[#allocation9 + $0x10c] ss:$16 sps:$4 sm:$0xff]  }
  0xa6   :  { %815 = vmatprep.subr.bf16.mxu0 %v4433_v42  ;;  %856 = vmatprep.subr.bf16.mxu1 %v4435_v43  ;;  %v5905_v42 = vld [vmem:[#allocation9 + $0x100] ss:$16 sps:$4 sm:$0xff]   ;;  %v5907_v43 = vld [vmem:[#allocation9 + $0x108] ss:$16 sps:$4 sm:$0xff]  }
  0xa8   :  { %418 = vmatmul.mubr.bf16.gmra.mrb[4].mxu0 %v4432_v44  ;;  %491 = vmatmul.mubr.bf16.gmra.mrb[4].mxu1 %v4432_v44  ;;  %v5913_v44 = vld [vmem:[#allocation9 + $0x124] ss:$16 sps:$4 sm:$0xff]  }
  0xa9   :  { %816 = vmatpush1.bf16.msra.mxu0 %v4437_v45  ;;  %857 = vmatpush1.bf16.msra.mxu1 %v4438_v46  ;;  %9077 = vst [vmem:[#allocation21_spill] sm:$0xff] %v5913_v44  ;;  %v5915_v45 = vld [vmem:[#allocation9 + $0x12c] ss:$16 sps:$4 sm:$0xff]   ;;  %v5917_v46 = vld [vmem:[#allocation9 + $0x120] ss:$16 sps:$4 sm:$0xff]  }
  0xaa   :  { %817 = vmatprep.subr.bf16.mxu0 %v4439_v47  ;;  %858 = vmatprep.subr.bf16.mxu1 %v4441_v48  ;;  %9078 = vst [vmem:[#allocation22_spill] sm:$0xff] %v5915_v45  ;;  %9079 = vst [vmem:[#allocation23_spill] sm:$0xff] %v5917_v46  ;;  %v5919_v47 = vld [vmem:[#allocation9 + $0x128] ss:$16 sps:$4 sm:$0xff]   ;;  %v5925_v48 = vld [vmem:[#allocation9 + $0x144] ss:$16 sps:$4 sm:$0xff]  }
  0xab   :  { %427 = vmatprep.mubr.bf16.mxu0 %v8645_v0  ;;  %500 = vmatprep.mubr.bf16.mxu1 %v8645_v0  ;;  %9080 = vst [vmem:[#allocation24_spill] sm:$0xff] %v5919_v47  ;;  %9081 = vst [vmem:[#allocation25_spill] sm:$0xff] %v5925_v48 }
  0xad   :  { %818 = vmatpush1.bf16.msra.mxu0 %v4443_v49  ;;  %859 = vmatpush1.bf16.msra.mxu1 %v4444_v50  ;;  %v5927_v49 = vld [vmem:[#allocation9 + $0x14c] ss:$16 sps:$4 sm:$0xff]   ;;  %v5929_v50 = vld [vmem:[#allocation9 + $0x140] ss:$16 sps:$4 sm:$0xff]  }
  0xae   :  { %819 = vmatprep.subr.bf16.mxu0 %v4446_v51  ;;  %860 = vmatprep.subr.bf16.mxu1 %v4448_v52  ;;  %9082 = vst [vmem:[#allocation26_spill] sm:$0xff] %v5927_v49  ;;  %9083 = vst [vmem:[#allocation27_spill] sm:$0xff] %v5929_v50  ;;  %v5931_v51 = vld [vmem:[#allocation9 + $0x148] ss:$16 sps:$4 sm:$0xff]   ;;  %v5937_v52 = vld [vmem:[#allocation9 + $0x164] ss:$16 sps:$4 sm:$0xff]  }
  0xaf   :  { %9084 = vst [vmem:[#allocation28_spill] sm:$0xff] %v5931_v51  ;;  %9085 = vst [vmem:[#allocation29_spill] sm:$0xff] %v5937_v52 }
  0xb0   :  { %428 = vmatmul.mubr.bf16.gmra.mrb[8].mxu0 %v4445_v53  ;;  %501 = vmatmul.mubr.bf16.gmra.mrb[8].mxu1 %v4445_v53  ;;  %v5939_v53 = vld [vmem:[#allocation9 + $0x16c] ss:$16 sps:$4 sm:$0xff]  }
  0xb1   :  { %820 = vmatpush1.bf16.msra.mxu0 %v4450_v54  ;;  %861 = vmatpush1.bf16.msra.mxu1 %v4451_v55  ;;  %9086 = vst [vmem:[#allocation30_spill] sm:$0xff] %v5939_v53  ;;  %v5941_v54 = vld [vmem:[#allocation9 + $0x160] ss:$16 sps:$4 sm:$0xff]   ;;  %v5943_v55 = vld [vmem:[#allocation9 + $0x168] ss:$16 sps:$4 sm:$0xff]  }
  0xb2   :  { %821 = vmatprep.subr.bf16.mxu0 %v4452_v56  ;;  %862 = vmatprep.subr.bf16.mxu1 %v4454_v57  ;;  %9087 = vst [vmem:[#allocation31_spill] sm:$0xff] %v5941_v54  ;;  %9088 = vst [vmem:[#allocation32_spill] sm:$0xff] %v5943_v55  ;;  %v5949_v56 = vld [vmem:[#allocation9 + $0x184] ss:$16 sps:$4 sm:$0xff]   ;;  %v5951_v57 = vld [vmem:[#allocation9 + $0x18c] ss:$16 sps:$4 sm:$0xff]  }
  0xb3   :  { %437 = vmatprep.mubr.bf16.mxu0 %v8645_v0  ;;  %510 = vmatprep.mubr.bf16.mxu1 %v8645_v0  ;;  %9089 = vst [vmem:[#allocation33_spill] sm:$0xff] %v5949_v56  ;;  %9090 = vst [vmem:[#allocation34_spill] sm:$0xff] %v5951_v57 }
  0xb5   :  { %822 = vmatpush1.bf16.msra.mxu0 %v4456_v58  ;;  %863 = vmatpush1.bf16.msra.mxu1 %v4457_v59  ;;  %v5953_v58 = vld [vmem:[#allocation9 + $0x180] ss:$16 sps:$4 sm:$0xff]   ;;  %v5955_v59 = vld [vmem:[#allocation9 + $0x188] ss:$16 sps:$4 sm:$0xff]  }
  0xb6   :  { %823 = vmatprep.subr.bf16.mxu0 %v4459_v60  ;;  %864 = vmatprep.subr.bf16.mxu1 %v4461_v61  ;;  %9091 = vst [vmem:[#allocation35_spill] sm:$0xff] %v5953_v58  ;;  %9092 = vst [vmem:[#allocation36_spill] sm:$0xff] %v5955_v59  ;;  %v5959_v60 = vld [vmem:[#allocation9 + $0x1a4] ss:$16 sps:$4 sm:$0xff]   ;;  %v5961_v61 = vld [vmem:[#allocation9 + $0x1ac] ss:$16 sps:$4 sm:$0xff]  }
  0xb7   :  { %9093 = vst [vmem:[#allocation37_spill] sm:$0xff] %v5959_v60  ;;  %9094 = vst [vmem:[#allocation38_spill] sm:$0xff] %v5961_v61 }
  0xb8   :  { %438 = vmatmul.mubr.bf16.gmra.mrb[12].mxu0 %v4458_v62  ;;  %511 = vmatmul.mubr.bf16.gmra.mrb[12].mxu1 %v4458_v62  ;;  %v5965_v62 = vld [vmem:[#allocation9 + $0x1a0] ss:$16 sps:$4 sm:$0xff]  }
  0xb9   :  { %824 = vmatpush1.bf16.msra.mxu0 %v4463_v63  ;;  %865 = vmatpush1.bf16.msra.mxu1 %v4464_v1  ;;  %9095 = vst [vmem:[#allocation39_spill] sm:$0xff] %v5965_v62  ;;  %v5967_v63 = vld [vmem:[#allocation9 + $0x1a8] ss:$16 sps:$4 sm:$0xff]   ;;  %v5971_v1 = vld [vmem:[#allocation9 + $0x1c4] ss:$16 sps:$4 sm:$0xff]  }
  0xba   :  { %825 = vmatprep.subr.bf16.mxu0 %v4465_v2  ;;  %866 = vmatprep.subr.bf16.mxu1 %v4467_v3  ;;  %9096 = vst [vmem:[#allocation40_spill] sm:$0xff] %v5967_v63  ;;  %9097 = vst [vmem:[#allocation41_spill] sm:$0xff] %v5971_v1  ;;  %v5973_v2 = vld [vmem:[#allocation9 + $0x1cc] ss:$16 sps:$4 sm:$0xff]  }
  0xbb   :  { %843 = vmatprep.mubr.bf16.mxu0 %v8645_v0  ;;  %884 = vmatprep.mubr.bf16.mxu1 %v8645_v0  ;;  %9098 = vst [vmem:[#allocation42_spill] sm:$0xff] %v5973_v2  ;;  %v602_v3 = vld [vmem:[#allocation11 + $0x8] sm:$0xff] }
  0xbc   :  { %v603_v6 = vpack.c.bf16 %v602_v3, %v602_v3  ;;  %v5985_v0 = vld [vmem:[#allocation9 + $0x1ec] ss:$16 sps:$4 sm:$0xff]   ;;  %v5997_v3 = vld [vmem:[#allocation9 + $0x204] ss:$16 sps:$4 sm:$0xff]  }
  0xbd   :  { %826 = vmatpush1.bf16.msra.mxu0 %v4469_v4  ;;  %867 = vmatpush1.bf16.msra.mxu1 %v4470_v5  ;;  %v5977_v4 = vld [vmem:[#allocation9 + $0x1c0] ss:$16 sps:$4 sm:$0xff]   ;;  %v5979_v5 = vld [vmem:[#allocation9 + $0x1c8] ss:$16 sps:$4 sm:$0xff]   ;;  %9102 = vst [vmem:[#allocation46_spill] sm:$0xff] %v5985_v0  ;;  %9105 = vst [vmem:[#allocation49_spill] sm:$0xff] %v5997_v3 }
  0xbe   :  { %1293 = vmatprep.subr.bf16.mxu0 %v5805_v8  ;;  %1334 = vmatprep.subr.bf16.mxu1 %v5807_v9  ;;  %9099 = vst [vmem:[#allocation43_spill] sm:$0xff] %v5977_v4  ;;  %9100 = vst [vmem:[#allocation44_spill] sm:$0xff] %v5979_v5 }
  0xc0   :  { %844 = vmatmul.mubr.bf16.vlgmr.msra.gmra.mrb[16].mxu0 %v600_v7  ;;  %885 = vmatmul.mubr.bf16.vlgmr.msra.gmra.mrb[16].mxu1 %v600_v7  ;;  %v5983_v7 = vld [vmem:[#allocation9 + $0x1e4] ss:$16 sps:$4 sm:$0xff]  }
  0xc1   :  { %1294 = vmatpush1.bf16.msra.mxu0 %v5809_v10  ;;  %1335 = vmatpush1.bf16.msra.mxu1 %v5811_v11  ;;  %9101 = vst [vmem:[#allocation45_spill] sm:$0xff] %v5983_v7 }
  0xc2   :  { %1295 = vmatprep.subr.bf16.mxu0 %v5817_v12  ;;  %1336 = vmatprep.subr.bf16.mxu1 %v5819_v13 }
  0xc3   :  { %1325 = vmatprep.mubr.bf16.mxu0 %v603_v6  ;;  %1366 = vmatprep.mubr.bf16.mxu1 %v603_v6  ;;  %v171_v6 = vlaneseq }
  0xc5   :  { %1296 = vmatpush1.bf16.msra.mxu0 %v5821_v14  ;;  %1337 = vmatpush1.bf16.msra.mxu1 %v5823_v15 }
  0xc6   :  { %1297 = vmatprep.subr.bf16.mxu0 %v5829_v16  ;;  %1338 = vmatprep.subr.bf16.mxu1 %v5831_v17 }
  0xc9   :  { %1298 = vmatpush1.bf16.msra.mxu0 %v5833_v18  ;;  %1339 = vmatpush1.bf16.msra.mxu1 %v5835_v19 }
  0xca   :  { %1299 = vmatprep.subr.bf16.mxu0 %v5841_v20  ;;  %1340 = vmatprep.subr.bf16.mxu1 %v5843_v21 }
  0xcd   :  { %1300 = vmatpush1.bf16.msra.mxu0 %v5845_v22  ;;  %1341 = vmatpush1.bf16.msra.mxu1 %v5847_v23 }
  0xce   :  { %1301 = vmatprep.subr.bf16.mxu0 %v5853_v24  ;;  %1342 = vmatprep.subr.bf16.mxu1 %v5855_v25 }
  0xd1   :  { %1302 = vmatpush1.bf16.msra.mxu0 %v5857_v26  ;;  %1343 = vmatpush1.bf16.msra.mxu1 %v5859_v27 }
  0xd2   :  { %1303 = vmatprep.subr.bf16.mxu0 %v5865_v28  ;;  %1344 = vmatprep.subr.bf16.mxu1 %v5867_v29 }
  0xd5   :  { %1304 = vmatpush1.bf16.msra.mxu0 %v5869_v30  ;;  %1345 = vmatpush1.bf16.msra.mxu1 %v5871_v31 }
  0xd6   :  { %1305 = vmatprep.subr.bf16.mxu0 %v5877_v32  ;;  %1346 = vmatprep.subr.bf16.mxu1 %v5879_v33 }
  0xd9   :  { %1306 = vmatpush1.bf16.msra.mxu0 %v5881_v34  ;;  %1347 = vmatpush1.bf16.msra.mxu1 %v5883_v35 }
  0xda   :  { %1307 = vmatprep.subr.bf16.mxu0 %v5889_v36  ;;  %1348 = vmatprep.subr.bf16.mxu1 %v5891_v37 }
  0xdd   :  { %1308 = vmatpush1.bf16.msra.mxu0 %v5893_v38  ;;  %1349 = vmatpush1.bf16.msra.mxu1 %v5895_v39 }
  0xde   :  { %1309 = vmatprep.subr.bf16.mxu0 %v5901_v40  ;;  %1350 = vmatprep.subr.bf16.mxu1 %v5903_v41 }
  0xe1   :  { %1310 = vmatpush1.bf16.msra.mxu0 %v5905_v42  ;;  %1351 = vmatpush1.bf16.msra.mxu1 %v5907_v43 }
  0xe2   :  { %1311 = vmatprep.subr.bf16.mxu0 %v5913_v44  ;;  %1352 = vmatprep.subr.bf16.mxu1 %v5915_v45 }
  0xe5   :  { %1312 = vmatpush1.bf16.msra.mxu0 %v5917_v46  ;;  %1353 = vmatpush1.bf16.msra.mxu1 %v5919_v47 }
  0xe6   :  { %1313 = vmatprep.subr.bf16.mxu0 %v5925_v48  ;;  %1354 = vmatprep.subr.bf16.mxu1 %v5927_v49 }
  0xe9   :  { %1314 = vmatpush1.bf16.msra.mxu0 %v5929_v50  ;;  %1355 = vmatpush1.bf16.msra.mxu1 %v5931_v51 }
  0xea   :  { %1315 = vmatprep.subr.bf16.mxu0 %v5937_v52  ;;  %1356 = vmatprep.subr.bf16.mxu1 %v5939_v53 }
  0xed   :  { %1316 = vmatpush1.bf16.msra.mxu0 %v5941_v54  ;;  %1357 = vmatpush1.bf16.msra.mxu1 %v5943_v55 }
  0xee   :  { %1317 = vmatprep.subr.bf16.mxu0 %v5949_v56  ;;  %1358 = vmatprep.subr.bf16.mxu1 %v5951_v57 }
  0xf1   :  { %1318 = vmatpush1.bf16.msra.mxu0 %v5953_v58  ;;  %1359 = vmatpush1.bf16.msra.mxu1 %v5955_v59 }
  0xf2   :  { %1319 = vmatprep.subr.bf16.mxu0 %v5959_v60  ;;  %1360 = vmatprep.subr.bf16.mxu1 %v5961_v61 }
  0xf5   :  { %1320 = vmatpush1.bf16.msra.mxu0 %v5965_v62  ;;  %1361 = vmatpush1.bf16.msra.mxu1 %v5967_v63  ;;  %v5989_v63 = vld [vmem:[#allocation9 + $0x1e0] ss:$16 sps:$4 sm:$0xff]   ;;  %v5991_v62 = vld [vmem:[#allocation9 + $0x1e8] ss:$16 sps:$4 sm:$0xff]  }
  0xf6   :  { %1321 = vmatprep.subr.bf16.mxu0 %v5971_v1  ;;  %1362 = vmatprep.subr.bf16.mxu1 %v5973_v2  ;;  %9103 = vst [vmem:[#allocation47_spill] sm:$0xff] %v5989_v63  ;;  %9104 = vst [vmem:[#allocation48_spill] sm:$0xff] %v5991_v62  ;;  %v5999_v2 = vld [vmem:[#allocation9 + $0x20c] ss:$16 sps:$4 sm:$0xff]  }
  0xf7   :  { %9106 = vst [vmem:[#allocation50_spill] sm:$0xff] %v5999_v2 }
  0xf9   :  { %1322 = vmatpush1.bf16.msra.mxu0 %v5977_v4  ;;  %1363 = vmatpush1.bf16.msra.mxu1 %v5979_v5  ;;  %v172_v5 = vshrl.u32 %v171_v6, 7 }
  0xfa   :  { %1323 = vmatprep.subr.bf16.mxu0 %v5983_v7  ;;  %1364 = vmatprep.subr.bf16.mxu1 %v5985_v0 }
  0xfb   :  { %v6003_v4 = vsub.s32 2, %v172_v5  ;;  %v6005_v1 = vsub.s32 3, %v172_v5  ;;  %v6007_v7 = vsub.s32 0, %v172_v5 }
  0xfd   :  { %1324 = vmatpush1.bf16.msra.mxu0 %v5989_v63  ;;  %1365 = vmatpush1.bf16.msra.mxu1 %v5991_v62  ;;  %v169_v62 = vld [vmem:[%s8639_s4] sm:$0xf]  ;;  %v6012_v63 = vsub.s32 1, %v172_v5 }
  0xfe   :  { %1776 = vmatprep.subr.bf16.mxu0 %v5997_v3  ;;  %1817 = vmatprep.subr.bf16.mxu1 %v5999_v2  ;;  %v6015_v0 = vrot.slane %v169_v62, %v6003_v4  ;;  %v6022_v6 = vrot.slane %v169_v62, %v6005_v1  ;;  %v174_v61 = vrot.slane %v169_v62, %v6007_v7 }
  0xff   :  { %v178_v58 = vrot.slane %v169_v62, %v6012_v63 }
 0x173   :  { %v6017_v3 = vpop.f32.mrb[0].mxu0  ;;  %v6019_v2 = vpop.f32.mrb[0].mxu1 }
 0x174   :  { %v411_v60 = vpop.f32.mrb[1].mxu0  ;;  %v484_v59 = vpop.f32.mrb[1].mxu1 }
 0x175   :  { %v413_v57 = vpop.f32.mrb[2].mxu0  ;;  %v486_v56 = vpop.f32.mrb[2].mxu1 }
 0x176   :  { %v6026_v5 = vadd.f32 %v413_v57, %v174_v61  ;;  %v415_v55 = vpop.f32.mrb[3].mxu0  ;;  %v6029_v54 = vadd.f32 %v486_v56, %v6015_v0  ;;  %v488_v53 = vpop.f32.mrb[3].mxu1 }
 0x177   :  { %v6031_v52 = vadd.f32 %v415_v55, %v178_v58  ;;  %v6034_v51 = vadd.f32 %v488_v53, %v6022_v6 }
 0x178   :  { %9107 = vst [vmem:[#allocation51_spill] sm:$0xff] %v6026_v5  ;;  %9108 = vst [vmem:[#allocation52_spill] sm:$0xff] %v6029_v54 }
 0x179   :  { %9109 = vst [vmem:[#allocation53_spill] sm:$0xff] %v6031_v52  ;;  %9110 = vst [vmem:[#allocation54_spill] sm:$0xff] %v6034_v51 }
 0x17b   :  { %v419_v50 = vpop.f32.mrb[4].mxu0  ;;  %v492_v49 = vpop.f32.mrb[4].mxu1 }
 0x17c   :  { %v6036_v48 = vadd.f32 %v419_v50, %v174_v61  ;;  %v421_v47 = vpop.f32.mrb[5].mxu0  ;;  %v6039_v62 = vadd.f32 %v492_v49, %v6015_v0  ;;  %v494_v57 = vpop.f32.mrb[5].mxu1 }
 0x17d   :  { %v6041_v5 = vadd.f32 %v421_v47, %v178_v58  ;;  %v423_v46 = vpop.f32.mrb[6].mxu0  ;;  %v6044_v56 = vadd.f32 %v494_v57, %v6022_v6  ;;  %v496_v55 = vpop.f32.mrb[6].mxu1 }
 0x17e   :  { %9111 = vst [vmem:[#allocation55_spill] sm:$0xff] %v6036_v48  ;;  %9112 = vst [vmem:[#allocation56_spill] sm:$0xff] %v6039_v62  ;;  %v6046_v52 = vadd.f32 %v423_v46, %v174_v61  ;;  %v425_v53 = vpop.f32.mrb[7].mxu0  ;;  %v6049_v51 = vadd.f32 %v496_v55, %v6015_v0  ;;  %v498_v50 = vpop.f32.mrb[7].mxu1 }
 0x17f   :  { %9113 = vst [vmem:[#allocation57_spill] sm:$0xff] %v6041_v5  ;;  %9114 = vst [vmem:[#allocation58_spill] sm:$0xff] %v6044_v56  ;;  %v6051_v48 = vadd.f32 %v425_v53, %v178_v58  ;;  %v6054_v49 = vadd.f32 %v498_v50, %v6022_v6 }
 0x180   :  { %9115 = vst [vmem:[#allocation59_spill] sm:$0xff] %v6046_v52  ;;  %9116 = vst [vmem:[#allocation60_spill] sm:$0xff] %v6049_v51 }
 0x181   :  { %9117 = vst [vmem:[#allocation61_spill] sm:$0xff] %v6051_v48  ;;  %9118 = vst [vmem:[#allocation62_spill] sm:$0xff] %v6054_v49 }
 0x183   :  { %v429_v62 = vpop.f32.mrb[8].mxu0  ;;  %v502_v47 = vpop.f32.mrb[8].mxu1 }
 0x184   :  { %v6056_v5 = vadd.f32 %v429_v62, %v174_v61  ;;  %v431_v54 = vpop.f32.mrb[9].mxu0  ;;  %v6059_v57 = vadd.f32 %v502_v47, %v6015_v0  ;;  %v504_v46 = vpop.f32.mrb[9].mxu1 }
 0x185   :  { %v6061_v52 = vadd.f32 %v431_v54, %v178_v58  ;;  %v433_v56 = vpop.f32.mrb[10].mxu0  ;;  %v6064_v55 = vadd.f32 %v504_v46, %v6022_v6  ;;  %v506_v53 = vpop.f32.mrb[10].mxu1 }
 0x186   :  { %9119 = vst [vmem:[#allocation63_spill] sm:$0xff] %v6056_v5  ;;  %9120 = vst [vmem:[#allocation64_spill] sm:$0xff] %v6059_v57  ;;  %v6066_v48 = vadd.f32 %v433_v56, %v174_v61  ;;  %v435_v50 = vpop.f32.mrb[11].mxu0  ;;  %v6069_v49 = vadd.f32 %v506_v53, %v6015_v0  ;;  %v508_v62 = vpop.f32.mrb[11].mxu1 }
 0x187   :  { %9121 = vst [vmem:[#allocation65_spill] sm:$0xff] %v6061_v52  ;;  %9122 = vst [vmem:[#allocation66_spill] sm:$0xff] %v6064_v55  ;;  %v6071_v5 = vadd.f32 %v435_v50, %v178_v58  ;;  %v6074_v47 = vadd.f32 %v508_v62, %v6022_v6 }
 0x188   :  { %9123 = vst [vmem:[#allocation67_spill] sm:$0xff] %v6066_v48  ;;  %9124 = vst [vmem:[#allocation68_spill] sm:$0xff] %v6069_v49 }
 0x189   :  { %9125 = vst [vmem:[#allocation69_spill] sm:$0xff] %v6071_v5  ;;  %9126 = vst [vmem:[#allocation70_spill] sm:$0xff] %v6074_v47 }
 0x18b   :  { %v439_v57 = vpop.f32.mrb[12].mxu0  ;;  %v512_v54 = vpop.f32.mrb[12].mxu1 }
 0x18c   :  { %v6076_v52 = vadd.f32 %v439_v57, %v174_v61  ;;  %v441_v51 = vpop.f32.mrb[13].mxu0  ;;  %v6079_v46 = vadd.f32 %v512_v54, %v6015_v0  ;;  %v514_v56 = vpop.f32.mrb[13].mxu1 }
 0x18d   :  { %v6081_v48 = vadd.f32 %v441_v51, %v178_v58  ;;  %v443_v55 = vpop.f32.mrb[14].mxu0  ;;  %v6084_v53 = vadd.f32 %v514_v56, %v6022_v6  ;;  %v516_v50 = vpop.f32.mrb[14].mxu1  ;;  %v410_v51 = vadd.f32 %v6017_v3, %v174_v61  ;;  %v412_v56 = vadd.f32 %v411_v60, %v178_v58  ;;  %v607_v3 = vld [vmem:[#allocation12] sm:$0xff] }
 0x18e   :  { %9127 = vst [vmem:[#allocation71_spill] sm:$0xff] %v6076_v52  ;;  %9128 = vst [vmem:[#allocation72_spill] sm:$0xff] %v6079_v46  ;;  %v6086_v5 = vadd.f32 %v443_v55, %v174_v61  ;;  %v445_v62 = vpop.f32.mrb[15].mxu0  ;;  %v6089_v47 = vadd.f32 %v516_v50, %v6015_v0  ;;  %v518_v57 = vpop.f32.mrb[15].mxu1 }
 0x18f   :  { %9129 = vst [vmem:[#allocation73_spill] sm:$0xff] %v6081_v48  ;;  %9130 = vst [vmem:[#allocation74_spill] sm:$0xff] %v6084_v53  ;;  %v6091_v52 = vadd.f32 %v445_v62, %v178_v58  ;;  %v6094_v54 = vadd.f32 %v518_v57, %v6022_v6  ;;  %v483_v48 = vadd.f32 %v6019_v2, %v6015_v0 }
 0x190   :  { %9131 = vst [vmem:[#allocation75_spill] sm:$0xff] %v6086_v5  ;;  %9132 = vst [vmem:[#allocation76_spill] sm:$0xff] %v6089_v47  ;;  %v485_v53 = vadd.f32 %v484_v59, %v6022_v6 }
 0x191   :  { %9133 = vst [vmem:[#allocation77_spill] sm:$0xff] %v6091_v52  ;;  %9134 = vst [vmem:[#allocation78_spill] sm:$0xff] %v6094_v54 }
 0x193   :  { %v845_v55 = vpop.f32.mrb[16].mxu0  ;;  %v886_v5 = vpop.f32.mrb[16].mxu1 }
 0x194   :  { %v846_v46 = vadd.f32 %v845_v55, %v410_v51  ;;  %v887_v49 = vadd.f32 %v886_v5, %v483_v48  ;;  %v847_v50 = vpop.f32.mrb[17].mxu0  ;;  %v888_v47 = vpop.f32.mrb[17].mxu1  ;;  %v6111_v55 = vld [vmem:[#allocation9 + $0x22c] ss:$16 sps:$4 sm:$0xff]  }
 0x195   :  { %v848_v45 = vadd.f32 %v847_v50, %v412_v56  ;;  %v889_v62 = vadd.f32 %v888_v47, %v485_v53  ;;  %v849_v52 = vpop.f32.mrb[18].mxu0  ;;  %v890_v44 = vpop.f32.mrb[18].mxu1  ;;  %v6103_v53 = vld [vmem:[#allocation9 + $0x200] ss:$16 sps:$4 sm:$0xff]   ;;  %v6109_v56 = vld [vmem:[#allocation9 + $0x224] ss:$16 sps:$4 sm:$0xff]  }
 0x196   :  { %4671 = vtanh.f32 %v846_v46  ;;  %v850_v57 = vpop.f32.mrb[19].mxu0  ;;  %v891_v54 = vpop.f32.mrb[19].mxu1  ;;  %9135 = vst [vmem:[#allocation79_spill] sm:$0xff] %v6111_v55  ;;  %v6117_v50 = vld [vmem:[#allocation9 + $0x220] ss:$16 sps:$4 sm:$0xff]  }
 0x197   :  { %4673 = vtanh.f32 %v848_v45  ;;  %v6105_v54 = vld [vmem:[#allocation9 + $0x208] ss:$16 sps:$4 sm:$0xff]   ;;  %9136 = vst [vmem:[#allocation80_spill] sm:$0xff] %v6117_v50  ;;  %v6123_v57 = vld [vmem:[#allocation9 + $0x244] ss:$16 sps:$4 sm:$0xff]  }
 0x198   :  { %4675 = vtanh.f32 %v889_v62  ;;  %v6119_v62 = vld [vmem:[#allocation9 + $0x228] ss:$16 sps:$4 sm:$0xff]   ;;  %9138 = vst [vmem:[#allocation82_spill] sm:$0xff] %v6123_v57 }
 0x199   :  { %4677 = vtanh.f32 %v887_v49  ;;  %9137 = vst [vmem:[#allocation81_spill] sm:$0xff] %v6119_v62 }
 0x1a0   :  { %v4672_v61 = vpop.eup %4671 }
 0x1a1   :  { %v896_v0 = vmul.f32 0.5, %v4672_v61  ;;  %v4674_v58 = vpop.eup %4673  ;;  %v6125_v61 = vld [vmem:[#allocation9 + $0x24c] ss:$16 sps:$4 sm:$0xff]  }
 0x1a2   :  { %v897_v59 = vmul.f32 0.5, %v4674_v58  ;;  %v4676_v2 = vpop.eup %4675  ;;  %9139 = vst [vmem:[#allocation83_spill] sm:$0xff] %v6125_v61  ;;  %v6131_v58 = vld [vmem:[#allocation9 + $0x248] ss:$16 sps:$4 sm:$0xff]  }
 0x1a3   :  { %v899_v60 = vadd.f32 0.5, %v896_v0  ;;  %v4678_v44 = vpop.eup %4677  ;;  %v6129_v0 = vld [vmem:[#allocation9 + $0x240] ss:$16 sps:$4 sm:$0xff]   ;;  %9141 = vst [vmem:[#allocation85_spill] sm:$0xff] %v6131_v58 }
 0x1a4   :  { %v900_v48 = vadd.f32 0.5, %v897_v59  ;;  %v898_v52 = vmul.f32 0.5, %v4678_v44  ;;  %9140 = vst [vmem:[#allocation84_spill] sm:$0xff] %v6129_v0  ;;  %v6137_v59 = vld [vmem:[#allocation9 + $0x26c] ss:$16 sps:$4 sm:$0xff]  }
 0x1a5   :  { %v904_v6 = vmul.f32 %v4676_v2, %v899_v60  ;;  %v6135_v60 = vld [vmem:[#allocation9 + $0x264] ss:$16 sps:$4 sm:$0xff]   ;;  %9143 = vst [vmem:[#allocation87_spill] sm:$0xff] %v6137_v59  ;;  %v6141_v2 = vld [vmem:[#allocation9 + $0x260] ss:$16 sps:$4 sm:$0xff]  }
 0x1a6   :  { %v903_v5 = vmul.f32 %v900_v48, %v607_v3  ;;  %v901_v47 = vadd.f32 0.5, %v898_v52  ;;  %9142 = vst [vmem:[#allocation86_spill] sm:$0xff] %v6135_v60  ;;  %9144 = vst [vmem:[#allocation88_spill] sm:$0xff] %v6141_v2  ;;  %v6143_v3 = vld [vmem:[#allocation9 + $0x268] ss:$16 sps:$4 sm:$0xff]  }
 0x1a7   :  { %9145 = vst [vmem:[#allocation89_spill] sm:$0xff] %v6143_v3  ;;  %v6147_v48 = vld [vmem:[#allocation9 + $0x284] ss:$16 sps:$4 sm:$0xff]   ;;  %v6155_v44 = vld [vmem:[#allocation9 + $0x288] ss:$16 sps:$4 sm:$0xff]  }
 0x1a8   :  { %v6100_v51 = vadd.f32 %v904_v6, %v903_v5  ;;  %9146 = vst [vmem:[#allocation90_spill] sm:$0xff] %v6147_v48  ;;  %v6149_v6 = vld [vmem:[#allocation9 + $0x28c] ss:$16 sps:$4 sm:$0xff]   ;;  %v6153_v5 = vld [vmem:[#allocation9 + $0x280] ss:$16 sps:$4 sm:$0xff]   ;;  %9149 = vst [vmem:[#allocation93_spill] sm:$0xff] %v6155_v44 }
 0x1a9   :  { %9147 = vst [vmem:[#allocation91_spill] sm:$0xff] %v6149_v6  ;;  %9148 = vst [vmem:[#allocation92_spill] sm:$0xff] %v6153_v5  ;;  %v6159_v52 = vld [vmem:[#allocation9 + $0x2a4] ss:$16 sps:$4 sm:$0xff]  }
 0x1aa   :  { %4679 = vtanh.f32 %v6100_v51  ;;  %9150 = vst [vmem:[#allocation94_spill] sm:$0xff] %v6159_v52 }
 0x1b4   :  { %v4680_v45 = vpop.eup %4679 }
 0x1b5   :  { %v907_v46 = vmul.f32 %v4680_v45, %v901_v47  ;;  %v6161_v47 = vld [vmem:[#allocation9 + $0x2ac] ss:$16 sps:$4 sm:$0xff]   ;;  %v6165_v45 = vld [vmem:[#allocation9 + $0x2a0] ss:$16 sps:$4 sm:$0xff]  }
 0x1b6   :  { %9151 = vst [vmem:[#allocation95_spill] sm:$0xff] %v6161_v47  ;;  %9152 = vst [vmem:[#allocation96_spill] sm:$0xff] %v6165_v45 }
 0x1b7   :  { %v6107_v49 = vpack.c.bf16 %v907_v46, %v907_v46  ;;  %v6167_v46 = vld [vmem:[#allocation9 + $0x2a8] ss:$16 sps:$4 sm:$0xff]  }
 0x1b8   :  { %9153 = vst [vmem:[#allocation97_spill] sm:$0xff] %v6167_v46 }
 0x1b9   :  { %1326 = vmatmul.mubr.bf16.vlgmr.msra.gmra.mrb[20].mxu0 %v6107_v49  ;;  %1367 = vmatmul.mubr.bf16.vlgmr.msra.gmra.mrb[20].mxu1 %v6107_v49 }
 0x1ba   :  { %1777 = vmatpush1.bf16.msra.mxu0 %v6103_v53  ;;  %1818 = vmatpush1.bf16.msra.mxu1 %v6105_v54 }
 0x1bb   :  { %1778 = vmatprep.subr.bf16.mxu0 %v6109_v56  ;;  %1819 = vmatprep.subr.bf16.mxu1 %v6111_v55 }
 0x1be   :  { %1779 = vmatpush1.bf16.msra.mxu0 %v6117_v50  ;;  %1820 = vmatpush1.bf16.msra.mxu1 %v6119_v62 }
 0x1bf   :  { %1780 = vmatprep.subr.bf16.mxu0 %v6123_v57  ;;  %1821 = vmatprep.subr.bf16.mxu1 %v6125_v61 }
 0x1c2   :  { %1781 = vmatpush1.bf16.msra.mxu0 %v6129_v0  ;;  %1822 = vmatpush1.bf16.msra.mxu1 %v6131_v58 }
 0x1c3   :  { %1782 = vmatprep.subr.bf16.mxu0 %v6135_v60  ;;  %1823 = vmatprep.subr.bf16.mxu1 %v6137_v59  ;;  %v6281_v59 = vld [vmem:[#allocation9 + $0x3ec] ss:$16 sps:$4 sm:$0xff]  }
 0x1c4   :  { %9191 = vst [vmem:[#allocation135_spill] sm:$0xff] %v6281_v59 }
 0x1c6   :  { %1783 = vmatpush1.bf16.msra.mxu0 %v6141_v2  ;;  %1824 = vmatpush1.bf16.msra.mxu1 %v6143_v3  ;;  %v6171_v3 = vld [vmem:[#allocation9 + $0x2c4] ss:$16 sps:$4 sm:$0xff]   ;;  %v6267_v2 = vld [vmem:[#allocation9 + $0x3cc] ss:$16 sps:$4 sm:$0xff]  }
 0x1c7   :  { %1784 = vmatprep.subr.bf16.mxu0 %v6147_v48  ;;  %1825 = vmatprep.subr.bf16.mxu1 %v6149_v6  ;;  %9154 = vst [vmem:[#allocation98_spill] sm:$0xff] %v6171_v3  ;;  %v6173_v48 = vld [vmem:[#allocation9 + $0x2cc] ss:$16 sps:$4 sm:$0xff]   ;;  %v6177_v6 = vld [vmem:[#allocation9 + $0x2c0] ss:$16 sps:$4 sm:$0xff]   ;;  %9187 = vst [vmem:[#allocation131_spill] sm:$0xff] %v6267_v2 }
 0x1c8   :  { %9155 = vst [vmem:[#allocation99_spill] sm:$0xff] %v6173_v48  ;;  %9156 = vst [vmem:[#allocation100_spill] sm:$0xff] %v6177_v6 }
 0x1ca   :  { %1785 = vmatpush1.bf16.msra.mxu0 %v6153_v5  ;;  %1826 = vmatpush1.bf16.msra.mxu1 %v6155_v44  ;;  %v6179_v5 = vld [vmem:[#allocation9 + $0x2c8] ss:$16 sps:$4 sm:$0xff]   ;;  %v6189_v44 = vld [vmem:[#allocation9 + $0x2e0] ss:$16 sps:$4 sm:$0xff]  }
 0x1cb   :  { %1786 = vmatprep.subr.bf16.mxu0 %v6159_v52  ;;  %1827 = vmatprep.subr.bf16.mxu1 %v6161_v47  ;;  %9157 = vst [vmem:[#allocation101_spill] sm:$0xff] %v6179_v5  ;;  %v6185_v47 = vld [vmem:[#allocation9 + $0x2e4] ss:$16 sps:$4 sm:$0xff]   ;;  %v6187_v52 = vld [vmem:[#allocation9 + $0x2ec] ss:$16 sps:$4 sm:$0xff]   ;;  %9160 = vst [vmem:[#allocation104_spill] sm:$0xff] %v6189_v44 }
 0x1cc   :  { %9158 = vst [vmem:[#allocation102_spill] sm:$0xff] %v6185_v47  ;;  %9159 = vst [vmem:[#allocation103_spill] sm:$0xff] %v6187_v52 }
 0x1ce   :  { %1787 = vmatpush1.bf16.msra.mxu0 %v6165_v45  ;;  %1828 = vmatpush1.bf16.msra.mxu1 %v6167_v46  ;;  %v6191_v45 = vld [vmem:[#allocation9 + $0x2e8] ss:$16 sps:$4 sm:$0xff]   ;;  %v6265_v46 = vld [vmem:[#allocation9 + $0x3c4] ss:$16 sps:$4 sm:$0xff]  }
 0x1cf   :  { %1788 = vmatprep.subr.bf16.mxu0 %v6171_v3  ;;  %1829 = vmatprep.subr.bf16.mxu1 %v6173_v48  ;;  %9161 = vst [vmem:[#allocation105_spill] sm:$0xff] %v6191_v45  ;;  %v6197_v48 = vld [vmem:[#allocation9 + $0x304] ss:$16 sps:$4 sm:$0xff]   ;;  %v6203_v3 = vld [vmem:[#allocation9 + $0x308] ss:$16 sps:$4 sm:$0xff]   ;;  %9186 = vst [vmem:[#allocation130_spill] sm:$0xff] %v6265_v46 }
 0x1d0   :  { %9162 = vst [vmem:[#allocation106_spill] sm:$0xff] %v6197_v48  ;;  %9165 = vst [vmem:[#allocation109_spill] sm:$0xff] %v6203_v3 }
 0x1d2   :  { %1789 = vmatpush1.bf16.msra.mxu0 %v6177_v6  ;;  %1830 = vmatpush1.bf16.msra.mxu1 %v6179_v5  ;;  %v6199_v6 = vld [vmem:[#allocation9 + $0x30c] ss:$16 sps:$4 sm:$0xff]   ;;  %v6201_v5 = vld [vmem:[#allocation9 + $0x300] ss:$16 sps:$4 sm:$0xff]  }
 0x1d3   :  { %1790 = vmatprep.subr.bf16.mxu0 %v6185_v47  ;;  %1831 = vmatprep.subr.bf16.mxu1 %v6187_v52  ;;  %9163 = vst [vmem:[#allocation107_spill] sm:$0xff] %v6199_v6  ;;  %9164 = vst [vmem:[#allocation108_spill] sm:$0xff] %v6201_v5  ;;  %v6209_v52 = vld [vmem:[#allocation9 + $0x324] ss:$16 sps:$4 sm:$0xff]   ;;  %v6215_v47 = vld [vmem:[#allocation9 + $0x328] ss:$16 sps:$4 sm:$0xff]  }
 0x1d4   :  { %9166 = vst [vmem:[#allocation110_spill] sm:$0xff] %v6209_v52  ;;  %9169 = vst [vmem:[#allocation113_spill] sm:$0xff] %v6215_v47 }
 0x1d6   :  { %1791 = vmatpush1.bf16.msra.mxu0 %v6189_v44  ;;  %1832 = vmatpush1.bf16.msra.mxu1 %v6191_v45  ;;  %v6211_v44 = vld [vmem:[#allocation9 + $0x32c] ss:$16 sps:$4 sm:$0xff]   ;;  %v6213_v45 = vld [vmem:[#allocation9 + $0x320] ss:$16 sps:$4 sm:$0xff]  }
 0x1d7   :  { %1792 = vmatprep.subr.bf16.mxu0 %v6197_v48  ;;  %1833 = vmatprep.subr.bf16.mxu1 %v6199_v6  ;;  %9167 = vst [vmem:[#allocation111_spill] sm:$0xff] %v6211_v44  ;;  %9168 = vst [vmem:[#allocation112_spill] sm:$0xff] %v6213_v45  ;;  %v6221_v6 = vld [vmem:[#allocation9 + $0x344] ss:$16 sps:$4 sm:$0xff]   ;;  %v6227_v48 = vld [vmem:[#allocation9 + $0x348] ss:$16 sps:$4 sm:$0xff]  }
 0x1d8   :  { %9170 = vst [vmem:[#allocation114_spill] sm:$0xff] %v6221_v6  ;;  %9173 = vst [vmem:[#allocation117_spill] sm:$0xff] %v6227_v48 }
 0x1da   :  { %1793 = vmatpush1.bf16.msra.mxu0 %v6201_v5  ;;  %1834 = vmatpush1.bf16.msra.mxu1 %v6203_v3  ;;  %v6223_v5 = vld [vmem:[#allocation9 + $0x34c] ss:$16 sps:$4 sm:$0xff]   ;;  %v6225_v3 = vld [vmem:[#allocation9 + $0x340] ss:$16 sps:$4 sm:$0xff]  }
 0x1db   :  { %1794 = vmatprep.subr.bf16.mxu0 %v6209_v52  ;;  %1835 = vmatprep.subr.bf16.mxu1 %v6211_v44  ;;  %9171 = vst [vmem:[#allocation115_spill] sm:$0xff] %v6223_v5  ;;  %9172 = vst [vmem:[#allocation116_spill] sm:$0xff] %v6225_v3  ;;  %v6233_v44 = vld [vmem:[#allocation9 + $0x364] ss:$16 sps:$4 sm:$0xff]   ;;  %v6239_v52 = vld [vmem:[#allocation9 + $0x368] ss:$16 sps:$4 sm:$0xff]  }
 0x1dc   :  { %9174 = vst [vmem:[#allocation118_spill] sm:$0xff] %v6233_v44  ;;  %9177 = vst [vmem:[#allocation121_spill] sm:$0xff] %v6239_v52 }
 0x1de   :  { %1795 = vmatpush1.bf16.msra.mxu0 %v6213_v45  ;;  %1836 = vmatpush1.bf16.msra.mxu1 %v6215_v47  ;;  %v6235_v45 = vld [vmem:[#allocation9 + $0x36c] ss:$16 sps:$4 sm:$0xff]   ;;  %v6237_v47 = vld [vmem:[#allocation9 + $0x360] ss:$16 sps:$4 sm:$0xff]  }
 0x1df   :  { %1796 = vmatprep.subr.bf16.mxu0 %v6221_v6  ;;  %1837 = vmatprep.subr.bf16.mxu1 %v6223_v5  ;;  %9175 = vst [vmem:[#allocation119_spill] sm:$0xff] %v6235_v45  ;;  %9176 = vst [vmem:[#allocation120_spill] sm:$0xff] %v6237_v47  ;;  %v6245_v5 = vld [vmem:[#allocation9 + $0x384] ss:$16 sps:$4 sm:$0xff]   ;;  %v6251_v6 = vld [vmem:[#allocation9 + $0x388] ss:$16 sps:$4 sm:$0xff]  }
 0x1e0   :  { %9178 = vst [vmem:[#allocation122_spill] sm:$0xff] %v6245_v5  ;;  %9181 = vst [vmem:[#allocation125_spill] sm:$0xff] %v6251_v6 }
 0x1e2   :  { %1797 = vmatpush1.bf16.msra.mxu0 %v6225_v3  ;;  %1838 = vmatpush1.bf16.msra.mxu1 %v6227_v48  ;;  %v6247_v3 = vld [vmem:[#allocation9 + $0x38c] ss:$16 sps:$4 sm:$0xff]   ;;  %v6249_v48 = vld [vmem:[#allocation9 + $0x380] ss:$16 sps:$4 sm:$0xff]  }
 0x1e3   :  { %1798 = vmatprep.subr.bf16.mxu0 %v6233_v44  ;;  %1839 = vmatprep.subr.bf16.mxu1 %v6235_v45  ;;  %9179 = vst [vmem:[#allocation123_spill] sm:$0xff] %v6247_v3  ;;  %9180 = vst [vmem:[#allocation124_spill] sm:$0xff] %v6249_v48  ;;  %v6257_v45 = vld [vmem:[#allocation9 + $0x3a4] ss:$16 sps:$4 sm:$0xff]   ;;  %v6263_v44 = vld [vmem:[#allocation9 + $0x3a8] ss:$16 sps:$4 sm:$0xff]  }
 0x1e4   :  { %9182 = vst [vmem:[#allocation126_spill] sm:$0xff] %v6257_v45  ;;  %9185 = vst [vmem:[#allocation129_spill] sm:$0xff] %v6263_v44 }
 0x1e6   :  { %1799 = vmatpush1.bf16.msra.mxu0 %v6237_v47  ;;  %1840 = vmatpush1.bf16.msra.mxu1 %v6239_v52  ;;  %v6259_v47 = vld [vmem:[#allocation9 + $0x3ac] ss:$16 sps:$4 sm:$0xff]   ;;  %v6261_v52 = vld [vmem:[#allocation9 + $0x3a0] ss:$16 sps:$4 sm:$0xff]  }
 0x1e7   :  { %1800 = vmatprep.subr.bf16.mxu0 %v6245_v5  ;;  %1841 = vmatprep.subr.bf16.mxu1 %v6247_v3  ;;  %9183 = vst [vmem:[#allocation127_spill] sm:$0xff] %v6259_v47  ;;  %9184 = vst [vmem:[#allocation128_spill] sm:$0xff] %v6261_v52  ;;  %v605_v3 = vld [vmem:[#allocation11 + $0x10] sm:$0xff] }
 0x1e8   :  { %v6279_v5 = vld [vmem:[#allocation9 + $0x3e4] ss:$16 sps:$4 sm:$0xff]  }
 0x1e9   :  { %9190 = vst [vmem:[#allocation134_spill] sm:$0xff] %v6279_v5 }
 0x1ea   :  { %1801 = vmatpush1.bf16.msra.mxu0 %v6249_v48  ;;  %1842 = vmatpush1.bf16.msra.mxu1 %v6251_v6  ;;  %v6273_v6 = vld [vmem:[#allocation9 + $0x3c0] ss:$16 sps:$4 sm:$0xff]   ;;  %v6275_v48 = vld [vmem:[#allocation9 + $0x3c8] ss:$16 sps:$4 sm:$0xff]  }
 0x1eb   :  { %1802 = vmatprep.subr.bf16.mxu0 %v6257_v45  ;;  %1843 = vmatprep.subr.bf16.mxu1 %v6259_v47  ;;  %9188 = vst [vmem:[#allocation132_spill] sm:$0xff] %v6273_v6  ;;  %9189 = vst [vmem:[#allocation133_spill] sm:$0xff] %v6275_v48  ;;  %v606_v45 = vpack.c.bf16 %v605_v3, %v605_v3  ;;  %v6296_v3 = vld [vmem:[#allocation8 + $0xc] ss:$16 sps:$4 sm:$0xff]  }
 0x1ec   :  { %9195 = vst [vmem:[#allocation139_spill] sm:$0xff] %v6296_v3 }
 0x1ed   :  { %1808 = vmatprep.mubr.bf16.mxu0 %v606_v45  ;;  %1849 = vmatprep.mubr.bf16.mxu1 %v606_v45  ;;  %v4154_v45 = vld [vmem:[%s8639_s4 + $0x4] sm:$0xf] }
 0x1ee   :  { %1803 = vmatpush1.bf16.msra.mxu0 %v6261_v52  ;;  %1844 = vmatpush1.bf16.msra.mxu1 %v6263_v44  ;;  %v6285_v44 = vld [vmem:[#allocation9 + $0x3e0] ss:$16 sps:$4 sm:$0xff]   ;;  %v6287_v52 = vld [vmem:[#allocation9 + $0x3e8] ss:$16 sps:$4 sm:$0xff]   ;;  %v6315_v57 = vrot.slane %v4154_v45, %v6003_v4 }
 0x1ef   :  { %1804 = vmatprep.subr.bf16.mxu0 %v6265_v46  ;;  %1845 = vmatprep.subr.bf16.mxu1 %v6267_v2  ;;  %9192 = vst [vmem:[#allocation136_spill] sm:$0xff] %v6285_v44  ;;  %9193 = vst [vmem:[#allocation137_spill] sm:$0xff] %v6287_v52  ;;  %v6293_v2 = vld [vmem:[#allocation8 + $0x4] ss:$16 sps:$4 sm:$0xff]  }
 0x1f0   :  { %9194 = vst [vmem:[#allocation138_spill] sm:$0xff] %v6293_v2  ;;  %9198 = vst [vmem:[#allocation142_spill] sm:$0xff] %v6315_v57 }
 0x1f2   :  { %1805 = vmatpush1.bf16.msra.mxu0 %v6273_v6  ;;  %1846 = vmatpush1.bf16.msra.mxu1 %v6275_v48 }
 0x1f3   :  { %1806 = vmatprep.subr.bf16.mxu0 %v6279_v5  ;;  %1847 = vmatprep.subr.bf16.mxu1 %v6281_v59  ;;  %v6303_v5 = vrot.slane %v4154_v45, %v6007_v7  ;;  %v6306_v59 = vrot.slane %v4154_v45, %v6012_v63 }
 0x1f5   :  { %9196 = vst [vmem:[#allocation140_spill] sm:$0xff] %v6303_v5  ;;  %9197 = vst [vmem:[#allocation141_spill] sm:$0xff] %v6306_v59 }
 0x1f6   :  { %1807 = vmatpush1.bf16.msra.mxu0 %v6285_v44  ;;  %1848 = vmatpush1.bf16.msra.mxu1 %v6287_v52  ;;  %v6309_v52 = vrot.slane %v4154_v45, %v6005_v1 }
 0x1f7   :  { %1881 = vmatprep.subr.bf16.mxu0 %v6293_v2  ;;  %1922 = vmatprep.subr.bf16.mxu1 %v6296_v3 }
 0x28c   :  { %v1327_v44 = vpop.f32.mrb[20].mxu0  ;;  %v1368_v48 = vpop.f32.mrb[20].mxu1 }
 0x28d   :  { %v1328_v2 = vadd.f32 %v1327_v44, %v6303_v5  ;;  %v1329_v6 = vpop.f32.mrb[21].mxu0  ;;  %v1370_v46 = vpop.f32.mrb[21].mxu1  ;;  %v1369_v62 = vadd.f32 %v1368_v48, %v6315_v57 }
 0x28e   :  { %v1330_v3 = vadd.f32 %v1329_v6, %v6306_v59  ;;  %v1331_v47 = vpop.f32.mrb[22].mxu0  ;;  %v1372_v60 = vpop.f32.mrb[22].mxu1  ;;  %v1371_v58 = vadd.f32 %v1370_v46, %v6309_v52 }
 0x28f   :  { %4681 = vtanh.f32 %v1328_v2  ;;  %v1332_v0 = vpop.f32.mrb[23].mxu0  ;;  %v1373_v61 = vpop.f32.mrb[23].mxu1  ;;  %v609_v60 = vld [vmem:[#allocation12 + $0x8] sm:$0xff] }
 0x290   :  { %4683 = vtanh.f32 %v1330_v3 }
 0x291   :  { %4685 = vtanh.f32 %v1371_v58 }
 0x292   :  { %4687 = vtanh.f32 %v1369_v62  ;;  %v6331_v62 = vld [vmem:[#allocation8 + $0x24] ss:$16 sps:$4 sm:$0xff]  }
 0x299   :  { %v4682_v50 = vpop.eup %4681 }
 0x29a   :  { %v1378_v44 = vmul.f32 0.5, %v4682_v50  ;;  %v4684_v5 = vpop.eup %4683  ;;  %v6325_v50 = vld [vmem:[#allocation8] ss:$16 sps:$4 sm:$0xff]  }
 0x29b   :  { %v1379_v6 = vmul.f32 0.5, %v4684_v5  ;;  %v4686_v47 = vpop.eup %4685  ;;  %v9199_v5 = vmov 0  }
 0x29c   :  { %v1381_v55 = vadd.f32 0.5, %v1378_v44  ;;  %v4688_v61 = vpop.eup %4687  ;;  %v6339_v44 = vld [vmem:[#allocation8 + $0x20] ss:$16 sps:$4 sm:$0xff]  }
 0x29d   :  { %v1382_v2 = vadd.f32 0.5, %v1379_v6  ;;  %v1380_v58 = vmul.f32 0.5, %v4688_v61  ;;  %v6342_v6 = vld [vmem:[#allocation8 + $0x28] ss:$16 sps:$4 sm:$0xff]   ;;  %v6357_v61 = vld [vmem:[#allocation8 + $0x64] ss:$16 sps:$4 sm:$0xff]  }
 0x29e   :  { %v1386_v59 = vmul.f32 %v4686_v47, %v1381_v55  ;;  %v6328_v55 = vld [vmem:[#allocation8 + $0x8] ss:$16 sps:$4 sm:$0xff]   ;;  %v6345_v47 = vld [vmem:[#allocation8 + $0x44] ss:$16 sps:$4 sm:$0xff]   ;;  %9201 = vst [vmem:[#allocation144_spill] sm:$0xff] %v6357_v61 }
 0x29f   :  { %v1385_v46 = vmul.f32 %v1382_v2, %v609_v60  ;;  %v1383_v3 = vadd.f32 0.5, %v1380_v58  ;;  %v6348_v60 = vld [vmem:[#allocation8 + $0x4c] ss:$16 sps:$4 sm:$0xff]   ;;  %v6351_v2 = vld [vmem:[#allocation8 + $0x40] ss:$16 sps:$4 sm:$0xff]  }
 0x2a0   :  { %v6360_v58 = vld [vmem:[#allocation8 + $0x6c] ss:$16 sps:$4 sm:$0xff]  }
 0x2a1   :  { %v6318_v0 = vadd.f32 %v1386_v59, %v1385_v46  ;;  %v6334_v59 = vld [vmem:[#allocation8 + $0x2c] ss:$16 sps:$4 sm:$0xff]   ;;  %v6354_v46 = vld [vmem:[#allocation8 + $0x48] ss:$16 sps:$4 sm:$0xff]   ;;  %9202 = vst [vmem:[#allocation145_spill] sm:$0xff] %v6360_v58 }
 0x2a2   :  { %9200 = vst [vmem:[#allocation143_spill] sm:$0xff] %v6354_v46 }
 0x2a3   :  { %4689 = vtanh.f32 %v6318_v0 }
 0x2ad   :  { %v4690_v45 = vpop.eup %4689 }
 0x2ae   :  { %v1389_v48 = vmul.f32 %v4690_v45, %v1383_v3  ;;  %v6363_v3 = vld [vmem:[#allocation8 + $0x60] ss:$16 sps:$4 sm:$0xff]   ;;  %v6366_v45 = vld [vmem:[#allocation8 + $0x68] ss:$16 sps:$4 sm:$0xff]  }
 0x2af   :  { %9203 = vst [vmem:[#allocation146_spill] sm:$0xff] %v6363_v3  ;;  %9204 = vst [vmem:[#allocation147_spill] sm:$0xff] %v6366_v45 }
 0x2b0   :  { %v6321_v57 = vpack.c.bf16 %v1389_v48, %v1389_v48  ;;  %v6369_v48 = vld [vmem:[#allocation8 + $0x84] ss:$16 sps:$4 sm:$0xff]  }
 0x2b1   :  { %9205 = vst [vmem:[#allocation148_spill] sm:$0xff] %v6369_v48 }
 0x2b2   :  { %1809 = vmatmul.mubr.bf16.vlgmr.msra.gmra.mrb[24].mxu0 %v6321_v57  ;;  %1850 = vmatmul.mubr.bf16.vlgmr.msra.gmra.mrb[24].mxu1 %v6321_v57 }
 0x2b3   :  { %1882 = vmatpush1.bf16.msra.mxu0 %v6325_v50  ;;  %1923 = vmatpush1.bf16.msra.mxu1 %v6328_v55 }
 0x2b4   :  { %1883 = vmatprep.subr.bf16.mxu0 %v6331_v62  ;;  %1924 = vmatprep.subr.bf16.mxu1 %v6334_v59 }
 0x2b5   :  { %1913 = vmatprep.mubr.bf16.mxu0 %v9199_v5  ;;  %1954 = vmatprep.mubr.bf16.mxu1 %v9199_v5 }
 0x2b7   :  { %1884 = vmatpush1.bf16.msra.mxu0 %v6339_v44  ;;  %1925 = vmatpush1.bf16.msra.mxu1 %v6342_v6 }
 0x2b8   :  { %1885 = vmatprep.subr.bf16.mxu0 %v6345_v47  ;;  %1926 = vmatprep.subr.bf16.mxu1 %v6348_v60 }
 0x2bb   :  { %1886 = vmatpush1.bf16.msra.mxu0 %v6351_v2  ;;  %1927 = vmatpush1.bf16.msra.mxu1 %v6354_v46  ;;  %v6372_v46 = vld [vmem:[#allocation8 + $0x8c] ss:$16 sps:$4 sm:$0xff]  }
 0x2bc   :  { %1887 = vmatprep.subr.bf16.mxu0 %v6357_v61  ;;  %1928 = vmatprep.subr.bf16.mxu1 %v6360_v58  ;;  %9206 = vst [vmem:[#allocation149_spill] sm:$0xff] %v6372_v46  ;;  %v6375_v61 = vld [vmem:[#allocation8 + $0x80] ss:$16 sps:$4 sm:$0xff]   ;;  %v6378_v58 = vld [vmem:[#allocation8 + $0x88] ss:$16 sps:$4 sm:$0xff]  }
 0x2bd   :  { %9207 = vst [vmem:[#allocation150_spill] sm:$0xff] %v6375_v61  ;;  %9208 = vst [vmem:[#allocation151_spill] sm:$0xff] %v6378_v58 }
 0x2bf   :  { %1888 = vmatpush1.bf16.msra.mxu0 %v6363_v3  ;;  %1929 = vmatpush1.bf16.msra.mxu1 %v6366_v45  ;;  %v6381_v3 = vld [vmem:[#allocation8 + $0xa4] ss:$16 sps:$4 sm:$0xff]   ;;  %v6384_v45 = vld [vmem:[#allocation8 + $0xac] ss:$16 sps:$4 sm:$0xff]  }
 0x2c0   :  { %1889 = vmatprep.subr.bf16.mxu0 %v6369_v48  ;;  %1930 = vmatprep.subr.bf16.mxu1 %v6372_v46  ;;  %9209 = vst [vmem:[#allocation152_spill] sm:$0xff] %v6381_v3  ;;  %9210 = vst [vmem:[#allocation153_spill] sm:$0xff] %v6384_v45  ;;  %v6387_v48 = vld [vmem:[#allocation8 + $0xa0] ss:$16 sps:$4 sm:$0xff]   ;;  %v6390_v46 = vld [vmem:[#allocation8 + $0xa8] ss:$16 sps:$4 sm:$0xff]  }
 0x2c1   :  { %9211 = vst [vmem:[#allocation154_spill] sm:$0xff] %v6387_v48  ;;  %9212 = vst [vmem:[#allocation155_spill] sm:$0xff] %v6390_v46 }
 0x2c3   :  { %1890 = vmatpush1.bf16.msra.mxu0 %v6375_v61  ;;  %1931 = vmatpush1.bf16.msra.mxu1 %v6378_v58  ;;  %v6393_v61 = vld [vmem:[#allocation8 + $0xc4] ss:$16 sps:$4 sm:$0xff]   ;;  %v6396_v58 = vld [vmem:[#allocation8 + $0xcc] ss:$16 sps:$4 sm:$0xff]  }
 0x2c4   :  { %1891 = vmatprep.subr.bf16.mxu0 %v6381_v3  ;;  %1932 = vmatprep.subr.bf16.mxu1 %v6384_v45  ;;  %9213 = vst [vmem:[#allocation156_spill] sm:$0xff] %v6393_v61  ;;  %9214 = vst [vmem:[#allocation157_spill] sm:$0xff] %v6396_v58  ;;  %v6399_v3 = vld [vmem:[#allocation8 + $0xc0] ss:$16 sps:$4 sm:$0xff]   ;;  %v6402_v45 = vld [vmem:[#allocation8 + $0xc8] ss:$16 sps:$4 sm:$0xff]  }
 0x2c7   :  { %1892 = vmatpush1.bf16.msra.mxu0 %v6387_v48  ;;  %1933 = vmatpush1.bf16.msra.mxu1 %v6390_v46  ;;  %v6405_v48 = vld [vmem:[#allocation8 + $0xe4] ss:$16 sps:$4 sm:$0xff]   ;;  %v6408_v46 = vld [vmem:[#allocation8 + $0xec] ss:$16 sps:$4 sm:$0xff]  }
 0x2c8   :  { %1893 = vmatprep.subr.bf16.mxu0 %v6393_v61  ;;  %1934 = vmatprep.subr.bf16.mxu1 %v6396_v58  ;;  %v6411_v61 = vld [vmem:[#allocation8 + $0xe0] ss:$16 sps:$4 sm:$0xff]   ;;  %v6414_v58 = vld [vmem:[#allocation8 + $0xe8] ss:$16 sps:$4 sm:$0xff]  }
 0x2cb   :  { %1894 = vmatpush1.bf16.msra.mxu0 %v6399_v3  ;;  %1935 = vmatpush1.bf16.msra.mxu1 %v6402_v45 }
 0x2cc   :  { %1895 = vmatprep.subr.bf16.mxu0 %v6405_v48  ;;  %1936 = vmatprep.subr.bf16.mxu1 %v6408_v46 }
 0x2cf   :  { %1896 = vmatpush1.bf16.msra.mxu0 %v6411_v61  ;;  %1937 = vmatpush1.bf16.msra.mxu1 %v6414_v58 }
 0x2d0   :  { %1979 = vmatprep.subr.bf16.mxu0 %v5805_v8  ;;  %2020 = vmatprep.subr.bf16.mxu1 %v5807_v9  ;;  %v9215_v8 = vld [vmem:[#allocation21_spill] sm:$0xff]  ;;  %v9216_v9 = vld [vmem:[#allocation22_spill] sm:$0xff] }
 0x2d2   :  { %1914 = vmatmul.mubr.bf16.vlgmr.msra.gmra.mrb[28].mxu0 %v6107_v49  ;;  %1955 = vmatmul.mubr.bf16.vlgmr.msra.gmra.mrb[28].mxu1 %v6107_v49 }
 0x2d3   :  { %2011 = vmatprep.mubr.bf16.mxu0 %v6321_v57  ;;  %2052 = vmatprep.mubr.bf16.mxu1 %v6321_v57 }
 0x2d4   :  { %1980 = vmatpush1.bf16.msra.mxu0 %v5809_v10  ;;  %2021 = vmatpush1.bf16.msra.mxu1 %v5811_v11  ;;  %v9217_v10 = vld [vmem:[#allocation23_spill] sm:$0xff]  ;;  %v9218_v11 = vld [vmem:[#allocation24_spill] sm:$0xff] }
 0x2d5   :  { %1981 = vmatprep.subr.bf16.mxu0 %v5817_v12  ;;  %2022 = vmatprep.subr.bf16.mxu1 %v5819_v13  ;;  %v9219_v12 = vld [vmem:[#allocation25_spill] sm:$0xff]  ;;  %v9220_v13 = vld [vmem:[#allocation26_spill] sm:$0xff] }
 0x2d8   :  { %1982 = vmatpush1.bf16.msra.mxu0 %v5821_v14  ;;  %2023 = vmatpush1.bf16.msra.mxu1 %v5823_v15  ;;  %v9221_v14 = vld [vmem:[#allocation27_spill] sm:$0xff]  ;;  %v9222_v15 = vld [vmem:[#allocation28_spill] sm:$0xff] }
 0x2d9   :  { %1983 = vmatprep.subr.bf16.mxu0 %v5829_v16  ;;  %2024 = vmatprep.subr.bf16.mxu1 %v5831_v17  ;;  %v9223_v16 = vld [vmem:[#allocation29_spill] sm:$0xff]  ;;  %v9224_v17 = vld [vmem:[#allocation30_spill] sm:$0xff] }
 0x2dc   :  { %1984 = vmatpush1.bf16.msra.mxu0 %v5833_v18  ;;  %2025 = vmatpush1.bf16.msra.mxu1 %v5835_v19  ;;  %v9225_v18 = vld [vmem:[#allocation31_spill] sm:$0xff]  ;;  %v9226_v19 = vld [vmem:[#allocation32_spill] sm:$0xff] }
 0x2dd   :  { %1985 = vmatprep.subr.bf16.mxu0 %v5841_v20  ;;  %2026 = vmatprep.subr.bf16.mxu1 %v5843_v21  ;;  %v9227_v20 = vld [vmem:[#allocation33_spill] sm:$0xff]  ;;  %v9228_v21 = vld [vmem:[#allocation34_spill] sm:$0xff] }
 0x2e0   :  { %1986 = vmatpush1.bf16.msra.mxu0 %v5845_v22  ;;  %2027 = vmatpush1.bf16.msra.mxu1 %v5847_v23  ;;  %v9229_v22 = vld [vmem:[#allocation35_spill] sm:$0xff]  ;;  %v9230_v23 = vld [vmem:[#allocation36_spill] sm:$0xff] }
 0x2e1   :  { %1987 = vmatprep.subr.bf16.mxu0 %v5853_v24  ;;  %2028 = vmatprep.subr.bf16.mxu1 %v5855_v25  ;;  %v9231_v24 = vld [vmem:[#allocation37_spill] sm:$0xff]  ;;  %v9232_v25 = vld [vmem:[#allocation38_spill] sm:$0xff] }
 0x2e4   :  { %1988 = vmatpush1.bf16.msra.mxu0 %v5857_v26  ;;  %2029 = vmatpush1.bf16.msra.mxu1 %v5859_v27  ;;  %v9233_v26 = vld [vmem:[#allocation39_spill] sm:$0xff]  ;;  %v9234_v27 = vld [vmem:[#allocation40_spill] sm:$0xff] }
 0x2e5   :  { %1989 = vmatprep.subr.bf16.mxu0 %v5865_v28  ;;  %2030 = vmatprep.subr.bf16.mxu1 %v5867_v29  ;;  %v9235_v28 = vld [vmem:[#allocation41_spill] sm:$0xff]  ;;  %v9236_v29 = vld [vmem:[#allocation42_spill] sm:$0xff] }
 0x2e8   :  { %1990 = vmatpush1.bf16.msra.mxu0 %v5869_v30  ;;  %2031 = vmatpush1.bf16.msra.mxu1 %v5871_v31  ;;  %v9237_v30 = vld [vmem:[#allocation43_spill] sm:$0xff]  ;;  %v9238_v31 = vld [vmem:[#allocation44_spill] sm:$0xff] }
 0x2e9   :  { %1991 = vmatprep.subr.bf16.mxu0 %v5877_v32  ;;  %2032 = vmatprep.subr.bf16.mxu1 %v5879_v33  ;;  %v9239_v32 = vld [vmem:[#allocation45_spill] sm:$0xff]  ;;  %v9240_v33 = vld [vmem:[#allocation46_spill] sm:$0xff] }
 0x2ec   :  { %1992 = vmatpush1.bf16.msra.mxu0 %v5881_v34  ;;  %2033 = vmatpush1.bf16.msra.mxu1 %v5883_v35  ;;  %v9241_v34 = vld [vmem:[#allocation47_spill] sm:$0xff]  ;;  %v9242_v35 = vld [vmem:[#allocation48_spill] sm:$0xff] }
 0x2ed   :  { %1993 = vmatprep.subr.bf16.mxu0 %v5889_v36  ;;  %2034 = vmatprep.subr.bf16.mxu1 %v5891_v37  ;;  %v9243_v36 = vld [vmem:[#allocation49_spill] sm:$0xff]  ;;  %v9244_v37 = vld [vmem:[#allocation50_spill] sm:$0xff] }
 0x2f0   :  { %1994 = vmatpush1.bf16.msra.mxu0 %v5893_v38  ;;  %2035 = vmatpush1.bf16.msra.mxu1 %v5895_v39  ;;  %v4155_v38 = vld [vmem:[%s8639_s4 + $0x8] sm:$0xf] }
 0x2f1   :  { %1995 = vmatprep.subr.bf16.mxu0 %v5901_v40  ;;  %2036 = vmatprep.subr.bf16.mxu1 %v5903_v41  ;;  %v6491_v39 = vrot.slane %v4155_v38, %v6007_v7  ;;  %v6494_v40 = vrot.slane %v4155_v38, %v6012_v63  ;;  %v6497_v41 = vrot.slane %v4155_v38, %v6005_v1 }
 0x2f3   :  { %9245 = vst [vmem:[#allocation21_spill] sm:$0xff] %v6491_v39  ;;  %9246 = vst [vmem:[#allocation22_spill] sm:$0xff] %v6494_v40 }
 0x2f4   :  { %1996 = vmatpush1.bf16.msra.mxu0 %v5905_v42  ;;  %2037 = vmatpush1.bf16.msra.mxu1 %v5907_v43  ;;  %9247 = vst [vmem:[#allocation23_spill] sm:$0xff] %v6497_v41 }
 0x2f5   :  { %1997 = vmatprep.subr.bf16.mxu0 %v9215_v8  ;;  %2038 = vmatprep.subr.bf16.mxu1 %v9216_v9 }
 0x2f8   :  { %1998 = vmatpush1.bf16.msra.mxu0 %v9217_v10  ;;  %2039 = vmatpush1.bf16.msra.mxu1 %v9218_v11 }
 0x2f9   :  { %1999 = vmatprep.subr.bf16.mxu0 %v9219_v12  ;;  %2040 = vmatprep.subr.bf16.mxu1 %v9220_v13 }
 0x2fc   :  { %2000 = vmatpush1.bf16.msra.mxu0 %v9221_v14  ;;  %2041 = vmatpush1.bf16.msra.mxu1 %v9222_v15 }
 0x2fd   :  { %2001 = vmatprep.subr.bf16.mxu0 %v9223_v16  ;;  %2042 = vmatprep.subr.bf16.mxu1 %v9224_v17 }
 0x300   :  { %2002 = vmatpush1.bf16.msra.mxu0 %v9225_v18  ;;  %2043 = vmatpush1.bf16.msra.mxu1 %v9226_v19  ;;  %v611_v18 = vld [vmem:[#allocation12 + $0x10] sm:$0xff] }
 0x301   :  { %2003 = vmatprep.subr.bf16.mxu0 %v9227_v20  ;;  %2044 = vmatprep.subr.bf16.mxu1 %v9228_v21 }
 0x304   :  { %2004 = vmatpush1.bf16.msra.mxu0 %v9229_v22  ;;  %2045 = vmatpush1.bf16.msra.mxu1 %v9230_v23 }
 0x305   :  { %2005 = vmatprep.subr.bf16.mxu0 %v9231_v24  ;;  %2046 = vmatprep.subr.bf16.mxu1 %v9232_v25  ;;  %v9248_v25 = vld [vmem:[#allocation51_spill] sm:$0xff] }
 0x308   :  { %2006 = vmatpush1.bf16.msra.mxu0 %v9233_v26  ;;  %2047 = vmatpush1.bf16.msra.mxu1 %v9234_v27  ;;  %v9249_v27 = vld [vmem:[#allocation52_spill] sm:$0xff] }
 0x309   :  { %2007 = vmatprep.subr.bf16.mxu0 %v9235_v28  ;;  %2048 = vmatprep.subr.bf16.mxu1 %v9236_v29 }
 0x30c   :  { %2008 = vmatpush1.bf16.msra.mxu0 %v9237_v30  ;;  %2049 = vmatpush1.bf16.msra.mxu1 %v9238_v31  ;;  %v9250_v31 = vld [vmem:[#allocation53_spill] sm:$0xff] }
 0x30d   :  { %2009 = vmatprep.subr.bf16.mxu0 %v9239_v32  ;;  %2050 = vmatprep.subr.bf16.mxu1 %v9240_v33  ;;  %v9251_v33 = vld [vmem:[#allocation54_spill] sm:$0xff] }
 0x310   :  { %2010 = vmatpush1.bf16.msra.mxu0 %v9241_v34  ;;  %2051 = vmatpush1.bf16.msra.mxu1 %v9242_v35 }
 0x311   :  { %2077 = vmatprep.subr.bf16.mxu0 %v9243_v36  ;;  %2118 = vmatprep.subr.bf16.mxu1 %v9244_v37 }
 0x385   :  { %v1810_v42 = vpop.f32.mrb[24].mxu0  ;;  %v1851_v43 = vpop.f32.mrb[24].mxu1 }
 0x386   :  { %v1811_v49 = vadd.f32 %v1810_v42, %v6491_v39  ;;  %v1812_v57 = vpop.f32.mrb[25].mxu0  ;;  %v1853_v8 = vpop.f32.mrb[25].mxu1 }
 0x387   :  { %v1813_v9 = vadd.f32 %v1812_v57, %v6494_v40  ;;  %v1814_v10 = vpop.f32.mrb[26].mxu0  ;;  %v1855_v11 = vpop.f32.mrb[26].mxu1  ;;  %v1854_v7 = vadd.f32 %v1853_v8, %v6497_v41 }
 0x388   :  { %4691 = vtanh.f32 %v1811_v49  ;;  %v1815_v12 = vpop.f32.mrb[27].mxu0  ;;  %v1856_v13 = vpop.f32.mrb[27].mxu1  ;;  %v6509_v49 = vrot.slane %v4155_v38, %v6003_v4 }
 0x389   :  { %4693 = vtanh.f32 %v1813_v9 }
 0x38a   :  { %4695 = vtanh.f32 %v1854_v7  ;;  %v1852_v57 = vadd.f32 %v1851_v43, %v6509_v49 }
 0x392   :  { %v4692_v63 = vpop.eup %4691 }
 0x393   :  { %v1861_v1 = vmul.f32 0.5, %v4692_v63  ;;  %v4694_v14 = vpop.eup %4693 }
 0x394   :  { %v1862_v16 = vmul.f32 0.5, %v4694_v14  ;;  %v4696_v17 = vpop.eup %4695 }
 0x395   :  { %v1864_v15 = vadd.f32 0.5, %v1861_v1 }
 0x396   :  { %v1865_v19 = vadd.f32 0.5, %v1862_v16 }
 0x397   :  { %v1869_v20 = vmul.f32 %v4696_v17, %v1864_v15 }
 0x398   :  { %v1868_v21 = vmul.f32 %v1865_v19, %v611_v18 }
 0x39a   :  { %v6502_v22 = vadd.f32 %v1869_v20, %v1868_v21 }
 0x3a5   :  { %v1915_v23 = vpop.f32.mrb[28].mxu0  ;;  %v1956_v24 = vpop.f32.mrb[28].mxu1 }
 0x3a6   :  { %v1916_v26 = vadd.f32 %v1915_v23, %v9248_v25  ;;  %v1957_v28 = vadd.f32 %v1956_v24, %v9249_v27  ;;  %v1917_v29 = vpop.f32.mrb[29].mxu0  ;;  %v1958_v30 = vpop.f32.mrb[29].mxu1  ;;  %v9253_v25 = vld [vmem:[#allocation80_spill] sm:$0xff]  ;;  %v9255_v27 = vld [vmem:[#allocation82_spill] sm:$0xff] }
 0x3a7   :  { %v1918_v32 = vadd.f32 %v1917_v29, %v9250_v31  ;;  %v1959_v34 = vadd.f32 %v1958_v30, %v9251_v33  ;;  %v1919_v35 = vpop.f32.mrb[30].mxu0  ;;  %v1960_v36 = vpop.f32.mrb[30].mxu1  ;;  %v9257_v29 = vld [vmem:[#allocation84_spill] sm:$0xff]  ;;  %v9258_v30 = vld [vmem:[#allocation85_spill] sm:$0xff]  ;;  %v9259_v31 = vld [vmem:[#allocation86_spill] sm:$0xff] }
 0x3a8   :  { %4697 = vtanh.f32 %v1916_v26  ;;  %v1920_v37 = vpop.f32.mrb[31].mxu0  ;;  %v1961_v42 = vpop.f32.mrb[31].mxu1  ;;  %v9254_v26 = vld [vmem:[#allocation81_spill] sm:$0xff]  ;;  %v9264_v33 = vld [vmem:[#allocation91_spill] sm:$0xff]  ;;  %v9267_v36 = vld [vmem:[#allocation94_spill] sm:$0xff] }
 0x3a9   :  { %4699 = vtanh.f32 %v1918_v32  ;;  %v9263_v32 = vld [vmem:[#allocation90_spill] sm:$0xff]  ;;  %v9266_v35 = vld [vmem:[#allocation93_spill] sm:$0xff]  ;;  %v9268_v37 = vld [vmem:[#allocation95_spill] sm:$0xff] }
 0x3aa   :  { %4701 = vtanh.f32 %v1959_v34  ;;  %v9265_v34 = vld [vmem:[#allocation92_spill] sm:$0xff] }
 0x3ab   :  { %4703 = vtanh.f32 %v1852_v57  ;;  %v9269_v42 = vld [vmem:[#allocation96_spill] sm:$0xff]  ;;  %v9270_v57 = vld [vmem:[#allocation97_spill] sm:$0xff] }
 0x3ac   :  { %4705 = vtanh.f32 %v1957_v28  ;;  %v9256_v28 = vld [vmem:[#allocation83_spill] sm:$0xff] }
 0x3ad   :  { %4707 = vtanh.f32 %v6502_v22 }
 0x3b2   :  { %v4698_v8 = vpop.eup %4697 }
 0x3b3   :  { %v1966_v9 = vmul.f32 0.5, %v4698_v8  ;;  %v4700_v10 = vpop.eup %4699  ;;  %v9271_v8 = vld [vmem:[#allocation98_spill] sm:$0xff] }
 0x3b4   :  { %v1967_v7 = vmul.f32 0.5, %v4700_v10  ;;  %v4702_v12 = vpop.eup %4701  ;;  %v9273_v10 = vld [vmem:[#allocation100_spill] sm:$0xff] }
 0x3b5   :  { %v1969_v11 = vadd.f32 0.5, %v1966_v9  ;;  %v4704_v4 = vpop.eup %4703  ;;  %v9272_v9 = vld [vmem:[#allocation99_spill] sm:$0xff] }
 0x3b6   :  { %v1970_v13 = vadd.f32 0.5, %v1967_v7  ;;  %v4706_v38 = vpop.eup %4705  ;;  %v1863_v43 = vmul.f32 0.5, %v4704_v4  ;;  %v9275_v7 = vld [vmem:[#allocation102_spill] sm:$0xff]  ;;  %v9280_v4 = vld [vmem:[#allocation107_spill] sm:$0xff] }
 0x3b7   :  { %v1974_v63 = vmul.f32 %v4702_v12, %v1969_v11  ;;  %v1968_v15 = vmul.f32 0.5, %v4706_v38  ;;  %v4708_v16 = vpop.eup %4707  ;;  %v9274_v11 = vld [vmem:[#allocation101_spill] sm:$0xff]  ;;  %v9276_v12 = vld [vmem:[#allocation103_spill] sm:$0xff]  ;;  %v9281_v38 = vld [vmem:[#allocation108_spill] sm:$0xff] }
 0x3b8   :  { %v1973_v1 = vmul.f32 %v1970_v13, %v6100_v51  ;;  %v1866_v17 = vadd.f32 0.5, %v1863_v43  ;;  %v9252_v51 = vld [vmem:[#allocation79_spill] sm:$0xff]  ;;  %v9277_v13 = vld [vmem:[#allocation104_spill] sm:$0xff]  ;;  %v9282_v43 = vld [vmem:[#allocation109_spill] sm:$0xff] }
 0x3b9   :  { %v1971_v18 = vadd.f32 0.5, %v1968_v15  ;;  %v9283_v15 = vld [vmem:[#allocation110_spill] sm:$0xff] }
 0x3ba   :  { %v6514_v14 = vadd.f32 %v1974_v63, %v1973_v1  ;;  %v1872_v20 = vmul.f32 %v4708_v16, %v1866_v17  ;;  %v9278_v63 = vld [vmem:[#allocation105_spill] sm:$0xff]  ;;  %v9279_v1 = vld [vmem:[#allocation106_spill] sm:$0xff]  ;;  %v9284_v16 = vld [vmem:[#allocation111_spill] sm:$0xff] }
 0x3bb   :  { %v9285_v17 = vld [vmem:[#allocation112_spill] sm:$0xff] }
 0x3bc   :  { %4709 = vtanh.f32 %v6514_v14  ;;  %v1873_v24 = vpack.c.bf16 %v1872_v20, %v1872_v20  ;;  %v9288_v20 = vld [vmem:[#allocation115_spill] sm:$0xff] }
 0x3c6   :  { %v4710_v19 = vpop.eup %4709 }
 0x3c7   :  { %v1977_v21 = vmul.f32 %v4710_v19, %v1971_v18  ;;  %v9286_v18 = vld [vmem:[#allocation113_spill] sm:$0xff]  ;;  %v9287_v19 = vld [vmem:[#allocation114_spill] sm:$0xff] }
 0x3c9   :  { %v6517_v23 = vpack.c.bf16 %v1977_v21, %v1977_v21  ;;  %v9289_v21 = vld [vmem:[#allocation116_spill] sm:$0xff] }
 0x3cb   :  { %2012 = vmatmul.mubr.bf16.vlgmr.msra.gmra.mrb[32].mxu0 %v6517_v23  ;;  %2053 = vmatmul.mubr.bf16.vlgmr.msra.gmra.mrb[32].mxu1 %v6517_v23 }
 0x3cc   :  { %2109 = vmatprep.mubr.bf16.mxu0 %v1873_v24  ;;  %2150 = vmatprep.mubr.bf16.mxu1 %v1873_v24  ;;  %v9290_v24 = vld [vmem:[#allocation117_spill] sm:$0xff] }
 0x3cd   :  { %2078 = vmatpush1.bf16.msra.mxu0 %v6103_v53  ;;  %2119 = vmatpush1.bf16.msra.mxu1 %v6105_v54  ;;  %v9260_v53 = vld [vmem:[#allocation87_spill] sm:$0xff]  ;;  %v9261_v54 = vld [vmem:[#allocation88_spill] sm:$0xff] }
 0x3ce   :  { %2079 = vmatprep.subr.bf16.mxu0 %v6109_v56  ;;  %2120 = vmatprep.subr.bf16.mxu1 %v9252_v51  ;;  %v9262_v56 = vld [vmem:[#allocation89_spill] sm:$0xff]  ;;  %v9291_v51 = vld [vmem:[#allocation118_spill] sm:$0xff] }
 0x3d1   :  { %2080 = vmatpush1.bf16.msra.mxu0 %v9253_v25  ;;  %2121 = vmatpush1.bf16.msra.mxu1 %v9254_v26  ;;  %v9292_v25 = vld [vmem:[#allocation119_spill] sm:$0xff]  ;;  %v9293_v26 = vld [vmem:[#allocation120_spill] sm:$0xff] }
 0x3d2   :  { %2081 = vmatprep.subr.bf16.mxu0 %v9255_v27  ;;  %2122 = vmatprep.subr.bf16.mxu1 %v9256_v28  ;;  %v9294_v27 = vld [vmem:[#allocation121_spill] sm:$0xff]  ;;  %v9295_v28 = vld [vmem:[#allocation122_spill] sm:$0xff] }
 0x3d5   :  { %2082 = vmatpush1.bf16.msra.mxu0 %v9257_v29  ;;  %2123 = vmatpush1.bf16.msra.mxu1 %v9258_v30  ;;  %v9296_v29 = vld [vmem:[#allocation123_spill] sm:$0xff]  ;;  %v9297_v30 = vld [vmem:[#allocation124_spill] sm:$0xff] }
 0x3d6   :  { %2083 = vmatprep.subr.bf16.mxu0 %v9259_v31  ;;  %2124 = vmatprep.subr.bf16.mxu1 %v9260_v53  ;;  %v9298_v31 = vld [vmem:[#allocation125_spill] sm:$0xff]  ;;  %v9299_v53 = vld [vmem:[#allocation126_spill] sm:$0xff] }
 0x3d9   :  { %2084 = vmatpush1.bf16.msra.mxu0 %v9261_v54  ;;  %2125 = vmatpush1.bf16.msra.mxu1 %v9262_v56  ;;  %v9300_v54 = vld [vmem:[#allocation127_spill] sm:$0xff]  ;;  %v9301_v56 = vld [vmem:[#allocation128_spill] sm:$0xff] }
 0x3da   :  { %2085 = vmatprep.subr.bf16.mxu0 %v9263_v32  ;;  %2126 = vmatprep.subr.bf16.mxu1 %v9264_v33  ;;  %v9302_v32 = vld [vmem:[#allocation129_spill] sm:$0xff]  ;;  %v9303_v33 = vld [vmem:[#allocation130_spill] sm:$0xff] }
 0x3dd   :  { %2086 = vmatpush1.bf16.msra.mxu0 %v9265_v34  ;;  %2127 = vmatpush1.bf16.msra.mxu1 %v9266_v35  ;;  %v9304_v34 = vld [vmem:[#allocation131_spill] sm:$0xff]  ;;  %v9305_v35 = vld [vmem:[#allocation132_spill] sm:$0xff] }
 0x3de   :  { %2087 = vmatprep.subr.bf16.mxu0 %v9267_v36  ;;  %2128 = vmatprep.subr.bf16.mxu1 %v9268_v37  ;;  %v9306_v36 = vld [vmem:[#allocation133_spill] sm:$0xff]  ;;  %v9307_v37 = vld [vmem:[#allocation134_spill] sm:$0xff] }
 0x3e1   :  { %2088 = vmatpush1.bf16.msra.mxu0 %v9269_v42  ;;  %2129 = vmatpush1.bf16.msra.mxu1 %v9270_v57  ;;  %v9308_v42 = vld [vmem:[#allocation135_spill] sm:$0xff]  ;;  %v9309_v57 = vld [vmem:[#allocation136_spill] sm:$0xff] }
 0x3e2   :  { %2089 = vmatprep.subr.bf16.mxu0 %v9271_v8  ;;  %2130 = vmatprep.subr.bf16.mxu1 %v9272_v9  ;;  %v9310_v8 = vld [vmem:[#allocation137_spill] sm:$0xff]  ;;  %v9311_v9 = vld [vmem:[#allocation138_spill] sm:$0xff] }
 0x3e5   :  { %2090 = vmatpush1.bf16.msra.mxu0 %v9273_v10  ;;  %2131 = vmatpush1.bf16.msra.mxu1 %v9274_v11  ;;  %v9312_v10 = vld [vmem:[#allocation139_spill] sm:$0xff] }
 0x3e6   :  { %2091 = vmatprep.subr.bf16.mxu0 %v9275_v7  ;;  %2132 = vmatprep.subr.bf16.mxu1 %v9276_v12  ;;  %v9313_v12 = vld [vmem:[#allocation140_spill] sm:$0xff] }
 0x3e9   :  { %2092 = vmatpush1.bf16.msra.mxu0 %v9277_v13  ;;  %2133 = vmatpush1.bf16.msra.mxu1 %v9278_v63 }
 0x3ea   :  { %2093 = vmatprep.subr.bf16.mxu0 %v9279_v1  ;;  %2134 = vmatprep.subr.bf16.mxu1 %v9280_v4  ;;  %v9314_v4 = vld [vmem:[#allocation141_spill] sm:$0xff] }
 0x3ed   :  { %2094 = vmatpush1.bf16.msra.mxu0 %v9281_v38  ;;  %2135 = vmatpush1.bf16.msra.mxu1 %v9282_v43 }
 0x3ee   :  { %2095 = vmatprep.subr.bf16.mxu0 %v9283_v15  ;;  %2136 = vmatprep.subr.bf16.mxu1 %v9284_v16 }
 0x3f1   :  { %2096 = vmatpush1.bf16.msra.mxu0 %v9285_v17  ;;  %2137 = vmatpush1.bf16.msra.mxu1 %v9286_v18 }
 0x3f2   :  { %2097 = vmatprep.subr.bf16.mxu0 %v9287_v19  ;;  %2138 = vmatprep.subr.bf16.mxu1 %v9288_v20  ;;  %v9315_v19 = vld [vmem:[#allocation142_spill] sm:$0xff] }
 0x3f5   :  { %2098 = vmatpush1.bf16.msra.mxu0 %v9289_v21  ;;  %2139 = vmatpush1.bf16.msra.mxu1 %v9290_v24 }
 0x3f6   :  { %2099 = vmatprep.subr.bf16.mxu0 %v9291_v51  ;;  %2140 = vmatprep.subr.bf16.mxu1 %v9292_v25 }
 0x3f9   :  { %2100 = vmatpush1.bf16.msra.mxu0 %v9293_v26  ;;  %2141 = vmatpush1.bf16.msra.mxu1 %v9294_v27 }
 0x3fa   :  { %2101 = vmatprep.subr.bf16.mxu0 %v9295_v28  ;;  %2142 = vmatprep.subr.bf16.mxu1 %v9296_v29 }
 0x3fd   :  { %2102 = vmatpush1.bf16.msra.mxu0 %v9297_v30  ;;  %2143 = vmatpush1.bf16.msra.mxu1 %v9298_v31 }
 0x3fe   :  { %2103 = vmatprep.subr.bf16.mxu0 %v9299_v53  ;;  %2144 = vmatprep.subr.bf16.mxu1 %v9300_v54 }
 0x401   :  { %2104 = vmatpush1.bf16.msra.mxu0 %v9301_v56  ;;  %2145 = vmatpush1.bf16.msra.mxu1 %v9302_v32 }
 0x402   :  { %2105 = vmatprep.subr.bf16.mxu0 %v9303_v33  ;;  %2146 = vmatprep.subr.bf16.mxu1 %v9304_v34 }
 0x405   :  { %2106 = vmatpush1.bf16.msra.mxu0 %v9305_v35  ;;  %2147 = vmatpush1.bf16.msra.mxu1 %v9306_v36  ;;  %v9321_v35 = vld [vmem:[#allocation148_spill] sm:$0xff]  ;;  %v9327_v36 = vld [vmem:[#allocation154_spill] sm:$0xff] }
 0x406   :  { %2107 = vmatprep.subr.bf16.mxu0 %v9307_v37  ;;  %2148 = vmatprep.subr.bf16.mxu1 %v9308_v42  ;;  %v9328_v37 = vld [vmem:[#allocation155_spill] sm:$0xff]  ;;  %v9329_v42 = vld [vmem:[#allocation156_spill] sm:$0xff] }
 0x409   :  { %2108 = vmatpush1.bf16.msra.mxu0 %v9309_v57  ;;  %2149 = vmatpush1.bf16.msra.mxu1 %v9310_v8  ;;  %v9330_v57 = vld [vmem:[#allocation157_spill] sm:$0xff]  ;;  %v6625_v8 = vld [vmem:[#allocation9 + $0x4] ss:$16 sps:$4 sm:$0xff]  }
 0x40a   :  { %2182 = vmatprep.subr.bf16.mxu0 %v9311_v9  ;;  %2223 = vmatprep.subr.bf16.mxu1 %v9312_v10  ;;  %v6628_v9 = vld [vmem:[#allocation9 + $0xc] ss:$16 sps:$4 sm:$0xff]  }
 0x40b   :  { %v6654_v10 = vld [vmem:[#allocation9 + $0x4c] ss:$16 sps:$4 sm:$0xff]  }
 0x49e   :  { %v2013_v11 = vpop.f32.mrb[32].mxu0  ;;  %v2054_v7 = vpop.f32.mrb[32].mxu1 }
 0x49f   :  { %v2014_v13 = vadd.f32 %v2013_v11, %v9313_v12  ;;  %v2015_v63 = vpop.f32.mrb[33].mxu0  ;;  %v2056_v1 = vpop.f32.mrb[33].mxu1  ;;  %v2055_v20 = vadd.f32 %v2054_v7, %v9315_v19  ;;  %v6657_v11 = vld [vmem:[#allocation9 + $0x40] ss:$16 sps:$4 sm:$0xff]   ;;  %v6660_v7 = vld [vmem:[#allocation9 + $0x48] ss:$16 sps:$4 sm:$0xff]  }
 0x4a0   :  { %v2016_v38 = vadd.f32 %v2015_v63, %v9314_v4  ;;  %v2017_v43 = vpop.f32.mrb[34].mxu0  ;;  %v2058_v15 = vpop.f32.mrb[34].mxu1  ;;  %v2057_v16 = vadd.f32 %v2056_v1, %v6309_v52  ;;  %v6666_v63 = vld [vmem:[#allocation9 + $0x6c] ss:$16 sps:$4 sm:$0xff]   ;;  %v6669_v1 = vld [vmem:[#allocation9 + $0x60] ss:$16 sps:$4 sm:$0xff]  }
 0x4a1   :  { %4711 = vtanh.f32 %v2014_v13  ;;  %v2018_v17 = vpop.f32.mrb[35].mxu0  ;;  %v2059_v18 = vpop.f32.mrb[35].mxu1  ;;  %v6663_v13 = vld [vmem:[#allocation9 + $0x64] ss:$16 sps:$4 sm:$0xff]   ;;  %v6678_v15 = vld [vmem:[#allocation9 + $0x8c] ss:$16 sps:$4 sm:$0xff]  }
 0x4a2   :  { %4713 = vtanh.f32 %v2016_v38  ;;  %v6672_v38 = vld [vmem:[#allocation9 + $0x68] ss:$16 sps:$4 sm:$0xff]   ;;  %v6675_v43 = vld [vmem:[#allocation9 + $0x84] ss:$16 sps:$4 sm:$0xff]  }
 0x4a3   :  { %4715 = vtanh.f32 %v2057_v16  ;;  %v6681_v16 = vld [vmem:[#allocation9 + $0x80] ss:$16 sps:$4 sm:$0xff]   ;;  %v6684_v17 = vld [vmem:[#allocation9 + $0x88] ss:$16 sps:$4 sm:$0xff]   ;;  %v6687_v18 = vld [vmem:[#allocation9 + $0xa4] ss:$16 sps:$4 sm:$0xff]  }
 0x4a4   :  { %4717 = vtanh.f32 %v2055_v20  ;;  %v6690_v20 = vld [vmem:[#allocation9 + $0xac] ss:$16 sps:$4 sm:$0xff]  }
 0x4ab   :  { %v4712_v21 = vpop.eup %4711 }
 0x4ac   :  { %v2064_v24 = vmul.f32 0.5, %v4712_v21  ;;  %v4714_v51 = vpop.eup %4713  ;;  %v6693_v21 = vld [vmem:[#allocation9 + $0xa0] ss:$16 sps:$4 sm:$0xff]  }
 0x4ad   :  { %v2065_v26 = vmul.f32 0.5, %v4714_v51  ;;  %v4716_v27 = vpop.eup %4715  ;;  %v6699_v51 = vld [vmem:[#allocation9 + $0xc4] ss:$16 sps:$4 sm:$0xff]  }
 0x4ae   :  { %v2067_v25 = vadd.f32 0.5, %v2064_v24  ;;  %v4718_v53 = vpop.eup %4717  ;;  %v6696_v24 = vld [vmem:[#allocation9 + $0xa8] ss:$16 sps:$4 sm:$0xff]  }
 0x4af   :  { %v2068_v28 = vadd.f32 0.5, %v2065_v26  ;;  %v2066_v54 = vmul.f32 0.5, %v4718_v53  ;;  %v6705_v26 = vld [vmem:[#allocation9 + $0xc0] ss:$16 sps:$4 sm:$0xff]   ;;  %v6720_v53 = vld [vmem:[#allocation9 + $0xe8] ss:$16 sps:$4 sm:$0xff]  }
 0x4b0   :  { %v2072_v29 = vmul.f32 %v4716_v27, %v2067_v25  ;;  %v6702_v25 = vld [vmem:[#allocation9 + $0xcc] ss:$16 sps:$4 sm:$0xff]   ;;  %v6708_v27 = vld [vmem:[#allocation9 + $0xc8] ss:$16 sps:$4 sm:$0xff]  }
 0x4b1   :  { %v2071_v30 = vmul.f32 %v2068_v28, %v6318_v0  ;;  %v2069_v56 = vadd.f32 0.5, %v2066_v54  ;;  %v9316_v0 = vld [vmem:[#allocation143_spill] sm:$0xff]  ;;  %v6711_v28 = vld [vmem:[#allocation9 + $0xe4] ss:$16 sps:$4 sm:$0xff]  }
 0x4b2   :  { %v6723_v54 = vld [vmem:[#allocation9 + $0x104] ss:$16 sps:$4 sm:$0xff]  }
 0x4b3   :  { %v6590_v31 = vadd.f32 %v2072_v29, %v2071_v30  ;;  %v6714_v29 = vld [vmem:[#allocation9 + $0xec] ss:$16 sps:$4 sm:$0xff]   ;;  %v6717_v30 = vld [vmem:[#allocation9 + $0xe0] ss:$16 sps:$4 sm:$0xff]  }
 0x4b5   :  { %4719 = vtanh.f32 %v6590_v31 }
 0x4bf   :  { %v4720_v32 = vpop.eup %4719 }
 0x4c0   :  { %v2075_v33 = vmul.f32 %v4720_v32, %v2069_v56  ;;  %v6726_v56 = vld [vmem:[#allocation9 + $0x10c] ss:$16 sps:$4 sm:$0xff]   ;;  %v6729_v32 = vld [vmem:[#allocation9 + $0x100] ss:$16 sps:$4 sm:$0xff]  }
 0x4c1   :  { %9331 = vst [vmem:[#allocation24_spill] sm:$0xff] %v6726_v56  ;;  %9332 = vst [vmem:[#allocation25_spill] sm:$0xff] %v6729_v32 }
 0x4c2   :  { %v2076_v34 = vpack.c.bf16 %v2075_v33, %v2075_v33  ;;  %v6732_v33 = vld [vmem:[#allocation9 + $0x108] ss:$16 sps:$4 sm:$0xff]  }
 0x4c3   :  { %9333 = vst [vmem:[#allocation26_spill] sm:$0xff] %v6732_v33 }
 0x4c4   :  { %2110 = vmatmul.mubr.bf16.vlgmr.msra.gmra.mrb[36].mxu0 %v2076_v34  ;;  %2151 = vmatmul.mubr.bf16.vlgmr.msra.gmra.mrb[36].mxu1 %v2076_v34 }
 0x4c5   :  { %2183 = vmatpush1.bf16.msra.mxu0 %v6325_v50  ;;  %2224 = vmatpush1.bf16.msra.mxu1 %v6328_v55  ;;  %v9317_v50 = vld [vmem:[#allocation144_spill] sm:$0xff]  ;;  %v9318_v55 = vld [vmem:[#allocation145_spill] sm:$0xff] }
 0x4c6   :  { %2184 = vmatprep.subr.bf16.mxu0 %v6331_v62  ;;  %2225 = vmatprep.subr.bf16.mxu1 %v6334_v59  ;;  %v9319_v62 = vld [vmem:[#allocation146_spill] sm:$0xff]  ;;  %v9320_v59 = vld [vmem:[#allocation147_spill] sm:$0xff] }
 0x4c7   :  { %2214 = vmatprep.mubr.bf16.mxu0 %v9199_v5  ;;  %2255 = vmatprep.mubr.bf16.mxu1 %v9199_v5 }
 0x4c9   :  { %2185 = vmatpush1.bf16.msra.mxu0 %v6339_v44  ;;  %2226 = vmatpush1.bf16.msra.mxu1 %v6342_v6  ;;  %v9322_v44 = vld [vmem:[#allocation149_spill] sm:$0xff]  ;;  %v9323_v6 = vld [vmem:[#allocation150_spill] sm:$0xff] }
 0x4ca   :  { %2186 = vmatprep.subr.bf16.mxu0 %v6345_v47  ;;  %2227 = vmatprep.subr.bf16.mxu1 %v6348_v60  ;;  %v9324_v47 = vld [vmem:[#allocation151_spill] sm:$0xff]  ;;  %v9325_v60 = vld [vmem:[#allocation152_spill] sm:$0xff] }
 0x4cd   :  { %2187 = vmatpush1.bf16.msra.mxu0 %v6351_v2  ;;  %2228 = vmatpush1.bf16.msra.mxu1 %v9316_v0  ;;  %v9326_v2 = vld [vmem:[#allocation153_spill] sm:$0xff] }
 0x4ce   :  { %2188 = vmatprep.subr.bf16.mxu0 %v9317_v50  ;;  %2229 = vmatprep.subr.bf16.mxu1 %v9318_v55  ;;  %v6738_v0 = vld [vmem:[#allocation9 + $0x12c] ss:$16 sps:$4 sm:$0xff]   ;;  %v6741_v50 = vld [vmem:[#allocation9 + $0x120] ss:$16 sps:$4 sm:$0xff]   ;;  %v6744_v55 = vld [vmem:[#allocation9 + $0x128] ss:$16 sps:$4 sm:$0xff]  }
 0x4cf   :  { %9335 = vst [vmem:[#allocation28_spill] sm:$0xff] %v6738_v0  ;;  %9336 = vst [vmem:[#allocation29_spill] sm:$0xff] %v6741_v50 }
 0x4d0   :  { %9337 = vst [vmem:[#allocation30_spill] sm:$0xff] %v6744_v55 }
 0x4d1   :  { %2189 = vmatpush1.bf16.msra.mxu0 %v9319_v62  ;;  %2230 = vmatpush1.bf16.msra.mxu1 %v9320_v59  ;;  %v6747_v62 = vld [vmem:[#allocation9 + $0x144] ss:$16 sps:$4 sm:$0xff]   ;;  %v6750_v59 = vld [vmem:[#allocation9 + $0x14c] ss:$16 sps:$4 sm:$0xff]  }
 0x4d2   :  { %2190 = vmatprep.subr.bf16.mxu0 %v9321_v35  ;;  %2231 = vmatprep.subr.bf16.mxu1 %v9322_v44  ;;  %9338 = vst [vmem:[#allocation31_spill] sm:$0xff] %v6747_v62  ;;  %9339 = vst [vmem:[#allocation32_spill] sm:$0xff] %v6750_v59  ;;  %v6753_v35 = vld [vmem:[#allocation9 + $0x140] ss:$16 sps:$4 sm:$0xff]   ;;  %v6756_v44 = vld [vmem:[#allocation9 + $0x148] ss:$16 sps:$4 sm:$0xff]  }
 0x4d3   :  { %9340 = vst [vmem:[#allocation33_spill] sm:$0xff] %v6753_v35  ;;  %9341 = vst [vmem:[#allocation34_spill] sm:$0xff] %v6756_v44 }
 0x4d5   :  { %2191 = vmatpush1.bf16.msra.mxu0 %v9323_v6  ;;  %2232 = vmatpush1.bf16.msra.mxu1 %v9324_v47  ;;  %v6759_v6 = vld [vmem:[#allocation9 + $0x164] ss:$16 sps:$4 sm:$0xff]   ;;  %v6762_v47 = vld [vmem:[#allocation9 + $0x16c] ss:$16 sps:$4 sm:$0xff]  }
 0x4d6   :  { %2192 = vmatprep.subr.bf16.mxu0 %v9325_v60  ;;  %2233 = vmatprep.subr.bf16.mxu1 %v9326_v2  ;;  %9342 = vst [vmem:[#allocation35_spill] sm:$0xff] %v6759_v6  ;;  %9343 = vst [vmem:[#allocation36_spill] sm:$0xff] %v6762_v47  ;;  %v6765_v60 = vld [vmem:[#allocation9 + $0x160] ss:$16 sps:$4 sm:$0xff]   ;;  %v6768_v2 = vld [vmem:[#allocation9 + $0x168] ss:$16 sps:$4 sm:$0xff]  }
 0x4d7   :  { %9344 = vst [vmem:[#allocation37_spill] sm:$0xff] %v6765_v60  ;;  %9345 = vst [vmem:[#allocation38_spill] sm:$0xff] %v6768_v2 }
 0x4d9   :  { %2193 = vmatpush1.bf16.msra.mxu0 %v9327_v36  ;;  %2234 = vmatpush1.bf16.msra.mxu1 %v9328_v37  ;;  %v6771_v36 = vld [vmem:[#allocation9 + $0x184] ss:$16 sps:$4 sm:$0xff]   ;;  %v6774_v37 = vld [vmem:[#allocation9 + $0x18c] ss:$16 sps:$4 sm:$0xff]  }
 0x4da   :  { %2194 = vmatprep.subr.bf16.mxu0 %v9329_v42  ;;  %2235 = vmatprep.subr.bf16.mxu1 %v9330_v57  ;;  %9346 = vst [vmem:[#allocation39_spill] sm:$0xff] %v6771_v36  ;;  %9347 = vst [vmem:[#allocation40_spill] sm:$0xff] %v6774_v37  ;;  %v6777_v42 = vld [vmem:[#allocation9 + $0x180] ss:$16 sps:$4 sm:$0xff]   ;;  %v6780_v57 = vld [vmem:[#allocation9 + $0x188] ss:$16 sps:$4 sm:$0xff]  }
 0x4db   :  { %9348 = vst [vmem:[#allocation41_spill] sm:$0xff] %v6777_v42  ;;  %9349 = vst [vmem:[#allocation42_spill] sm:$0xff] %v6780_v57 }
 0x4dd   :  { %2195 = vmatpush1.bf16.msra.mxu0 %v6399_v3  ;;  %2236 = vmatpush1.bf16.msra.mxu1 %v6402_v45  ;;  %v6633_v3 = vld [vmem:[#allocation9] ss:$16 sps:$4 sm:$0xff]  }
 0x4de   :  { %2196 = vmatprep.subr.bf16.mxu0 %v6405_v48  ;;  %2237 = vmatprep.subr.bf16.mxu1 %v6408_v46  ;;  %v6636_v46 = vld [vmem:[#allocation9 + $0x8] ss:$16 sps:$4 sm:$0xff]   ;;  %v6645_v45 = vld [vmem:[#allocation9 + $0x20] ss:$16 sps:$4 sm:$0xff]  }
 0x4df   :  { %v6648_v48 = vld [vmem:[#allocation9 + $0x28] ss:$16 sps:$4 sm:$0xff]  }
 0x4e1   :  { %2197 = vmatpush1.bf16.msra.mxu0 %v6411_v61  ;;  %2238 = vmatpush1.bf16.msra.mxu1 %v6414_v58  ;;  %v6639_v61 = vld [vmem:[#allocation9 + $0x24] ss:$16 sps:$4 sm:$0xff]   ;;  %v6642_v58 = vld [vmem:[#allocation9 + $0x2c] ss:$16 sps:$4 sm:$0xff]  }
 0x4e2   :  { %2280 = vmatprep.subr.bf16.mxu0 %v6625_v8  ;;  %2321 = vmatprep.subr.bf16.mxu1 %v6628_v9 }
 0x4e4   :  { %2215 = vmatmul.mubr.bf16.vlgmr.msra.gmra.mrb[40].mxu0 %v6517_v23  ;;  %2256 = vmatmul.mubr.bf16.vlgmr.msra.gmra.mrb[40].mxu1 %v6517_v23  ;;  %v6651_v23 = vld [vmem:[#allocation9 + $0x44] ss:$16 sps:$4 sm:$0xff]  }
 0x4e5   :  { %2312 = vmatprep.mubr.bf16.mxu0 %v2076_v34  ;;  %2353 = vmatprep.mubr.bf16.mxu1 %v2076_v34  ;;  %v6735_v34 = vld [vmem:[#allocation9 + $0x124] ss:$16 sps:$4 sm:$0xff]  }
 0x4e6   :  { %2281 = vmatpush1.bf16.msra.mxu0 %v6633_v3  ;;  %2322 = vmatpush1.bf16.msra.mxu1 %v6636_v46  ;;  %9334 = vst [vmem:[#allocation27_spill] sm:$0xff] %v6735_v34 }
 0x4e7   :  { %2282 = vmatprep.subr.bf16.mxu0 %v6639_v61  ;;  %2323 = vmatprep.subr.bf16.mxu1 %v6642_v58 }
 0x4ea   :  { %2283 = vmatpush1.bf16.msra.mxu0 %v6645_v45  ;;  %2324 = vmatpush1.bf16.msra.mxu1 %v6648_v48 }
 0x4eb   :  { %2284 = vmatprep.subr.bf16.mxu0 %v6651_v23  ;;  %2325 = vmatprep.subr.bf16.mxu1 %v6654_v10 }
 0x4ee   :  { %2285 = vmatpush1.bf16.msra.mxu0 %v6657_v11  ;;  %2326 = vmatpush1.bf16.msra.mxu1 %v6660_v7 }
 0x4ef   :  { %2286 = vmatprep.subr.bf16.mxu0 %v6663_v13  ;;  %2327 = vmatprep.subr.bf16.mxu1 %v6666_v63 }
 0x4f2   :  { %2287 = vmatpush1.bf16.msra.mxu0 %v6669_v1  ;;  %2328 = vmatpush1.bf16.msra.mxu1 %v6672_v38 }
 0x4f3   :  { %2288 = vmatprep.subr.bf16.mxu0 %v6675_v43  ;;  %2329 = vmatprep.subr.bf16.mxu1 %v6678_v15 }
 0x4f6   :  { %2289 = vmatpush1.bf16.msra.mxu0 %v6681_v16  ;;  %2330 = vmatpush1.bf16.msra.mxu1 %v6684_v17 }
 0x4f7   :  { %2290 = vmatprep.subr.bf16.mxu0 %v6687_v18  ;;  %2331 = vmatprep.subr.bf16.mxu1 %v6690_v20 }
 0x4fa   :  { %2291 = vmatpush1.bf16.msra.mxu0 %v6693_v21  ;;  %2332 = vmatpush1.bf16.msra.mxu1 %v6696_v24 }
 0x4fb   :  { %2292 = vmatprep.subr.bf16.mxu0 %v6699_v51  ;;  %2333 = vmatprep.subr.bf16.mxu1 %v6702_v25 }
 0x4fe   :  { %2293 = vmatpush1.bf16.msra.mxu0 %v6705_v26  ;;  %2334 = vmatpush1.bf16.msra.mxu1 %v6708_v27 }
 0x4ff   :  { %2294 = vmatprep.subr.bf16.mxu0 %v6711_v28  ;;  %2335 = vmatprep.subr.bf16.mxu1 %v6714_v29 }
 0x502   :  { %2295 = vmatpush1.bf16.msra.mxu0 %v6717_v30  ;;  %2336 = vmatpush1.bf16.msra.mxu1 %v6720_v53 }
 0x503   :  { %2296 = vmatprep.subr.bf16.mxu0 %v6723_v54  ;;  %2337 = vmatprep.subr.bf16.mxu1 %v6726_v56 }
 0x506   :  { %2297 = vmatpush1.bf16.msra.mxu0 %v6729_v32  ;;  %2338 = vmatpush1.bf16.msra.mxu1 %v6732_v33 }
 0x507   :  { %2298 = vmatprep.subr.bf16.mxu0 %v6735_v34  ;;  %2339 = vmatprep.subr.bf16.mxu1 %v6738_v0 }
 0x50a   :  { %2299 = vmatpush1.bf16.msra.mxu0 %v6741_v50  ;;  %2340 = vmatpush1.bf16.msra.mxu1 %v6744_v55 }
 0x50b   :  { %2300 = vmatprep.subr.bf16.mxu0 %v6747_v62  ;;  %2341 = vmatprep.subr.bf16.mxu1 %v6750_v59 }
 0x50e   :  { %2301 = vmatpush1.bf16.msra.mxu0 %v6753_v35  ;;  %2342 = vmatpush1.bf16.msra.mxu1 %v6756_v44 }
 0x50f   :  { %2302 = vmatprep.subr.bf16.mxu0 %v6759_v6  ;;  %2343 = vmatprep.subr.bf16.mxu1 %v6762_v47 }
 0x512   :  { %2303 = vmatpush1.bf16.msra.mxu0 %v6765_v60  ;;  %2344 = vmatpush1.bf16.msra.mxu1 %v6768_v2  ;;  %v6783_v60 = vld [vmem:[#allocation9 + $0x1a4] ss:$16 sps:$4 sm:$0xff]   ;;  %v6786_v2 = vld [vmem:[#allocation9 + $0x1ac] ss:$16 sps:$4 sm:$0xff]  }
 0x513   :  { %2304 = vmatprep.subr.bf16.mxu0 %v6771_v36  ;;  %2345 = vmatprep.subr.bf16.mxu1 %v6774_v37  ;;  %9350 = vst [vmem:[#allocation43_spill] sm:$0xff] %v6783_v60  ;;  %9351 = vst [vmem:[#allocation44_spill] sm:$0xff] %v6786_v2  ;;  %v6789_v36 = vld [vmem:[#allocation9 + $0x1a0] ss:$16 sps:$4 sm:$0xff]   ;;  %v6792_v37 = vld [vmem:[#allocation9 + $0x1a8] ss:$16 sps:$4 sm:$0xff]  }
 0x514   :  { %9352 = vst [vmem:[#allocation45_spill] sm:$0xff] %v6789_v36  ;;  %9353 = vst [vmem:[#allocation46_spill] sm:$0xff] %v6792_v37 }
 0x516   :  { %2305 = vmatpush1.bf16.msra.mxu0 %v6777_v42  ;;  %2346 = vmatpush1.bf16.msra.mxu1 %v6780_v57  ;;  %v6795_v42 = vld [vmem:[#allocation9 + $0x1c4] ss:$16 sps:$4 sm:$0xff]   ;;  %v6798_v57 = vld [vmem:[#allocation9 + $0x1cc] ss:$16 sps:$4 sm:$0xff]  }
 0x517   :  { %2306 = vmatprep.subr.bf16.mxu0 %v6783_v60  ;;  %2347 = vmatprep.subr.bf16.mxu1 %v6786_v2  ;;  %9354 = vst [vmem:[#allocation47_spill] sm:$0xff] %v6795_v42  ;;  %9355 = vst [vmem:[#allocation48_spill] sm:$0xff] %v6798_v57  ;;  %v6801_v60 = vld [vmem:[#allocation9 + $0x1c0] ss:$16 sps:$4 sm:$0xff]   ;;  %v6804_v2 = vld [vmem:[#allocation9 + $0x1c8] ss:$16 sps:$4 sm:$0xff]  }
 0x518   :  { %9356 = vst [vmem:[#allocation49_spill] sm:$0xff] %v6801_v60  ;;  %9357 = vst [vmem:[#allocation50_spill] sm:$0xff] %v6804_v2 }
 0x51a   :  { %2307 = vmatpush1.bf16.msra.mxu0 %v6789_v36  ;;  %2348 = vmatpush1.bf16.msra.mxu1 %v6792_v37  ;;  %v6807_v36 = vld [vmem:[#allocation9 + $0x1e4] ss:$16 sps:$4 sm:$0xff]   ;;  %v6810_v37 = vld [vmem:[#allocation9 + $0x1ec] ss:$16 sps:$4 sm:$0xff]  }
 0x51b   :  { %2308 = vmatprep.subr.bf16.mxu0 %v6795_v42  ;;  %2349 = vmatprep.subr.bf16.mxu1 %v6798_v57  ;;  %9358 = vst [vmem:[#allocation51_spill] sm:$0xff] %v6807_v36  ;;  %9359 = vst [vmem:[#allocation52_spill] sm:$0xff] %v6810_v37  ;;  %v6813_v42 = vld [vmem:[#allocation9 + $0x1e0] ss:$16 sps:$4 sm:$0xff]   ;;  %v6816_v57 = vld [vmem:[#allocation9 + $0x1e8] ss:$16 sps:$4 sm:$0xff]  }
 0x51c   :  { %9360 = vst [vmem:[#allocation53_spill] sm:$0xff] %v6813_v42  ;;  %9361 = vst [vmem:[#allocation54_spill] sm:$0xff] %v6816_v57 }
 0x51e   :  { %2309 = vmatpush1.bf16.msra.mxu0 %v6801_v60  ;;  %2350 = vmatpush1.bf16.msra.mxu1 %v6804_v2  ;;  %v6819_v60 = vld [vmem:[#allocation9 + $0x204] ss:$16 sps:$4 sm:$0xff]   ;;  %v6822_v2 = vld [vmem:[#allocation9 + $0x20c] ss:$16 sps:$4 sm:$0xff]  }
 0x51f   :  { %2310 = vmatprep.subr.bf16.mxu0 %v6807_v36  ;;  %2351 = vmatprep.subr.bf16.mxu1 %v6810_v37  ;;  %9362 = vst [vmem:[#allocation79_spill] sm:$0xff] %v6819_v60  ;;  %9363 = vst [vmem:[#allocation80_spill] sm:$0xff] %v6822_v2 }
 0x522   :  { %2311 = vmatpush1.bf16.msra.mxu0 %v6813_v42  ;;  %2352 = vmatpush1.bf16.msra.mxu1 %v6816_v57 }
 0x523   :  { %2378 = vmatprep.subr.bf16.mxu0 %v6819_v60  ;;  %2419 = vmatprep.subr.bf16.mxu1 %v6822_v2 }
 0x597   :  { %v2111_v36 = vpop.f32.mrb[36].mxu0  ;;  %v2152_v47 = vpop.f32.mrb[36].mxu1 }
 0x598   :  { %v2112_v37 = vadd.f32 %v2111_v36, %v6491_v39  ;;  %v2113_v6 = vpop.f32.mrb[37].mxu0  ;;  %v2154_v44 = vpop.f32.mrb[37].mxu1 }
 0x599   :  { %v2114_v42 = vadd.f32 %v2113_v6, %v6494_v40  ;;  %v2115_v35 = vpop.f32.mrb[38].mxu0  ;;  %v2156_v59 = vpop.f32.mrb[38].mxu1  ;;  %v2155_v57 = vadd.f32 %v2154_v44, %v6497_v41  ;;  %v9366_v41 = vld [vmem:[#allocation57_spill] sm:$0xff]  ;;  %v9367_v40 = vld [vmem:[#allocation58_spill] sm:$0xff] }
 0x59a   :  { %4721 = vtanh.f32 %v2112_v37  ;;  %v2116_v62 = vpop.f32.mrb[39].mxu0  ;;  %v2157_v55 = vpop.f32.mrb[39].mxu1  ;;  %v9364_v37 = vld [vmem:[#allocation55_spill] sm:$0xff] }
 0x59b   :  { %4723 = vtanh.f32 %v2114_v42  ;;  %v9365_v62 = vld [vmem:[#allocation56_spill] sm:$0xff] }
 0x59c   :  { %4725 = vtanh.f32 %v2155_v57 }
 0x5a4   :  { %v4722_v60 = vpop.eup %4721 }
 0x5a5   :  { %v2162_v50 = vmul.f32 0.5, %v4722_v60  ;;  %v4724_v2 = vpop.eup %4723 }
 0x5a6   :  { %v2163_v34 = vmul.f32 0.5, %v4724_v2  ;;  %v4726_v33 = vpop.eup %4725 }
 0x5a7   :  { %v2165_v0 = vadd.f32 0.5, %v2162_v50 }
 0x5a8   :  { %v2166_v36 = vadd.f32 0.5, %v2163_v34 }
 0x5a9   :  { %v2170_v39 = vmul.f32 %v4726_v33, %v2165_v0 }
 0x5aa   :  { %v2169_v32 = vmul.f32 %v2166_v36, %v6502_v22 }
 0x5ac   :  { %v6829_v6 = vadd.f32 %v2170_v39, %v2169_v32  ;;  %v2153_v39 = vadd.f32 %v2152_v47, %v6509_v49 }
 0x5b7   :  { %v2216_v59 = vpop.f32.mrb[40].mxu0  ;;  %v2257_v35 = vpop.f32.mrb[40].mxu1 }
 0x5b8   :  { %v2217_v44 = vadd.f32 %v2216_v59, %v9364_v37  ;;  %v2258_v55 = vadd.f32 %v2257_v35, %v9365_v62  ;;  %v2218_v42 = vpop.f32.mrb[41].mxu0  ;;  %v2259_v57 = vpop.f32.mrb[41].mxu1 }
 0x5b9   :  { %v2219_v60 = vadd.f32 %v2218_v42, %v9366_v41  ;;  %v2260_v50 = vadd.f32 %v2259_v57, %v9367_v40  ;;  %v2220_v2 = vpop.f32.mrb[42].mxu0  ;;  %v2261_v56 = vpop.f32.mrb[42].mxu1 }
 0x5ba   :  { %4727 = vtanh.f32 %v2217_v44  ;;  %v2221_v33 = vpop.f32.mrb[43].mxu0  ;;  %v2262_v34 = vpop.f32.mrb[43].mxu1 }
 0x5bb   :  { %4729 = vtanh.f32 %v2219_v60 }
 0x5bc   :  { %4731 = vtanh.f32 %v2260_v50 }
 0x5bd   :  { %4733 = vtanh.f32 %v2153_v39 }
 0x5be   :  { %4735 = vtanh.f32 %v2258_v55 }
 0x5bf   :  { %4737 = vtanh.f32 %v6829_v6 }
 0x5c4   :  { %v4728_v22 = vpop.eup %4727 }
 0x5c5   :  { %v2267_v32 = vmul.f32 0.5, %v4728_v22  ;;  %v4730_v0 = vpop.eup %4729  ;;  %v6848_v22 = vld [vmem:[#allocation9 + $0x208] ss:$16 sps:$4 sm:$0xff]  }
 0x5c6   :  { %v2268_v59 = vmul.f32 0.5, %v4730_v0  ;;  %v4732_v35 = vpop.eup %4731  ;;  %v6854_v0 = vld [vmem:[#allocation9 + $0x22c] ss:$16 sps:$4 sm:$0xff]  }
 0x5c7   :  { %v2270_v36 = vadd.f32 0.5, %v2267_v32  ;;  %v4734_v44 = vpop.eup %4733  ;;  %v6851_v32 = vld [vmem:[#allocation9 + $0x224] ss:$16 sps:$4 sm:$0xff]  }
 0x5c8   :  { %v2271_v41 = vadd.f32 0.5, %v2268_v59  ;;  %v4736_v47 = vpop.eup %4735  ;;  %v2164_v62 = vmul.f32 0.5, %v4734_v44  ;;  %v6860_v59 = vld [vmem:[#allocation9 + $0x228] ss:$16 sps:$4 sm:$0xff]   ;;  %v6875_v44 = vld [vmem:[#allocation9 + $0x264] ss:$16 sps:$4 sm:$0xff]  }
 0x5c9   :  { %v2275_v37 = vmul.f32 %v4732_v35, %v2270_v36  ;;  %v2269_v42 = vmul.f32 0.5, %v4736_v47  ;;  %v4738_v57 = vpop.eup %4737  ;;  %v6857_v36 = vld [vmem:[#allocation9 + $0x220] ss:$16 sps:$4 sm:$0xff]   ;;  %9369 = vst [vmem:[#allocation82_spill] sm:$0xff] %v6860_v59  ;;  %v6863_v35 = vld [vmem:[#allocation9 + $0x244] ss:$16 sps:$4 sm:$0xff]  }
 0x5ca   :  { %v2274_v40 = vmul.f32 %v2271_v41, %v6514_v14  ;;  %v2167_v60 = vadd.f32 0.5, %v2164_v62  ;;  %v6845_v14 = vld [vmem:[#allocation9 + $0x200] ss:$16 sps:$4 sm:$0xff]   ;;  %9368 = vst [vmem:[#allocation81_spill] sm:$0xff] %v6857_v36  ;;  %9370 = vst [vmem:[#allocation83_spill] sm:$0xff] %v6863_v35 }
 0x5cb   :  { %v2272_v50 = vadd.f32 0.5, %v2269_v42  ;;  %v6866_v41 = vld [vmem:[#allocation9 + $0x24c] ss:$16 sps:$4 sm:$0xff]   ;;  %9374 = vst [vmem:[#allocation87_spill] sm:$0xff] %v6875_v44  ;;  %v6881_v62 = vld [vmem:[#allocation9 + $0x260] ss:$16 sps:$4 sm:$0xff]  }
 0x5cc   :  { %v6838_v56 = vadd.f32 %v2275_v37, %v2274_v40  ;;  %v2173_v2 = vmul.f32 %v4738_v57, %v2167_v60  ;;  %9371 = vst [vmem:[#allocation84_spill] sm:$0xff] %v6866_v41  ;;  %v6869_v37 = vld [vmem:[#allocation9 + $0x240] ss:$16 sps:$4 sm:$0xff]   ;;  %v6872_v40 = vld [vmem:[#allocation9 + $0x248] ss:$16 sps:$4 sm:$0xff]   ;;  %9376 = vst [vmem:[#allocation89_spill] sm:$0xff] %v6881_v62 }
 0x5cd   :  { %9372 = vst [vmem:[#allocation85_spill] sm:$0xff] %v6869_v37  ;;  %9373 = vst [vmem:[#allocation86_spill] sm:$0xff] %v6872_v40  ;;  %v6878_v47 = vld [vmem:[#allocation9 + $0x26c] ss:$16 sps:$4 sm:$0xff]   ;;  %v6884_v42 = vld [vmem:[#allocation9 + $0x268] ss:$16 sps:$4 sm:$0xff]  }
 0x5ce   :  { %4739 = vtanh.f32 %v6838_v56  ;;  %v2174_v39 = vpack.c.bf16 %v2173_v2, %v2173_v2  ;;  %9375 = vst [vmem:[#allocation88_spill] sm:$0xff] %v6878_v47  ;;  %9377 = vst [vmem:[#allocation90_spill] sm:$0xff] %v6884_v42  ;;  %v6887_v57 = vld [vmem:[#allocation9 + $0x284] ss:$16 sps:$4 sm:$0xff]   ;;  %v6890_v60 = vld [vmem:[#allocation9 + $0x28c] ss:$16 sps:$4 sm:$0xff]  }
 0x5cf   :  { %9378 = vst [vmem:[#allocation91_spill] sm:$0xff] %v6887_v57  ;;  %9379 = vst [vmem:[#allocation92_spill] sm:$0xff] %v6890_v60  ;;  %v6899_v2 = vld [vmem:[#allocation9 + $0x2a4] ss:$16 sps:$4 sm:$0xff]  }
 0x5d0   :  { %9382 = vst [vmem:[#allocation95_spill] sm:$0xff] %v6899_v2 }
 0x5d8   :  { %v4740_v55 = vpop.eup %4739 }
 0x5d9   :  { %v2278_v33 = vmul.f32 %v4740_v55, %v2272_v50  ;;  %v6893_v50 = vld [vmem:[#allocation9 + $0x280] ss:$16 sps:$4 sm:$0xff]   ;;  %v6896_v55 = vld [vmem:[#allocation9 + $0x288] ss:$16 sps:$4 sm:$0xff]  }
 0x5da   :  { %9380 = vst [vmem:[#allocation93_spill] sm:$0xff] %v6893_v50  ;;  %9381 = vst [vmem:[#allocation94_spill] sm:$0xff] %v6896_v55 }
 0x5db   :  { %v6841_v34 = vpack.c.bf16 %v2278_v33, %v2278_v33  ;;  %v6902_v33 = vld [vmem:[#allocation9 + $0x2ac] ss:$16 sps:$4 sm:$0xff]  }
 0x5dc   :  { %9383 = vst [vmem:[#allocation96_spill] sm:$0xff] %v6902_v33 }
 0x5dd   :  { %2313 = vmatmul.mubr.bf16.vlgmr.msra.gmra.mrb[44].mxu0 %v6841_v34  ;;  %2354 = vmatmul.mubr.bf16.vlgmr.msra.gmra.mrb[44].mxu1 %v6841_v34 }
 0x5de   :  { %2410 = vmatprep.mubr.bf16.mxu0 %v2174_v39  ;;  %2451 = vmatprep.mubr.bf16.mxu1 %v2174_v39  ;;  %v6905_v39 = vld [vmem:[#allocation9 + $0x2a0] ss:$16 sps:$4 sm:$0xff]  }
 0x5df   :  { %2379 = vmatpush1.bf16.msra.mxu0 %v6845_v14  ;;  %2420 = vmatpush1.bf16.msra.mxu1 %v6848_v22  ;;  %9384 = vst [vmem:[#allocation97_spill] sm:$0xff] %v6905_v39 }
 0x5e0   :  { %2380 = vmatprep.subr.bf16.mxu0 %v6851_v32  ;;  %2421 = vmatprep.subr.bf16.mxu1 %v6854_v0 }
 0x5e3   :  { %2381 = vmatpush1.bf16.msra.mxu0 %v6857_v36  ;;  %2422 = vmatpush1.bf16.msra.mxu1 %v6860_v59 }
 0x5e4   :  { %2382 = vmatprep.subr.bf16.mxu0 %v6863_v35  ;;  %2423 = vmatprep.subr.bf16.mxu1 %v6866_v41 }
 0x5e7   :  { %2383 = vmatpush1.bf16.msra.mxu0 %v6869_v37  ;;  %2424 = vmatpush1.bf16.msra.mxu1 %v6872_v40 }
 0x5e8   :  { %2384 = vmatprep.subr.bf16.mxu0 %v6875_v44  ;;  %2425 = vmatprep.subr.bf16.mxu1 %v6878_v47 }
 0x5eb   :  { %2385 = vmatpush1.bf16.msra.mxu0 %v6881_v62  ;;  %2426 = vmatpush1.bf16.msra.mxu1 %v6884_v42 }
 0x5ec   :  { %2386 = vmatprep.subr.bf16.mxu0 %v6887_v57  ;;  %2427 = vmatprep.subr.bf16.mxu1 %v6890_v60  ;;  %v6908_v60 = vld [vmem:[#allocation9 + $0x2a8] ss:$16 sps:$4 sm:$0xff]  }
 0x5ed   :  { %9385 = vst [vmem:[#allocation98_spill] sm:$0xff] %v6908_v60 }
 0x5ef   :  { %2387 = vmatpush1.bf16.msra.mxu0 %v6893_v50  ;;  %2428 = vmatpush1.bf16.msra.mxu1 %v6896_v55  ;;  %v6911_v50 = vld [vmem:[#allocation9 + $0x2c4] ss:$16 sps:$4 sm:$0xff]   ;;  %v6914_v55 = vld [vmem:[#allocation9 + $0x2cc] ss:$16 sps:$4 sm:$0xff]  }
 0x5f0   :  { %2388 = vmatprep.subr.bf16.mxu0 %v6899_v2  ;;  %2429 = vmatprep.subr.bf16.mxu1 %v6902_v33  ;;  %9386 = vst [vmem:[#allocation99_spill] sm:$0xff] %v6911_v50  ;;  %9387 = vst [vmem:[#allocation100_spill] sm:$0xff] %v6914_v55  ;;  %v6917_v2 = vld [vmem:[#allocation9 + $0x2c0] ss:$16 sps:$4 sm:$0xff]   ;;  %v6920_v33 = vld [vmem:[#allocation9 + $0x2c8] ss:$16 sps:$4 sm:$0xff]  }
 0x5f1   :  { %9388 = vst [vmem:[#allocation101_spill] sm:$0xff] %v6917_v2  ;;  %9389 = vst [vmem:[#allocation102_spill] sm:$0xff] %v6920_v33 }
 0x5f3   :  { %2389 = vmatpush1.bf16.msra.mxu0 %v6905_v39  ;;  %2430 = vmatpush1.bf16.msra.mxu1 %v6908_v60  ;;  %v6923_v39 = vld [vmem:[#allocation9 + $0x2e4] ss:$16 sps:$4 sm:$0xff]   ;;  %v6926_v60 = vld [vmem:[#allocation9 + $0x2ec] ss:$16 sps:$4 sm:$0xff]  }
 0x5f4   :  { %2390 = vmatprep.subr.bf16.mxu0 %v6911_v50  ;;  %2431 = vmatprep.subr.bf16.mxu1 %v6914_v55  ;;  %9390 = vst [vmem:[#allocation103_spill] sm:$0xff] %v6923_v39  ;;  %9391 = vst [vmem:[#allocation104_spill] sm:$0xff] %v6926_v60  ;;  %v6929_v50 = vld [vmem:[#allocation9 + $0x2e0] ss:$16 sps:$4 sm:$0xff]   ;;  %v6932_v55 = vld [vmem:[#allocation9 + $0x2e8] ss:$16 sps:$4 sm:$0xff]  }
 0x5f5   :  { %9392 = vst [vmem:[#allocation105_spill] sm:$0xff] %v6929_v50  ;;  %9393 = vst [vmem:[#allocation106_spill] sm:$0xff] %v6932_v55 }
 0x5f7   :  { %2391 = vmatpush1.bf16.msra.mxu0 %v6917_v2  ;;  %2432 = vmatpush1.bf16.msra.mxu1 %v6920_v33  ;;  %v6935_v2 = vld [vmem:[#allocation9 + $0x304] ss:$16 sps:$4 sm:$0xff]   ;;  %v6938_v33 = vld [vmem:[#allocation9 + $0x30c] ss:$16 sps:$4 sm:$0xff]  }
 0x5f8   :  { %2392 = vmatprep.subr.bf16.mxu0 %v6923_v39  ;;  %2433 = vmatprep.subr.bf16.mxu1 %v6926_v60  ;;  %9394 = vst [vmem:[#allocation107_spill] sm:$0xff] %v6935_v2  ;;  %9395 = vst [vmem:[#allocation108_spill] sm:$0xff] %v6938_v33  ;;  %v6941_v39 = vld [vmem:[#allocation9 + $0x300] ss:$16 sps:$4 sm:$0xff]   ;;  %v6944_v60 = vld [vmem:[#allocation9 + $0x308] ss:$16 sps:$4 sm:$0xff]  }
 0x5f9   :  { %9396 = vst [vmem:[#allocation109_spill] sm:$0xff] %v6941_v39  ;;  %9397 = vst [vmem:[#allocation110_spill] sm:$0xff] %v6944_v60 }
 0x5fb   :  { %2393 = vmatpush1.bf16.msra.mxu0 %v6929_v50  ;;  %2434 = vmatpush1.bf16.msra.mxu1 %v6932_v55  ;;  %v6947_v50 = vld [vmem:[#allocation9 + $0x324] ss:$16 sps:$4 sm:$0xff]   ;;  %v6950_v55 = vld [vmem:[#allocation9 + $0x32c] ss:$16 sps:$4 sm:$0xff]  }
 0x5fc   :  { %2394 = vmatprep.subr.bf16.mxu0 %v6935_v2  ;;  %2435 = vmatprep.subr.bf16.mxu1 %v6938_v33  ;;  %9398 = vst [vmem:[#allocation111_spill] sm:$0xff] %v6947_v50  ;;  %9399 = vst [vmem:[#allocation112_spill] sm:$0xff] %v6950_v55  ;;  %v6953_v2 = vld [vmem:[#allocation9 + $0x320] ss:$16 sps:$4 sm:$0xff]   ;;  %v6956_v33 = vld [vmem:[#allocation9 + $0x328] ss:$16 sps:$4 sm:$0xff]  }
 0x5fd   :  { %9400 = vst [vmem:[#allocation113_spill] sm:$0xff] %v6953_v2  ;;  %9401 = vst [vmem:[#allocation114_spill] sm:$0xff] %v6956_v33 }
 0x5ff   :  { %2395 = vmatpush1.bf16.msra.mxu0 %v6941_v39  ;;  %2436 = vmatpush1.bf16.msra.mxu1 %v6944_v60  ;;  %v6959_v39 = vld [vmem:[#allocation9 + $0x344] ss:$16 sps:$4 sm:$0xff]   ;;  %v6962_v60 = vld [vmem:[#allocation9 + $0x34c] ss:$16 sps:$4 sm:$0xff]  }
 0x600   :  { %2396 = vmatprep.subr.bf16.mxu0 %v6947_v50  ;;  %2437 = vmatprep.subr.bf16.mxu1 %v6950_v55  ;;  %9402 = vst [vmem:[#allocation115_spill] sm:$0xff] %v6959_v39  ;;  %9403 = vst [vmem:[#allocation116_spill] sm:$0xff] %v6962_v60  ;;  %v6965_v50 = vld [vmem:[#allocation9 + $0x340] ss:$16 sps:$4 sm:$0xff]   ;;  %v6968_v55 = vld [vmem:[#allocation9 + $0x348] ss:$16 sps:$4 sm:$0xff]  }
 0x601   :  { %9404 = vst [vmem:[#allocation117_spill] sm:$0xff] %v6965_v50  ;;  %9405 = vst [vmem:[#allocation118_spill] sm:$0xff] %v6968_v55 }
 0x603   :  { %2397 = vmatpush1.bf16.msra.mxu0 %v6953_v2  ;;  %2438 = vmatpush1.bf16.msra.mxu1 %v6956_v33  ;;  %v6971_v2 = vld [vmem:[#allocation9 + $0x364] ss:$16 sps:$4 sm:$0xff]   ;;  %v6974_v33 = vld [vmem:[#allocation9 + $0x36c] ss:$16 sps:$4 sm:$0xff]  }
 0x604   :  { %2398 = vmatprep.subr.bf16.mxu0 %v6959_v39  ;;  %2439 = vmatprep.subr.bf16.mxu1 %v6962_v60  ;;  %9406 = vst [vmem:[#allocation119_spill] sm:$0xff] %v6971_v2  ;;  %9407 = vst [vmem:[#allocation120_spill] sm:$0xff] %v6974_v33  ;;  %v6977_v39 = vld [vmem:[#allocation9 + $0x360] ss:$16 sps:$4 sm:$0xff]   ;;  %v6980_v60 = vld [vmem:[#allocation9 + $0x368] ss:$16 sps:$4 sm:$0xff]  }
 0x605   :  { %9408 = vst [vmem:[#allocation121_spill] sm:$0xff] %v6977_v39  ;;  %9409 = vst [vmem:[#allocation122_spill] sm:$0xff] %v6980_v60 }
 0x607   :  { %2399 = vmatpush1.bf16.msra.mxu0 %v6965_v50  ;;  %2440 = vmatpush1.bf16.msra.mxu1 %v6968_v55  ;;  %v6983_v50 = vld [vmem:[#allocation9 + $0x384] ss:$16 sps:$4 sm:$0xff]   ;;  %v6986_v55 = vld [vmem:[#allocation9 + $0x38c] ss:$16 sps:$4 sm:$0xff]  }
 0x608   :  { %2400 = vmatprep.subr.bf16.mxu0 %v6971_v2  ;;  %2441 = vmatprep.subr.bf16.mxu1 %v6974_v33  ;;  %9410 = vst [vmem:[#allocation123_spill] sm:$0xff] %v6983_v50  ;;  %9411 = vst [vmem:[#allocation124_spill] sm:$0xff] %v6986_v55  ;;  %v6989_v2 = vld [vmem:[#allocation9 + $0x380] ss:$16 sps:$4 sm:$0xff]   ;;  %v6992_v33 = vld [vmem:[#allocation9 + $0x388] ss:$16 sps:$4 sm:$0xff]  }
 0x609   :  { %9412 = vst [vmem:[#allocation125_spill] sm:$0xff] %v6989_v2  ;;  %9413 = vst [vmem:[#allocation126_spill] sm:$0xff] %v6992_v33 }
 0x60b   :  { %2401 = vmatpush1.bf16.msra.mxu0 %v6977_v39  ;;  %2442 = vmatpush1.bf16.msra.mxu1 %v6980_v60  ;;  %v6995_v39 = vld [vmem:[#allocation9 + $0x3a4] ss:$16 sps:$4 sm:$0xff]   ;;  %v6998_v60 = vld [vmem:[#allocation9 + $0x3ac] ss:$16 sps:$4 sm:$0xff]  }
 0x60c   :  { %2402 = vmatprep.subr.bf16.mxu0 %v6983_v50  ;;  %2443 = vmatprep.subr.bf16.mxu1 %v6986_v55  ;;  %9414 = vst [vmem:[#allocation127_spill] sm:$0xff] %v6995_v39  ;;  %9415 = vst [vmem:[#allocation128_spill] sm:$0xff] %v6998_v60  ;;  %v7001_v50 = vld [vmem:[#allocation9 + $0x3a0] ss:$16 sps:$4 sm:$0xff]   ;;  %v7004_v55 = vld [vmem:[#allocation9 + $0x3a8] ss:$16 sps:$4 sm:$0xff]  }
 0x60d   :  { %9416 = vst [vmem:[#allocation129_spill] sm:$0xff] %v7001_v50  ;;  %9417 = vst [vmem:[#allocation130_spill] sm:$0xff] %v7004_v55 }
 0x60f   :  { %2403 = vmatpush1.bf16.msra.mxu0 %v6989_v2  ;;  %2444 = vmatpush1.bf16.msra.mxu1 %v6992_v33  ;;  %v7007_v2 = vld [vmem:[#allocation9 + $0x3c4] ss:$16 sps:$4 sm:$0xff]   ;;  %v7010_v33 = vld [vmem:[#allocation9 + $0x3cc] ss:$16 sps:$4 sm:$0xff]  }
 0x610   :  { %2404 = vmatprep.subr.bf16.mxu0 %v6995_v39  ;;  %2445 = vmatprep.subr.bf16.mxu1 %v6998_v60  ;;  %9418 = vst [vmem:[#allocation131_spill] sm:$0xff] %v7007_v2  ;;  %9419 = vst [vmem:[#allocation132_spill] sm:$0xff] %v7010_v33  ;;  %v7013_v39 = vld [vmem:[#allocation9 + $0x3c0] ss:$16 sps:$4 sm:$0xff]   ;;  %v7016_v60 = vld [vmem:[#allocation9 + $0x3c8] ss:$16 sps:$4 sm:$0xff]  }
 0x611   :  { %9420 = vst [vmem:[#allocation133_spill] sm:$0xff] %v7013_v39  ;;  %9421 = vst [vmem:[#allocation134_spill] sm:$0xff] %v7016_v60 }
 0x613   :  { %2405 = vmatpush1.bf16.msra.mxu0 %v7001_v50  ;;  %2446 = vmatpush1.bf16.msra.mxu1 %v7004_v55  ;;  %v7019_v50 = vld [vmem:[#allocation9 + $0x3e4] ss:$16 sps:$4 sm:$0xff]   ;;  %v7022_v55 = vld [vmem:[#allocation9 + $0x3ec] ss:$16 sps:$4 sm:$0xff]  }
 0x614   :  { %2406 = vmatprep.subr.bf16.mxu0 %v7007_v2  ;;  %2447 = vmatprep.subr.bf16.mxu1 %v7010_v33  ;;  %9422 = vst [vmem:[#allocation135_spill] sm:$0xff] %v7019_v50  ;;  %9423 = vst [vmem:[#allocation136_spill] sm:$0xff] %v7022_v55  ;;  %v7025_v2 = vld [vmem:[#allocation9 + $0x3e0] ss:$16 sps:$4 sm:$0xff]   ;;  %v7028_v33 = vld [vmem:[#allocation9 + $0x3e8] ss:$16 sps:$4 sm:$0xff]  }
 0x615   :  { %9424 = vst [vmem:[#allocation137_spill] sm:$0xff] %v7025_v2  ;;  %9425 = vst [vmem:[#allocation138_spill] sm:$0xff] %v7028_v33 }
 0x617   :  { %2407 = vmatpush1.bf16.msra.mxu0 %v7013_v39  ;;  %2448 = vmatpush1.bf16.msra.mxu1 %v7016_v60  ;;  %v7031_v39 = vld [vmem:[#allocation8 + $0x4] ss:$16 sps:$4 sm:$0xff]   ;;  %v7034_v60 = vld [vmem:[#allocation8 + $0xc] ss:$16 sps:$4 sm:$0xff]  }
 0x618   :  { %2408 = vmatprep.subr.bf16.mxu0 %v7019_v50  ;;  %2449 = vmatprep.subr.bf16.mxu1 %v7022_v55  ;;  %9426 = vst [vmem:[#allocation139_spill] sm:$0xff] %v7031_v39  ;;  %9427 = vst [vmem:[#allocation141_spill] sm:$0xff] %v7034_v60 }
 0x61b   :  { %2409 = vmatpush1.bf16.msra.mxu0 %v7025_v2  ;;  %2450 = vmatpush1.bf16.msra.mxu1 %v7028_v33 }
 0x61c   :  { %2483 = vmatprep.subr.bf16.mxu0 %v7031_v39  ;;  %2524 = vmatprep.subr.bf16.mxu1 %v7034_v60 }
 0x6b0   :  { %v2314_v50 = vpop.f32.mrb[44].mxu0  ;;  %v2355_v57 = vpop.f32.mrb[44].mxu1 }
 0x6b1   :  { %v2315_v55 = vadd.f32 %v2314_v50, %v9313_v12  ;;  %v2316_v42 = vpop.f32.mrb[45].mxu0  ;;  %v2357_v62 = vpop.f32.mrb[45].mxu1  ;;  %v2356_v39 = vadd.f32 %v2355_v57, %v9315_v19 }
 0x6b2   :  { %v2317_v2 = vadd.f32 %v2316_v42, %v9314_v4  ;;  %v2318_v47 = vpop.f32.mrb[46].mxu0  ;;  %v2359_v44 = vpop.f32.mrb[46].mxu1  ;;  %v2358_v33 = vadd.f32 %v2357_v62, %v6309_v52 }
 0x6b3   :  { %4741 = vtanh.f32 %v2315_v55  ;;  %v2319_v40 = vpop.f32.mrb[47].mxu0  ;;  %v2360_v37 = vpop.f32.mrb[47].mxu1 }
 0x6b4   :  { %4743 = vtanh.f32 %v2317_v2 }
 0x6b5   :  { %4745 = vtanh.f32 %v2358_v33  ;;  %v7072_v33 = vld [vmem:[#allocation8 + $0x4c] ss:$16 sps:$4 sm:$0xff]  }
 0x6b6   :  { %4747 = vtanh.f32 %v2356_v39  ;;  %v7075_v39 = vld [vmem:[#allocation8 + $0x40] ss:$16 sps:$4 sm:$0xff]  }
 0x6bd   :  { %v4742_v60 = vpop.eup %4741 }
 0x6be   :  { %v2365_v41 = vmul.f32 0.5, %v4742_v60  ;;  %v4744_v35 = vpop.eup %4743  ;;  %v7069_v60 = vld [vmem:[#allocation8 + $0x44] ss:$16 sps:$4 sm:$0xff]  }
 0x6bf   :  { %v2366_v50 = vmul.f32 0.5, %v4744_v35  ;;  %v4746_v12 = vpop.eup %4745  ;;  %v7049_v35 = vld [vmem:[#allocation8] ss:$16 sps:$4 sm:$0xff]  }
 0x6c0   :  { %v2368_v59 = vadd.f32 0.5, %v2365_v41  ;;  %v4748_v37 = vpop.eup %4747  ;;  %v7066_v41 = vld [vmem:[#allocation8 + $0x28] ss:$16 sps:$4 sm:$0xff]  }
 0x6c1   :  { %v2369_v36 = vadd.f32 0.5, %v2366_v50  ;;  %v2367_v40 = vmul.f32 0.5, %v4748_v37  ;;  %v7078_v50 = vld [vmem:[#allocation8 + $0x48] ss:$16 sps:$4 sm:$0xff]   ;;  %v7087_v37 = vld [vmem:[#allocation8 + $0x60] ss:$16 sps:$4 sm:$0xff]  }
 0x6c2   :  { %v2373_v42 = vmul.f32 %v4746_v12, %v2368_v59  ;;  %v7052_v12 = vld [vmem:[#allocation8 + $0x8] ss:$16 sps:$4 sm:$0xff]   ;;  %v7063_v59 = vld [vmem:[#allocation8 + $0x20] ss:$16 sps:$4 sm:$0xff]   ;;  %9429 = vst [vmem:[#allocation143_spill] sm:$0xff] %v7087_v37 }
 0x6c3   :  { %v2372_v44 = vmul.f32 %v2369_v36, %v6590_v31  ;;  %v2370_v62 = vadd.f32 0.5, %v2367_v40  ;;  %v7055_v31 = vld [vmem:[#allocation8 + $0x24] ss:$16 sps:$4 sm:$0xff]   ;;  %v7058_v36 = vld [vmem:[#allocation8 + $0x2c] ss:$16 sps:$4 sm:$0xff]  }
 0x6c4   :  { %v7090_v40 = vld [vmem:[#allocation8 + $0x68] ss:$16 sps:$4 sm:$0xff]  }
 0x6c5   :  { %v7042_v47 = vadd.f32 %v2373_v42, %v2372_v44  ;;  %v7081_v42 = vld [vmem:[#allocation8 + $0x64] ss:$16 sps:$4 sm:$0xff]   ;;  %v7084_v44 = vld [vmem:[#allocation8 + $0x6c] ss:$16 sps:$4 sm:$0xff]   ;;  %9430 = vst [vmem:[#allocation144_spill] sm:$0xff] %v7090_v40 }
 0x6c6   :  { %9428 = vst [vmem:[#allocation142_spill] sm:$0xff] %v7084_v44 }
 0x6c7   :  { %4749 = vtanh.f32 %v7042_v47 }
 0x6d1   :  { %v4750_v55 = vpop.eup %4749 }
 0x6d2   :  { %v2376_v57 = vmul.f32 %v4750_v55, %v2370_v62  ;;  %v7093_v62 = vld [vmem:[#allocation8 + $0x84] ss:$16 sps:$4 sm:$0xff]   ;;  %v7096_v55 = vld [vmem:[#allocation8 + $0x8c] ss:$16 sps:$4 sm:$0xff]  }
 0x6d3   :  { %9431 = vst [vmem:[#allocation145_spill] sm:$0xff] %v7093_v62  ;;  %9432 = vst [vmem:[#allocation146_spill] sm:$0xff] %v7096_v55 }
 0x6d4   :  { %v7045_v2 = vpack.c.bf16 %v2376_v57, %v2376_v57  ;;  %v7099_v57 = vld [vmem:[#allocation8 + $0x80] ss:$16 sps:$4 sm:$0xff]  }
 0x6d5   :  { %9433 = vst [vmem:[#allocation147_spill] sm:$0xff] %v7099_v57 }
 0x6d6   :  { %2411 = vmatmul.mubr.bf16.vlgmr.msra.gmra.mrb[48].mxu0 %v7045_v2  ;;  %2452 = vmatmul.mubr.bf16.vlgmr.msra.gmra.mrb[48].mxu1 %v7045_v2 }
 0x6d7   :  { %2484 = vmatpush1.bf16.msra.mxu0 %v7049_v35  ;;  %2525 = vmatpush1.bf16.msra.mxu1 %v7052_v12 }
 0x6d8   :  { %2485 = vmatprep.subr.bf16.mxu0 %v7055_v31  ;;  %2526 = vmatprep.subr.bf16.mxu1 %v7058_v36 }
 0x6d9   :  { %2515 = vmatprep.mubr.bf16.mxu0 %v9199_v5  ;;  %2556 = vmatprep.mubr.bf16.mxu1 %v9199_v5 }
 0x6db   :  { %2486 = vmatpush1.bf16.msra.mxu0 %v7063_v59  ;;  %2527 = vmatpush1.bf16.msra.mxu1 %v7066_v41 }
 0x6dc   :  { %2487 = vmatprep.subr.bf16.mxu0 %v7069_v60  ;;  %2528 = vmatprep.subr.bf16.mxu1 %v7072_v33 }
 0x6df   :  { %2488 = vmatpush1.bf16.msra.mxu0 %v7075_v39  ;;  %2529 = vmatpush1.bf16.msra.mxu1 %v7078_v50 }
 0x6e0   :  { %2489 = vmatprep.subr.bf16.mxu0 %v7081_v42  ;;  %2530 = vmatprep.subr.bf16.mxu1 %v7084_v44  ;;  %v7102_v44 = vld [vmem:[#allocation8 + $0x88] ss:$16 sps:$4 sm:$0xff]  }
 0x6e1   :  { %9434 = vst [vmem:[#allocation148_spill] sm:$0xff] %v7102_v44 }
 0x6e3   :  { %2490 = vmatpush1.bf16.msra.mxu0 %v7087_v37  ;;  %2531 = vmatpush1.bf16.msra.mxu1 %v7090_v40  ;;  %v7105_v37 = vld [vmem:[#allocation8 + $0xa4] ss:$16 sps:$4 sm:$0xff]   ;;  %v7108_v40 = vld [vmem:[#allocation8 + $0xac] ss:$16 sps:$4 sm:$0xff]  }
 0x6e4   :  { %2491 = vmatprep.subr.bf16.mxu0 %v7093_v62  ;;  %2532 = vmatprep.subr.bf16.mxu1 %v7096_v55  ;;  %9435 = vst [vmem:[#allocation149_spill] sm:$0xff] %v7105_v37  ;;  %9436 = vst [vmem:[#allocation150_spill] sm:$0xff] %v7108_v40  ;;  %v7111_v62 = vld [vmem:[#allocation8 + $0xa0] ss:$16 sps:$4 sm:$0xff]   ;;  %v7114_v55 = vld [vmem:[#allocation8 + $0xa8] ss:$16 sps:$4 sm:$0xff]  }
 0x6e5   :  { %9437 = vst [vmem:[#allocation151_spill] sm:$0xff] %v7111_v62  ;;  %9438 = vst [vmem:[#allocation152_spill] sm:$0xff] %v7114_v55 }
 0x6e7   :  { %2492 = vmatpush1.bf16.msra.mxu0 %v7099_v57  ;;  %2533 = vmatpush1.bf16.msra.mxu1 %v7102_v44  ;;  %v7117_v57 = vld [vmem:[#allocation8 + $0xc4] ss:$16 sps:$4 sm:$0xff]   ;;  %v7120_v44 = vld [vmem:[#allocation8 + $0xcc] ss:$16 sps:$4 sm:$0xff]  }
 0x6e8   :  { %2493 = vmatprep.subr.bf16.mxu0 %v7105_v37  ;;  %2534 = vmatprep.subr.bf16.mxu1 %v7108_v40  ;;  %9439 = vst [vmem:[#allocation153_spill] sm:$0xff] %v7117_v57  ;;  %9440 = vst [vmem:[#allocation154_spill] sm:$0xff] %v7120_v44  ;;  %v7123_v37 = vld [vmem:[#allocation8 + $0xc0] ss:$16 sps:$4 sm:$0xff]   ;;  %v7126_v40 = vld [vmem:[#allocation8 + $0xc8] ss:$16 sps:$4 sm:$0xff]  }
 0x6eb   :  { %2494 = vmatpush1.bf16.msra.mxu0 %v7111_v62  ;;  %2535 = vmatpush1.bf16.msra.mxu1 %v7114_v55  ;;  %v7129_v62 = vld [vmem:[#allocation8 + $0xe4] ss:$16 sps:$4 sm:$0xff]   ;;  %v7132_v55 = vld [vmem:[#allocation8 + $0xec] ss:$16 sps:$4 sm:$0xff]  }
 0x6ec   :  { %2495 = vmatprep.subr.bf16.mxu0 %v7117_v57  ;;  %2536 = vmatprep.subr.bf16.mxu1 %v7120_v44  ;;  %v7135_v57 = vld [vmem:[#allocation8 + $0xe0] ss:$16 sps:$4 sm:$0xff]   ;;  %v7138_v44 = vld [vmem:[#allocation8 + $0xe8] ss:$16 sps:$4 sm:$0xff]  }
 0x6ef   :  { %2496 = vmatpush1.bf16.msra.mxu0 %v7123_v37  ;;  %2537 = vmatpush1.bf16.msra.mxu1 %v7126_v40 }
 0x6f0   :  { %2497 = vmatprep.subr.bf16.mxu0 %v7129_v62  ;;  %2538 = vmatprep.subr.bf16.mxu1 %v7132_v55 }
 0x6f3   :  { %2498 = vmatpush1.bf16.msra.mxu0 %v7135_v57  ;;  %2539 = vmatpush1.bf16.msra.mxu1 %v7138_v44 }
 0x6f4   :  { %2581 = vmatprep.subr.bf16.mxu0 %v6625_v8  ;;  %2622 = vmatprep.subr.bf16.mxu1 %v6628_v9  ;;  %v9441_v8 = vld [vmem:[#allocation24_spill] sm:$0xff]  ;;  %v9442_v9 = vld [vmem:[#allocation25_spill] sm:$0xff] }
 0x6f6   :  { %2516 = vmatmul.mubr.bf16.vlgmr.msra.gmra.mrb[52].mxu0 %v6841_v34  ;;  %2557 = vmatmul.mubr.bf16.vlgmr.msra.gmra.mrb[52].mxu1 %v6841_v34 }
 0x6f7   :  { %2613 = vmatprep.mubr.bf16.mxu0 %v7045_v2  ;;  %2654 = vmatprep.mubr.bf16.mxu1 %v7045_v2 }
 0x6f8   :  { %2582 = vmatpush1.bf16.msra.mxu0 %v6633_v3  ;;  %2623 = vmatpush1.bf16.msra.mxu1 %v6636_v46  ;;  %v9443_v3 = vld [vmem:[#allocation26_spill] sm:$0xff]  ;;  %v9444_v46 = vld [vmem:[#allocation27_spill] sm:$0xff] }
 0x6f9   :  { %2583 = vmatprep.subr.bf16.mxu0 %v6639_v61  ;;  %2624 = vmatprep.subr.bf16.mxu1 %v6642_v58  ;;  %v9445_v61 = vld [vmem:[#allocation28_spill] sm:$0xff]  ;;  %v9446_v58 = vld [vmem:[#allocation29_spill] sm:$0xff] }
 0x6fc   :  { %2584 = vmatpush1.bf16.msra.mxu0 %v6645_v45  ;;  %2625 = vmatpush1.bf16.msra.mxu1 %v6648_v48  ;;  %v9447_v45 = vld [vmem:[#allocation30_spill] sm:$0xff]  ;;  %v9448_v48 = vld [vmem:[#allocation31_spill] sm:$0xff] }
 0x6fd   :  { %2585 = vmatprep.subr.bf16.mxu0 %v6651_v23  ;;  %2626 = vmatprep.subr.bf16.mxu1 %v6654_v10  ;;  %v9449_v23 = vld [vmem:[#allocation32_spill] sm:$0xff]  ;;  %v9450_v10 = vld [vmem:[#allocation33_spill] sm:$0xff] }
 0x700   :  { %2586 = vmatpush1.bf16.msra.mxu0 %v6657_v11  ;;  %2627 = vmatpush1.bf16.msra.mxu1 %v6660_v7  ;;  %v9451_v11 = vld [vmem:[#allocation34_spill] sm:$0xff]  ;;  %v9452_v7 = vld [vmem:[#allocation35_spill] sm:$0xff] }
 0x701   :  { %2587 = vmatprep.subr.bf16.mxu0 %v6663_v13  ;;  %2628 = vmatprep.subr.bf16.mxu1 %v6666_v63  ;;  %v9453_v13 = vld [vmem:[#allocation36_spill] sm:$0xff]  ;;  %v9454_v63 = vld [vmem:[#allocation37_spill] sm:$0xff] }
 0x704   :  { %2588 = vmatpush1.bf16.msra.mxu0 %v6669_v1  ;;  %2629 = vmatpush1.bf16.msra.mxu1 %v6672_v38  ;;  %v9455_v1 = vld [vmem:[#allocation38_spill] sm:$0xff]  ;;  %v9456_v38 = vld [vmem:[#allocation39_spill] sm:$0xff] }
 0x705   :  { %2589 = vmatprep.subr.bf16.mxu0 %v6675_v43  ;;  %2630 = vmatprep.subr.bf16.mxu1 %v6678_v15  ;;  %v9457_v43 = vld [vmem:[#allocation40_spill] sm:$0xff]  ;;  %v9458_v15 = vld [vmem:[#allocation41_spill] sm:$0xff] }
 0x708   :  { %2590 = vmatpush1.bf16.msra.mxu0 %v6681_v16  ;;  %2631 = vmatpush1.bf16.msra.mxu1 %v6684_v17  ;;  %v9459_v16 = vld [vmem:[#allocation42_spill] sm:$0xff]  ;;  %v9460_v17 = vld [vmem:[#allocation43_spill] sm:$0xff] }
 0x709   :  { %2591 = vmatprep.subr.bf16.mxu0 %v6687_v18  ;;  %2632 = vmatprep.subr.bf16.mxu1 %v6690_v20  ;;  %v9461_v18 = vld [vmem:[#allocation44_spill] sm:$0xff]  ;;  %v9462_v20 = vld [vmem:[#allocation45_spill] sm:$0xff] }
 0x70c   :  { %2592 = vmatpush1.bf16.msra.mxu0 %v6693_v21  ;;  %2633 = vmatpush1.bf16.msra.mxu1 %v6696_v24  ;;  %v9463_v21 = vld [vmem:[#allocation46_spill] sm:$0xff]  ;;  %v9464_v24 = vld [vmem:[#allocation47_spill] sm:$0xff] }
 0x70d   :  { %2593 = vmatprep.subr.bf16.mxu0 %v6699_v51  ;;  %2634 = vmatprep.subr.bf16.mxu1 %v6702_v25  ;;  %v9465_v51 = vld [vmem:[#allocation48_spill] sm:$0xff]  ;;  %v9466_v25 = vld [vmem:[#allocation49_spill] sm:$0xff] }
 0x710   :  { %2594 = vmatpush1.bf16.msra.mxu0 %v6705_v26  ;;  %2635 = vmatpush1.bf16.msra.mxu1 %v6708_v27  ;;  %v9467_v26 = vld [vmem:[#allocation50_spill] sm:$0xff]  ;;  %v9468_v27 = vld [vmem:[#allocation51_spill] sm:$0xff] }
 0x711   :  { %2595 = vmatprep.subr.bf16.mxu0 %v6711_v28  ;;  %2636 = vmatprep.subr.bf16.mxu1 %v6714_v29  ;;  %v9469_v28 = vld [vmem:[#allocation52_spill] sm:$0xff]  ;;  %v9470_v29 = vld [vmem:[#allocation53_spill] sm:$0xff] }
 0x714   :  { %2596 = vmatpush1.bf16.msra.mxu0 %v6717_v30  ;;  %2637 = vmatpush1.bf16.msra.mxu1 %v6720_v53  ;;  %v9471_v30 = vld [vmem:[#allocation54_spill] sm:$0xff]  ;;  %v9472_v53 = vld [vmem:[#allocation79_spill] sm:$0xff] }
 0x715   :  { %2597 = vmatprep.subr.bf16.mxu0 %v6723_v54  ;;  %2638 = vmatprep.subr.bf16.mxu1 %v9441_v8  ;;  %v9473_v54 = vld [vmem:[#allocation80_spill] sm:$0xff]  ;;  %v9474_v8 = vld [vmem:[#allocation21_spill] sm:$0xff] }
 0x718   :  { %2598 = vmatpush1.bf16.msra.mxu0 %v9442_v9  ;;  %2639 = vmatpush1.bf16.msra.mxu1 %v9443_v3 }
 0x719   :  { %2599 = vmatprep.subr.bf16.mxu0 %v9444_v46  ;;  %2640 = vmatprep.subr.bf16.mxu1 %v9445_v61  ;;  %v9475_v61 = vld [vmem:[#allocation22_spill] sm:$0xff] }
 0x71c   :  { %2600 = vmatpush1.bf16.msra.mxu0 %v9446_v58  ;;  %2641 = vmatpush1.bf16.msra.mxu1 %v9447_v45 }
 0x71d   :  { %2601 = vmatprep.subr.bf16.mxu0 %v9448_v48  ;;  %2642 = vmatprep.subr.bf16.mxu1 %v9449_v23  ;;  %v9476_v23 = vld [vmem:[#allocation23_spill] sm:$0xff] }
 0x720   :  { %2602 = vmatpush1.bf16.msra.mxu0 %v9450_v10  ;;  %2643 = vmatpush1.bf16.msra.mxu1 %v9451_v11 }
 0x721   :  { %2603 = vmatprep.subr.bf16.mxu0 %v9452_v7  ;;  %2644 = vmatprep.subr.bf16.mxu1 %v9453_v13 }
 0x724   :  { %2604 = vmatpush1.bf16.msra.mxu0 %v9454_v63  ;;  %2645 = vmatpush1.bf16.msra.mxu1 %v9455_v1 }
 0x725   :  { %2605 = vmatprep.subr.bf16.mxu0 %v9456_v38  ;;  %2646 = vmatprep.subr.bf16.mxu1 %v9457_v43 }
 0x728   :  { %2606 = vmatpush1.bf16.msra.mxu0 %v9458_v15  ;;  %2647 = vmatpush1.bf16.msra.mxu1 %v9459_v16 }
 0x729   :  { %2607 = vmatprep.subr.bf16.mxu0 %v9460_v17  ;;  %2648 = vmatprep.subr.bf16.mxu1 %v9461_v18 }
 0x72c   :  { %2608 = vmatpush1.bf16.msra.mxu0 %v9462_v20  ;;  %2649 = vmatpush1.bf16.msra.mxu1 %v9463_v21 }
 0x72d   :  { %2609 = vmatprep.subr.bf16.mxu0 %v9464_v24  ;;  %2650 = vmatprep.subr.bf16.mxu1 %v9465_v51  ;;  %v9477_v51 = vld [vmem:[#allocation59_spill] sm:$0xff] }
 0x730   :  { %2610 = vmatpush1.bf16.msra.mxu0 %v9466_v25  ;;  %2651 = vmatpush1.bf16.msra.mxu1 %v9467_v26  ;;  %v9478_v26 = vld [vmem:[#allocation60_spill] sm:$0xff] }
 0x731   :  { %2611 = vmatprep.subr.bf16.mxu0 %v9468_v27  ;;  %2652 = vmatprep.subr.bf16.mxu1 %v9469_v28 }
 0x734   :  { %2612 = vmatpush1.bf16.msra.mxu0 %v9470_v29  ;;  %2653 = vmatpush1.bf16.msra.mxu1 %v9471_v30  ;;  %v9479_v30 = vld [vmem:[#allocation61_spill] sm:$0xff] }
 0x735   :  { %2679 = vmatprep.subr.bf16.mxu0 %v9472_v53  ;;  %2720 = vmatprep.subr.bf16.mxu1 %v9473_v54  ;;  %v9480_v54 = vld [vmem:[#allocation62_spill] sm:$0xff] }
 0x7a9   :  { %v2412_v34 = vpop.f32.mrb[48].mxu0  ;;  %v2453_v2 = vpop.f32.mrb[48].mxu1 }
 0x7aa   :  { %v2413_v9 = vadd.f32 %v2412_v34, %v9474_v8  ;;  %v2414_v3 = vpop.f32.mrb[49].mxu0  ;;  %v2455_v46 = vpop.f32.mrb[49].mxu1 }
 0x7ab   :  { %v2415_v58 = vadd.f32 %v2414_v3, %v9475_v61  ;;  %v2416_v45 = vpop.f32.mrb[50].mxu0  ;;  %v2457_v48 = vpop.f32.mrb[50].mxu1  ;;  %v2456_v10 = vadd.f32 %v2455_v46, %v9476_v23 }
 0x7ac   :  { %4751 = vtanh.f32 %v2413_v9  ;;  %v2417_v11 = vpop.f32.mrb[51].mxu0  ;;  %v2458_v7 = vpop.f32.mrb[51].mxu1 }
 0x7ad   :  { %4753 = vtanh.f32 %v2415_v58 }
 0x7ae   :  { %4755 = vtanh.f32 %v2456_v10 }
 0x7b6   :  { %v4752_v13 = vpop.eup %4751 }
 0x7b7   :  { %v2463_v63 = vmul.f32 0.5, %v4752_v13  ;;  %v4754_v1 = vpop.eup %4753 }
 0x7b8   :  { %v2464_v43 = vmul.f32 0.5, %v4754_v1  ;;  %v4756_v15 = vpop.eup %4755 }
 0x7b9   :  { %v2466_v38 = vadd.f32 0.5, %v2463_v63 }
 0x7ba   :  { %v2467_v16 = vadd.f32 0.5, %v2464_v43 }
 0x7bb   :  { %v2471_v17 = vmul.f32 %v4756_v15, %v2466_v38 }
 0x7bc   :  { %v2470_v18 = vmul.f32 %v2467_v16, %v6829_v6  ;;  %v2454_v6 = vadd.f32 %v2453_v2, %v6509_v49 }
 0x7be   :  { %v7215_v20 = vadd.f32 %v2471_v17, %v2470_v18 }
 0x7c9   :  { %v2517_v21 = vpop.f32.mrb[52].mxu0  ;;  %v2558_v24 = vpop.f32.mrb[52].mxu1 }
 0x7ca   :  { %v2518_v25 = vadd.f32 %v2517_v21, %v9477_v51  ;;  %v2559_v27 = vadd.f32 %v2558_v24, %v9478_v26  ;;  %v2519_v28 = vpop.f32.mrb[53].mxu0  ;;  %v2560_v29 = vpop.f32.mrb[53].mxu1 }
 0x7cb   :  { %v2520_v53 = vadd.f32 %v2519_v28, %v9479_v30  ;;  %v2561_v34 = vadd.f32 %v2560_v29, %v9480_v54  ;;  %v2521_v9 = vpop.f32.mrb[54].mxu0  ;;  %v2562_v3 = vpop.f32.mrb[54].mxu1  ;;  %v9482_v29 = vld [vmem:[#allocation82_spill] sm:$0xff]  ;;  %v9483_v30 = vld [vmem:[#allocation83_spill] sm:$0xff]  ;;  %v9485_v54 = vld [vmem:[#allocation85_spill] sm:$0xff] }
 0x7cc   :  { %4757 = vtanh.f32 %v2518_v25  ;;  %v2522_v46 = vpop.f32.mrb[55].mxu0  ;;  %v2563_v58 = vpop.f32.mrb[55].mxu1  ;;  %v9487_v9 = vld [vmem:[#allocation87_spill] sm:$0xff]  ;;  %v9492_v3 = vld [vmem:[#allocation92_spill] sm:$0xff] }
 0x7cd   :  { %4759 = vtanh.f32 %v2520_v53  ;;  %v9484_v53 = vld [vmem:[#allocation84_spill] sm:$0xff]  ;;  %v9493_v46 = vld [vmem:[#allocation93_spill] sm:$0xff]  ;;  %v9494_v58 = vld [vmem:[#allocation94_spill] sm:$0xff] }
 0x7ce   :  { %4761 = vtanh.f32 %v2561_v34  ;;  %v9486_v34 = vld [vmem:[#allocation86_spill] sm:$0xff] }
 0x7cf   :  { %4763 = vtanh.f32 %v2454_v6  ;;  %v9495_v6 = vld [vmem:[#allocation95_spill] sm:$0xff] }
 0x7d0   :  { %4765 = vtanh.f32 %v2559_v27 }
 0x7d1   :  { %4767 = vtanh.f32 %v7215_v20 }
 0x7d6   :  { %v4758_v45 = vpop.eup %4757 }
 0x7d7   :  { %v2568_v48 = vmul.f32 0.5, %v4758_v45  ;;  %v4760_v10 = vpop.eup %4759  ;;  %v9496_v45 = vld [vmem:[#allocation96_spill] sm:$0xff] }
 0x7d8   :  { %v2569_v7 = vmul.f32 0.5, %v4760_v10  ;;  %v4762_v13 = vpop.eup %4761  ;;  %v9498_v10 = vld [vmem:[#allocation98_spill] sm:$0xff] }
 0x7d9   :  { %v2571_v11 = vadd.f32 0.5, %v2568_v48  ;;  %v4764_v15 = vpop.eup %4763  ;;  %v9497_v48 = vld [vmem:[#allocation97_spill] sm:$0xff] }
 0x7da   :  { %v2572_v63 = vadd.f32 0.5, %v2569_v7  ;;  %v4766_v2 = vpop.eup %4765  ;;  %v2465_v16 = vmul.f32 0.5, %v4764_v15  ;;  %v9500_v7 = vld [vmem:[#allocation100_spill] sm:$0xff]  ;;  %v9505_v15 = vld [vmem:[#allocation105_spill] sm:$0xff] }
 0x7db   :  { %v2576_v1 = vmul.f32 %v4762_v13, %v2571_v11  ;;  %v2570_v17 = vmul.f32 0.5, %v4766_v2  ;;  %v4768_v18 = vpop.eup %4767  ;;  %v9499_v11 = vld [vmem:[#allocation99_spill] sm:$0xff]  ;;  %v9501_v13 = vld [vmem:[#allocation101_spill] sm:$0xff]  ;;  %v9506_v2 = vld [vmem:[#allocation106_spill] sm:$0xff] }
 0x7dc   :  { %v2575_v38 = vmul.f32 %v2572_v63, %v6838_v56  ;;  %v2468_v21 = vadd.f32 0.5, %v2465_v16  ;;  %v9481_v56 = vld [vmem:[#allocation81_spill] sm:$0xff]  ;;  %v9502_v63 = vld [vmem:[#allocation102_spill] sm:$0xff]  ;;  %v9507_v16 = vld [vmem:[#allocation107_spill] sm:$0xff] }
 0x7dd   :  { %v2573_v24 = vadd.f32 0.5, %v2570_v17  ;;  %v9508_v17 = vld [vmem:[#allocation108_spill] sm:$0xff] }
 0x7de   :  { %v7224_v43 = vadd.f32 %v2576_v1, %v2575_v38  ;;  %v2474_v25 = vmul.f32 %v4768_v18, %v2468_v21  ;;  %v9503_v1 = vld [vmem:[#allocation103_spill] sm:$0xff]  ;;  %v9504_v38 = vld [vmem:[#allocation104_spill] sm:$0xff]  ;;  %v9509_v18 = vld [vmem:[#allocation109_spill] sm:$0xff] }
 0x7df   :  { %v9510_v21 = vld [vmem:[#allocation110_spill] sm:$0xff] }
 0x7e0   :  { %4769 = vtanh.f32 %v7224_v43  ;;  %v2475_v28 = vpack.c.bf16 %v2474_v25, %v2474_v25  ;;  %v9513_v25 = vld [vmem:[#allocation113_spill] sm:$0xff] }
 0x7ea   :  { %v4770_v51 = vpop.eup %4769 }
 0x7eb   :  { %v2579_v26 = vmul.f32 %v4770_v51, %v2573_v24  ;;  %v9511_v24 = vld [vmem:[#allocation111_spill] sm:$0xff]  ;;  %v9512_v51 = vld [vmem:[#allocation112_spill] sm:$0xff] }
 0x7ed   :  { %v7227_v27 = vpack.c.bf16 %v2579_v26, %v2579_v26  ;;  %v9514_v26 = vld [vmem:[#allocation114_spill] sm:$0xff] }
 0x7ef   :  { %2614 = vmatmul.mubr.bf16.vlgmr.msra.gmra.mrb[56].mxu0 %v7227_v27  ;;  %2655 = vmatmul.mubr.bf16.vlgmr.msra.gmra.mrb[56].mxu1 %v7227_v27 }
 0x7f0   :  { %2711 = vmatprep.mubr.bf16.mxu0 %v2475_v28  ;;  %2752 = vmatprep.mubr.bf16.mxu1 %v2475_v28  ;;  %v9515_v28 = vld [vmem:[#allocation115_spill] sm:$0xff] }
 0x7f1   :  { %2680 = vmatpush1.bf16.msra.mxu0 %v6845_v14  ;;  %2721 = vmatpush1.bf16.msra.mxu1 %v6848_v22  ;;  %v9488_v14 = vld [vmem:[#allocation88_spill] sm:$0xff]  ;;  %v9489_v22 = vld [vmem:[#allocation89_spill] sm:$0xff] }
 0x7f2   :  { %2681 = vmatprep.subr.bf16.mxu0 %v6851_v32  ;;  %2722 = vmatprep.subr.bf16.mxu1 %v6854_v0  ;;  %v9490_v32 = vld [vmem:[#allocation90_spill] sm:$0xff]  ;;  %v9491_v0 = vld [vmem:[#allocation91_spill] sm:$0xff] }
 0x7f5   :  { %2682 = vmatpush1.bf16.msra.mxu0 %v9481_v56  ;;  %2723 = vmatpush1.bf16.msra.mxu1 %v9482_v29  ;;  %v9516_v56 = vld [vmem:[#allocation116_spill] sm:$0xff]  ;;  %v9517_v29 = vld [vmem:[#allocation117_spill] sm:$0xff] }
 0x7f6   :  { %2683 = vmatprep.subr.bf16.mxu0 %v9483_v30  ;;  %2724 = vmatprep.subr.bf16.mxu1 %v9484_v53  ;;  %v9518_v30 = vld [vmem:[#allocation118_spill] sm:$0xff]  ;;  %v9519_v53 = vld [vmem:[#allocation119_spill] sm:$0xff] }
 0x7f9   :  { %2684 = vmatpush1.bf16.msra.mxu0 %v9485_v54  ;;  %2725 = vmatpush1.bf16.msra.mxu1 %v9486_v34  ;;  %v9520_v54 = vld [vmem:[#allocation120_spill] sm:$0xff]  ;;  %v9521_v34 = vld [vmem:[#allocation121_spill] sm:$0xff] }
 0x7fa   :  { %2685 = vmatprep.subr.bf16.mxu0 %v9487_v9  ;;  %2726 = vmatprep.subr.bf16.mxu1 %v9488_v14  ;;  %v9522_v9 = vld [vmem:[#allocation122_spill] sm:$0xff]  ;;  %v9523_v14 = vld [vmem:[#allocation123_spill] sm:$0xff] }
 0x7fd   :  { %2686 = vmatpush1.bf16.msra.mxu0 %v9489_v22  ;;  %2727 = vmatpush1.bf16.msra.mxu1 %v9490_v32  ;;  %v9524_v22 = vld [vmem:[#allocation124_spill] sm:$0xff]  ;;  %v9525_v32 = vld [vmem:[#allocation125_spill] sm:$0xff] }
 0x7fe   :  { %2687 = vmatprep.subr.bf16.mxu0 %v9491_v0  ;;  %2728 = vmatprep.subr.bf16.mxu1 %v9492_v3  ;;  %v9526_v0 = vld [vmem:[#allocation126_spill] sm:$0xff]  ;;  %v9527_v3 = vld [vmem:[#allocation127_spill] sm:$0xff] }
 0x801   :  { %2688 = vmatpush1.bf16.msra.mxu0 %v9493_v46  ;;  %2729 = vmatpush1.bf16.msra.mxu1 %v9494_v58  ;;  %v9528_v46 = vld [vmem:[#allocation128_spill] sm:$0xff]  ;;  %v9529_v58 = vld [vmem:[#allocation129_spill] sm:$0xff] }
 0x802   :  { %2689 = vmatprep.subr.bf16.mxu0 %v9495_v6  ;;  %2730 = vmatprep.subr.bf16.mxu1 %v9496_v45  ;;  %v9530_v6 = vld [vmem:[#allocation130_spill] sm:$0xff]  ;;  %v9531_v45 = vld [vmem:[#allocation131_spill] sm:$0xff] }
 0x805   :  { %2690 = vmatpush1.bf16.msra.mxu0 %v9497_v48  ;;  %2731 = vmatpush1.bf16.msra.mxu1 %v9498_v10  ;;  %v9532_v48 = vld [vmem:[#allocation132_spill] sm:$0xff]  ;;  %v9533_v10 = vld [vmem:[#allocation133_spill] sm:$0xff] }
 0x806   :  { %2691 = vmatprep.subr.bf16.mxu0 %v9499_v11  ;;  %2732 = vmatprep.subr.bf16.mxu1 %v9500_v7  ;;  %v9534_v11 = vld [vmem:[#allocation134_spill] sm:$0xff]  ;;  %v9535_v7 = vld [vmem:[#allocation135_spill] sm:$0xff] }
 0x809   :  { %2692 = vmatpush1.bf16.msra.mxu0 %v9501_v13  ;;  %2733 = vmatpush1.bf16.msra.mxu1 %v9502_v63  ;;  %v9536_v13 = vld [vmem:[#allocation136_spill] sm:$0xff]  ;;  %v9537_v63 = vld [vmem:[#allocation137_spill] sm:$0xff] }
 0x80a   :  { %2693 = vmatprep.subr.bf16.mxu0 %v9503_v1  ;;  %2734 = vmatprep.subr.bf16.mxu1 %v9504_v38  ;;  %v9538_v1 = vld [vmem:[#allocation138_spill] sm:$0xff]  ;;  %v9539_v38 = vld [vmem:[#allocation139_spill] sm:$0xff] }
 0x80d   :  { %2694 = vmatpush1.bf16.msra.mxu0 %v9505_v15  ;;  %2735 = vmatpush1.bf16.msra.mxu1 %v9506_v2  ;;  %v9540_v15 = vld [vmem:[#allocation141_spill] sm:$0xff] }
 0x80e   :  { %2695 = vmatprep.subr.bf16.mxu0 %v9507_v16  ;;  %2736 = vmatprep.subr.bf16.mxu1 %v9508_v17  ;;  %v9541_v17 = vld [vmem:[#allocation140_spill] sm:$0xff] }
 0x811   :  { %2696 = vmatpush1.bf16.msra.mxu0 %v9509_v18  ;;  %2737 = vmatpush1.bf16.msra.mxu1 %v9510_v21 }
 0x812   :  { %2697 = vmatprep.subr.bf16.mxu0 %v9511_v24  ;;  %2738 = vmatprep.subr.bf16.mxu1 %v9512_v51 }
 0x815   :  { %2698 = vmatpush1.bf16.msra.mxu0 %v9513_v25  ;;  %2739 = vmatpush1.bf16.msra.mxu1 %v9514_v26 }
 0x816   :  { %2699 = vmatprep.subr.bf16.mxu0 %v9515_v28  ;;  %2740 = vmatprep.subr.bf16.mxu1 %v9516_v56 }
 0x819   :  { %2700 = vmatpush1.bf16.msra.mxu0 %v9517_v29  ;;  %2741 = vmatpush1.bf16.msra.mxu1 %v9518_v30 }
 0x81a   :  { %2701 = vmatprep.subr.bf16.mxu0 %v9519_v53  ;;  %2742 = vmatprep.subr.bf16.mxu1 %v9520_v54 }
 0x81d   :  { %2702 = vmatpush1.bf16.msra.mxu0 %v9521_v34  ;;  %2743 = vmatpush1.bf16.msra.mxu1 %v9522_v9 }
 0x81e   :  { %2703 = vmatprep.subr.bf16.mxu0 %v9523_v14  ;;  %2744 = vmatprep.subr.bf16.mxu1 %v9524_v22 }
 0x821   :  { %2704 = vmatpush1.bf16.msra.mxu0 %v9525_v32  ;;  %2745 = vmatpush1.bf16.msra.mxu1 %v9526_v0 }
 0x822   :  { %2705 = vmatprep.subr.bf16.mxu0 %v9527_v3  ;;  %2746 = vmatprep.subr.bf16.mxu1 %v9528_v46 }
 0x825   :  { %2706 = vmatpush1.bf16.msra.mxu0 %v9529_v58  ;;  %2747 = vmatpush1.bf16.msra.mxu1 %v9530_v6 }
 0x826   :  { %2707 = vmatprep.subr.bf16.mxu0 %v9531_v45  ;;  %2748 = vmatprep.subr.bf16.mxu1 %v9532_v48 }
 0x829   :  { %2708 = vmatpush1.bf16.msra.mxu0 %v9533_v10  ;;  %2749 = vmatpush1.bf16.msra.mxu1 %v9534_v11 }
 0x82a   :  { %2709 = vmatprep.subr.bf16.mxu0 %v9535_v7  ;;  %2750 = vmatprep.subr.bf16.mxu1 %v9536_v13  ;;  %v9554_v7 = vld [vmem:[#allocation154_spill] sm:$0xff] }
 0x82b   :  { %v7335_v13 = vld [vmem:[#allocation9 + $0x4] ss:$16 sps:$4 sm:$0xff]  }
 0x82d   :  { %2710 = vmatpush1.bf16.msra.mxu0 %v9537_v63  ;;  %2751 = vmatpush1.bf16.msra.mxu1 %v9538_v1  ;;  %v7338_v63 = vld [vmem:[#allocation9 + $0xc] ss:$16 sps:$4 sm:$0xff]  }
 0x82e   :  { %2784 = vmatprep.subr.bf16.mxu0 %v9539_v38  ;;  %2825 = vmatprep.subr.bf16.mxu1 %v9540_v15  ;;  %v7364_v1 = vld [vmem:[#allocation9 + $0x4c] ss:$16 sps:$4 sm:$0xff]   ;;  %v7367_v38 = vld [vmem:[#allocation9 + $0x40] ss:$16 sps:$4 sm:$0xff]   ;;  %v7370_v15 = vld [vmem:[#allocation9 + $0x48] ss:$16 sps:$4 sm:$0xff]  }
 0x8c2   :  { %v2615_v2 = vpop.f32.mrb[56].mxu0  ;;  %v2656_v16 = vpop.f32.mrb[56].mxu1 }
 0x8c3   :  { %v2616_v18 = vadd.f32 %v2615_v2, %v9541_v17  ;;  %v2617_v21 = vpop.f32.mrb[57].mxu0  ;;  %v2658_v24 = vpop.f32.mrb[57].mxu1  ;;  %v2657_v30 = vadd.f32 %v2656_v16, %v9315_v19  ;;  %v7373_v2 = vld [vmem:[#allocation9 + $0x64] ss:$16 sps:$4 sm:$0xff]   ;;  %v7376_v16 = vld [vmem:[#allocation9 + $0x6c] ss:$16 sps:$4 sm:$0xff]  }
 0x8c4   :  { %v2618_v51 = vadd.f32 %v2617_v21, %v9314_v4  ;;  %v2619_v25 = vpop.f32.mrb[58].mxu0  ;;  %v2660_v26 = vpop.f32.mrb[58].mxu1  ;;  %v2659_v28 = vadd.f32 %v2658_v24, %v6309_v52  ;;  %v7382_v21 = vld [vmem:[#allocation9 + $0x68] ss:$16 sps:$4 sm:$0xff]   ;;  %v7385_v24 = vld [vmem:[#allocation9 + $0x84] ss:$16 sps:$4 sm:$0xff]  }
 0x8c5   :  { %4771 = vtanh.f32 %v2616_v18  ;;  %v2620_v56 = vpop.f32.mrb[59].mxu0  ;;  %v2661_v29 = vpop.f32.mrb[59].mxu1  ;;  %v7379_v18 = vld [vmem:[#allocation9 + $0x60] ss:$16 sps:$4 sm:$0xff]   ;;  %v7394_v26 = vld [vmem:[#allocation9 + $0x88] ss:$16 sps:$4 sm:$0xff]  }
 0x8c6   :  { %4773 = vtanh.f32 %v2618_v51  ;;  %v7388_v51 = vld [vmem:[#allocation9 + $0x8c] ss:$16 sps:$4 sm:$0xff]   ;;  %v7391_v25 = vld [vmem:[#allocation9 + $0x80] ss:$16 sps:$4 sm:$0xff]  }
 0x8c7   :  { %4775 = vtanh.f32 %v2659_v28  ;;  %v7397_v28 = vld [vmem:[#allocation9 + $0xa4] ss:$16 sps:$4 sm:$0xff]   ;;  %v7400_v56 = vld [vmem:[#allocation9 + $0xac] ss:$16 sps:$4 sm:$0xff]   ;;  %v7403_v29 = vld [vmem:[#allocation9 + $0xa0] ss:$16 sps:$4 sm:$0xff]  }
 0x8c8   :  { %4777 = vtanh.f32 %v2657_v30  ;;  %v7406_v30 = vld [vmem:[#allocation9 + $0xa8] ss:$16 sps:$4 sm:$0xff]  }
 0x8cf   :  { %v4772_v53 = vpop.eup %4771 }
 0x8d0   :  { %v2666_v54 = vmul.f32 0.5, %v4772_v53  ;;  %v4774_v34 = vpop.eup %4773  ;;  %v7409_v53 = vld [vmem:[#allocation9 + $0xc4] ss:$16 sps:$4 sm:$0xff]  }
 0x8d1   :  { %v2667_v14 = vmul.f32 0.5, %v4774_v34  ;;  %v4776_v22 = vpop.eup %4775  ;;  %v7415_v34 = vld [vmem:[#allocation9 + $0xc0] ss:$16 sps:$4 sm:$0xff]  }
 0x8d2   :  { %v2669_v9 = vadd.f32 0.5, %v2666_v54  ;;  %v4778_v58 = vpop.eup %4777  ;;  %v7412_v54 = vld [vmem:[#allocation9 + $0xcc] ss:$16 sps:$4 sm:$0xff]  }
 0x8d3   :  { %v2670_v32 = vadd.f32 0.5, %v2667_v14  ;;  %v2668_v6 = vmul.f32 0.5, %v4778_v58  ;;  %v7421_v14 = vld [vmem:[#allocation9 + $0xe4] ss:$16 sps:$4 sm:$0xff]   ;;  %v7436_v58 = vld [vmem:[#allocation9 + $0x10c] ss:$16 sps:$4 sm:$0xff]  }
 0x8d4   :  { %v2674_v0 = vmul.f32 %v4776_v22, %v2669_v9  ;;  %v7418_v9 = vld [vmem:[#allocation9 + $0xc8] ss:$16 sps:$4 sm:$0xff]   ;;  %v7424_v22 = vld [vmem:[#allocation9 + $0xec] ss:$16 sps:$4 sm:$0xff]   ;;  %9555 = vst [vmem:[#allocation155_spill] sm:$0xff] %v7436_v58 }
 0x8d5   :  { %v2673_v3 = vmul.f32 %v2670_v32, %v7042_v47  ;;  %v2671_v45 = vadd.f32 0.5, %v2668_v6  ;;  %v9542_v47 = vld [vmem:[#allocation142_spill] sm:$0xff] }
 0x8d6   :  { %v7427_v32 = vld [vmem:[#allocation9 + $0xe0] ss:$16 sps:$4 sm:$0xff]  }
 0x8d7   :  { %v7300_v46 = vadd.f32 %v2674_v0, %v2673_v3  ;;  %v7430_v0 = vld [vmem:[#allocation9 + $0xe8] ss:$16 sps:$4 sm:$0xff]   ;;  %v7433_v3 = vld [vmem:[#allocation9 + $0x104] ss:$16 sps:$4 sm:$0xff]   ;;  %v7439_v6 = vld [vmem:[#allocation9 + $0x100] ss:$16 sps:$4 sm:$0xff]  }
 0x8d8   :  { %9556 = vst [vmem:[#allocation156_spill] sm:$0xff] %v7439_v6 }
 0x8d9   :  { %4779 = vtanh.f32 %v7300_v46 }
 0x8e3   :  { %v4780_v48 = vpop.eup %4779 }
 0x8e4   :  { %v2677_v10 = vmul.f32 %v4780_v48, %v2671_v45  ;;  %v7442_v45 = vld [vmem:[#allocation9 + $0x108] ss:$16 sps:$4 sm:$0xff]   ;;  %v7445_v48 = vld [vmem:[#allocation9 + $0x124] ss:$16 sps:$4 sm:$0xff]  }
 0x8e5   :  { %9557 = vst [vmem:[#allocation157_spill] sm:$0xff] %v7442_v45  ;;  %9558 = vst [vmem:[#allocation55_spill] sm:$0xff] %v7445_v48 }
 0x8e6   :  { %v2678_v11 = vpack.c.bf16 %v2677_v10, %v2677_v10  ;;  %v7448_v10 = vld [vmem:[#allocation9 + $0x12c] ss:$16 sps:$4 sm:$0xff]  }
 0x8e7   :  { %9559 = vst [vmem:[#allocation56_spill] sm:$0xff] %v7448_v10 }
 0x8e8   :  { %2712 = vmatmul.mubr.bf16.vlgmr.msra.gmra.mrb[60].mxu0 %v2678_v11  ;;  %2753 = vmatmul.mubr.bf16.vlgmr.msra.gmra.mrb[60].mxu1 %v2678_v11 }
 0x8e9   :  { %2785 = vmatpush1.bf16.msra.mxu0 %v7049_v35  ;;  %2826 = vmatpush1.bf16.msra.mxu1 %v7052_v12  ;;  %v9543_v35 = vld [vmem:[#allocation143_spill] sm:$0xff]  ;;  %v9544_v12 = vld [vmem:[#allocation144_spill] sm:$0xff] }
 0x8ea   :  { %2786 = vmatprep.subr.bf16.mxu0 %v7055_v31  ;;  %2827 = vmatprep.subr.bf16.mxu1 %v7058_v36  ;;  %v9545_v31 = vld [vmem:[#allocation145_spill] sm:$0xff]  ;;  %v9546_v36 = vld [vmem:[#allocation146_spill] sm:$0xff] }
 0x8eb   :  { %2816 = vmatprep.mubr.bf16.mxu0 %v9199_v5  ;;  %2857 = vmatprep.mubr.bf16.mxu1 %v9199_v5 }
 0x8ed   :  { %2787 = vmatpush1.bf16.msra.mxu0 %v7063_v59  ;;  %2828 = vmatpush1.bf16.msra.mxu1 %v7066_v41  ;;  %v9547_v59 = vld [vmem:[#allocation147_spill] sm:$0xff]  ;;  %v9548_v41 = vld [vmem:[#allocation148_spill] sm:$0xff] }
 0x8ee   :  { %2788 = vmatprep.subr.bf16.mxu0 %v7069_v60  ;;  %2829 = vmatprep.subr.bf16.mxu1 %v7072_v33  ;;  %v9549_v60 = vld [vmem:[#allocation149_spill] sm:$0xff]  ;;  %v9550_v33 = vld [vmem:[#allocation150_spill] sm:$0xff] }
 0x8f1   :  { %2789 = vmatpush1.bf16.msra.mxu0 %v7075_v39  ;;  %2830 = vmatpush1.bf16.msra.mxu1 %v7078_v50  ;;  %v9551_v39 = vld [vmem:[#allocation151_spill] sm:$0xff]  ;;  %v9552_v50 = vld [vmem:[#allocation152_spill] sm:$0xff] }
 0x8f2   :  { %2790 = vmatprep.subr.bf16.mxu0 %v7081_v42  ;;  %2831 = vmatprep.subr.bf16.mxu1 %v9542_v47  ;;  %v9553_v42 = vld [vmem:[#allocation153_spill] sm:$0xff] }
 0x8f3   :  { %v7454_v47 = vld [vmem:[#allocation9 + $0x128] ss:$16 sps:$4 sm:$0xff]  }
 0x8f4   :  { %9561 = vst [vmem:[#allocation58_spill] sm:$0xff] %v7454_v47 }
 0x8f5   :  { %2791 = vmatpush1.bf16.msra.mxu0 %v9543_v35  ;;  %2832 = vmatpush1.bf16.msra.mxu1 %v9544_v12  ;;  %v7457_v35 = vld [vmem:[#allocation9 + $0x144] ss:$16 sps:$4 sm:$0xff]   ;;  %v7460_v12 = vld [vmem:[#allocation9 + $0x14c] ss:$16 sps:$4 sm:$0xff]  }
 0x8f6   :  { %2792 = vmatprep.subr.bf16.mxu0 %v9545_v31  ;;  %2833 = vmatprep.subr.bf16.mxu1 %v9546_v36  ;;  %9562 = vst [vmem:[#allocation24_spill] sm:$0xff] %v7457_v35  ;;  %9563 = vst [vmem:[#allocation25_spill] sm:$0xff] %v7460_v12  ;;  %v7463_v31 = vld [vmem:[#allocation9 + $0x140] ss:$16 sps:$4 sm:$0xff]   ;;  %v7466_v36 = vld [vmem:[#allocation9 + $0x148] ss:$16 sps:$4 sm:$0xff]  }
 0x8f7   :  { %9564 = vst [vmem:[#allocation26_spill] sm:$0xff] %v7463_v31  ;;  %9565 = vst [vmem:[#allocation27_spill] sm:$0xff] %v7466_v36 }
 0x8f9   :  { %2793 = vmatpush1.bf16.msra.mxu0 %v9547_v59  ;;  %2834 = vmatpush1.bf16.msra.mxu1 %v9548_v41  ;;  %v7469_v59 = vld [vmem:[#allocation9 + $0x164] ss:$16 sps:$4 sm:$0xff]   ;;  %v7472_v41 = vld [vmem:[#allocation9 + $0x16c] ss:$16 sps:$4 sm:$0xff]  }
 0x8fa   :  { %2794 = vmatprep.subr.bf16.mxu0 %v9549_v60  ;;  %2835 = vmatprep.subr.bf16.mxu1 %v9550_v33  ;;  %9566 = vst [vmem:[#allocation28_spill] sm:$0xff] %v7469_v59  ;;  %9567 = vst [vmem:[#allocation29_spill] sm:$0xff] %v7472_v41  ;;  %v7475_v60 = vld [vmem:[#allocation9 + $0x160] ss:$16 sps:$4 sm:$0xff]   ;;  %v7478_v33 = vld [vmem:[#allocation9 + $0x168] ss:$16 sps:$4 sm:$0xff]  }
 0x8fb   :  { %9568 = vst [vmem:[#allocation30_spill] sm:$0xff] %v7475_v60  ;;  %9569 = vst [vmem:[#allocation31_spill] sm:$0xff] %v7478_v33 }
 0x8fd   :  { %2795 = vmatpush1.bf16.msra.mxu0 %v9551_v39  ;;  %2836 = vmatpush1.bf16.msra.mxu1 %v9552_v50  ;;  %v7481_v39 = vld [vmem:[#allocation9 + $0x184] ss:$16 sps:$4 sm:$0xff]   ;;  %v7484_v50 = vld [vmem:[#allocation9 + $0x18c] ss:$16 sps:$4 sm:$0xff]  }
 0x8fe   :  { %2796 = vmatprep.subr.bf16.mxu0 %v9553_v42  ;;  %2837 = vmatprep.subr.bf16.mxu1 %v9554_v7  ;;  %9570 = vst [vmem:[#allocation32_spill] sm:$0xff] %v7481_v39  ;;  %9571 = vst [vmem:[#allocation33_spill] sm:$0xff] %v7484_v50  ;;  %v7487_v42 = vld [vmem:[#allocation9 + $0x180] ss:$16 sps:$4 sm:$0xff]   ;;  %v7490_v7 = vld [vmem:[#allocation9 + $0x188] ss:$16 sps:$4 sm:$0xff]  }
 0x8ff   :  { %9572 = vst [vmem:[#allocation34_spill] sm:$0xff] %v7487_v42  ;;  %9573 = vst [vmem:[#allocation35_spill] sm:$0xff] %v7490_v7 }
 0x901   :  { %2797 = vmatpush1.bf16.msra.mxu0 %v7123_v37  ;;  %2838 = vmatpush1.bf16.msra.mxu1 %v7126_v40  ;;  %v7343_v37 = vld [vmem:[#allocation9] ss:$16 sps:$4 sm:$0xff]   ;;  %v7346_v40 = vld [vmem:[#allocation9 + $0x8] ss:$16 sps:$4 sm:$0xff]  }
 0x902   :  { %2798 = vmatprep.subr.bf16.mxu0 %v7129_v62  ;;  %2839 = vmatprep.subr.bf16.mxu1 %v7132_v55  ;;  %v7352_v62 = vld [vmem:[#allocation9 + $0x2c] ss:$16 sps:$4 sm:$0xff]   ;;  %v7355_v55 = vld [vmem:[#allocation9 + $0x20] ss:$16 sps:$4 sm:$0xff]  }
 0x905   :  { %2799 = vmatpush1.bf16.msra.mxu0 %v7135_v57  ;;  %2840 = vmatpush1.bf16.msra.mxu1 %v7138_v44  ;;  %v7349_v44 = vld [vmem:[#allocation9 + $0x24] ss:$16 sps:$4 sm:$0xff]   ;;  %v7358_v57 = vld [vmem:[#allocation9 + $0x28] ss:$16 sps:$4 sm:$0xff]  }
 0x906   :  { %2882 = vmatprep.subr.bf16.mxu0 %v7335_v13  ;;  %2923 = vmatprep.subr.bf16.mxu1 %v7338_v63 }
 0x908   :  { %2817 = vmatmul.mubr.bf16.vlgmr.msra.gmra.mrb[64].mxu0 %v7227_v27  ;;  %2858 = vmatmul.mubr.bf16.vlgmr.msra.gmra.mrb[64].mxu1 %v7227_v27  ;;  %v7361_v27 = vld [vmem:[#allocation9 + $0x44] ss:$16 sps:$4 sm:$0xff]  }
 0x909   :  { %2914 = vmatprep.mubr.bf16.mxu0 %v2678_v11  ;;  %2955 = vmatprep.mubr.bf16.mxu1 %v2678_v11  ;;  %v7451_v11 = vld [vmem:[#allocation9 + $0x120] ss:$16 sps:$4 sm:$0xff]  }
 0x90a   :  { %2883 = vmatpush1.bf16.msra.mxu0 %v7343_v37  ;;  %2924 = vmatpush1.bf16.msra.mxu1 %v7346_v40  ;;  %9560 = vst [vmem:[#allocation57_spill] sm:$0xff] %v7451_v11 }
 0x90b   :  { %2884 = vmatprep.subr.bf16.mxu0 %v7349_v44  ;;  %2925 = vmatprep.subr.bf16.mxu1 %v7352_v62 }
 0x90e   :  { %2885 = vmatpush1.bf16.msra.mxu0 %v7355_v55  ;;  %2926 = vmatpush1.bf16.msra.mxu1 %v7358_v57 }
 0x90f   :  { %2886 = vmatprep.subr.bf16.mxu0 %v7361_v27  ;;  %2927 = vmatprep.subr.bf16.mxu1 %v7364_v1 }
 0x912   :  { %2887 = vmatpush1.bf16.msra.mxu0 %v7367_v38  ;;  %2928 = vmatpush1.bf16.msra.mxu1 %v7370_v15 }
 0x913   :  { %2888 = vmatprep.subr.bf16.mxu0 %v7373_v2  ;;  %2929 = vmatprep.subr.bf16.mxu1 %v7376_v16 }
 0x916   :  { %2889 = vmatpush1.bf16.msra.mxu0 %v7379_v18  ;;  %2930 = vmatpush1.bf16.msra.mxu1 %v7382_v21 }
 0x917   :  { %2890 = vmatprep.subr.bf16.mxu0 %v7385_v24  ;;  %2931 = vmatprep.subr.bf16.mxu1 %v7388_v51 }
 0x91a   :  { %2891 = vmatpush1.bf16.msra.mxu0 %v7391_v25  ;;  %2932 = vmatpush1.bf16.msra.mxu1 %v7394_v26 }
 0x91b   :  { %2892 = vmatprep.subr.bf16.mxu0 %v7397_v28  ;;  %2933 = vmatprep.subr.bf16.mxu1 %v7400_v56 }
 0x91e   :  { %2893 = vmatpush1.bf16.msra.mxu0 %v7403_v29  ;;  %2934 = vmatpush1.bf16.msra.mxu1 %v7406_v30 }
 0x91f   :  { %2894 = vmatprep.subr.bf16.mxu0 %v7409_v53  ;;  %2935 = vmatprep.subr.bf16.mxu1 %v7412_v54 }
 0x922   :  { %2895 = vmatpush1.bf16.msra.mxu0 %v7415_v34  ;;  %2936 = vmatpush1.bf16.msra.mxu1 %v7418_v9 }
 0x923   :  { %2896 = vmatprep.subr.bf16.mxu0 %v7421_v14  ;;  %2937 = vmatprep.subr.bf16.mxu1 %v7424_v22 }
 0x926   :  { %2897 = vmatpush1.bf16.msra.mxu0 %v7427_v32  ;;  %2938 = vmatpush1.bf16.msra.mxu1 %v7430_v0 }
 0x927   :  { %2898 = vmatprep.subr.bf16.mxu0 %v7433_v3  ;;  %2939 = vmatprep.subr.bf16.mxu1 %v7436_v58 }
 0x92a   :  { %2899 = vmatpush1.bf16.msra.mxu0 %v7439_v6  ;;  %2940 = vmatpush1.bf16.msra.mxu1 %v7442_v45 }
 0x92b   :  { %2900 = vmatprep.subr.bf16.mxu0 %v7445_v48  ;;  %2941 = vmatprep.subr.bf16.mxu1 %v7448_v10 }
 0x92e   :  { %2901 = vmatpush1.bf16.msra.mxu0 %v7451_v11  ;;  %2942 = vmatpush1.bf16.msra.mxu1 %v7454_v47 }
 0x92f   :  { %2902 = vmatprep.subr.bf16.mxu0 %v7457_v35  ;;  %2943 = vmatprep.subr.bf16.mxu1 %v7460_v12 }
 0x932   :  { %2903 = vmatpush1.bf16.msra.mxu0 %v7463_v31  ;;  %2944 = vmatpush1.bf16.msra.mxu1 %v7466_v36 }
 0x933   :  { %2904 = vmatprep.subr.bf16.mxu0 %v7469_v59  ;;  %2945 = vmatprep.subr.bf16.mxu1 %v7472_v41 }
 0x936   :  { %2905 = vmatpush1.bf16.msra.mxu0 %v7475_v60  ;;  %2946 = vmatpush1.bf16.msra.mxu1 %v7478_v33  ;;  %v7493_v60 = vld [vmem:[#allocation9 + $0x1a4] ss:$16 sps:$4 sm:$0xff]   ;;  %v7496_v33 = vld [vmem:[#allocation9 + $0x1ac] ss:$16 sps:$4 sm:$0xff]  }
 0x937   :  { %2906 = vmatprep.subr.bf16.mxu0 %v7481_v39  ;;  %2947 = vmatprep.subr.bf16.mxu1 %v7484_v50  ;;  %9574 = vst [vmem:[#allocation36_spill] sm:$0xff] %v7493_v60  ;;  %9575 = vst [vmem:[#allocation37_spill] sm:$0xff] %v7496_v33  ;;  %v7499_v39 = vld [vmem:[#allocation9 + $0x1a0] ss:$16 sps:$4 sm:$0xff]   ;;  %v7502_v50 = vld [vmem:[#allocation9 + $0x1a8] ss:$16 sps:$4 sm:$0xff]  }
 0x938   :  { %9576 = vst [vmem:[#allocation38_spill] sm:$0xff] %v7499_v39  ;;  %9577 = vst [vmem:[#allocation39_spill] sm:$0xff] %v7502_v50 }
 0x93a   :  { %2907 = vmatpush1.bf16.msra.mxu0 %v7487_v42  ;;  %2948 = vmatpush1.bf16.msra.mxu1 %v7490_v7  ;;  %v7505_v42 = vld [vmem:[#allocation9 + $0x1c4] ss:$16 sps:$4 sm:$0xff]   ;;  %v7508_v7 = vld [vmem:[#allocation9 + $0x1cc] ss:$16 sps:$4 sm:$0xff]  }
 0x93b   :  { %2908 = vmatprep.subr.bf16.mxu0 %v7493_v60  ;;  %2949 = vmatprep.subr.bf16.mxu1 %v7496_v33  ;;  %9578 = vst [vmem:[#allocation40_spill] sm:$0xff] %v7505_v42  ;;  %9579 = vst [vmem:[#allocation41_spill] sm:$0xff] %v7508_v7  ;;  %v7511_v60 = vld [vmem:[#allocation9 + $0x1c0] ss:$16 sps:$4 sm:$0xff]   ;;  %v7514_v33 = vld [vmem:[#allocation9 + $0x1c8] ss:$16 sps:$4 sm:$0xff]  }
 0x93c   :  { %9580 = vst [vmem:[#allocation42_spill] sm:$0xff] %v7511_v60  ;;  %9581 = vst [vmem:[#allocation43_spill] sm:$0xff] %v7514_v33 }
 0x93e   :  { %2909 = vmatpush1.bf16.msra.mxu0 %v7499_v39  ;;  %2950 = vmatpush1.bf16.msra.mxu1 %v7502_v50  ;;  %v7517_v39 = vld [vmem:[#allocation9 + $0x1e4] ss:$16 sps:$4 sm:$0xff]   ;;  %v7520_v50 = vld [vmem:[#allocation9 + $0x1ec] ss:$16 sps:$4 sm:$0xff]  }
 0x93f   :  { %2910 = vmatprep.subr.bf16.mxu0 %v7505_v42  ;;  %2951 = vmatprep.subr.bf16.mxu1 %v7508_v7  ;;  %9582 = vst [vmem:[#allocation44_spill] sm:$0xff] %v7517_v39  ;;  %9583 = vst [vmem:[#allocation45_spill] sm:$0xff] %v7520_v50  ;;  %v7523_v42 = vld [vmem:[#allocation9 + $0x1e0] ss:$16 sps:$4 sm:$0xff]   ;;  %v7526_v7 = vld [vmem:[#allocation9 + $0x1e8] ss:$16 sps:$4 sm:$0xff]  }
 0x940   :  { %9584 = vst [vmem:[#allocation46_spill] sm:$0xff] %v7523_v42  ;;  %9585 = vst [vmem:[#allocation47_spill] sm:$0xff] %v7526_v7 }
 0x942   :  { %2911 = vmatpush1.bf16.msra.mxu0 %v7511_v60  ;;  %2952 = vmatpush1.bf16.msra.mxu1 %v7514_v33  ;;  %v7529_v60 = vld [vmem:[#allocation9 + $0x204] ss:$16 sps:$4 sm:$0xff]   ;;  %v7532_v33 = vld [vmem:[#allocation9 + $0x20c] ss:$16 sps:$4 sm:$0xff]  }
 0x943   :  { %2912 = vmatprep.subr.bf16.mxu0 %v7517_v39  ;;  %2953 = vmatprep.subr.bf16.mxu1 %v7520_v50  ;;  %9586 = vst [vmem:[#allocation48_spill] sm:$0xff] %v7529_v60  ;;  %9587 = vst [vmem:[#allocation49_spill] sm:$0xff] %v7532_v33 }
 0x946   :  { %2913 = vmatpush1.bf16.msra.mxu0 %v7523_v42  ;;  %2954 = vmatpush1.bf16.msra.mxu1 %v7526_v7 }
 0x947   :  { %2980 = vmatprep.subr.bf16.mxu0 %v7529_v60  ;;  %3021 = vmatprep.subr.bf16.mxu1 %v7532_v33 }
 0x9bb   :  { %v2713_v39 = vpop.f32.mrb[60].mxu0  ;;  %v2754_v41 = vpop.f32.mrb[60].mxu1 }
 0x9bc   :  { %v2714_v50 = vadd.f32 %v2713_v39, %v9474_v8  ;;  %v2715_v59 = vpop.f32.mrb[61].mxu0  ;;  %v2756_v36 = vpop.f32.mrb[61].mxu1 }
 0x9bd   :  { %v2716_v42 = vadd.f32 %v2715_v59, %v9475_v61  ;;  %v2717_v31 = vpop.f32.mrb[62].mxu0  ;;  %v2758_v12 = vpop.f32.mrb[62].mxu1  ;;  %v2757_v7 = vadd.f32 %v2756_v36, %v9476_v23  ;;  %v9590_v23 = vld [vmem:[#allocation65_spill] sm:$0xff]  ;;  %v9591_v61 = vld [vmem:[#allocation66_spill] sm:$0xff] }
 0x9be   :  { %4781 = vtanh.f32 %v2714_v50  ;;  %v2718_v35 = vpop.f32.mrb[63].mxu0  ;;  %v2759_v47 = vpop.f32.mrb[63].mxu1  ;;  %v9588_v50 = vld [vmem:[#allocation63_spill] sm:$0xff] }
 0x9bf   :  { %4783 = vtanh.f32 %v2716_v42  ;;  %v9589_v35 = vld [vmem:[#allocation64_spill] sm:$0xff] }
 0x9c0   :  { %4785 = vtanh.f32 %v2757_v7 }
 0x9c8   :  { %v4782_v60 = vpop.eup %4781 }
 0x9c9   :  { %v2764_v11 = vmul.f32 0.5, %v4782_v60  ;;  %v4784_v33 = vpop.eup %4783 }
 0x9ca   :  { %v2765_v48 = vmul.f32 0.5, %v4784_v33  ;;  %v4786_v45 = vpop.eup %4785 }
 0x9cb   :  { %v2767_v10 = vadd.f32 0.5, %v2764_v11 }
 0x9cc   :  { %v2768_v39 = vadd.f32 0.5, %v2765_v48 }
 0x9cd   :  { %v2772_v8 = vmul.f32 %v4786_v45, %v2767_v10 }
 0x9ce   :  { %v2771_v6 = vmul.f32 %v2768_v39, %v7215_v20 }
 0x9d0   :  { %v7539_v59 = vadd.f32 %v2772_v8, %v2771_v6  ;;  %v2755_v8 = vadd.f32 %v2754_v41, %v6509_v49 }
 0x9db   :  { %v2818_v12 = vpop.f32.mrb[64].mxu0  ;;  %v2859_v31 = vpop.f32.mrb[64].mxu1 }
 0x9dc   :  { %v2819_v36 = vadd.f32 %v2818_v12, %v9588_v50  ;;  %v2860_v47 = vadd.f32 %v2859_v31, %v9589_v35  ;;  %v2820_v42 = vpop.f32.mrb[65].mxu0  ;;  %v2861_v7 = vpop.f32.mrb[65].mxu1 }
 0x9dd   :  { %v2821_v60 = vadd.f32 %v2820_v42, %v9590_v23  ;;  %v2862_v11 = vadd.f32 %v2861_v7, %v9591_v61  ;;  %v2822_v33 = vpop.f32.mrb[66].mxu0  ;;  %v2863_v58 = vpop.f32.mrb[66].mxu1 }
 0x9de   :  { %4787 = vtanh.f32 %v2819_v36  ;;  %v2823_v45 = vpop.f32.mrb[67].mxu0  ;;  %v2864_v48 = vpop.f32.mrb[67].mxu1 }
 0x9df   :  { %4789 = vtanh.f32 %v2821_v60 }
 0x9e0   :  { %4791 = vtanh.f32 %v2862_v11 }
 0x9e1   :  { %4793 = vtanh.f32 %v2755_v8 }
 0x9e2   :  { %4795 = vtanh.f32 %v2860_v47 }
 0x9e3   :  { %4797 = vtanh.f32 %v7539_v59 }
 0x9e8   :  { %v4788_v20 = vpop.eup %4787 }
 0x9e9   :  { %v2869_v6 = vmul.f32 0.5, %v4788_v20  ;;  %v4790_v10 = vpop.eup %4789  ;;  %v7558_v20 = vld [vmem:[#allocation9 + $0x208] ss:$16 sps:$4 sm:$0xff]  }
 0x9ea   :  { %v2870_v12 = vmul.f32 0.5, %v4790_v10  ;;  %v4792_v31 = vpop.eup %4791  ;;  %v7564_v10 = vld [vmem:[#allocation9 + $0x22c] ss:$16 sps:$4 sm:$0xff]  }
 0x9eb   :  { %v2872_v39 = vadd.f32 0.5, %v2869_v6  ;;  %v4794_v36 = vpop.eup %4793  ;;  %v7561_v6 = vld [vmem:[#allocation9 + $0x224] ss:$16 sps:$4 sm:$0xff]  }
 0x9ec   :  { %v2873_v23 = vadd.f32 0.5, %v2870_v12  ;;  %v4796_v41 = vpop.eup %4795  ;;  %v2766_v35 = vmul.f32 0.5, %v4794_v36  ;;  %v7570_v12 = vld [vmem:[#allocation9 + $0x228] ss:$16 sps:$4 sm:$0xff]   ;;  %v7585_v36 = vld [vmem:[#allocation9 + $0x264] ss:$16 sps:$4 sm:$0xff]  }
 0x9ed   :  { %v2877_v50 = vmul.f32 %v4792_v31, %v2872_v39  ;;  %v2871_v42 = vmul.f32 0.5, %v4796_v41  ;;  %v4798_v7 = vpop.eup %4797  ;;  %v7567_v39 = vld [vmem:[#allocation9 + $0x220] ss:$16 sps:$4 sm:$0xff]   ;;  %9593 = vst [vmem:[#allocation51_spill] sm:$0xff] %v7570_v12  ;;  %v7573_v31 = vld [vmem:[#allocation9 + $0x244] ss:$16 sps:$4 sm:$0xff]  }
 0x9ee   :  { %v2876_v61 = vmul.f32 %v2873_v23, %v7224_v43  ;;  %v2769_v60 = vadd.f32 0.5, %v2766_v35  ;;  %v7555_v43 = vld [vmem:[#allocation9 + $0x200] ss:$16 sps:$4 sm:$0xff]   ;;  %9592 = vst [vmem:[#allocation50_spill] sm:$0xff] %v7567_v39  ;;  %9594 = vst [vmem:[#allocation52_spill] sm:$0xff] %v7573_v31 }
 0x9ef   :  { %v2874_v11 = vadd.f32 0.5, %v2871_v42  ;;  %v7576_v23 = vld [vmem:[#allocation9 + $0x24c] ss:$16 sps:$4 sm:$0xff]   ;;  %9598 = vst [vmem:[#allocation80_spill] sm:$0xff] %v7585_v36  ;;  %v7591_v35 = vld [vmem:[#allocation9 + $0x260] ss:$16 sps:$4 sm:$0xff]  }
 0x9f0   :  { %v7548_v58 = vadd.f32 %v2877_v50, %v2876_v61  ;;  %v2775_v33 = vmul.f32 %v4798_v7, %v2769_v60  ;;  %9595 = vst [vmem:[#allocation53_spill] sm:$0xff] %v7576_v23  ;;  %v7579_v50 = vld [vmem:[#allocation9 + $0x240] ss:$16 sps:$4 sm:$0xff]   ;;  %v7582_v61 = vld [vmem:[#allocation9 + $0x248] ss:$16 sps:$4 sm:$0xff]   ;;  %9600 = vst [vmem:[#allocation60_spill] sm:$0xff] %v7591_v35 }
 0x9f1   :  { %9596 = vst [vmem:[#allocation54_spill] sm:$0xff] %v7579_v50  ;;  %9597 = vst [vmem:[#allocation79_spill] sm:$0xff] %v7582_v61  ;;  %v7588_v41 = vld [vmem:[#allocation9 + $0x26c] ss:$16 sps:$4 sm:$0xff]   ;;  %v7594_v42 = vld [vmem:[#allocation9 + $0x268] ss:$16 sps:$4 sm:$0xff]  }
 0x9f2   :  { %4799 = vtanh.f32 %v7548_v58  ;;  %v2776_v8 = vpack.c.bf16 %v2775_v33, %v2775_v33  ;;  %9599 = vst [vmem:[#allocation59_spill] sm:$0xff] %v7588_v41  ;;  %9601 = vst [vmem:[#allocation61_spill] sm:$0xff] %v7594_v42  ;;  %v7597_v7 = vld [vmem:[#allocation9 + $0x284] ss:$16 sps:$4 sm:$0xff]   ;;  %v7600_v60 = vld [vmem:[#allocation9 + $0x28c] ss:$16 sps:$4 sm:$0xff]  }
 0x9f3   :  { %9602 = vst [vmem:[#allocation62_spill] sm:$0xff] %v7597_v7  ;;  %9603 = vst [vmem:[#allocation81_spill] sm:$0xff] %v7600_v60  ;;  %v7609_v33 = vld [vmem:[#allocation9 + $0x2a4] ss:$16 sps:$4 sm:$0xff]  }
 0x9f4   :  { %9606 = vst [vmem:[#allocation84_spill] sm:$0xff] %v7609_v33 }
 0x9fc   :  { %v4800_v47 = vpop.eup %4799 }
 0x9fd   :  { %v2880_v45 = vmul.f32 %v4800_v47, %v2874_v11  ;;  %v7603_v11 = vld [vmem:[#allocation9 + $0x280] ss:$16 sps:$4 sm:$0xff]   ;;  %v7606_v47 = vld [vmem:[#allocation9 + $0x288] ss:$16 sps:$4 sm:$0xff]  }
 0x9fe   :  { %9604 = vst [vmem:[#allocation82_spill] sm:$0xff] %v7603_v11  ;;  %9605 = vst [vmem:[#allocation83_spill] sm:$0xff] %v7606_v47 }
 0x9ff   :  { %v7551_v48 = vpack.c.bf16 %v2880_v45, %v2880_v45  ;;  %v7612_v45 = vld [vmem:[#allocation9 + $0x2ac] ss:$16 sps:$4 sm:$0xff]  }
 0xa00   :  { %9607 = vst [vmem:[#allocation85_spill] sm:$0xff] %v7612_v45 }
 0xa01   :  { %2915 = vmatmul.mubr.bf16.vlgmr.msra.gmra.mrb[68].mxu0 %v7551_v48  ;;  %2956 = vmatmul.mubr.bf16.vlgmr.msra.gmra.mrb[68].mxu1 %v7551_v48 }
 0xa02   :  { %3012 = vmatprep.mubr.bf16.mxu0 %v2776_v8  ;;  %3053 = vmatprep.mubr.bf16.mxu1 %v2776_v8  ;;  %v7615_v8 = vld [vmem:[#allocation9 + $0x2a0] ss:$16 sps:$4 sm:$0xff]  }
 0xa03   :  { %2981 = vmatpush1.bf16.msra.mxu0 %v7555_v43  ;;  %3022 = vmatpush1.bf16.msra.mxu1 %v7558_v20  ;;  %9608 = vst [vmem:[#allocation86_spill] sm:$0xff] %v7615_v8 }
 0xa04   :  { %2982 = vmatprep.subr.bf16.mxu0 %v7561_v6  ;;  %3023 = vmatprep.subr.bf16.mxu1 %v7564_v10 }
 0xa07   :  { %2983 = vmatpush1.bf16.msra.mxu0 %v7567_v39  ;;  %3024 = vmatpush1.bf16.msra.mxu1 %v7570_v12 }
 0xa08   :  { %2984 = vmatprep.subr.bf16.mxu0 %v7573_v31  ;;  %3025 = vmatprep.subr.bf16.mxu1 %v7576_v23 }
 0xa0b   :  { %2985 = vmatpush1.bf16.msra.mxu0 %v7579_v50  ;;  %3026 = vmatpush1.bf16.msra.mxu1 %v7582_v61 }
 0xa0c   :  { %2986 = vmatprep.subr.bf16.mxu0 %v7585_v36  ;;  %3027 = vmatprep.subr.bf16.mxu1 %v7588_v41 }
 0xa0f   :  { %2987 = vmatpush1.bf16.msra.mxu0 %v7591_v35  ;;  %3028 = vmatpush1.bf16.msra.mxu1 %v7594_v42 }
 0xa10   :  { %2988 = vmatprep.subr.bf16.mxu0 %v7597_v7  ;;  %3029 = vmatprep.subr.bf16.mxu1 %v7600_v60  ;;  %v7618_v60 = vld [vmem:[#allocation9 + $0x2a8] ss:$16 sps:$4 sm:$0xff]  }
 0xa11   :  { %9609 = vst [vmem:[#allocation87_spill] sm:$0xff] %v7618_v60 }
 0xa13   :  { %2989 = vmatpush1.bf16.msra.mxu0 %v7603_v11  ;;  %3030 = vmatpush1.bf16.msra.mxu1 %v7606_v47  ;;  %v7621_v11 = vld [vmem:[#allocation9 + $0x2c4] ss:$16 sps:$4 sm:$0xff]   ;;  %v7624_v47 = vld [vmem:[#allocation9 + $0x2cc] ss:$16 sps:$4 sm:$0xff]  }
 0xa14   :  { %2990 = vmatprep.subr.bf16.mxu0 %v7609_v33  ;;  %3031 = vmatprep.subr.bf16.mxu1 %v7612_v45  ;;  %9610 = vst [vmem:[#allocation88_spill] sm:$0xff] %v7621_v11  ;;  %9611 = vst [vmem:[#allocation89_spill] sm:$0xff] %v7624_v47  ;;  %v7627_v33 = vld [vmem:[#allocation9 + $0x2c0] ss:$16 sps:$4 sm:$0xff]   ;;  %v7630_v45 = vld [vmem:[#allocation9 + $0x2c8] ss:$16 sps:$4 sm:$0xff]  }
 0xa15   :  { %9612 = vst [vmem:[#allocation90_spill] sm:$0xff] %v7627_v33  ;;  %9613 = vst [vmem:[#allocation91_spill] sm:$0xff] %v7630_v45 }
 0xa17   :  { %2991 = vmatpush1.bf16.msra.mxu0 %v7615_v8  ;;  %3032 = vmatpush1.bf16.msra.mxu1 %v7618_v60  ;;  %v7633_v8 = vld [vmem:[#allocation9 + $0x2e4] ss:$16 sps:$4 sm:$0xff]   ;;  %v7636_v60 = vld [vmem:[#allocation9 + $0x2ec] ss:$16 sps:$4 sm:$0xff]  }
 0xa18   :  { %2992 = vmatprep.subr.bf16.mxu0 %v7621_v11  ;;  %3033 = vmatprep.subr.bf16.mxu1 %v7624_v47  ;;  %9614 = vst [vmem:[#allocation92_spill] sm:$0xff] %v7633_v8  ;;  %9615 = vst [vmem:[#allocation93_spill] sm:$0xff] %v7636_v60  ;;  %v7639_v11 = vld [vmem:[#allocation9 + $0x2e0] ss:$16 sps:$4 sm:$0xff]   ;;  %v7642_v47 = vld [vmem:[#allocation9 + $0x2e8] ss:$16 sps:$4 sm:$0xff]  }
 0xa19   :  { %9616 = vst [vmem:[#allocation94_spill] sm:$0xff] %v7639_v11  ;;  %9617 = vst [vmem:[#allocation95_spill] sm:$0xff] %v7642_v47 }
 0xa1b   :  { %2993 = vmatpush1.bf16.msra.mxu0 %v7627_v33  ;;  %3034 = vmatpush1.bf16.msra.mxu1 %v7630_v45  ;;  %v7645_v33 = vld [vmem:[#allocation9 + $0x304] ss:$16 sps:$4 sm:$0xff]   ;;  %v7648_v45 = vld [vmem:[#allocation9 + $0x30c] ss:$16 sps:$4 sm:$0xff]  }
 0xa1c   :  { %2994 = vmatprep.subr.bf16.mxu0 %v7633_v8  ;;  %3035 = vmatprep.subr.bf16.mxu1 %v7636_v60  ;;  %9618 = vst [vmem:[#allocation96_spill] sm:$0xff] %v7645_v33  ;;  %9619 = vst [vmem:[#allocation97_spill] sm:$0xff] %v7648_v45  ;;  %v7651_v8 = vld [vmem:[#allocation9 + $0x300] ss:$16 sps:$4 sm:$0xff]   ;;  %v7654_v60 = vld [vmem:[#allocation9 + $0x308] ss:$16 sps:$4 sm:$0xff]  }
 0xa1d   :  { %9620 = vst [vmem:[#allocation98_spill] sm:$0xff] %v7651_v8  ;;  %9621 = vst [vmem:[#allocation99_spill] sm:$0xff] %v7654_v60 }
 0xa1f   :  { %2995 = vmatpush1.bf16.msra.mxu0 %v7639_v11  ;;  %3036 = vmatpush1.bf16.msra.mxu1 %v7642_v47  ;;  %v7657_v11 = vld [vmem:[#allocation9 + $0x324] ss:$16 sps:$4 sm:$0xff]   ;;  %v7660_v47 = vld [vmem:[#allocation9 + $0x32c] ss:$16 sps:$4 sm:$0xff]  }
 0xa20   :  { %2996 = vmatprep.subr.bf16.mxu0 %v7645_v33  ;;  %3037 = vmatprep.subr.bf16.mxu1 %v7648_v45  ;;  %9622 = vst [vmem:[#allocation100_spill] sm:$0xff] %v7657_v11  ;;  %9623 = vst [vmem:[#allocation101_spill] sm:$0xff] %v7660_v47  ;;  %v7663_v33 = vld [vmem:[#allocation9 + $0x320] ss:$16 sps:$4 sm:$0xff]   ;;  %v7666_v45 = vld [vmem:[#allocation9 + $0x328] ss:$16 sps:$4 sm:$0xff]  }
 0xa21   :  { %9624 = vst [vmem:[#allocation102_spill] sm:$0xff] %v7663_v33  ;;  %9625 = vst [vmem:[#allocation103_spill] sm:$0xff] %v7666_v45 }
 0xa23   :  { %2997 = vmatpush1.bf16.msra.mxu0 %v7651_v8  ;;  %3038 = vmatpush1.bf16.msra.mxu1 %v7654_v60  ;;  %v7669_v8 = vld [vmem:[#allocation9 + $0x344] ss:$16 sps:$4 sm:$0xff]   ;;  %v7672_v60 = vld [vmem:[#allocation9 + $0x34c] ss:$16 sps:$4 sm:$0xff]  }
 0xa24   :  { %2998 = vmatprep.subr.bf16.mxu0 %v7657_v11  ;;  %3039 = vmatprep.subr.bf16.mxu1 %v7660_v47  ;;  %9626 = vst [vmem:[#allocation104_spill] sm:$0xff] %v7669_v8  ;;  %9627 = vst [vmem:[#allocation105_spill] sm:$0xff] %v7672_v60  ;;  %v7675_v11 = vld [vmem:[#allocation9 + $0x340] ss:$16 sps:$4 sm:$0xff]   ;;  %v7678_v47 = vld [vmem:[#allocation9 + $0x348] ss:$16 sps:$4 sm:$0xff]  }
 0xa25   :  { %9628 = vst [vmem:[#allocation106_spill] sm:$0xff] %v7675_v11  ;;  %9629 = vst [vmem:[#allocation107_spill] sm:$0xff] %v7678_v47 }
 0xa27   :  { %2999 = vmatpush1.bf16.msra.mxu0 %v7663_v33  ;;  %3040 = vmatpush1.bf16.msra.mxu1 %v7666_v45  ;;  %v7681_v33 = vld [vmem:[#allocation9 + $0x364] ss:$16 sps:$4 sm:$0xff]   ;;  %v7684_v45 = vld [vmem:[#allocation9 + $0x36c] ss:$16 sps:$4 sm:$0xff]  }
 0xa28   :  { %3000 = vmatprep.subr.bf16.mxu0 %v7669_v8  ;;  %3041 = vmatprep.subr.bf16.mxu1 %v7672_v60  ;;  %9630 = vst [vmem:[#allocation108_spill] sm:$0xff] %v7681_v33  ;;  %9631 = vst [vmem:[#allocation109_spill] sm:$0xff] %v7684_v45  ;;  %v7687_v8 = vld [vmem:[#allocation9 + $0x360] ss:$16 sps:$4 sm:$0xff]   ;;  %v7690_v60 = vld [vmem:[#allocation9 + $0x368] ss:$16 sps:$4 sm:$0xff]  }
 0xa29   :  { %9632 = vst [vmem:[#allocation110_spill] sm:$0xff] %v7687_v8  ;;  %9633 = vst [vmem:[#allocation111_spill] sm:$0xff] %v7690_v60 }
 0xa2b   :  { %3001 = vmatpush1.bf16.msra.mxu0 %v7675_v11  ;;  %3042 = vmatpush1.bf16.msra.mxu1 %v7678_v47  ;;  %v7693_v11 = vld [vmem:[#allocation9 + $0x384] ss:$16 sps:$4 sm:$0xff]   ;;  %v7696_v47 = vld [vmem:[#allocation9 + $0x38c] ss:$16 sps:$4 sm:$0xff]  }
 0xa2c   :  { %3002 = vmatprep.subr.bf16.mxu0 %v7681_v33  ;;  %3043 = vmatprep.subr.bf16.mxu1 %v7684_v45  ;;  %9634 = vst [vmem:[#allocation112_spill] sm:$0xff] %v7693_v11  ;;  %9635 = vst [vmem:[#allocation113_spill] sm:$0xff] %v7696_v47  ;;  %v7699_v33 = vld [vmem:[#allocation9 + $0x380] ss:$16 sps:$4 sm:$0xff]   ;;  %v7702_v45 = vld [vmem:[#allocation9 + $0x388] ss:$16 sps:$4 sm:$0xff]  }
 0xa2d   :  { %9636 = vst [vmem:[#allocation114_spill] sm:$0xff] %v7699_v33  ;;  %9637 = vst [vmem:[#allocation115_spill] sm:$0xff] %v7702_v45 }
 0xa2f   :  { %3003 = vmatpush1.bf16.msra.mxu0 %v7687_v8  ;;  %3044 = vmatpush1.bf16.msra.mxu1 %v7690_v60  ;;  %v7705_v8 = vld [vmem:[#allocation9 + $0x3a4] ss:$16 sps:$4 sm:$0xff]   ;;  %v7708_v60 = vld [vmem:[#allocation9 + $0x3ac] ss:$16 sps:$4 sm:$0xff]  }
 0xa30   :  { %3004 = vmatprep.subr.bf16.mxu0 %v7693_v11  ;;  %3045 = vmatprep.subr.bf16.mxu1 %v7696_v47  ;;  %9638 = vst [vmem:[#allocation116_spill] sm:$0xff] %v7705_v8  ;;  %9639 = vst [vmem:[#allocation117_spill] sm:$0xff] %v7708_v60  ;;  %v7711_v11 = vld [vmem:[#allocation9 + $0x3a0] ss:$16 sps:$4 sm:$0xff]   ;;  %v7714_v47 = vld [vmem:[#allocation9 + $0x3a8] ss:$16 sps:$4 sm:$0xff]  }
 0xa31   :  { %9640 = vst [vmem:[#allocation118_spill] sm:$0xff] %v7711_v11  ;;  %9641 = vst [vmem:[#allocation119_spill] sm:$0xff] %v7714_v47 }
 0xa33   :  { %3005 = vmatpush1.bf16.msra.mxu0 %v7699_v33  ;;  %3046 = vmatpush1.bf16.msra.mxu1 %v7702_v45  ;;  %v7717_v33 = vld [vmem:[#allocation9 + $0x3c4] ss:$16 sps:$4 sm:$0xff]   ;;  %v7720_v45 = vld [vmem:[#allocation9 + $0x3cc] ss:$16 sps:$4 sm:$0xff]  }
 0xa34   :  { %3006 = vmatprep.subr.bf16.mxu0 %v7705_v8  ;;  %3047 = vmatprep.subr.bf16.mxu1 %v7708_v60  ;;  %9642 = vst [vmem:[#allocation120_spill] sm:$0xff] %v7717_v33  ;;  %9643 = vst [vmem:[#allocation121_spill] sm:$0xff] %v7720_v45  ;;  %v7723_v8 = vld [vmem:[#allocation9 + $0x3c0] ss:$16 sps:$4 sm:$0xff]   ;;  %v7726_v60 = vld [vmem:[#allocation9 + $0x3c8] ss:$16 sps:$4 sm:$0xff]  }
 0xa35   :  { %9644 = vst [vmem:[#allocation122_spill] sm:$0xff] %v7723_v8  ;;  %9645 = vst [vmem:[#allocation123_spill] sm:$0xff] %v7726_v60 }
 0xa37   :  { %3007 = vmatpush1.bf16.msra.mxu0 %v7711_v11  ;;  %3048 = vmatpush1.bf16.msra.mxu1 %v7714_v47  ;;  %v7729_v11 = vld [vmem:[#allocation9 + $0x3e4] ss:$16 sps:$4 sm:$0xff]   ;;  %v7732_v47 = vld [vmem:[#allocation9 + $0x3ec] ss:$16 sps:$4 sm:$0xff]  }
 0xa38   :  { %3008 = vmatprep.subr.bf16.mxu0 %v7717_v33  ;;  %3049 = vmatprep.subr.bf16.mxu1 %v7720_v45  ;;  %9646 = vst [vmem:[#allocation124_spill] sm:$0xff] %v7729_v11  ;;  %9647 = vst [vmem:[#allocation125_spill] sm:$0xff] %v7732_v47  ;;  %v7735_v33 = vld [vmem:[#allocation9 + $0x3e0] ss:$16 sps:$4 sm:$0xff]   ;;  %v7738_v45 = vld [vmem:[#allocation9 + $0x3e8] ss:$16 sps:$4 sm:$0xff]  }
 0xa39   :  { %9648 = vst [vmem:[#allocation126_spill] sm:$0xff] %v7735_v33  ;;  %9649 = vst [vmem:[#allocation127_spill] sm:$0xff] %v7738_v45 }
 0xa3b   :  { %3009 = vmatpush1.bf16.msra.mxu0 %v7723_v8  ;;  %3050 = vmatpush1.bf16.msra.mxu1 %v7726_v60  ;;  %v7741_v8 = vld [vmem:[#allocation8 + $0x4] ss:$16 sps:$4 sm:$0xff]   ;;  %v7744_v60 = vld [vmem:[#allocation8 + $0xc] ss:$16 sps:$4 sm:$0xff]  }
 0xa3c   :  { %3010 = vmatprep.subr.bf16.mxu0 %v7729_v11  ;;  %3051 = vmatprep.subr.bf16.mxu1 %v7732_v47  ;;  %9650 = vst [vmem:[#allocation128_spill] sm:$0xff] %v7741_v8  ;;  %9651 = vst [vmem:[#allocation129_spill] sm:$0xff] %v7744_v60 }
 0xa3f   :  { %3011 = vmatpush1.bf16.msra.mxu0 %v7735_v33  ;;  %3052 = vmatpush1.bf16.msra.mxu1 %v7738_v45 }
 0xa40   :  { %3085 = vmatprep.subr.bf16.mxu0 %v7741_v8  ;;  %3126 = vmatprep.subr.bf16.mxu1 %v7744_v60 }
 0xad4   :  { %v2916_v11 = vpop.f32.mrb[68].mxu0  ;;  %v2957_v7 = vpop.f32.mrb[68].mxu1 }
 0xad5   :  { %v2917_v47 = vadd.f32 %v2916_v11, %v9541_v17  ;;  %v2918_v42 = vpop.f32.mrb[69].mxu0  ;;  %v2959_v35 = vpop.f32.mrb[69].mxu1  ;;  %v2958_v8 = vadd.f32 %v2957_v7, %v9315_v19 }
 0xad6   :  { %v2919_v33 = vadd.f32 %v2918_v42, %v9314_v4  ;;  %v2920_v41 = vpop.f32.mrb[70].mxu0  ;;  %v2961_v36 = vpop.f32.mrb[70].mxu1  ;;  %v2960_v45 = vadd.f32 %v2959_v35, %v6309_v52 }
 0xad7   :  { %4801 = vtanh.f32 %v2917_v47  ;;  %v2921_v61 = vpop.f32.mrb[71].mxu0  ;;  %v2962_v50 = vpop.f32.mrb[71].mxu1 }
 0xad8   :  { %4803 = vtanh.f32 %v2919_v33 }
 0xad9   :  { %4805 = vtanh.f32 %v2960_v45  ;;  %v7782_v45 = vld [vmem:[#allocation8 + $0x4c] ss:$16 sps:$4 sm:$0xff]  }
 0xada   :  { %4807 = vtanh.f32 %v2958_v8  ;;  %v7785_v8 = vld [vmem:[#allocation8 + $0x40] ss:$16 sps:$4 sm:$0xff]  }
 0xae1   :  { %v4802_v60 = vpop.eup %4801 }
 0xae2   :  { %v2967_v23 = vmul.f32 0.5, %v4802_v60  ;;  %v4804_v31 = vpop.eup %4803  ;;  %v7779_v60 = vld [vmem:[#allocation8 + $0x44] ss:$16 sps:$4 sm:$0xff]  }
 0xae3   :  { %v2968_v11 = vmul.f32 0.5, %v4804_v31  ;;  %v4806_v17 = vpop.eup %4805  ;;  %v7759_v31 = vld [vmem:[#allocation8] ss:$16 sps:$4 sm:$0xff]  }
 0xae4   :  { %v2970_v12 = vadd.f32 0.5, %v2967_v23  ;;  %v4808_v50 = vpop.eup %4807  ;;  %v7776_v23 = vld [vmem:[#allocation8 + $0x28] ss:$16 sps:$4 sm:$0xff]  }
 0xae5   :  { %v2971_v39 = vadd.f32 0.5, %v2968_v11  ;;  %v2969_v61 = vmul.f32 0.5, %v4808_v50  ;;  %v7788_v11 = vld [vmem:[#allocation8 + $0x48] ss:$16 sps:$4 sm:$0xff]   ;;  %v7797_v50 = vld [vmem:[#allocation8 + $0x60] ss:$16 sps:$4 sm:$0xff]  }
 0xae6   :  { %v2975_v42 = vmul.f32 %v4806_v17, %v2970_v12  ;;  %v7762_v17 = vld [vmem:[#allocation8 + $0x8] ss:$16 sps:$4 sm:$0xff]   ;;  %v7773_v12 = vld [vmem:[#allocation8 + $0x20] ss:$16 sps:$4 sm:$0xff]   ;;  %9653 = vst [vmem:[#allocation131_spill] sm:$0xff] %v7797_v50 }
 0xae7   :  { %v2974_v36 = vmul.f32 %v2971_v39, %v7300_v46  ;;  %v2972_v35 = vadd.f32 0.5, %v2969_v61  ;;  %v7765_v46 = vld [vmem:[#allocation8 + $0x24] ss:$16 sps:$4 sm:$0xff]   ;;  %v7768_v39 = vld [vmem:[#allocation8 + $0x2c] ss:$16 sps:$4 sm:$0xff]  }
 0xae8   :  { %v7800_v61 = vld [vmem:[#allocation8 + $0x68] ss:$16 sps:$4 sm:$0xff]  }
 0xae9   :  { %v7752_v41 = vadd.f32 %v2975_v42, %v2974_v36  ;;  %v7791_v42 = vld [vmem:[#allocation8 + $0x64] ss:$16 sps:$4 sm:$0xff]   ;;  %v7794_v36 = vld [vmem:[#allocation8 + $0x6c] ss:$16 sps:$4 sm:$0xff]   ;;  %9654 = vst [vmem:[#allocation132_spill] sm:$0xff] %v7800_v61 }
 0xaea   :  { %9652 = vst [vmem:[#allocation130_spill] sm:$0xff] %v7794_v36 }
 0xaeb   :  { %4809 = vtanh.f32 %v7752_v41 }
 0xaf5   :  { %v4810_v47 = vpop.eup %4809 }
 0xaf6   :  { %v2978_v7 = vmul.f32 %v4810_v47, %v2972_v35  ;;  %v7803_v35 = vld [vmem:[#allocation8 + $0x84] ss:$16 sps:$4 sm:$0xff]   ;;  %v7806_v47 = vld [vmem:[#allocation8 + $0x8c] ss:$16 sps:$4 sm:$0xff]  }
 0xaf7   :  { %9655 = vst [vmem:[#allocation133_spill] sm:$0xff] %v7803_v35  ;;  %9656 = vst [vmem:[#allocation134_spill] sm:$0xff] %v7806_v47 }
 0xaf8   :  { %v7755_v33 = vpack.c.bf16 %v2978_v7, %v2978_v7  ;;  %v7809_v7 = vld [vmem:[#allocation8 + $0x80] ss:$16 sps:$4 sm:$0xff]  }
 0xaf9   :  { %9657 = vst [vmem:[#allocation135_spill] sm:$0xff] %v7809_v7 }
 0xafa   :  { %3013 = vmatmul.mubr.bf16.vlgmr.msra.gmra.mrb[72].mxu0 %v7755_v33  ;;  %3054 = vmatmul.mubr.bf16.vlgmr.msra.gmra.mrb[72].mxu1 %v7755_v33 }
 0xafb   :  { %3086 = vmatpush1.bf16.msra.mxu0 %v7759_v31  ;;  %3127 = vmatpush1.bf16.msra.mxu1 %v7762_v17 }
 0xafc   :  { %3087 = vmatprep.subr.bf16.mxu0 %v7765_v46  ;;  %3128 = vmatprep.subr.bf16.mxu1 %v7768_v39 }
 0xafd   :  { %3117 = vmatprep.mubr.bf16.mxu0 %v9199_v5  ;;  %3158 = vmatprep.mubr.bf16.mxu1 %v9199_v5 }
 0xaff   :  { %3088 = vmatpush1.bf16.msra.mxu0 %v7773_v12  ;;  %3129 = vmatpush1.bf16.msra.mxu1 %v7776_v23 }
 0xb00   :  { %3089 = vmatprep.subr.bf16.mxu0 %v7779_v60  ;;  %3130 = vmatprep.subr.bf16.mxu1 %v7782_v45 }
 0xb03   :  { %3090 = vmatpush1.bf16.msra.mxu0 %v7785_v8  ;;  %3131 = vmatpush1.bf16.msra.mxu1 %v7788_v11 }
 0xb04   :  { %3091 = vmatprep.subr.bf16.mxu0 %v7791_v42  ;;  %3132 = vmatprep.subr.bf16.mxu1 %v7794_v36  ;;  %v7812_v36 = vld [vmem:[#allocation8 + $0x88] ss:$16 sps:$4 sm:$0xff]  }
 0xb05   :  { %9658 = vst [vmem:[#allocation136_spill] sm:$0xff] %v7812_v36 }
 0xb07   :  { %3092 = vmatpush1.bf16.msra.mxu0 %v7797_v50  ;;  %3133 = vmatpush1.bf16.msra.mxu1 %v7800_v61  ;;  %v7815_v50 = vld [vmem:[#allocation8 + $0xa4] ss:$16 sps:$4 sm:$0xff]   ;;  %v7818_v61 = vld [vmem:[#allocation8 + $0xac] ss:$16 sps:$4 sm:$0xff]  }
 0xb08   :  { %3093 = vmatprep.subr.bf16.mxu0 %v7803_v35  ;;  %3134 = vmatprep.subr.bf16.mxu1 %v7806_v47  ;;  %9659 = vst [vmem:[#allocation137_spill] sm:$0xff] %v7815_v50  ;;  %9660 = vst [vmem:[#allocation138_spill] sm:$0xff] %v7818_v61  ;;  %v7821_v35 = vld [vmem:[#allocation8 + $0xa0] ss:$16 sps:$4 sm:$0xff]   ;;  %v7824_v47 = vld [vmem:[#allocation8 + $0xa8] ss:$16 sps:$4 sm:$0xff]  }
 0xb09   :  { %9661 = vst [vmem:[#allocation139_spill] sm:$0xff] %v7821_v35  ;;  %9662 = vst [vmem:[#allocation141_spill] sm:$0xff] %v7824_v47 }
 0xb0b   :  { %3094 = vmatpush1.bf16.msra.mxu0 %v7809_v7  ;;  %3135 = vmatpush1.bf16.msra.mxu1 %v7812_v36  ;;  %v7827_v7 = vld [vmem:[#allocation8 + $0xc4] ss:$16 sps:$4 sm:$0xff]   ;;  %v7830_v36 = vld [vmem:[#allocation8 + $0xcc] ss:$16 sps:$4 sm:$0xff]  }
 0xb0c   :  { %3095 = vmatprep.subr.bf16.mxu0 %v7815_v50  ;;  %3136 = vmatprep.subr.bf16.mxu1 %v7818_v61  ;;  %9663 = vst [vmem:[#allocation142_spill] sm:$0xff] %v7827_v7  ;;  %9664 = vst [vmem:[#allocation143_spill] sm:$0xff] %v7830_v36  ;;  %v7833_v50 = vld [vmem:[#allocation8 + $0xc0] ss:$16 sps:$4 sm:$0xff]   ;;  %v7836_v61 = vld [vmem:[#allocation8 + $0xc8] ss:$16 sps:$4 sm:$0xff]  }
 0xb0f   :  { %3096 = vmatpush1.bf16.msra.mxu0 %v7821_v35  ;;  %3137 = vmatpush1.bf16.msra.mxu1 %v7824_v47  ;;  %v7839_v35 = vld [vmem:[#allocation8 + $0xe4] ss:$16 sps:$4 sm:$0xff]   ;;  %v7842_v47 = vld [vmem:[#allocation8 + $0xec] ss:$16 sps:$4 sm:$0xff]  }
 0xb10   :  { %3097 = vmatprep.subr.bf16.mxu0 %v7827_v7  ;;  %3138 = vmatprep.subr.bf16.mxu1 %v7830_v36  ;;  %v7845_v7 = vld [vmem:[#allocation8 + $0xe0] ss:$16 sps:$4 sm:$0xff]   ;;  %v7848_v36 = vld [vmem:[#allocation8 + $0xe8] ss:$16 sps:$4 sm:$0xff]  }
 0xb13   :  { %3098 = vmatpush1.bf16.msra.mxu0 %v7833_v50  ;;  %3139 = vmatpush1.bf16.msra.mxu1 %v7836_v61 }
 0xb14   :  { %3099 = vmatprep.subr.bf16.mxu0 %v7839_v35  ;;  %3140 = vmatprep.subr.bf16.mxu1 %v7842_v47 }
 0xb17   :  { %3100 = vmatpush1.bf16.msra.mxu0 %v7845_v7  ;;  %3141 = vmatpush1.bf16.msra.mxu1 %v7848_v36 }
 0xb18   :  { %3183 = vmatprep.subr.bf16.mxu0 %v7335_v13  ;;  %3224 = vmatprep.subr.bf16.mxu1 %v7338_v63  ;;  %v9665_v13 = vld [vmem:[#allocation155_spill] sm:$0xff]  ;;  %v9666_v63 = vld [vmem:[#allocation156_spill] sm:$0xff] }
 0xb1a   :  { %3118 = vmatmul.mubr.bf16.vlgmr.msra.gmra.mrb[76].mxu0 %v7551_v48  ;;  %3159 = vmatmul.mubr.bf16.vlgmr.msra.gmra.mrb[76].mxu1 %v7551_v48 }
 0xb1b   :  { %3215 = vmatprep.mubr.bf16.mxu0 %v7755_v33  ;;  %3256 = vmatprep.mubr.bf16.mxu1 %v7755_v33 }
 0xb1c   :  { %3184 = vmatpush1.bf16.msra.mxu0 %v7343_v37  ;;  %3225 = vmatpush1.bf16.msra.mxu1 %v7346_v40  ;;  %v9667_v37 = vld [vmem:[#allocation157_spill] sm:$0xff]  ;;  %v9668_v40 = vld [vmem:[#allocation55_spill] sm:$0xff] }
 0xb1d   :  { %3185 = vmatprep.subr.bf16.mxu0 %v7349_v44  ;;  %3226 = vmatprep.subr.bf16.mxu1 %v7352_v62  ;;  %v9669_v44 = vld [vmem:[#allocation56_spill] sm:$0xff]  ;;  %v9670_v62 = vld [vmem:[#allocation57_spill] sm:$0xff] }
 0xb20   :  { %3186 = vmatpush1.bf16.msra.mxu0 %v7355_v55  ;;  %3227 = vmatpush1.bf16.msra.mxu1 %v7358_v57  ;;  %v9671_v55 = vld [vmem:[#allocation58_spill] sm:$0xff]  ;;  %v9672_v57 = vld [vmem:[#allocation24_spill] sm:$0xff] }
 0xb21   :  { %3187 = vmatprep.subr.bf16.mxu0 %v7361_v27  ;;  %3228 = vmatprep.subr.bf16.mxu1 %v7364_v1  ;;  %v9673_v27 = vld [vmem:[#allocation25_spill] sm:$0xff]  ;;  %v9674_v1 = vld [vmem:[#allocation26_spill] sm:$0xff] }
 0xb24   :  { %3188 = vmatpush1.bf16.msra.mxu0 %v7367_v38  ;;  %3229 = vmatpush1.bf16.msra.mxu1 %v7370_v15  ;;  %v9675_v38 = vld [vmem:[#allocation27_spill] sm:$0xff]  ;;  %v9676_v15 = vld [vmem:[#allocation28_spill] sm:$0xff] }
 0xb25   :  { %3189 = vmatprep.subr.bf16.mxu0 %v7373_v2  ;;  %3230 = vmatprep.subr.bf16.mxu1 %v7376_v16  ;;  %v9677_v2 = vld [vmem:[#allocation29_spill] sm:$0xff]  ;;  %v9678_v16 = vld [vmem:[#allocation30_spill] sm:$0xff] }
 0xb28   :  { %3190 = vmatpush1.bf16.msra.mxu0 %v7379_v18  ;;  %3231 = vmatpush1.bf16.msra.mxu1 %v7382_v21  ;;  %v9679_v18 = vld [vmem:[#allocation31_spill] sm:$0xff]  ;;  %v9680_v21 = vld [vmem:[#allocation32_spill] sm:$0xff] }
 0xb29   :  { %3191 = vmatprep.subr.bf16.mxu0 %v7385_v24  ;;  %3232 = vmatprep.subr.bf16.mxu1 %v7388_v51  ;;  %v9681_v24 = vld [vmem:[#allocation33_spill] sm:$0xff]  ;;  %v9682_v51 = vld [vmem:[#allocation34_spill] sm:$0xff] }
 0xb2c   :  { %3192 = vmatpush1.bf16.msra.mxu0 %v7391_v25  ;;  %3233 = vmatpush1.bf16.msra.mxu1 %v7394_v26  ;;  %v9683_v25 = vld [vmem:[#allocation35_spill] sm:$0xff]  ;;  %v9684_v26 = vld [vmem:[#allocation36_spill] sm:$0xff] }
 0xb2d   :  { %3193 = vmatprep.subr.bf16.mxu0 %v7397_v28  ;;  %3234 = vmatprep.subr.bf16.mxu1 %v7400_v56  ;;  %v9685_v28 = vld [vmem:[#allocation37_spill] sm:$0xff]  ;;  %v9686_v56 = vld [vmem:[#allocation38_spill] sm:$0xff] }
 0xb30   :  { %3194 = vmatpush1.bf16.msra.mxu0 %v7403_v29  ;;  %3235 = vmatpush1.bf16.msra.mxu1 %v7406_v30  ;;  %v9687_v29 = vld [vmem:[#allocation39_spill] sm:$0xff]  ;;  %v9688_v30 = vld [vmem:[#allocation40_spill] sm:$0xff] }
 0xb31   :  { %3195 = vmatprep.subr.bf16.mxu0 %v7409_v53  ;;  %3236 = vmatprep.subr.bf16.mxu1 %v7412_v54  ;;  %v9689_v53 = vld [vmem:[#allocation41_spill] sm:$0xff]  ;;  %v9690_v54 = vld [vmem:[#allocation42_spill] sm:$0xff] }
 0xb34   :  { %3196 = vmatpush1.bf16.msra.mxu0 %v7415_v34  ;;  %3237 = vmatpush1.bf16.msra.mxu1 %v7418_v9  ;;  %v9691_v34 = vld [vmem:[#allocation43_spill] sm:$0xff]  ;;  %v9692_v9 = vld [vmem:[#allocation44_spill] sm:$0xff] }
 0xb35   :  { %3197 = vmatprep.subr.bf16.mxu0 %v7421_v14  ;;  %3238 = vmatprep.subr.bf16.mxu1 %v7424_v22  ;;  %v9693_v14 = vld [vmem:[#allocation45_spill] sm:$0xff]  ;;  %v9694_v22 = vld [vmem:[#allocation46_spill] sm:$0xff] }
 0xb38   :  { %3198 = vmatpush1.bf16.msra.mxu0 %v7427_v32  ;;  %3239 = vmatpush1.bf16.msra.mxu1 %v7430_v0  ;;  %v9695_v32 = vld [vmem:[#allocation47_spill] sm:$0xff]  ;;  %v9696_v0 = vld [vmem:[#allocation48_spill] sm:$0xff] }
 0xb39   :  { %3199 = vmatprep.subr.bf16.mxu0 %v7433_v3  ;;  %3240 = vmatprep.subr.bf16.mxu1 %v9665_v13  ;;  %v9697_v3 = vld [vmem:[#allocation49_spill] sm:$0xff] }
 0xb3a   :  { %v9698_v13 = vld [vmem:[#allocation21_spill] sm:$0xff] }
 0xb3c   :  { %3200 = vmatpush1.bf16.msra.mxu0 %v9666_v63  ;;  %3241 = vmatpush1.bf16.msra.mxu1 %v9667_v37 }
 0xb3d   :  { %3201 = vmatprep.subr.bf16.mxu0 %v9668_v40  ;;  %3242 = vmatprep.subr.bf16.mxu1 %v9669_v44  ;;  %v9699_v44 = vld [vmem:[#allocation22_spill] sm:$0xff] }
 0xb40   :  { %3202 = vmatpush1.bf16.msra.mxu0 %v9670_v62  ;;  %3243 = vmatpush1.bf16.msra.mxu1 %v9671_v55 }
 0xb41   :  { %3203 = vmatprep.subr.bf16.mxu0 %v9672_v57  ;;  %3244 = vmatprep.subr.bf16.mxu1 %v9673_v27  ;;  %v9700_v27 = vld [vmem:[#allocation23_spill] sm:$0xff] }
 0xb44   :  { %3204 = vmatpush1.bf16.msra.mxu0 %v9674_v1  ;;  %3245 = vmatpush1.bf16.msra.mxu1 %v9675_v38 }
 0xb45   :  { %3205 = vmatprep.subr.bf16.mxu0 %v9676_v15  ;;  %3246 = vmatprep.subr.bf16.mxu1 %v9677_v2 }
 0xb48   :  { %3206 = vmatpush1.bf16.msra.mxu0 %v9678_v16  ;;  %3247 = vmatpush1.bf16.msra.mxu1 %v9679_v18 }
 0xb49   :  { %3207 = vmatprep.subr.bf16.mxu0 %v9680_v21  ;;  %3248 = vmatprep.subr.bf16.mxu1 %v9681_v24 }
 0xb4c   :  { %3208 = vmatpush1.bf16.msra.mxu0 %v9682_v51  ;;  %3249 = vmatpush1.bf16.msra.mxu1 %v9683_v25 }
 0xb4d   :  { %3209 = vmatprep.subr.bf16.mxu0 %v9684_v26  ;;  %3250 = vmatprep.subr.bf16.mxu1 %v9685_v28 }
 0xb50   :  { %3210 = vmatpush1.bf16.msra.mxu0 %v9686_v56  ;;  %3251 = vmatpush1.bf16.msra.mxu1 %v9687_v29 }
 0xb51   :  { %3211 = vmatprep.subr.bf16.mxu0 %v9688_v30  ;;  %3252 = vmatprep.subr.bf16.mxu1 %v9689_v53  ;;  %v9701_v53 = vld [vmem:[#allocation67_spill] sm:$0xff] }
 0xb54   :  { %3212 = vmatpush1.bf16.msra.mxu0 %v9690_v54  ;;  %3253 = vmatpush1.bf16.msra.mxu1 %v9691_v34  ;;  %v9702_v34 = vld [vmem:[#allocation68_spill] sm:$0xff] }
 0xb55   :  { %3213 = vmatprep.subr.bf16.mxu0 %v9692_v9  ;;  %3254 = vmatprep.subr.bf16.mxu1 %v9693_v14 }
 0xb58   :  { %3214 = vmatpush1.bf16.msra.mxu0 %v9694_v22  ;;  %3255 = vmatpush1.bf16.msra.mxu1 %v9695_v32  ;;  %v9703_v32 = vld [vmem:[#allocation69_spill] sm:$0xff] }
 0xb59   :  { %3281 = vmatprep.subr.bf16.mxu0 %v9696_v0  ;;  %3322 = vmatprep.subr.bf16.mxu1 %v9697_v3  ;;  %v9704_v3 = vld [vmem:[#allocation70_spill] sm:$0xff] }
 0xbcd   :  { %v3014_v48 = vpop.f32.mrb[72].mxu0  ;;  %v3055_v33 = vpop.f32.mrb[72].mxu1 }
 0xbce   :  { %v3015_v63 = vadd.f32 %v3014_v48, %v9698_v13  ;;  %v3016_v37 = vpop.f32.mrb[73].mxu0  ;;  %v3057_v40 = vpop.f32.mrb[73].mxu1 }
 0xbcf   :  { %v3017_v62 = vadd.f32 %v3016_v37, %v9699_v44  ;;  %v3018_v55 = vpop.f32.mrb[74].mxu0  ;;  %v3059_v57 = vpop.f32.mrb[74].mxu1  ;;  %v3058_v1 = vadd.f32 %v3057_v40, %v9700_v27 }
 0xbd0   :  { %4811 = vtanh.f32 %v3015_v63  ;;  %v3019_v38 = vpop.f32.mrb[75].mxu0  ;;  %v3060_v15 = vpop.f32.mrb[75].mxu1 }
 0xbd1   :  { %4813 = vtanh.f32 %v3017_v62 }
 0xbd2   :  { %4815 = vtanh.f32 %v3058_v1 }
 0xbda   :  { %v4812_v2 = vpop.eup %4811 }
 0xbdb   :  { %v3065_v16 = vmul.f32 0.5, %v4812_v2  ;;  %v4814_v18 = vpop.eup %4813 }
 0xbdc   :  { %v3066_v24 = vmul.f32 0.5, %v4814_v18  ;;  %v4816_v51 = vpop.eup %4815 }
 0xbdd   :  { %v3068_v21 = vadd.f32 0.5, %v3065_v16 }
 0xbde   :  { %v3069_v25 = vadd.f32 0.5, %v3066_v24 }
 0xbdf   :  { %v3073_v26 = vmul.f32 %v4816_v51, %v3068_v21 }
 0xbe0   :  { %v3072_v28 = vmul.f32 %v3069_v25, %v7539_v59  ;;  %v3056_v59 = vadd.f32 %v3055_v33, %v6509_v49 }
 0xbe2   :  { %v7925_v56 = vadd.f32 %v3073_v26, %v3072_v28 }
 0xbed   :  { %v3119_v29 = vpop.f32.mrb[76].mxu0  ;;  %v3160_v30 = vpop.f32.mrb[76].mxu1 }
 0xbee   :  { %v3120_v54 = vadd.f32 %v3119_v29, %v9701_v53  ;;  %v3161_v9 = vadd.f32 %v3160_v30, %v9702_v34  ;;  %v3121_v14 = vpop.f32.mrb[77].mxu0  ;;  %v3162_v22 = vpop.f32.mrb[77].mxu1 }
 0xbef   :  { %v3122_v0 = vadd.f32 %v3121_v14, %v9703_v32  ;;  %v3163_v48 = vadd.f32 %v3162_v22, %v9704_v3  ;;  %v3123_v63 = vpop.f32.mrb[78].mxu0  ;;  %v3164_v37 = vpop.f32.mrb[78].mxu1  ;;  %v9706_v22 = vld [vmem:[#allocation51_spill] sm:$0xff]  ;;  %v9707_v32 = vld [vmem:[#allocation52_spill] sm:$0xff]  ;;  %v9709_v3 = vld [vmem:[#allocation54_spill] sm:$0xff] }
 0xbf0   :  { %4817 = vtanh.f32 %v3120_v54  ;;  %v3124_v40 = vpop.f32.mrb[79].mxu0  ;;  %v3165_v62 = vpop.f32.mrb[79].mxu1  ;;  %v9711_v63 = vld [vmem:[#allocation80_spill] sm:$0xff]  ;;  %v9716_v37 = vld [vmem:[#allocation81_spill] sm:$0xff] }
 0xbf1   :  { %4819 = vtanh.f32 %v3122_v0  ;;  %v9708_v0 = vld [vmem:[#allocation53_spill] sm:$0xff]  ;;  %v9717_v40 = vld [vmem:[#allocation82_spill] sm:$0xff]  ;;  %v9718_v62 = vld [vmem:[#allocation83_spill] sm:$0xff] }
 0xbf2   :  { %4821 = vtanh.f32 %v3163_v48  ;;  %v9710_v48 = vld [vmem:[#allocation79_spill] sm:$0xff] }
 0xbf3   :  { %4823 = vtanh.f32 %v3056_v59  ;;  %v9719_v59 = vld [vmem:[#allocation84_spill] sm:$0xff] }
 0xbf4   :  { %4825 = vtanh.f32 %v3161_v9 }
 0xbf5   :  { %4827 = vtanh.f32 %v7925_v56 }
 0xbfa   :  { %v4818_v55 = vpop.eup %4817 }
 0xbfb   :  { %v3170_v57 = vmul.f32 0.5, %v4818_v55  ;;  %v4820_v1 = vpop.eup %4819  ;;  %v9720_v55 = vld [vmem:[#allocation85_spill] sm:$0xff] }
 0xbfc   :  { %v3171_v15 = vmul.f32 0.5, %v4820_v1  ;;  %v4822_v2 = vpop.eup %4821  ;;  %v9722_v1 = vld [vmem:[#allocation87_spill] sm:$0xff] }
 0xbfd   :  { %v3173_v38 = vadd.f32 0.5, %v3170_v57  ;;  %v4824_v51 = vpop.eup %4823  ;;  %v9721_v57 = vld [vmem:[#allocation86_spill] sm:$0xff] }
 0xbfe   :  { %v3174_v16 = vadd.f32 0.5, %v3171_v15  ;;  %v4826_v33 = vpop.eup %4825  ;;  %v3067_v25 = vmul.f32 0.5, %v4824_v51  ;;  %v9724_v15 = vld [vmem:[#allocation89_spill] sm:$0xff]  ;;  %v9729_v51 = vld [vmem:[#allocation94_spill] sm:$0xff] }
 0xbff   :  { %v3178_v18 = vmul.f32 %v4822_v2, %v3173_v38  ;;  %v3172_v26 = vmul.f32 0.5, %v4826_v33  ;;  %v4828_v28 = vpop.eup %4827  ;;  %v9723_v38 = vld [vmem:[#allocation88_spill] sm:$0xff]  ;;  %v9725_v2 = vld [vmem:[#allocation90_spill] sm:$0xff]  ;;  %v9730_v33 = vld [vmem:[#allocation95_spill] sm:$0xff] }
 0xc00   :  { %v3177_v21 = vmul.f32 %v3174_v16, %v7548_v58  ;;  %v3070_v29 = vadd.f32 0.5, %v3067_v25  ;;  %v9705_v58 = vld [vmem:[#allocation50_spill] sm:$0xff]  ;;  %v9726_v16 = vld [vmem:[#allocation91_spill] sm:$0xff]  ;;  %v9731_v25 = vld [vmem:[#allocation96_spill] sm:$0xff] }
 0xc01   :  { %v3175_v30 = vadd.f32 0.5, %v3172_v26  ;;  %v9732_v26 = vld [vmem:[#allocation97_spill] sm:$0xff] }
 0xc02   :  { %v7934_v24 = vadd.f32 %v3178_v18, %v3177_v21  ;;  %v3076_v54 = vmul.f32 %v4828_v28, %v3070_v29  ;;  %v9727_v18 = vld [vmem:[#allocation92_spill] sm:$0xff]  ;;  %v9728_v21 = vld [vmem:[#allocation93_spill] sm:$0xff]  ;;  %v9733_v28 = vld [vmem:[#allocation98_spill] sm:$0xff] }
 0xc03   :  { %v9734_v29 = vld [vmem:[#allocation99_spill] sm:$0xff] }
 0xc04   :  { %4829 = vtanh.f32 %v7934_v24  ;;  %v3077_v14 = vpack.c.bf16 %v3076_v54, %v3076_v54  ;;  %v9737_v54 = vld [vmem:[#allocation102_spill] sm:$0xff] }
 0xc0e   :  { %v4830_v53 = vpop.eup %4829 }
 0xc0f   :  { %v3181_v34 = vmul.f32 %v4830_v53, %v3175_v30  ;;  %v9735_v30 = vld [vmem:[#allocation100_spill] sm:$0xff]  ;;  %v9736_v53 = vld [vmem:[#allocation101_spill] sm:$0xff] }
 0xc11   :  { %v7937_v9 = vpack.c.bf16 %v3181_v34, %v3181_v34  ;;  %v9738_v34 = vld [vmem:[#allocation103_spill] sm:$0xff] }
 0xc13   :  { %3216 = vmatmul.mubr.bf16.vlgmr.msra.gmra.mrb[80].mxu0 %v7937_v9  ;;  %3257 = vmatmul.mubr.bf16.vlgmr.msra.gmra.mrb[80].mxu1 %v7937_v9 }
 0xc14   :  { %3313 = vmatprep.mubr.bf16.mxu0 %v3077_v14  ;;  %3354 = vmatprep.mubr.bf16.mxu1 %v3077_v14  ;;  %v9739_v14 = vld [vmem:[#allocation104_spill] sm:$0xff] }
 0xc15   :  { %3282 = vmatpush1.bf16.msra.mxu0 %v7555_v43  ;;  %3323 = vmatpush1.bf16.msra.mxu1 %v7558_v20  ;;  %v9712_v43 = vld [vmem:[#allocation59_spill] sm:$0xff]  ;;  %v9713_v20 = vld [vmem:[#allocation60_spill] sm:$0xff] }
 0xc16   :  { %3283 = vmatprep.subr.bf16.mxu0 %v7561_v6  ;;  %3324 = vmatprep.subr.bf16.mxu1 %v7564_v10  ;;  %v9714_v6 = vld [vmem:[#allocation61_spill] sm:$0xff]  ;;  %v9715_v10 = vld [vmem:[#allocation62_spill] sm:$0xff] }
 0xc19   :  { %3284 = vmatpush1.bf16.msra.mxu0 %v9705_v58  ;;  %3325 = vmatpush1.bf16.msra.mxu1 %v9706_v22  ;;  %v9740_v58 = vld [vmem:[#allocation105_spill] sm:$0xff]  ;;  %v9741_v22 = vld [vmem:[#allocation106_spill] sm:$0xff] }
 0xc1a   :  { %3285 = vmatprep.subr.bf16.mxu0 %v9707_v32  ;;  %3326 = vmatprep.subr.bf16.mxu1 %v9708_v0  ;;  %v9742_v32 = vld [vmem:[#allocation107_spill] sm:$0xff]  ;;  %v9743_v0 = vld [vmem:[#allocation108_spill] sm:$0xff] }
 0xc1d   :  { %3286 = vmatpush1.bf16.msra.mxu0 %v9709_v3  ;;  %3327 = vmatpush1.bf16.msra.mxu1 %v9710_v48  ;;  %v9744_v3 = vld [vmem:[#allocation109_spill] sm:$0xff]  ;;  %v9745_v48 = vld [vmem:[#allocation110_spill] sm:$0xff] }
 0xc1e   :  { %3287 = vmatprep.subr.bf16.mxu0 %v9711_v63  ;;  %3328 = vmatprep.subr.bf16.mxu1 %v9712_v43  ;;  %v9746_v63 = vld [vmem:[#allocation111_spill] sm:$0xff]  ;;  %v9747_v43 = vld [vmem:[#allocation112_spill] sm:$0xff] }
 0xc21   :  { %3288 = vmatpush1.bf16.msra.mxu0 %v9713_v20  ;;  %3329 = vmatpush1.bf16.msra.mxu1 %v9714_v6  ;;  %v9748_v20 = vld [vmem:[#allocation113_spill] sm:$0xff]  ;;  %v9749_v6 = vld [vmem:[#allocation114_spill] sm:$0xff] }
 0xc22   :  { %3289 = vmatprep.subr.bf16.mxu0 %v9715_v10  ;;  %3330 = vmatprep.subr.bf16.mxu1 %v9716_v37  ;;  %v9750_v10 = vld [vmem:[#allocation115_spill] sm:$0xff]  ;;  %v9751_v37 = vld [vmem:[#allocation116_spill] sm:$0xff] }
 0xc25   :  { %3290 = vmatpush1.bf16.msra.mxu0 %v9717_v40  ;;  %3331 = vmatpush1.bf16.msra.mxu1 %v9718_v62  ;;  %v9752_v40 = vld [vmem:[#allocation117_spill] sm:$0xff]  ;;  %v9753_v62 = vld [vmem:[#allocation118_spill] sm:$0xff] }
 0xc26   :  { %3291 = vmatprep.subr.bf16.mxu0 %v9719_v59  ;;  %3332 = vmatprep.subr.bf16.mxu1 %v9720_v55  ;;  %v9754_v59 = vld [vmem:[#allocation119_spill] sm:$0xff]  ;;  %v9755_v55 = vld [vmem:[#allocation120_spill] sm:$0xff] }
 0xc29   :  { %3292 = vmatpush1.bf16.msra.mxu0 %v9721_v57  ;;  %3333 = vmatpush1.bf16.msra.mxu1 %v9722_v1  ;;  %v9756_v57 = vld [vmem:[#allocation121_spill] sm:$0xff]  ;;  %v9757_v1 = vld [vmem:[#allocation122_spill] sm:$0xff] }
 0xc2a   :  { %3293 = vmatprep.subr.bf16.mxu0 %v9723_v38  ;;  %3334 = vmatprep.subr.bf16.mxu1 %v9724_v15  ;;  %v9758_v38 = vld [vmem:[#allocation123_spill] sm:$0xff]  ;;  %v9759_v15 = vld [vmem:[#allocation124_spill] sm:$0xff] }
 0xc2d   :  { %3294 = vmatpush1.bf16.msra.mxu0 %v9725_v2  ;;  %3335 = vmatpush1.bf16.msra.mxu1 %v9726_v16  ;;  %v9760_v2 = vld [vmem:[#allocation125_spill] sm:$0xff]  ;;  %v9761_v16 = vld [vmem:[#allocation126_spill] sm:$0xff] }
 0xc2e   :  { %3295 = vmatprep.subr.bf16.mxu0 %v9727_v18  ;;  %3336 = vmatprep.subr.bf16.mxu1 %v9728_v21  ;;  %v9762_v18 = vld [vmem:[#allocation127_spill] sm:$0xff]  ;;  %v9763_v21 = vld [vmem:[#allocation128_spill] sm:$0xff] }
 0xc31   :  { %3296 = vmatpush1.bf16.msra.mxu0 %v9729_v51  ;;  %3337 = vmatpush1.bf16.msra.mxu1 %v9730_v33  ;;  %v9764_v51 = vld [vmem:[#allocation129_spill] sm:$0xff] }
 0xc32   :  { %3297 = vmatprep.subr.bf16.mxu0 %v9731_v25  ;;  %3338 = vmatprep.subr.bf16.mxu1 %v9732_v26  ;;  %v9765_v26 = vld [vmem:[#allocation140_spill] sm:$0xff] }
 0xc35   :  { %3298 = vmatpush1.bf16.msra.mxu0 %v9733_v28  ;;  %3339 = vmatpush1.bf16.msra.mxu1 %v9734_v29 }
 0xc36   :  { %3299 = vmatprep.subr.bf16.mxu0 %v9735_v30  ;;  %3340 = vmatprep.subr.bf16.mxu1 %v9736_v53 }
 0xc39   :  { %3300 = vmatpush1.bf16.msra.mxu0 %v9737_v54  ;;  %3341 = vmatpush1.bf16.msra.mxu1 %v9738_v34 }
 0xc3a   :  { %3301 = vmatprep.subr.bf16.mxu0 %v9739_v14  ;;  %3342 = vmatprep.subr.bf16.mxu1 %v9740_v58 }
 0xc3d   :  { %3302 = vmatpush1.bf16.msra.mxu0 %v9741_v22  ;;  %3343 = vmatpush1.bf16.msra.mxu1 %v9742_v32 }
 0xc3e   :  { %3303 = vmatprep.subr.bf16.mxu0 %v9743_v0  ;;  %3344 = vmatprep.subr.bf16.mxu1 %v9744_v3 }
 0xc41   :  { %3304 = vmatpush1.bf16.msra.mxu0 %v9745_v48  ;;  %3345 = vmatpush1.bf16.msra.mxu1 %v9746_v63 }
 0xc42   :  { %3305 = vmatprep.subr.bf16.mxu0 %v9747_v43  ;;  %3346 = vmatprep.subr.bf16.mxu1 %v9748_v20 }
 0xc45   :  { %3306 = vmatpush1.bf16.msra.mxu0 %v9749_v6  ;;  %3347 = vmatpush1.bf16.msra.mxu1 %v9750_v10 }
 0xc46   :  { %3307 = vmatprep.subr.bf16.mxu0 %v9751_v37  ;;  %3348 = vmatprep.subr.bf16.mxu1 %v9752_v40 }
 0xc49   :  { %3308 = vmatpush1.bf16.msra.mxu0 %v9753_v62  ;;  %3349 = vmatpush1.bf16.msra.mxu1 %v9754_v59 }
 0xc4a   :  { %3309 = vmatprep.subr.bf16.mxu0 %v9755_v55  ;;  %3350 = vmatprep.subr.bf16.mxu1 %v9756_v57 }
 0xc4d   :  { %3310 = vmatpush1.bf16.msra.mxu0 %v9757_v1  ;;  %3351 = vmatpush1.bf16.msra.mxu1 %v9758_v38 }
 0xc4e   :  { %3311 = vmatprep.subr.bf16.mxu0 %v9759_v15  ;;  %3352 = vmatprep.subr.bf16.mxu1 %v9760_v2  ;;  %v9778_v15 = vld [vmem:[#allocation143_spill] sm:$0xff]  ;;  %v8045_v2 = vld [vmem:[#allocation9 + $0x4] ss:$16 sps:$4 sm:$0xff]  }
 0xc51   :  { %3312 = vmatpush1.bf16.msra.mxu0 %v9761_v16  ;;  %3353 = vmatpush1.bf16.msra.mxu1 %v9762_v18  ;;  %v8048_v16 = vld [vmem:[#allocation9 + $0xc] ss:$16 sps:$4 sm:$0xff]  }
 0xc52   :  { %3386 = vmatprep.subr.bf16.mxu0 %v9763_v21  ;;  %3427 = vmatprep.subr.bf16.mxu1 %v9764_v51  ;;  %v8074_v18 = vld [vmem:[#allocation9 + $0x4c] ss:$16 sps:$4 sm:$0xff]   ;;  %v8077_v21 = vld [vmem:[#allocation9 + $0x40] ss:$16 sps:$4 sm:$0xff]   ;;  %v8080_v51 = vld [vmem:[#allocation9 + $0x48] ss:$16 sps:$4 sm:$0xff]  }
 0xce6   :  { %v3217_v33 = vpop.f32.mrb[80].mxu0  ;;  %v3258_v25 = vpop.f32.mrb[80].mxu1 }
 0xce7   :  { %v3218_v28 = vadd.f32 %v3217_v33, %v9765_v26  ;;  %v3219_v29 = vpop.f32.mrb[81].mxu0  ;;  %v3260_v30 = vpop.f32.mrb[81].mxu1  ;;  %v3259_v32 = vadd.f32 %v3258_v25, %v9315_v19  ;;  %v8083_v33 = vld [vmem:[#allocation9 + $0x64] ss:$16 sps:$4 sm:$0xff]   ;;  %v8086_v25 = vld [vmem:[#allocation9 + $0x6c] ss:$16 sps:$4 sm:$0xff]  }
 0xce8   :  { %v3220_v53 = vadd.f32 %v3219_v29, %v9314_v4  ;;  %v3221_v54 = vpop.f32.mrb[82].mxu0  ;;  %v3262_v34 = vpop.f32.mrb[82].mxu1  ;;  %v3261_v14 = vadd.f32 %v3260_v30, %v6309_v52  ;;  %v8092_v29 = vld [vmem:[#allocation9 + $0x68] ss:$16 sps:$4 sm:$0xff]   ;;  %v8095_v30 = vld [vmem:[#allocation9 + $0x84] ss:$16 sps:$4 sm:$0xff]  }
 0xce9   :  { %4831 = vtanh.f32 %v3218_v28  ;;  %v3222_v58 = vpop.f32.mrb[83].mxu0  ;;  %v3263_v22 = vpop.f32.mrb[83].mxu1  ;;  %v8089_v28 = vld [vmem:[#allocation9 + $0x60] ss:$16 sps:$4 sm:$0xff]   ;;  %v8104_v34 = vld [vmem:[#allocation9 + $0x88] ss:$16 sps:$4 sm:$0xff]  }
 0xcea   :  { %4833 = vtanh.f32 %v3220_v53  ;;  %v8098_v53 = vld [vmem:[#allocation9 + $0x8c] ss:$16 sps:$4 sm:$0xff]   ;;  %v8101_v54 = vld [vmem:[#allocation9 + $0x80] ss:$16 sps:$4 sm:$0xff]  }
 0xceb   :  { %4835 = vtanh.f32 %v3261_v14  ;;  %v8107_v14 = vld [vmem:[#allocation9 + $0xa4] ss:$16 sps:$4 sm:$0xff]   ;;  %v8110_v58 = vld [vmem:[#allocation9 + $0xac] ss:$16 sps:$4 sm:$0xff]   ;;  %v8113_v22 = vld [vmem:[#allocation9 + $0xa0] ss:$16 sps:$4 sm:$0xff]  }
 0xcec   :  { %4837 = vtanh.f32 %v3259_v32  ;;  %v8116_v32 = vld [vmem:[#allocation9 + $0xa8] ss:$16 sps:$4 sm:$0xff]  }
 0xcf3   :  { %v4832_v0 = vpop.eup %4831 }
 0xcf4   :  { %v3268_v3 = vmul.f32 0.5, %v4832_v0  ;;  %v4834_v48 = vpop.eup %4833  ;;  %v8119_v0 = vld [vmem:[#allocation9 + $0xc4] ss:$16 sps:$4 sm:$0xff]  }
 0xcf5   :  { %v3269_v43 = vmul.f32 0.5, %v4834_v48  ;;  %v4836_v20 = vpop.eup %4835  ;;  %v8125_v48 = vld [vmem:[#allocation9 + $0xc0] ss:$16 sps:$4 sm:$0xff]  }
 0xcf6   :  { %v3271_v63 = vadd.f32 0.5, %v3268_v3  ;;  %v4838_v62 = vpop.eup %4837  ;;  %v8122_v3 = vld [vmem:[#allocation9 + $0xcc] ss:$16 sps:$4 sm:$0xff]  }
 0xcf7   :  { %v3272_v6 = vadd.f32 0.5, %v3269_v43  ;;  %v3270_v59 = vmul.f32 0.5, %v4838_v62  ;;  %v8131_v43 = vld [vmem:[#allocation9 + $0xe4] ss:$16 sps:$4 sm:$0xff]   ;;  %v8146_v62 = vld [vmem:[#allocation9 + $0x10c] ss:$16 sps:$4 sm:$0xff]  }
 0xcf8   :  { %v3276_v10 = vmul.f32 %v4836_v20, %v3271_v63  ;;  %v8128_v63 = vld [vmem:[#allocation9 + $0xc8] ss:$16 sps:$4 sm:$0xff]   ;;  %v8134_v20 = vld [vmem:[#allocation9 + $0xec] ss:$16 sps:$4 sm:$0xff]   ;;  %9779 = vst [vmem:[#allocation144_spill] sm:$0xff] %v8146_v62 }
 0xcf9   :  { %v3275_v37 = vmul.f32 %v3272_v6, %v7752_v41  ;;  %v3273_v55 = vadd.f32 0.5, %v3270_v59  ;;  %v9766_v41 = vld [vmem:[#allocation130_spill] sm:$0xff] }
 0xcfa   :  { %v8137_v6 = vld [vmem:[#allocation9 + $0xe0] ss:$16 sps:$4 sm:$0xff]  }
 0xcfb   :  { %v8010_v40 = vadd.f32 %v3276_v10, %v3275_v37  ;;  %v8140_v10 = vld [vmem:[#allocation9 + $0xe8] ss:$16 sps:$4 sm:$0xff]   ;;  %v8143_v37 = vld [vmem:[#allocation9 + $0x104] ss:$16 sps:$4 sm:$0xff]   ;;  %v8149_v59 = vld [vmem:[#allocation9 + $0x100] ss:$16 sps:$4 sm:$0xff]  }
 0xcfc   :  { %9780 = vst [vmem:[#allocation145_spill] sm:$0xff] %v8149_v59 }
 0xcfd   :  { %4839 = vtanh.f32 %v8010_v40 }
 0xd07   :  { %v4840_v57 = vpop.eup %4839 }
 0xd08   :  { %v3279_v1 = vmul.f32 %v4840_v57, %v3273_v55  ;;  %v8152_v55 = vld [vmem:[#allocation9 + $0x108] ss:$16 sps:$4 sm:$0xff]   ;;  %v8155_v57 = vld [vmem:[#allocation9 + $0x124] ss:$16 sps:$4 sm:$0xff]  }
 0xd09   :  { %9781 = vst [vmem:[#allocation146_spill] sm:$0xff] %v8152_v55  ;;  %9782 = vst [vmem:[#allocation147_spill] sm:$0xff] %v8155_v57 }
 0xd0a   :  { %v3280_v38 = vpack.c.bf16 %v3279_v1, %v3279_v1  ;;  %v8158_v1 = vld [vmem:[#allocation9 + $0x12c] ss:$16 sps:$4 sm:$0xff]  }
 0xd0b   :  { %9783 = vst [vmem:[#allocation148_spill] sm:$0xff] %v8158_v1 }
 0xd0c   :  { %3314 = vmatmul.mubr.bf16.vlgmr.msra.gmra.mrb[84].mxu0 %v3280_v38  ;;  %3355 = vmatmul.mubr.bf16.vlgmr.msra.gmra.mrb[84].mxu1 %v3280_v38 }
 0xd0d   :  { %3387 = vmatpush1.bf16.msra.mxu0 %v7759_v31  ;;  %3428 = vmatpush1.bf16.msra.mxu1 %v7762_v17  ;;  %v9767_v31 = vld [vmem:[#allocation131_spill] sm:$0xff]  ;;  %v9768_v17 = vld [vmem:[#allocation132_spill] sm:$0xff] }
 0xd0e   :  { %3388 = vmatprep.subr.bf16.mxu0 %v7765_v46  ;;  %3429 = vmatprep.subr.bf16.mxu1 %v7768_v39  ;;  %v9769_v46 = vld [vmem:[#allocation133_spill] sm:$0xff]  ;;  %v9770_v39 = vld [vmem:[#allocation134_spill] sm:$0xff] }
 0xd0f   :  { %3418 = vmatprep.mubr.bf16.mxu0 %v9199_v5  ;;  %3459 = vmatprep.mubr.bf16.mxu1 %v9199_v5 }
 0xd11   :  { %3389 = vmatpush1.bf16.msra.mxu0 %v7773_v12  ;;  %3430 = vmatpush1.bf16.msra.mxu1 %v7776_v23  ;;  %v9771_v12 = vld [vmem:[#allocation135_spill] sm:$0xff]  ;;  %v9772_v23 = vld [vmem:[#allocation136_spill] sm:$0xff] }
 0xd12   :  { %3390 = vmatprep.subr.bf16.mxu0 %v7779_v60  ;;  %3431 = vmatprep.subr.bf16.mxu1 %v7782_v45  ;;  %v9773_v60 = vld [vmem:[#allocation137_spill] sm:$0xff]  ;;  %v9774_v45 = vld [vmem:[#allocation138_spill] sm:$0xff] }
 0xd15   :  { %3391 = vmatpush1.bf16.msra.mxu0 %v7785_v8  ;;  %3432 = vmatpush1.bf16.msra.mxu1 %v7788_v11  ;;  %v9775_v8 = vld [vmem:[#allocation139_spill] sm:$0xff]  ;;  %v9776_v11 = vld [vmem:[#allocation141_spill] sm:$0xff] }
 0xd16   :  { %3392 = vmatprep.subr.bf16.mxu0 %v7791_v42  ;;  %3433 = vmatprep.subr.bf16.mxu1 %v9766_v41  ;;  %v9777_v42 = vld [vmem:[#allocation142_spill] sm:$0xff]  ;;  %v8164_v41 = vld [vmem:[#allocation9 + $0x128] ss:$16 sps:$4 sm:$0xff]  }
 0xd17   :  { %9785 = vst [vmem:[#allocation150_spill] sm:$0xff] %v8164_v41 }
 0xd19   :  { %3393 = vmatpush1.bf16.msra.mxu0 %v9767_v31  ;;  %3434 = vmatpush1.bf16.msra.mxu1 %v9768_v17  ;;  %v8167_v31 = vld [vmem:[#allocation9 + $0x144] ss:$16 sps:$4 sm:$0xff]   ;;  %v8170_v17 = vld [vmem:[#allocation9 + $0x14c] ss:$16 sps:$4 sm:$0xff]  }
 0xd1a   :  { %3394 = vmatprep.subr.bf16.mxu0 %v9769_v46  ;;  %3435 = vmatprep.subr.bf16.mxu1 %v9770_v39  ;;  %9786 = vst [vmem:[#allocation151_spill] sm:$0xff] %v8167_v31  ;;  %9787 = vst [vmem:[#allocation152_spill] sm:$0xff] %v8170_v17  ;;  %v8173_v46 = vld [vmem:[#allocation9 + $0x140] ss:$16 sps:$4 sm:$0xff]   ;;  %v8176_v39 = vld [vmem:[#allocation9 + $0x148] ss:$16 sps:$4 sm:$0xff]  }
 0xd1b   :  { %9788 = vst [vmem:[#allocation153_spill] sm:$0xff] %v8173_v46  ;;  %9789 = vst [vmem:[#allocation154_spill] sm:$0xff] %v8176_v39 }
 0xd1d   :  { %3395 = vmatpush1.bf16.msra.mxu0 %v9771_v12  ;;  %3436 = vmatpush1.bf16.msra.mxu1 %v9772_v23  ;;  %v8179_v12 = vld [vmem:[#allocation9 + $0x164] ss:$16 sps:$4 sm:$0xff]   ;;  %v8182_v23 = vld [vmem:[#allocation9 + $0x16c] ss:$16 sps:$4 sm:$0xff]  }
 0xd1e   :  { %3396 = vmatprep.subr.bf16.mxu0 %v9773_v60  ;;  %3437 = vmatprep.subr.bf16.mxu1 %v9774_v45  ;;  %9790 = vst [vmem:[#allocation63_spill] sm:$0xff] %v8179_v12  ;;  %9791 = vst [vmem:[#allocation64_spill] sm:$0xff] %v8182_v23  ;;  %v8185_v60 = vld [vmem:[#allocation9 + $0x160] ss:$16 sps:$4 sm:$0xff]   ;;  %v8188_v45 = vld [vmem:[#allocation9 + $0x168] ss:$16 sps:$4 sm:$0xff]  }
 0xd1f   :  { %9792 = vst [vmem:[#allocation65_spill] sm:$0xff] %v8185_v60  ;;  %9793 = vst [vmem:[#allocation66_spill] sm:$0xff] %v8188_v45 }
 0xd21   :  { %3397 = vmatpush1.bf16.msra.mxu0 %v9775_v8  ;;  %3438 = vmatpush1.bf16.msra.mxu1 %v9776_v11  ;;  %v8191_v8 = vld [vmem:[#allocation9 + $0x184] ss:$16 sps:$4 sm:$0xff]   ;;  %v8194_v11 = vld [vmem:[#allocation9 + $0x18c] ss:$16 sps:$4 sm:$0xff]  }
 0xd22   :  { %3398 = vmatprep.subr.bf16.mxu0 %v9777_v42  ;;  %3439 = vmatprep.subr.bf16.mxu1 %v9778_v15  ;;  %9794 = vst [vmem:[#allocation155_spill] sm:$0xff] %v8191_v8  ;;  %9795 = vst [vmem:[#allocation156_spill] sm:$0xff] %v8194_v11  ;;  %v8197_v42 = vld [vmem:[#allocation9 + $0x180] ss:$16 sps:$4 sm:$0xff]   ;;  %v8200_v15 = vld [vmem:[#allocation9 + $0x188] ss:$16 sps:$4 sm:$0xff]  }
 0xd23   :  { %9796 = vst [vmem:[#allocation157_spill] sm:$0xff] %v8197_v42  ;;  %9797 = vst [vmem:[#allocation55_spill] sm:$0xff] %v8200_v15 }
 0xd25   :  { %3399 = vmatpush1.bf16.msra.mxu0 %v7833_v50  ;;  %3440 = vmatpush1.bf16.msra.mxu1 %v7836_v61  ;;  %v8053_v50 = vld [vmem:[#allocation9] ss:$16 sps:$4 sm:$0xff]   ;;  %v8056_v61 = vld [vmem:[#allocation9 + $0x8] ss:$16 sps:$4 sm:$0xff]  }
 0xd26   :  { %3400 = vmatprep.subr.bf16.mxu0 %v7839_v35  ;;  %3441 = vmatprep.subr.bf16.mxu1 %v7842_v47  ;;  %v8062_v35 = vld [vmem:[#allocation9 + $0x2c] ss:$16 sps:$4 sm:$0xff]   ;;  %v8065_v47 = vld [vmem:[#allocation9 + $0x20] ss:$16 sps:$4 sm:$0xff]  }
 0xd29   :  { %3401 = vmatpush1.bf16.msra.mxu0 %v7845_v7  ;;  %3442 = vmatpush1.bf16.msra.mxu1 %v7848_v36  ;;  %v8059_v36 = vld [vmem:[#allocation9 + $0x24] ss:$16 sps:$4 sm:$0xff]   ;;  %v8068_v7 = vld [vmem:[#allocation9 + $0x28] ss:$16 sps:$4 sm:$0xff]  }
 0xd2a   :  { %3484 = vmatprep.subr.bf16.mxu0 %v8045_v2  ;;  %3525 = vmatprep.subr.bf16.mxu1 %v8048_v16 }
 0xd2c   :  { %3419 = vmatmul.mubr.bf16.vlgmr.msra.gmra.mrb[88].mxu0 %v7937_v9  ;;  %3460 = vmatmul.mubr.bf16.vlgmr.msra.gmra.mrb[88].mxu1 %v7937_v9  ;;  %v8071_v9 = vld [vmem:[#allocation9 + $0x44] ss:$16 sps:$4 sm:$0xff]  }
 0xd2d   :  { %3516 = vmatprep.mubr.bf16.mxu0 %v3280_v38  ;;  %3557 = vmatprep.mubr.bf16.mxu1 %v3280_v38  ;;  %v8161_v38 = vld [vmem:[#allocation9 + $0x120] ss:$16 sps:$4 sm:$0xff]  }
 0xd2e   :  { %3485 = vmatpush1.bf16.msra.mxu0 %v8053_v50  ;;  %3526 = vmatpush1.bf16.msra.mxu1 %v8056_v61  ;;  %9784 = vst [vmem:[#allocation149_spill] sm:$0xff] %v8161_v38 }
 0xd2f   :  { %3486 = vmatprep.subr.bf16.mxu0 %v8059_v36  ;;  %3527 = vmatprep.subr.bf16.mxu1 %v8062_v35 }
 0xd32   :  { %3487 = vmatpush1.bf16.msra.mxu0 %v8065_v47  ;;  %3528 = vmatpush1.bf16.msra.mxu1 %v8068_v7 }
 0xd33   :  { %3488 = vmatprep.subr.bf16.mxu0 %v8071_v9  ;;  %3529 = vmatprep.subr.bf16.mxu1 %v8074_v18 }
 0xd36   :  { %3489 = vmatpush1.bf16.msra.mxu0 %v8077_v21  ;;  %3530 = vmatpush1.bf16.msra.mxu1 %v8080_v51 }
 0xd37   :  { %3490 = vmatprep.subr.bf16.mxu0 %v8083_v33  ;;  %3531 = vmatprep.subr.bf16.mxu1 %v8086_v25 }
 0xd3a   :  { %3491 = vmatpush1.bf16.msra.mxu0 %v8089_v28  ;;  %3532 = vmatpush1.bf16.msra.mxu1 %v8092_v29 }
 0xd3b   :  { %3492 = vmatprep.subr.bf16.mxu0 %v8095_v30  ;;  %3533 = vmatprep.subr.bf16.mxu1 %v8098_v53 }
 0xd3e   :  { %3493 = vmatpush1.bf16.msra.mxu0 %v8101_v54  ;;  %3534 = vmatpush1.bf16.msra.mxu1 %v8104_v34 }
 0xd3f   :  { %3494 = vmatprep.subr.bf16.mxu0 %v8107_v14  ;;  %3535 = vmatprep.subr.bf16.mxu1 %v8110_v58 }
 0xd42   :  { %3495 = vmatpush1.bf16.msra.mxu0 %v8113_v22  ;;  %3536 = vmatpush1.bf16.msra.mxu1 %v8116_v32 }
 0xd43   :  { %3496 = vmatprep.subr.bf16.mxu0 %v8119_v0  ;;  %3537 = vmatprep.subr.bf16.mxu1 %v8122_v3 }
 0xd46   :  { %3497 = vmatpush1.bf16.msra.mxu0 %v8125_v48  ;;  %3538 = vmatpush1.bf16.msra.mxu1 %v8128_v63 }
 0xd47   :  { %3498 = vmatprep.subr.bf16.mxu0 %v8131_v43  ;;  %3539 = vmatprep.subr.bf16.mxu1 %v8134_v20 }
 0xd4a   :  { %3499 = vmatpush1.bf16.msra.mxu0 %v8137_v6  ;;  %3540 = vmatpush1.bf16.msra.mxu1 %v8140_v10 }
 0xd4b   :  { %3500 = vmatprep.subr.bf16.mxu0 %v8143_v37  ;;  %3541 = vmatprep.subr.bf16.mxu1 %v8146_v62 }
 0xd4e   :  { %3501 = vmatpush1.bf16.msra.mxu0 %v8149_v59  ;;  %3542 = vmatpush1.bf16.msra.mxu1 %v8152_v55 }
 0xd4f   :  { %3502 = vmatprep.subr.bf16.mxu0 %v8155_v57  ;;  %3543 = vmatprep.subr.bf16.mxu1 %v8158_v1 }
 0xd52   :  { %3503 = vmatpush1.bf16.msra.mxu0 %v8161_v38  ;;  %3544 = vmatpush1.bf16.msra.mxu1 %v8164_v41 }
 0xd53   :  { %3504 = vmatprep.subr.bf16.mxu0 %v8167_v31  ;;  %3545 = vmatprep.subr.bf16.mxu1 %v8170_v17 }
 0xd56   :  { %3505 = vmatpush1.bf16.msra.mxu0 %v8173_v46  ;;  %3546 = vmatpush1.bf16.msra.mxu1 %v8176_v39 }
 0xd57   :  { %3506 = vmatprep.subr.bf16.mxu0 %v8179_v12  ;;  %3547 = vmatprep.subr.bf16.mxu1 %v8182_v23 }
 0xd5a   :  { %3507 = vmatpush1.bf16.msra.mxu0 %v8185_v60  ;;  %3548 = vmatpush1.bf16.msra.mxu1 %v8188_v45  ;;  %v8203_v60 = vld [vmem:[#allocation9 + $0x1a4] ss:$16 sps:$4 sm:$0xff]   ;;  %v8206_v45 = vld [vmem:[#allocation9 + $0x1ac] ss:$16 sps:$4 sm:$0xff]  }
 0xd5b   :  { %3508 = vmatprep.subr.bf16.mxu0 %v8191_v8  ;;  %3549 = vmatprep.subr.bf16.mxu1 %v8194_v11  ;;  %9798 = vst [vmem:[#allocation56_spill] sm:$0xff] %v8203_v60  ;;  %9799 = vst [vmem:[#allocation57_spill] sm:$0xff] %v8206_v45  ;;  %v8209_v8 = vld [vmem:[#allocation9 + $0x1a0] ss:$16 sps:$4 sm:$0xff]   ;;  %v8212_v11 = vld [vmem:[#allocation9 + $0x1a8] ss:$16 sps:$4 sm:$0xff]  }
 0xd5c   :  { %9800 = vst [vmem:[#allocation58_spill] sm:$0xff] %v8209_v8  ;;  %9801 = vst [vmem:[#allocation24_spill] sm:$0xff] %v8212_v11 }
 0xd5e   :  { %3509 = vmatpush1.bf16.msra.mxu0 %v8197_v42  ;;  %3550 = vmatpush1.bf16.msra.mxu1 %v8200_v15  ;;  %v8215_v42 = vld [vmem:[#allocation9 + $0x1c4] ss:$16 sps:$4 sm:$0xff]   ;;  %v8218_v15 = vld [vmem:[#allocation9 + $0x1cc] ss:$16 sps:$4 sm:$0xff]  }
 0xd5f   :  { %3510 = vmatprep.subr.bf16.mxu0 %v8203_v60  ;;  %3551 = vmatprep.subr.bf16.mxu1 %v8206_v45  ;;  %9802 = vst [vmem:[#allocation25_spill] sm:$0xff] %v8215_v42  ;;  %9803 = vst [vmem:[#allocation26_spill] sm:$0xff] %v8218_v15  ;;  %v8221_v60 = vld [vmem:[#allocation9 + $0x1c0] ss:$16 sps:$4 sm:$0xff]   ;;  %v8224_v45 = vld [vmem:[#allocation9 + $0x1c8] ss:$16 sps:$4 sm:$0xff]  }
 0xd60   :  { %9804 = vst [vmem:[#allocation27_spill] sm:$0xff] %v8221_v60  ;;  %9805 = vst [vmem:[#allocation28_spill] sm:$0xff] %v8224_v45 }
 0xd62   :  { %3511 = vmatpush1.bf16.msra.mxu0 %v8209_v8  ;;  %3552 = vmatpush1.bf16.msra.mxu1 %v8212_v11  ;;  %v8227_v8 = vld [vmem:[#allocation9 + $0x1e4] ss:$16 sps:$4 sm:$0xff]   ;;  %v8230_v11 = vld [vmem:[#allocation9 + $0x1ec] ss:$16 sps:$4 sm:$0xff]  }
 0xd63   :  { %3512 = vmatprep.subr.bf16.mxu0 %v8215_v42  ;;  %3553 = vmatprep.subr.bf16.mxu1 %v8218_v15  ;;  %9806 = vst [vmem:[#allocation29_spill] sm:$0xff] %v8227_v8  ;;  %9807 = vst [vmem:[#allocation30_spill] sm:$0xff] %v8230_v11  ;;  %v8233_v42 = vld [vmem:[#allocation9 + $0x1e0] ss:$16 sps:$4 sm:$0xff]   ;;  %v8236_v15 = vld [vmem:[#allocation9 + $0x1e8] ss:$16 sps:$4 sm:$0xff]  }
 0xd64   :  { %9808 = vst [vmem:[#allocation31_spill] sm:$0xff] %v8233_v42  ;;  %9809 = vst [vmem:[#allocation32_spill] sm:$0xff] %v8236_v15 }
 0xd66   :  { %3513 = vmatpush1.bf16.msra.mxu0 %v8221_v60  ;;  %3554 = vmatpush1.bf16.msra.mxu1 %v8224_v45  ;;  %v8239_v60 = vld [vmem:[#allocation9 + $0x204] ss:$16 sps:$4 sm:$0xff]   ;;  %v8242_v45 = vld [vmem:[#allocation9 + $0x20c] ss:$16 sps:$4 sm:$0xff]  }
 0xd67   :  { %3514 = vmatprep.subr.bf16.mxu0 %v8227_v8  ;;  %3555 = vmatprep.subr.bf16.mxu1 %v8230_v11  ;;  %9810 = vst [vmem:[#allocation33_spill] sm:$0xff] %v8239_v60  ;;  %9811 = vst [vmem:[#allocation34_spill] sm:$0xff] %v8242_v45 }
 0xd6a   :  { %3515 = vmatpush1.bf16.msra.mxu0 %v8233_v42  ;;  %3556 = vmatpush1.bf16.msra.mxu1 %v8236_v15 }
 0xd6b   :  { %3582 = vmatprep.subr.bf16.mxu0 %v8239_v60  ;;  %3623 = vmatprep.subr.bf16.mxu1 %v8242_v45 }
 0xddf   :  { %v3315_v8 = vpop.f32.mrb[84].mxu0  ;;  %v3356_v23 = vpop.f32.mrb[84].mxu1 }
 0xde0   :  { %v3316_v11 = vadd.f32 %v3315_v8, %v9698_v13  ;;  %v3317_v12 = vpop.f32.mrb[85].mxu0  ;;  %v3358_v39 = vpop.f32.mrb[85].mxu1 }
 0xde1   :  { %v3318_v42 = vadd.f32 %v3317_v12, %v9699_v44  ;;  %v3319_v46 = vpop.f32.mrb[86].mxu0  ;;  %v3360_v17 = vpop.f32.mrb[86].mxu1  ;;  %v3359_v15 = vadd.f32 %v3358_v39, %v9700_v27  ;;  %v9814_v27 = vld [vmem:[#allocation73_spill] sm:$0xff]  ;;  %v9815_v44 = vld [vmem:[#allocation74_spill] sm:$0xff] }
 0xde2   :  { %4841 = vtanh.f32 %v3316_v11  ;;  %v3320_v31 = vpop.f32.mrb[87].mxu0  ;;  %v3361_v41 = vpop.f32.mrb[87].mxu1  ;;  %v9812_v11 = vld [vmem:[#allocation71_spill] sm:$0xff] }
 0xde3   :  { %4843 = vtanh.f32 %v3318_v42  ;;  %v9813_v31 = vld [vmem:[#allocation72_spill] sm:$0xff] }
 0xde4   :  { %4845 = vtanh.f32 %v3359_v15 }
 0xdec   :  { %v4842_v60 = vpop.eup %4841 }
 0xded   :  { %v3366_v38 = vmul.f32 0.5, %v4842_v60  ;;  %v4844_v45 = vpop.eup %4843 }
 0xdee   :  { %v3367_v57 = vmul.f32 0.5, %v4844_v45  ;;  %v4846_v55 = vpop.eup %4845 }
 0xdef   :  { %v3369_v1 = vadd.f32 0.5, %v3366_v38 }
 0xdf0   :  { %v3370_v8 = vadd.f32 0.5, %v3367_v57 }
 0xdf1   :  { %v3374_v13 = vmul.f32 %v4846_v55, %v3369_v1 }
 0xdf2   :  { %v3373_v59 = vmul.f32 %v3370_v8, %v7925_v56 }
 0xdf4   :  { %v8249_v12 = vadd.f32 %v3374_v13, %v3373_v59  ;;  %v3357_v13 = vadd.f32 %v3356_v23, %v6509_v49 }
 0xdff   :  { %v3420_v17 = vpop.f32.mrb[88].mxu0  ;;  %v3461_v46 = vpop.f32.mrb[88].mxu1 }
 0xe00   :  { %v3421_v39 = vadd.f32 %v3420_v17, %v9812_v11  ;;  %v3462_v41 = vadd.f32 %v3461_v46, %v9813_v31  ;;  %v3422_v42 = vpop.f32.mrb[89].mxu0  ;;  %v3463_v15 = vpop.f32.mrb[89].mxu1 }
 0xe01   :  { %v3423_v60 = vadd.f32 %v3422_v42, %v9814_v27  ;;  %v3464_v38 = vadd.f32 %v3463_v15, %v9815_v44  ;;  %v3424_v45 = vpop.f32.mrb[90].mxu0  ;;  %v3465_v62 = vpop.f32.mrb[90].mxu1 }
 0xe02   :  { %4847 = vtanh.f32 %v3421_v39  ;;  %v3425_v55 = vpop.f32.mrb[91].mxu0  ;;  %v3466_v57 = vpop.f32.mrb[91].mxu1 }
 0xe03   :  { %4849 = vtanh.f32 %v3423_v60 }
 0xe04   :  { %4851 = vtanh.f32 %v3464_v38 }
 0xe05   :  { %4853 = vtanh.f32 %v3357_v13 }
 0xe06   :  { %4855 = vtanh.f32 %v3462_v41 }
 0xe07   :  { %4857 = vtanh.f32 %v8249_v12 }
 0xe0c   :  { %v4848_v56 = vpop.eup %4847 }
 0xe0d   :  { %v3471_v59 = vmul.f32 0.5, %v4848_v56  ;;  %v4850_v1 = vpop.eup %4849  ;;  %v8268_v56 = vld [vmem:[#allocation9 + $0x208] ss:$16 sps:$4 sm:$0xff]  }
 0xe0e   :  { %v3472_v17 = vmul.f32 0.5, %v4850_v1  ;;  %v4852_v46 = vpop.eup %4851  ;;  %v8274_v1 = vld [vmem:[#allocation9 + $0x22c] ss:$16 sps:$4 sm:$0xff]  }
 0xe0f   :  { %v3474_v8 = vadd.f32 0.5, %v3471_v59  ;;  %v4854_v39 = vpop.eup %4853  ;;  %v8271_v59 = vld [vmem:[#allocation9 + $0x224] ss:$16 sps:$4 sm:$0xff]  }
 0xe10   :  { %v3475_v27 = vadd.f32 0.5, %v3472_v17  ;;  %v4856_v23 = vpop.eup %4855  ;;  %v3368_v31 = vmul.f32 0.5, %v4854_v39  ;;  %v8280_v17 = vld [vmem:[#allocation9 + $0x228] ss:$16 sps:$4 sm:$0xff]   ;;  %v8295_v39 = vld [vmem:[#allocation9 + $0x264] ss:$16 sps:$4 sm:$0xff]  }
 0xe11   :  { %v3479_v11 = vmul.f32 %v4852_v46, %v3474_v8  ;;  %v3473_v42 = vmul.f32 0.5, %v4856_v23  ;;  %v4858_v15 = vpop.eup %4857  ;;  %v8277_v8 = vld [vmem:[#allocation9 + $0x220] ss:$16 sps:$4 sm:$0xff]   ;;  %9817 = vst [vmem:[#allocation36_spill] sm:$0xff] %v8280_v17  ;;  %v8283_v46 = vld [vmem:[#allocation9 + $0x244] ss:$16 sps:$4 sm:$0xff]  }
 0xe12   :  { %v3478_v44 = vmul.f32 %v3475_v27, %v7934_v24  ;;  %v3371_v60 = vadd.f32 0.5, %v3368_v31  ;;  %v8265_v24 = vld [vmem:[#allocation9 + $0x200] ss:$16 sps:$4 sm:$0xff]   ;;  %9816 = vst [vmem:[#allocation35_spill] sm:$0xff] %v8277_v8  ;;  %9818 = vst [vmem:[#allocation37_spill] sm:$0xff] %v8283_v46 }
 0xe13   :  { %v3476_v38 = vadd.f32 0.5, %v3473_v42  ;;  %v8286_v27 = vld [vmem:[#allocation9 + $0x24c] ss:$16 sps:$4 sm:$0xff]   ;;  %9822 = vst [vmem:[#allocation41_spill] sm:$0xff] %v8295_v39  ;;  %v8301_v31 = vld [vmem:[#allocation9 + $0x260] ss:$16 sps:$4 sm:$0xff]  }
 0xe14   :  { %v8258_v62 = vadd.f32 %v3479_v11, %v3478_v44  ;;  %v3377_v45 = vmul.f32 %v4858_v15, %v3371_v60  ;;  %9819 = vst [vmem:[#allocation38_spill] sm:$0xff] %v8286_v27  ;;  %v8289_v11 = vld [vmem:[#allocation9 + $0x240] ss:$16 sps:$4 sm:$0xff]   ;;  %v8292_v44 = vld [vmem:[#allocation9 + $0x248] ss:$16 sps:$4 sm:$0xff]   ;;  %9824 = vst [vmem:[#allocation43_spill] sm:$0xff] %v8301_v31 }
 0xe15   :  { %9820 = vst [vmem:[#allocation39_spill] sm:$0xff] %v8289_v11  ;;  %9821 = vst [vmem:[#allocation40_spill] sm:$0xff] %v8292_v44  ;;  %v8298_v23 = vld [vmem:[#allocation9 + $0x26c] ss:$16 sps:$4 sm:$0xff]   ;;  %v8304_v42 = vld [vmem:[#allocation9 + $0x268] ss:$16 sps:$4 sm:$0xff]  }
 0xe16   :  { %4859 = vtanh.f32 %v8258_v62  ;;  %v3378_v13 = vpack.c.bf16 %v3377_v45, %v3377_v45  ;;  %9823 = vst [vmem:[#allocation42_spill] sm:$0xff] %v8298_v23  ;;  %9825 = vst [vmem:[#allocation44_spill] sm:$0xff] %v8304_v42  ;;  %v8307_v15 = vld [vmem:[#allocation9 + $0x284] ss:$16 sps:$4 sm:$0xff]   ;;  %v8310_v60 = vld [vmem:[#allocation9 + $0x28c] ss:$16 sps:$4 sm:$0xff]  }
 0xe17   :  { %9826 = vst [vmem:[#allocation45_spill] sm:$0xff] %v8307_v15  ;;  %9827 = vst [vmem:[#allocation46_spill] sm:$0xff] %v8310_v60  ;;  %v8319_v45 = vld [vmem:[#allocation9 + $0x2a4] ss:$16 sps:$4 sm:$0xff]  }
 0xe18   :  { %9830 = vst [vmem:[#allocation49_spill] sm:$0xff] %v8319_v45 }
 0xe20   :  { %v4860_v41 = vpop.eup %4859 }
 0xe21   :  { %v3482_v55 = vmul.f32 %v4860_v41, %v3476_v38  ;;  %v8313_v38 = vld [vmem:[#allocation9 + $0x280] ss:$16 sps:$4 sm:$0xff]   ;;  %v8316_v41 = vld [vmem:[#allocation9 + $0x288] ss:$16 sps:$4 sm:$0xff]  }
 0xe22   :  { %9828 = vst [vmem:[#allocation47_spill] sm:$0xff] %v8313_v38  ;;  %9829 = vst [vmem:[#allocation48_spill] sm:$0xff] %v8316_v41 }
 0xe23   :  { %v8261_v57 = vpack.c.bf16 %v3482_v55, %v3482_v55  ;;  %v8322_v55 = vld [vmem:[#allocation9 + $0x2ac] ss:$16 sps:$4 sm:$0xff]  }
 0xe24   :  { %9831 = vst [vmem:[#allocation67_spill] sm:$0xff] %v8322_v55 }
 0xe25   :  { %3517 = vmatmul.mubr.bf16.vlgmr.msra.gmra.mrb[92].mxu0 %v8261_v57  ;;  %3558 = vmatmul.mubr.bf16.vlgmr.msra.gmra.mrb[92].mxu1 %v8261_v57 }
 0xe26   :  { %3614 = vmatprep.mubr.bf16.mxu0 %v3378_v13  ;;  %3655 = vmatprep.mubr.bf16.mxu1 %v3378_v13  ;;  %v8325_v13 = vld [vmem:[#allocation9 + $0x2a0] ss:$16 sps:$4 sm:$0xff]  }
 0xe27   :  { %3583 = vmatpush1.bf16.msra.mxu0 %v8265_v24  ;;  %3624 = vmatpush1.bf16.msra.mxu1 %v8268_v56  ;;  %9832 = vst [vmem:[#allocation68_spill] sm:$0xff] %v8325_v13 }
 0xe28   :  { %3584 = vmatprep.subr.bf16.mxu0 %v8271_v59  ;;  %3625 = vmatprep.subr.bf16.mxu1 %v8274_v1 }
 0xe2b   :  { %3585 = vmatpush1.bf16.msra.mxu0 %v8277_v8  ;;  %3626 = vmatpush1.bf16.msra.mxu1 %v8280_v17 }
 0xe2c   :  { %3586 = vmatprep.subr.bf16.mxu0 %v8283_v46  ;;  %3627 = vmatprep.subr.bf16.mxu1 %v8286_v27 }
 0xe2f   :  { %3587 = vmatpush1.bf16.msra.mxu0 %v8289_v11  ;;  %3628 = vmatpush1.bf16.msra.mxu1 %v8292_v44 }
 0xe30   :  { %3588 = vmatprep.subr.bf16.mxu0 %v8295_v39  ;;  %3629 = vmatprep.subr.bf16.mxu1 %v8298_v23 }
 0xe33   :  { %3589 = vmatpush1.bf16.msra.mxu0 %v8301_v31  ;;  %3630 = vmatpush1.bf16.msra.mxu1 %v8304_v42 }
 0xe34   :  { %3590 = vmatprep.subr.bf16.mxu0 %v8307_v15  ;;  %3631 = vmatprep.subr.bf16.mxu1 %v8310_v60  ;;  %v8328_v60 = vld [vmem:[#allocation9 + $0x2a8] ss:$16 sps:$4 sm:$0xff]   ;;  %v5392_v15 = vld [vmem:[#allocation8 + $0xc] ss:$16 sps:$4 sm:$0xff]  }
 0xe35   :  { %9833 = vst [vmem:[#allocation69_spill] sm:$0xff] %v8328_v60 }
 0xe37   :  { %3591 = vmatpush1.bf16.msra.mxu0 %v8313_v38  ;;  %3632 = vmatpush1.bf16.msra.mxu1 %v8316_v41  ;;  %v8331_v38 = vld [vmem:[#allocation9 + $0x2c4] ss:$16 sps:$4 sm:$0xff]   ;;  %v8334_v41 = vld [vmem:[#allocation9 + $0x2cc] ss:$16 sps:$4 sm:$0xff]  }
 0xe38   :  { %3592 = vmatprep.subr.bf16.mxu0 %v8319_v45  ;;  %3633 = vmatprep.subr.bf16.mxu1 %v8322_v55  ;;  %9834 = vst [vmem:[#allocation70_spill] sm:$0xff] %v8331_v38  ;;  %9835 = vst [vmem:[#allocation50_spill] sm:$0xff] %v8334_v41  ;;  %v8337_v45 = vld [vmem:[#allocation9 + $0x2c0] ss:$16 sps:$4 sm:$0xff]   ;;  %v8340_v55 = vld [vmem:[#allocation9 + $0x2c8] ss:$16 sps:$4 sm:$0xff]  }
 0xe39   :  { %9836 = vst [vmem:[#allocation51_spill] sm:$0xff] %v8337_v45  ;;  %9837 = vst [vmem:[#allocation52_spill] sm:$0xff] %v8340_v55 }
 0xe3b   :  { %3593 = vmatpush1.bf16.msra.mxu0 %v8325_v13  ;;  %3634 = vmatpush1.bf16.msra.mxu1 %v8328_v60  ;;  %v8343_v13 = vld [vmem:[#allocation9 + $0x2e4] ss:$16 sps:$4 sm:$0xff]   ;;  %v8346_v60 = vld [vmem:[#allocation9 + $0x2ec] ss:$16 sps:$4 sm:$0xff]  }
 0xe3c   :  { %3594 = vmatprep.subr.bf16.mxu0 %v8331_v38  ;;  %3635 = vmatprep.subr.bf16.mxu1 %v8334_v41  ;;  %9838 = vst [vmem:[#allocation53_spill] sm:$0xff] %v8343_v13  ;;  %9839 = vst [vmem:[#allocation54_spill] sm:$0xff] %v8346_v60  ;;  %v8349_v38 = vld [vmem:[#allocation9 + $0x2e0] ss:$16 sps:$4 sm:$0xff]   ;;  %v8352_v41 = vld [vmem:[#allocation9 + $0x2e8] ss:$16 sps:$4 sm:$0xff]  }
 0xe3d   :  { %9840 = vst [vmem:[#allocation79_spill] sm:$0xff] %v8349_v38  ;;  %9841 = vst [vmem:[#allocation80_spill] sm:$0xff] %v8352_v41 }
 0xe3f   :  { %3595 = vmatpush1.bf16.msra.mxu0 %v8337_v45  ;;  %3636 = vmatpush1.bf16.msra.mxu1 %v8340_v55  ;;  %v8355_v45 = vld [vmem:[#allocation9 + $0x304] ss:$16 sps:$4 sm:$0xff]   ;;  %v8358_v55 = vld [vmem:[#allocation9 + $0x30c] ss:$16 sps:$4 sm:$0xff]  }
 0xe40   :  { %3596 = vmatprep.subr.bf16.mxu0 %v8343_v13  ;;  %3637 = vmatprep.subr.bf16.mxu1 %v8346_v60  ;;  %9842 = vst [vmem:[#allocation59_spill] sm:$0xff] %v8355_v45  ;;  %9843 = vst [vmem:[#allocation60_spill] sm:$0xff] %v8358_v55  ;;  %v8361_v13 = vld [vmem:[#allocation9 + $0x300] ss:$16 sps:$4 sm:$0xff]   ;;  %v8364_v60 = vld [vmem:[#allocation9 + $0x308] ss:$16 sps:$4 sm:$0xff]  }
 0xe41   :  { %9844 = vst [vmem:[#allocation61_spill] sm:$0xff] %v8361_v13  ;;  %9845 = vst [vmem:[#allocation62_spill] sm:$0xff] %v8364_v60 }
 0xe43   :  { %3597 = vmatpush1.bf16.msra.mxu0 %v8349_v38  ;;  %3638 = vmatpush1.bf16.msra.mxu1 %v8352_v41  ;;  %v8367_v38 = vld [vmem:[#allocation9 + $0x324] ss:$16 sps:$4 sm:$0xff]   ;;  %v8370_v41 = vld [vmem:[#allocation9 + $0x32c] ss:$16 sps:$4 sm:$0xff]  }
 0xe44   :  { %3598 = vmatprep.subr.bf16.mxu0 %v8355_v45  ;;  %3639 = vmatprep.subr.bf16.mxu1 %v8358_v55  ;;  %9846 = vst [vmem:[#allocation81_spill] sm:$0xff] %v8367_v38  ;;  %9847 = vst [vmem:[#allocation82_spill] sm:$0xff] %v8370_v41  ;;  %v8373_v45 = vld [vmem:[#allocation9 + $0x320] ss:$16 sps:$4 sm:$0xff]   ;;  %v8376_v55 = vld [vmem:[#allocation9 + $0x328] ss:$16 sps:$4 sm:$0xff]  }
 0xe45   :  { %9848 = vst [vmem:[#allocation83_spill] sm:$0xff] %v8373_v45  ;;  %9849 = vst [vmem:[#allocation84_spill] sm:$0xff] %v8376_v55 }
 0xe47   :  { %3599 = vmatpush1.bf16.msra.mxu0 %v8361_v13  ;;  %3640 = vmatpush1.bf16.msra.mxu1 %v8364_v60  ;;  %v8379_v13 = vld [vmem:[#allocation9 + $0x344] ss:$16 sps:$4 sm:$0xff]   ;;  %v8382_v60 = vld [vmem:[#allocation9 + $0x34c] ss:$16 sps:$4 sm:$0xff]  }
 0xe48   :  { %3600 = vmatprep.subr.bf16.mxu0 %v8367_v38  ;;  %3641 = vmatprep.subr.bf16.mxu1 %v8370_v41  ;;  %9850 = vst [vmem:[#allocation85_spill] sm:$0xff] %v8379_v13  ;;  %9851 = vst [vmem:[#allocation86_spill] sm:$0xff] %v8382_v60  ;;  %v8385_v38 = vld [vmem:[#allocation9 + $0x340] ss:$16 sps:$4 sm:$0xff]   ;;  %v8388_v41 = vld [vmem:[#allocation9 + $0x348] ss:$16 sps:$4 sm:$0xff]  }
 0xe49   :  { %9852 = vst [vmem:[#allocation87_spill] sm:$0xff] %v8385_v38  ;;  %9853 = vst [vmem:[#allocation88_spill] sm:$0xff] %v8388_v41 }
 0xe4b   :  { %3601 = vmatpush1.bf16.msra.mxu0 %v8373_v45  ;;  %3642 = vmatpush1.bf16.msra.mxu1 %v8376_v55  ;;  %v8391_v45 = vld [vmem:[#allocation9 + $0x364] ss:$16 sps:$4 sm:$0xff]   ;;  %v8394_v55 = vld [vmem:[#allocation9 + $0x36c] ss:$16 sps:$4 sm:$0xff]  }
 0xe4c   :  { %3602 = vmatprep.subr.bf16.mxu0 %v8379_v13  ;;  %3643 = vmatprep.subr.bf16.mxu1 %v8382_v60  ;;  %9854 = vst [vmem:[#allocation89_spill] sm:$0xff] %v8391_v45  ;;  %9855 = vst [vmem:[#allocation90_spill] sm:$0xff] %v8394_v55  ;;  %v8397_v13 = vld [vmem:[#allocation9 + $0x360] ss:$16 sps:$4 sm:$0xff]   ;;  %v8400_v60 = vld [vmem:[#allocation9 + $0x368] ss:$16 sps:$4 sm:$0xff]  }
 0xe4d   :  { %9856 = vst [vmem:[#allocation91_spill] sm:$0xff] %v8397_v13  ;;  %9857 = vst [vmem:[#allocation92_spill] sm:$0xff] %v8400_v60 }
 0xe4f   :  { %3603 = vmatpush1.bf16.msra.mxu0 %v8385_v38  ;;  %3644 = vmatpush1.bf16.msra.mxu1 %v8388_v41  ;;  %v8403_v38 = vld [vmem:[#allocation9 + $0x384] ss:$16 sps:$4 sm:$0xff]   ;;  %v8406_v41 = vld [vmem:[#allocation9 + $0x38c] ss:$16 sps:$4 sm:$0xff]  }
 0xe50   :  { %3604 = vmatprep.subr.bf16.mxu0 %v8391_v45  ;;  %3645 = vmatprep.subr.bf16.mxu1 %v8394_v55  ;;  %9858 = vst [vmem:[#allocation93_spill] sm:$0xff] %v8403_v38  ;;  %9859 = vst [vmem:[#allocation94_spill] sm:$0xff] %v8406_v41  ;;  %v8409_v45 = vld [vmem:[#allocation9 + $0x380] ss:$16 sps:$4 sm:$0xff]   ;;  %v8412_v55 = vld [vmem:[#allocation9 + $0x388] ss:$16 sps:$4 sm:$0xff]  }
 0xe51   :  { %9860 = vst [vmem:[#allocation95_spill] sm:$0xff] %v8409_v45  ;;  %9861 = vst [vmem:[#allocation96_spill] sm:$0xff] %v8412_v55 }
 0xe53   :  { %3605 = vmatpush1.bf16.msra.mxu0 %v8397_v13  ;;  %3646 = vmatpush1.bf16.msra.mxu1 %v8400_v60  ;;  %v8415_v13 = vld [vmem:[#allocation9 + $0x3a4] ss:$16 sps:$4 sm:$0xff]   ;;  %v8418_v60 = vld [vmem:[#allocation9 + $0x3ac] ss:$16 sps:$4 sm:$0xff]  }
 0xe54   :  { %3606 = vmatprep.subr.bf16.mxu0 %v8403_v38  ;;  %3647 = vmatprep.subr.bf16.mxu1 %v8406_v41  ;;  %9862 = vst [vmem:[#allocation97_spill] sm:$0xff] %v8415_v13  ;;  %9863 = vst [vmem:[#allocation98_spill] sm:$0xff] %v8418_v60  ;;  %v8421_v38 = vld [vmem:[#allocation9 + $0x3a0] ss:$16 sps:$4 sm:$0xff]   ;;  %v8424_v41 = vld [vmem:[#allocation9 + $0x3a8] ss:$16 sps:$4 sm:$0xff]  }
 0xe55   :  { %9864 = vst [vmem:[#allocation99_spill] sm:$0xff] %v8421_v38  ;;  %9865 = vst [vmem:[#allocation100_spill] sm:$0xff] %v8424_v41 }
 0xe57   :  { %3607 = vmatpush1.bf16.msra.mxu0 %v8409_v45  ;;  %3648 = vmatpush1.bf16.msra.mxu1 %v8412_v55  ;;  %v8427_v45 = vld [vmem:[#allocation9 + $0x3c4] ss:$16 sps:$4 sm:$0xff]   ;;  %v8430_v55 = vld [vmem:[#allocation9 + $0x3cc] ss:$16 sps:$4 sm:$0xff]  }
 0xe58   :  { %3608 = vmatprep.subr.bf16.mxu0 %v8415_v13  ;;  %3649 = vmatprep.subr.bf16.mxu1 %v8418_v60  ;;  %9866 = vst [vmem:[#allocation101_spill] sm:$0xff] %v8427_v45  ;;  %9867 = vst [vmem:[#allocation102_spill] sm:$0xff] %v8430_v55  ;;  %v8433_v13 = vld [vmem:[#allocation9 + $0x3c0] ss:$16 sps:$4 sm:$0xff]   ;;  %v8436_v60 = vld [vmem:[#allocation9 + $0x3c8] ss:$16 sps:$4 sm:$0xff]  }
 0xe59   :  { %9868 = vst [vmem:[#allocation103_spill] sm:$0xff] %v8433_v13  ;;  %9869 = vst [vmem:[#allocation104_spill] sm:$0xff] %v8436_v60 }
 0xe5b   :  { %3609 = vmatpush1.bf16.msra.mxu0 %v8421_v38  ;;  %3650 = vmatpush1.bf16.msra.mxu1 %v8424_v41  ;;  %v8439_v38 = vld [vmem:[#allocation9 + $0x3e4] ss:$16 sps:$4 sm:$0xff]   ;;  %v8442_v41 = vld [vmem:[#allocation9 + $0x3ec] ss:$16 sps:$4 sm:$0xff]  }
 0xe5c   :  { %3610 = vmatprep.subr.bf16.mxu0 %v8427_v45  ;;  %3651 = vmatprep.subr.bf16.mxu1 %v8430_v55  ;;  %9870 = vst [vmem:[#allocation105_spill] sm:$0xff] %v8439_v38  ;;  %9871 = vst [vmem:[#allocation106_spill] sm:$0xff] %v8442_v41  ;;  %v8445_v45 = vld [vmem:[#allocation9 + $0x3e0] ss:$16 sps:$4 sm:$0xff]   ;;  %v8448_v55 = vld [vmem:[#allocation9 + $0x3e8] ss:$16 sps:$4 sm:$0xff]  }
 0xe5d   :  { %9872 = vst [vmem:[#allocation107_spill] sm:$0xff] %v8445_v45  ;;  %9873 = vst [vmem:[#allocation108_spill] sm:$0xff] %v8448_v55 }
 0xe5f   :  { %3611 = vmatpush1.bf16.msra.mxu0 %v8433_v13  ;;  %3652 = vmatpush1.bf16.msra.mxu1 %v8436_v60  ;;  %v5391_v13 = vld [vmem:[#allocation8 + $0x4] ss:$16 sps:$4 sm:$0xff]  }
 0xe60   :  { %3612 = vmatprep.subr.bf16.mxu0 %v8439_v38  ;;  %3653 = vmatprep.subr.bf16.mxu1 %v8442_v41 }
 0xe63   :  { %3613 = vmatpush1.bf16.msra.mxu0 %v8445_v45  ;;  %3654 = vmatpush1.bf16.msra.mxu1 %v8448_v55 }
 0xe64   :  { %3687 = vmatprep.subr.bf16.mxu0 %v5391_v13  ;;  %3728 = vmatprep.subr.bf16.mxu1 %v5392_v15 }
 0xef8   :  { %v3518_v60 = vpop.f32.mrb[92].mxu0  ;;  %v3559_v42 = vpop.f32.mrb[92].mxu1 }
 0xef9   :  { %v3519_v38 = vadd.f32 %v3518_v60, %v9765_v26  ;;  %v3520_v31 = vpop.f32.mrb[93].mxu0  ;;  %v3561_v23 = vpop.f32.mrb[93].mxu1  ;;  %v3560_v13 = vadd.f32 %v3559_v42, %v9315_v19 }
 0xefa   :  { %v3521_v41 = vadd.f32 %v3520_v31, %v9314_v4  ;;  %v3522_v39 = vpop.f32.mrb[94].mxu0  ;;  %v3563_v44 = vpop.f32.mrb[94].mxu1  ;;  %v3562_v45 = vadd.f32 %v3561_v23, %v6309_v52 }
 0xefb   :  { %4861 = vtanh.f32 %v3519_v38  ;;  %v3523_v11 = vpop.f32.mrb[95].mxu0  ;;  %v3564_v27 = vpop.f32.mrb[95].mxu1 }
 0xefc   :  { %4863 = vtanh.f32 %v3521_v41 }
 0xefd   :  { %4865 = vtanh.f32 %v3562_v45  ;;  %v5398_v45 = vld [vmem:[#allocation8 + $0x28] ss:$16 sps:$4 sm:$0xff]  }
 0xefe   :  { %4867 = vtanh.f32 %v3560_v13  ;;  %v5400_v13 = vld [vmem:[#allocation8 + $0x4c] ss:$16 sps:$4 sm:$0xff]  }
 0xf05   :  { %v4862_v15 = vpop.eup %4861 }
 0xf06   :  { %v3569_v55 = vmul.f32 0.5, %v4862_v15  ;;  %v4864_v46 = vpop.eup %4863  ;;  %v5401_v15 = vld [vmem:[#allocation8 + $0x40] ss:$16 sps:$4 sm:$0xff]  }
 0xf07   :  { %v3570_v60 = vmul.f32 0.5, %v4864_v46  ;;  %v4866_v26 = vpop.eup %4865  ;;  %v5393_v46 = vld [vmem:[#allocation8] ss:$16 sps:$4 sm:$0xff]  }
 0xf08   :  { %v3572_v17 = vadd.f32 0.5, %v3569_v55  ;;  %v4868_v27 = vpop.eup %4867  ;;  %v5399_v55 = vld [vmem:[#allocation8 + $0x44] ss:$16 sps:$4 sm:$0xff]  }
 0xf09   :  { %v3573_v8 = vadd.f32 0.5, %v3570_v60  ;;  %v3571_v11 = vmul.f32 0.5, %v4868_v27  ;;  %v5402_v60 = vld [vmem:[#allocation8 + $0x48] ss:$16 sps:$4 sm:$0xff]   ;;  %v5405_v27 = vld [vmem:[#allocation8 + $0x60] ss:$16 sps:$4 sm:$0xff]  }
 0xf0a   :  { %v3577_v31 = vmul.f32 %v4866_v26, %v3572_v17  ;;  %v5394_v26 = vld [vmem:[#allocation8 + $0x8] ss:$16 sps:$4 sm:$0xff]   ;;  %v5397_v17 = vld [vmem:[#allocation8 + $0x20] ss:$16 sps:$4 sm:$0xff]  }
 0xf0b   :  { %v3576_v44 = vmul.f32 %v3573_v8, %v8010_v40  ;;  %v3574_v23 = vadd.f32 0.5, %v3571_v11  ;;  %v5395_v40 = vld [vmem:[#allocation8 + $0x24] ss:$16 sps:$4 sm:$0xff]   ;;  %v5396_v8 = vld [vmem:[#allocation8 + $0x2c] ss:$16 sps:$4 sm:$0xff]  }
 0xf0c   :  { %v5406_v11 = vld [vmem:[#allocation8 + $0x68] ss:$16 sps:$4 sm:$0xff]  }
 0xf0d   :  { %v8456_v39 = vadd.f32 %v3577_v31, %v3576_v44  ;;  %v5403_v31 = vld [vmem:[#allocation8 + $0x64] ss:$16 sps:$4 sm:$0xff]   ;;  %v5404_v44 = vld [vmem:[#allocation8 + $0x6c] ss:$16 sps:$4 sm:$0xff]  }
 0xf0f   :  { %4869 = vtanh.f32 %v8456_v39 }
 0xf19   :  { %v4870_v38 = vpop.eup %4869 }
 0xf1a   :  { %v3580_v42 = vmul.f32 %v4870_v38, %v3574_v23  ;;  %v5408_v23 = vld [vmem:[#allocation8 + $0x8c] ss:$16 sps:$4 sm:$0xff]   ;;  %v5409_v38 = vld [vmem:[#allocation8 + $0x80] ss:$16 sps:$4 sm:$0xff]  }
 0xf1c   :  { %v8459_v41 = vpack.c.bf16 %v3580_v42, %v3580_v42  ;;  %v5410_v42 = vld [vmem:[#allocation8 + $0x88] ss:$16 sps:$4 sm:$0xff]  }
 0xf1e   :  { %3615 = vmatmul.mubr.bf16.vlgmr.msra.gmra.mrb[96].mxu0 %v8459_v41  ;;  %3656 = vmatmul.mubr.bf16.vlgmr.msra.gmra.mrb[96].mxu1 %v8459_v41 }
 0xf1f   :  { %3688 = vmatpush1.bf16.msra.mxu0 %v5393_v46  ;;  %3729 = vmatpush1.bf16.msra.mxu1 %v5394_v26  ;;  %v5411_v46 = vld [vmem:[#allocation8 + $0xa4] ss:$16 sps:$4 sm:$0xff]   ;;  %v5412_v26 = vld [vmem:[#allocation8 + $0xac] ss:$16 sps:$4 sm:$0xff]  }
 0xf20   :  { %3689 = vmatprep.subr.bf16.mxu0 %v5395_v40  ;;  %3730 = vmatprep.subr.bf16.mxu1 %v5396_v8  ;;  %v5413_v40 = vld [vmem:[#allocation8 + $0xa0] ss:$16 sps:$4 sm:$0xff]   ;;  %v5414_v8 = vld [vmem:[#allocation8 + $0xa8] ss:$16 sps:$4 sm:$0xff]  }
 0xf21   :  { %3719 = vmatprep.mubr.bf16.mxu0 %v9199_v5  ;;  %3760 = vmatprep.mubr.bf16.mxu1 %v9199_v5  ;;  %v5407_v5 = vld [vmem:[#allocation8 + $0x84] ss:$16 sps:$4 sm:$0xff]  }
 0xf23   :  { %3690 = vmatpush1.bf16.msra.mxu0 %v5397_v17  ;;  %3731 = vmatpush1.bf16.msra.mxu1 %v5398_v45  ;;  %v5415_v17 = vld [vmem:[#allocation8 + $0xc4] ss:$16 sps:$4 sm:$0xff]   ;;  %v5416_v45 = vld [vmem:[#allocation8 + $0xcc] ss:$16 sps:$4 sm:$0xff]  }
 0xf24   :  { %3691 = vmatprep.subr.bf16.mxu0 %v5399_v55  ;;  %3732 = vmatprep.subr.bf16.mxu1 %v5400_v13  ;;  %v5417_v55 = vld [vmem:[#allocation8 + $0xc0] ss:$16 sps:$4 sm:$0xff]   ;;  %v5418_v13 = vld [vmem:[#allocation8 + $0xc8] ss:$16 sps:$4 sm:$0xff]  }
 0xf27   :  { %3692 = vmatpush1.bf16.msra.mxu0 %v5401_v15  ;;  %3733 = vmatpush1.bf16.msra.mxu1 %v5402_v60  ;;  %v5419_v15 = vld [vmem:[#allocation8 + $0xe4] ss:$16 sps:$4 sm:$0xff]   ;;  %v5420_v60 = vld [vmem:[#allocation8 + $0xec] ss:$16 sps:$4 sm:$0xff]  }
 0xf28   :  { %3693 = vmatprep.subr.bf16.mxu0 %v5403_v31  ;;  %3734 = vmatprep.subr.bf16.mxu1 %v5404_v44  ;;  %v5421_v31 = vld [vmem:[#allocation8 + $0xe0] ss:$16 sps:$4 sm:$0xff]   ;;  %v5422_v44 = vld [vmem:[#allocation8 + $0xe8] ss:$16 sps:$4 sm:$0xff]  }
 0xf2b   :  { %3694 = vmatpush1.bf16.msra.mxu0 %v5405_v27  ;;  %3735 = vmatpush1.bf16.msra.mxu1 %v5406_v11  ;;  %v9907_v27 = vld [vmem:[#allocation21_spill] sm:$0xff] }
 0xf2c   :  { %3695 = vmatprep.subr.bf16.mxu0 %v5407_v5  ;;  %3736 = vmatprep.subr.bf16.mxu1 %v5408_v23 }
 0xf2f   :  { %3696 = vmatpush1.bf16.msra.mxu0 %v5409_v38  ;;  %3737 = vmatpush1.bf16.msra.mxu1 %v5410_v42  ;;  %v9908_v38 = vld [vmem:[#allocation22_spill] sm:$0xff] }
 0xf30   :  { %3697 = vmatprep.subr.bf16.mxu0 %v5411_v46  ;;  %3738 = vmatprep.subr.bf16.mxu1 %v5412_v26 }
 0xf33   :  { %3698 = vmatpush1.bf16.msra.mxu0 %v5413_v40  ;;  %3739 = vmatpush1.bf16.msra.mxu1 %v5414_v8  ;;  %v9909_v40 = vld [vmem:[#allocation23_spill] sm:$0xff] }
 0xf34   :  { %3699 = vmatprep.subr.bf16.mxu0 %v5415_v17  ;;  %3740 = vmatprep.subr.bf16.mxu1 %v5416_v45 }
 0xf37   :  { %3700 = vmatpush1.bf16.msra.mxu0 %v5417_v55  ;;  %3741 = vmatpush1.bf16.msra.mxu1 %v5418_v13 }
 0xf38   :  { %3701 = vmatprep.subr.bf16.mxu0 %v5419_v15  ;;  %3742 = vmatprep.subr.bf16.mxu1 %v5420_v60 }
 0xf3b   :  { %3702 = vmatpush1.bf16.msra.mxu0 %v5421_v31  ;;  %3743 = vmatpush1.bf16.msra.mxu1 %v5422_v44 }
 0xf3c   :  { %3785 = vmatprep.subr.bf16.mxu0 %v8045_v2  ;;  %3826 = vmatprep.subr.bf16.mxu1 %v8048_v16  ;;  %v9874_v2 = vld [vmem:[#allocation144_spill] sm:$0xff]  ;;  %v9875_v16 = vld [vmem:[#allocation145_spill] sm:$0xff] }
 0xf3e   :  { %3720 = vmatmul.mubr.bf16.vlgmr.msra.gmra.mrb[100].mxu0 %v8261_v57  ;;  %3761 = vmatmul.mubr.bf16.vlgmr.msra.gmra.mrb[100].mxu1 %v8261_v57 }
 0xf3f   :  { %3817 = vmatprep.mubr.bf16.mxu0 %v8459_v41  ;;  %3858 = vmatprep.mubr.bf16.mxu1 %v8459_v41 }
 0xf40   :  { %3786 = vmatpush1.bf16.msra.mxu0 %v8053_v50  ;;  %3827 = vmatpush1.bf16.msra.mxu1 %v8056_v61  ;;  %v9876_v50 = vld [vmem:[#allocation146_spill] sm:$0xff]  ;;  %v9877_v61 = vld [vmem:[#allocation147_spill] sm:$0xff] }
 0xf41   :  { %3787 = vmatprep.subr.bf16.mxu0 %v8059_v36  ;;  %3828 = vmatprep.subr.bf16.mxu1 %v8062_v35  ;;  %v9878_v36 = vld [vmem:[#allocation148_spill] sm:$0xff]  ;;  %v9879_v35 = vld [vmem:[#allocation149_spill] sm:$0xff] }
 0xf44   :  { %3788 = vmatpush1.bf16.msra.mxu0 %v8065_v47  ;;  %3829 = vmatpush1.bf16.msra.mxu1 %v8068_v7  ;;  %v9880_v47 = vld [vmem:[#allocation150_spill] sm:$0xff]  ;;  %v9881_v7 = vld [vmem:[#allocation151_spill] sm:$0xff] }
 0xf45   :  { %3789 = vmatprep.subr.bf16.mxu0 %v8071_v9  ;;  %3830 = vmatprep.subr.bf16.mxu1 %v8074_v18  ;;  %v9882_v9 = vld [vmem:[#allocation152_spill] sm:$0xff]  ;;  %v9883_v18 = vld [vmem:[#allocation153_spill] sm:$0xff] }
 0xf48   :  { %3790 = vmatpush1.bf16.msra.mxu0 %v8077_v21  ;;  %3831 = vmatpush1.bf16.msra.mxu1 %v8080_v51  ;;  %v9884_v21 = vld [vmem:[#allocation154_spill] sm:$0xff]  ;;  %v9885_v51 = vld [vmem:[#allocation63_spill] sm:$0xff] }
 0xf49   :  { %3791 = vmatprep.subr.bf16.mxu0 %v8083_v33  ;;  %3832 = vmatprep.subr.bf16.mxu1 %v8086_v25  ;;  %v9886_v33 = vld [vmem:[#allocation64_spill] sm:$0xff]  ;;  %v9887_v25 = vld [vmem:[#allocation65_spill] sm:$0xff] }
 0xf4c   :  { %3792 = vmatpush1.bf16.msra.mxu0 %v8089_v28  ;;  %3833 = vmatpush1.bf16.msra.mxu1 %v8092_v29  ;;  %v9888_v28 = vld [vmem:[#allocation66_spill] sm:$0xff]  ;;  %v9889_v29 = vld [vmem:[#allocation155_spill] sm:$0xff] }
 0xf4d   :  { %3793 = vmatprep.subr.bf16.mxu0 %v8095_v30  ;;  %3834 = vmatprep.subr.bf16.mxu1 %v8098_v53  ;;  %v9890_v30 = vld [vmem:[#allocation156_spill] sm:$0xff]  ;;  %v9891_v53 = vld [vmem:[#allocation157_spill] sm:$0xff] }
 0xf50   :  { %3794 = vmatpush1.bf16.msra.mxu0 %v8101_v54  ;;  %3835 = vmatpush1.bf16.msra.mxu1 %v8104_v34  ;;  %v9892_v54 = vld [vmem:[#allocation55_spill] sm:$0xff]  ;;  %v9893_v34 = vld [vmem:[#allocation56_spill] sm:$0xff] }
 0xf51   :  { %3795 = vmatprep.subr.bf16.mxu0 %v8107_v14  ;;  %3836 = vmatprep.subr.bf16.mxu1 %v8110_v58  ;;  %v9894_v14 = vld [vmem:[#allocation57_spill] sm:$0xff]  ;;  %v9895_v58 = vld [vmem:[#allocation58_spill] sm:$0xff] }
 0xf54   :  { %3796 = vmatpush1.bf16.msra.mxu0 %v8113_v22  ;;  %3837 = vmatpush1.bf16.msra.mxu1 %v8116_v32  ;;  %v9896_v22 = vld [vmem:[#allocation24_spill] sm:$0xff]  ;;  %v9897_v32 = vld [vmem:[#allocation25_spill] sm:$0xff] }
 0xf55   :  { %3797 = vmatprep.subr.bf16.mxu0 %v8119_v0  ;;  %3838 = vmatprep.subr.bf16.mxu1 %v8122_v3  ;;  %v9898_v0 = vld [vmem:[#allocation26_spill] sm:$0xff]  ;;  %v9899_v3 = vld [vmem:[#allocation27_spill] sm:$0xff] }
 0xf58   :  { %3798 = vmatpush1.bf16.msra.mxu0 %v8125_v48  ;;  %3839 = vmatpush1.bf16.msra.mxu1 %v8128_v63  ;;  %v9900_v48 = vld [vmem:[#allocation28_spill] sm:$0xff]  ;;  %v9901_v63 = vld [vmem:[#allocation29_spill] sm:$0xff] }
 0xf59   :  { %3799 = vmatprep.subr.bf16.mxu0 %v8131_v43  ;;  %3840 = vmatprep.subr.bf16.mxu1 %v8134_v20  ;;  %v9902_v43 = vld [vmem:[#allocation30_spill] sm:$0xff]  ;;  %v9903_v20 = vld [vmem:[#allocation31_spill] sm:$0xff] }
 0xf5c   :  { %3800 = vmatpush1.bf16.msra.mxu0 %v8137_v6  ;;  %3841 = vmatpush1.bf16.msra.mxu1 %v8140_v10  ;;  %v9904_v6 = vld [vmem:[#allocation32_spill] sm:$0xff]  ;;  %v9905_v10 = vld [vmem:[#allocation33_spill] sm:$0xff] }
 0xf5d   :  { %3801 = vmatprep.subr.bf16.mxu0 %v8143_v37  ;;  %3842 = vmatprep.subr.bf16.mxu1 %v9874_v2  ;;  %v9906_v37 = vld [vmem:[#allocation34_spill] sm:$0xff] }
 0xf60   :  { %3802 = vmatpush1.bf16.msra.mxu0 %v9875_v16  ;;  %3843 = vmatpush1.bf16.msra.mxu1 %v9876_v50 }
 0xf61   :  { %3803 = vmatprep.subr.bf16.mxu0 %v9877_v61  ;;  %3844 = vmatprep.subr.bf16.mxu1 %v9878_v36 }
 0xf64   :  { %3804 = vmatpush1.bf16.msra.mxu0 %v9879_v35  ;;  %3845 = vmatpush1.bf16.msra.mxu1 %v9880_v47  ;;  %v9910_v47 = vld [vmem:[#allocation75_spill] sm:$0xff] }
 0xf65   :  { %3805 = vmatprep.subr.bf16.mxu0 %v9881_v7  ;;  %3846 = vmatprep.subr.bf16.mxu1 %v9882_v9  ;;  %v9911_v9 = vld [vmem:[#allocation76_spill] sm:$0xff] }
 0xf68   :  { %3806 = vmatpush1.bf16.msra.mxu0 %v9883_v18  ;;  %3847 = vmatpush1.bf16.msra.mxu1 %v9884_v21 }
 0xf69   :  { %3807 = vmatprep.subr.bf16.mxu0 %v9885_v51  ;;  %3848 = vmatprep.subr.bf16.mxu1 %v9886_v33  ;;  %v9912_v33 = vld [vmem:[#allocation77_spill] sm:$0xff] }
 0xf6c   :  { %3808 = vmatpush1.bf16.msra.mxu0 %v9887_v25  ;;  %3849 = vmatpush1.bf16.msra.mxu1 %v9888_v28  ;;  %v9913_v28 = vld [vmem:[#allocation78_spill] sm:$0xff] }
 0xf6d   :  { %3809 = vmatprep.subr.bf16.mxu0 %v9889_v29  ;;  %3850 = vmatprep.subr.bf16.mxu1 %v9890_v30 }
 0xf70   :  { %3810 = vmatpush1.bf16.msra.mxu0 %v9891_v53  ;;  %3851 = vmatpush1.bf16.msra.mxu1 %v9892_v54 }
 0xf71   :  { %3811 = vmatprep.subr.bf16.mxu0 %v9893_v34  ;;  %3852 = vmatprep.subr.bf16.mxu1 %v9894_v14 }
 0xf74   :  { %3812 = vmatpush1.bf16.msra.mxu0 %v9895_v58  ;;  %3853 = vmatpush1.bf16.msra.mxu1 %v9896_v22 }
 0xf75   :  { %3813 = vmatprep.subr.bf16.mxu0 %v9897_v32  ;;  %3854 = vmatprep.subr.bf16.mxu1 %v9898_v0 }
 0xf78   :  { %3814 = vmatpush1.bf16.msra.mxu0 %v9899_v3  ;;  %3855 = vmatpush1.bf16.msra.mxu1 %v9900_v48 }
 0xf79   :  { %3815 = vmatprep.subr.bf16.mxu0 %v9901_v63  ;;  %3856 = vmatprep.subr.bf16.mxu1 %v9902_v43 }
 0xf7c   :  { %3816 = vmatpush1.bf16.msra.mxu0 %v9903_v20  ;;  %3857 = vmatpush1.bf16.msra.mxu1 %v9904_v6 }
 0xf7d   :  { %3883 = vmatprep.subr.bf16.mxu0 %v9905_v10  ;;  %3924 = vmatprep.subr.bf16.mxu1 %v9906_v37 }
 0xff1   :  { %v3616_v57 = vpop.f32.mrb[96].mxu0  ;;  %v3657_v41 = vpop.f32.mrb[96].mxu1 }
 0xff2   :  { %v3617_v11 = vadd.f32 %v3616_v57, %v9907_v27  ;;  %v3618_v5 = vpop.f32.mrb[97].mxu0  ;;  %v3659_v23 = vpop.f32.mrb[97].mxu1 }
 0xff3   :  { %v3619_v42 = vadd.f32 %v3618_v5, %v9908_v38  ;;  %v3620_v46 = vpop.f32.mrb[98].mxu0  ;;  %v3661_v26 = vpop.f32.mrb[98].mxu1  ;;  %v3660_v8 = vadd.f32 %v3659_v23, %v9909_v40 }
 0xff4   :  { %4871 = vtanh.f32 %v3617_v11  ;;  %v3621_v17 = vpop.f32.mrb[99].mxu0  ;;  %v3662_v45 = vpop.f32.mrb[99].mxu1 }
 0xff5   :  { %4873 = vtanh.f32 %v3619_v42  ;;  %v9915_v17 = vld [vmem:[#allocation36_spill] sm:$0xff]  ;;  %v9916_v45 = vld [vmem:[#allocation37_spill] sm:$0xff] }
 0xff6   :  { %4875 = vtanh.f32 %v3660_v8 }
 0xffe   :  { %v4872_v55 = vpop.eup %4871 }
 0xfff   :  { %v3667_v13 = vmul.f32 0.5, %v4872_v55  ;;  %v4874_v15 = vpop.eup %4873  ;;  %v9917_v55 = vld [vmem:[#allocation38_spill] sm:$0xff] }
0x1000   :  { %v3668_v31 = vmul.f32 0.5, %v4874_v15  ;;  %v4876_v44 = vpop.eup %4875  ;;  %v9919_v15 = vld [vmem:[#allocation40_spill] sm:$0xff] }
0x1001   :  { %v3670_v60 = vadd.f32 0.5, %v3667_v13  ;;  %v9918_v13 = vld [vmem:[#allocation39_spill] sm:$0xff] }
0x1002   :  { %v3671_v2 = vadd.f32 0.5, %v3668_v31  ;;  %v9925_v31 = vld [vmem:[#allocation46_spill] sm:$0xff] }
0x1003   :  { %v3675_v16 = vmul.f32 %v4876_v44, %v3670_v60  ;;  %v9920_v60 = vld [vmem:[#allocation41_spill] sm:$0xff]  ;;  %v9926_v44 = vld [vmem:[#allocation47_spill] sm:$0xff] }
0x1004   :  { %v3674_v50 = vmul.f32 %v3671_v2, %v8249_v12  ;;  %v3658_v12 = vadd.f32 %v3657_v41, %v6509_v49  ;;  %v9927_v2 = vld [vmem:[#allocation48_spill] sm:$0xff] }
0x1006   :  { %v8539_v61 = vadd.f32 %v3675_v16, %v3674_v50  ;;  %v9928_v16 = vld [vmem:[#allocation49_spill] sm:$0xff]  ;;  %v9929_v50 = vld [vmem:[#allocation67_spill] sm:$0xff] }
0x1011   :  { %v3721_v36 = vpop.f32.mrb[100].mxu0  ;;  %v3762_v35 = vpop.f32.mrb[100].mxu1 }
0x1012   :  { %v3722_v7 = vadd.f32 %v3721_v36, %v9910_v47  ;;  %v3763_v18 = vadd.f32 %v3762_v35, %v9911_v9  ;;  %v3723_v21 = vpop.f32.mrb[101].mxu0  ;;  %v3764_v51 = vpop.f32.mrb[101].mxu1  ;;  %v9930_v36 = vld [vmem:[#allocation68_spill] sm:$0xff]  ;;  %v9931_v35 = vld [vmem:[#allocation69_spill] sm:$0xff]  ;;  %v9932_v47 = vld [vmem:[#allocation70_spill] sm:$0xff] }
0x1013   :  { %v3724_v25 = vadd.f32 %v3723_v21, %v9912_v33  ;;  %v3765_v29 = vadd.f32 %v3764_v51, %v9913_v28  ;;  %v3725_v30 = vpop.f32.mrb[102].mxu0  ;;  %v3766_v53 = vpop.f32.mrb[102].mxu1  ;;  %v9934_v9 = vld [vmem:[#allocation51_spill] sm:$0xff]  ;;  %v9936_v21 = vld [vmem:[#allocation53_spill] sm:$0xff]  ;;  %v9937_v51 = vld [vmem:[#allocation54_spill] sm:$0xff] }
0x1014   :  { %4877 = vtanh.f32 %v3722_v7  ;;  %v3726_v54 = vpop.f32.mrb[103].mxu0  ;;  %v3767_v34 = vpop.f32.mrb[103].mxu1  ;;  %v9933_v7 = vld [vmem:[#allocation50_spill] sm:$0xff]  ;;  %v9938_v33 = vld [vmem:[#allocation79_spill] sm:$0xff]  ;;  %v9942_v30 = vld [vmem:[#allocation61_spill] sm:$0xff] }
0x1015   :  { %4879 = vtanh.f32 %v3724_v25  ;;  %v9939_v25 = vld [vmem:[#allocation80_spill] sm:$0xff]  ;;  %v9940_v28 = vld [vmem:[#allocation59_spill] sm:$0xff]  ;;  %v9943_v53 = vld [vmem:[#allocation62_spill] sm:$0xff] }
0x1016   :  { %4881 = vtanh.f32 %v3765_v29  ;;  %v9941_v29 = vld [vmem:[#allocation60_spill] sm:$0xff]  ;;  %v9944_v54 = vld [vmem:[#allocation81_spill] sm:$0xff]  ;;  %v9945_v34 = vld [vmem:[#allocation82_spill] sm:$0xff] }
0x1017   :  { %4883 = vtanh.f32 %v3658_v12  ;;  %v9946_v12 = vld [vmem:[#allocation83_spill] sm:$0xff] }
0x1018   :  { %4885 = vtanh.f32 %v3763_v18  ;;  %v9935_v18 = vld [vmem:[#allocation52_spill] sm:$0xff] }
0x1019   :  { %4887 = vtanh.f32 %v8539_v61 }
0x101e   :  { %v4878_v14 = vpop.eup %4877 }
0x101f   :  { %v3772_v58 = vmul.f32 0.5, %v4878_v14  ;;  %v4880_v22 = vpop.eup %4879  ;;  %v9947_v14 = vld [vmem:[#allocation84_spill] sm:$0xff] }
0x1020   :  { %v3773_v0 = vmul.f32 0.5, %v4880_v22  ;;  %v4882_v3 = vpop.eup %4881  ;;  %v9949_v22 = vld [vmem:[#allocation86_spill] sm:$0xff] }
0x1021   :  { %v3775_v32 = vadd.f32 0.5, %v3772_v58  ;;  %v4884_v6 = vpop.eup %4883  ;;  %v9948_v58 = vld [vmem:[#allocation85_spill] sm:$0xff] }
0x1022   :  { %v3776_v48 = vadd.f32 0.5, %v3773_v0  ;;  %v4886_v10 = vpop.eup %4885  ;;  %v3669_v37 = vmul.f32 0.5, %v4884_v6  ;;  %v9951_v0 = vld [vmem:[#allocation88_spill] sm:$0xff]  ;;  %v9957_v6 = vld [vmem:[#allocation94_spill] sm:$0xff] }
0x1023   :  { %v3780_v63 = vmul.f32 %v4882_v3, %v3775_v32  ;;  %v3774_v57 = vmul.f32 0.5, %v4886_v10  ;;  %v4888_v41 = vpop.eup %4887  ;;  %v9950_v32 = vld [vmem:[#allocation87_spill] sm:$0xff]  ;;  %v9952_v3 = vld [vmem:[#allocation89_spill] sm:$0xff] }
0x1024   :  { %v3779_v43 = vmul.f32 %v3776_v48, %v8258_v62  ;;  %v3672_v11 = vadd.f32 0.5, %v3669_v37  ;;  %v9914_v62 = vld [vmem:[#allocation35_spill] sm:$0xff]  ;;  %v9953_v48 = vld [vmem:[#allocation90_spill] sm:$0xff]  ;;  %v9959_v37 = vld [vmem:[#allocation96_spill] sm:$0xff] }
0x1025   :  { %v3777_v5 = vadd.f32 0.5, %v3774_v57  ;;  %v9958_v10 = vld [vmem:[#allocation95_spill] sm:$0xff]  ;;  %v9960_v57 = vld [vmem:[#allocation97_spill] sm:$0xff] }
0x1026   :  { %v3781_v20 = vadd.f32 %v3780_v63, %v3779_v43  ;;  %v3678_v42 = vmul.f32 %v4888_v41, %v3672_v11  ;;  %v9954_v63 = vld [vmem:[#allocation91_spill] sm:$0xff]  ;;  %v9955_v43 = vld [vmem:[#allocation92_spill] sm:$0xff]  ;;  %v9961_v41 = vld [vmem:[#allocation98_spill] sm:$0xff] }
0x1027   :  { %v9962_v11 = vld [vmem:[#allocation99_spill] sm:$0xff] }
0x1028   :  { %4889 = vtanh.f32 %v3781_v20  ;;  %v3679_v8 = vpack.c.bf16 %v3678_v42, %v3678_v42  ;;  %v9956_v20 = vld [vmem:[#allocation93_spill] sm:$0xff]  ;;  %v9965_v42 = vld [vmem:[#allocation102_spill] sm:$0xff] }
0x1032   :  { %v4890_v23 = vpop.eup %4889 }
0x1033   :  { %v3783_v46 = vmul.f32 %v4890_v23, %v3777_v5  ;;  %v9963_v5 = vld [vmem:[#allocation100_spill] sm:$0xff]  ;;  %v9964_v23 = vld [vmem:[#allocation101_spill] sm:$0xff] }
0x1035   :  { %v3784_v26 = vpack.c.bf16 %v3783_v46, %v3783_v46  ;;  %v9966_v46 = vld [vmem:[#allocation103_spill] sm:$0xff] }
0x1037   :  { %3818 = vmatmul.mubr.bf16.vlgmr.msra.gmra.mrb[104].mxu0 %v3784_v26  ;;  %3859 = vmatmul.mubr.bf16.vlgmr.msra.gmra.mrb[104].mxu1 %v3784_v26  ;;  %v9967_v26 = vld [vmem:[#allocation104_spill] sm:$0xff] }
0x1038   :  { %3915 = vmatprep.mubr.bf16.mxu0 %v3679_v8  ;;  %3956 = vmatprep.mubr.bf16.mxu1 %v3679_v8  ;;  %v9968_v8 = vld [vmem:[#allocation105_spill] sm:$0xff] }
0x1039   :  { %3884 = vmatpush1.bf16.msra.mxu0 %v8265_v24  ;;  %3925 = vmatpush1.bf16.msra.mxu1 %v8268_v56  ;;  %v9921_v24 = vld [vmem:[#allocation42_spill] sm:$0xff]  ;;  %v9922_v56 = vld [vmem:[#allocation43_spill] sm:$0xff] }
0x103a   :  { %3885 = vmatprep.subr.bf16.mxu0 %v8271_v59  ;;  %3926 = vmatprep.subr.bf16.mxu1 %v8274_v1  ;;  %v9923_v59 = vld [vmem:[#allocation44_spill] sm:$0xff]  ;;  %v9924_v1 = vld [vmem:[#allocation45_spill] sm:$0xff] }
0x103d   :  { %3886 = vmatpush1.bf16.msra.mxu0 %v9914_v62  ;;  %3927 = vmatpush1.bf16.msra.mxu1 %v9915_v17  ;;  %v9969_v62 = vld [vmem:[#allocation106_spill] sm:$0xff]  ;;  %v9970_v17 = vld [vmem:[#allocation107_spill] sm:$0xff] }
0x103e   :  { %3887 = vmatprep.subr.bf16.mxu0 %v9916_v45  ;;  %3928 = vmatprep.subr.bf16.mxu1 %v9917_v55  ;;  %v9971_v45 = vld [vmem:[#allocation108_spill] sm:$0xff] }
0x1041   :  { %3888 = vmatpush1.bf16.msra.mxu0 %v9918_v13  ;;  %3929 = vmatpush1.bf16.msra.mxu1 %v9919_v15  ;;  %v9972_v15 = vld [vmem:[#allocation140_spill] sm:$0xff] }
0x1042   :  { %3889 = vmatprep.subr.bf16.mxu0 %v9920_v60  ;;  %3930 = vmatprep.subr.bf16.mxu1 %v9921_v24 }
0x1045   :  { %3890 = vmatpush1.bf16.msra.mxu0 %v9922_v56  ;;  %3931 = vmatpush1.bf16.msra.mxu1 %v9923_v59 }
0x1046   :  { %3891 = vmatprep.subr.bf16.mxu0 %v9924_v1  ;;  %3932 = vmatprep.subr.bf16.mxu1 %v9925_v31 }
0x1049   :  { %3892 = vmatpush1.bf16.msra.mxu0 %v9926_v44  ;;  %3933 = vmatpush1.bf16.msra.mxu1 %v9927_v2 }
0x104a   :  { %3893 = vmatprep.subr.bf16.mxu0 %v9928_v16  ;;  %3934 = vmatprep.subr.bf16.mxu1 %v9929_v50 }
0x104d   :  { %3894 = vmatpush1.bf16.msra.mxu0 %v9930_v36  ;;  %3935 = vmatpush1.bf16.msra.mxu1 %v9931_v35 }
0x104e   :  { %3895 = vmatprep.subr.bf16.mxu0 %v9932_v47  ;;  %3936 = vmatprep.subr.bf16.mxu1 %v9933_v7 }
0x1051   :  { %3896 = vmatpush1.bf16.msra.mxu0 %v9934_v9  ;;  %3937 = vmatpush1.bf16.msra.mxu1 %v9935_v18 }
0x1052   :  { %3897 = vmatprep.subr.bf16.mxu0 %v9936_v21  ;;  %3938 = vmatprep.subr.bf16.mxu1 %v9937_v51 }
0x1055   :  { %3898 = vmatpush1.bf16.msra.mxu0 %v9938_v33  ;;  %3939 = vmatpush1.bf16.msra.mxu1 %v9939_v25 }
0x1056   :  { %3899 = vmatprep.subr.bf16.mxu0 %v9940_v28  ;;  %3940 = vmatprep.subr.bf16.mxu1 %v9941_v29 }
0x1059   :  { %3900 = vmatpush1.bf16.msra.mxu0 %v9942_v30  ;;  %3941 = vmatpush1.bf16.msra.mxu1 %v9943_v53 }
0x105a   :  { %3901 = vmatprep.subr.bf16.mxu0 %v9944_v54  ;;  %3942 = vmatprep.subr.bf16.mxu1 %v9945_v34  ;;  %v5623_v54 = vmov 0.0   ;;  %v4664_v34 = vld [vmem:[#allocation14 + $0x8] sm:$0xff]  }
0x105d   :  { %3902 = vmatpush1.bf16.msra.mxu0 %v9946_v12  ;;  %3943 = vmatpush1.bf16.msra.mxu1 %v9947_v14  ;;  %v4665_v12 = vld [vmem:[#allocation14 + $0x10] sm:$0xff]   ;;  %v4667_v14 = vld [vmem:[#allocation14 + $0x20] sm:$0xff]  }
0x105e   :  { %3903 = vmatprep.subr.bf16.mxu0 %v9948_v58  ;;  %3944 = vmatprep.subr.bf16.mxu1 %v9949_v22  ;;  %v4668_v58 = vld [vmem:[#allocation14 + $0x28] sm:$0xff]   ;;  %v4669_v22 = vld [vmem:[#allocation14 + $0x30] sm:$0xff]  }
0x1061   :  { %3904 = vmatpush1.bf16.msra.mxu0 %v9950_v32  ;;  %3945 = vmatpush1.bf16.msra.mxu1 %v9951_v0  ;;  %v4670_v32 = vld [vmem:[#allocation14 + $0x38] sm:$0xff]  }
0x1062   :  { %3905 = vmatprep.subr.bf16.mxu0 %v9952_v3  ;;  %3946 = vmatprep.subr.bf16.mxu1 %v9953_v48 }
0x1065   :  { %3906 = vmatpush1.bf16.msra.mxu0 %v9954_v63  ;;  %3947 = vmatpush1.bf16.msra.mxu1 %v9955_v43 }
0x1066   :  { %3907 = vmatprep.subr.bf16.mxu0 %v9956_v20  ;;  %3948 = vmatprep.subr.bf16.mxu1 %v9957_v6 }
0x1069   :  { %3908 = vmatpush1.bf16.msra.mxu0 %v9958_v10  ;;  %3949 = vmatpush1.bf16.msra.mxu1 %v9959_v37 }
0x106a   :  { %3909 = vmatprep.subr.bf16.mxu0 %v9960_v57  ;;  %3950 = vmatprep.subr.bf16.mxu1 %v9961_v41 }
0x106d   :  { %3910 = vmatpush1.bf16.msra.mxu0 %v9962_v11  ;;  %3951 = vmatpush1.bf16.msra.mxu1 %v9963_v5 }
0x106e   :  { %3911 = vmatprep.subr.bf16.mxu0 %v9964_v23  ;;  %3952 = vmatprep.subr.bf16.mxu1 %v9965_v42 }
0x1071   :  { %3912 = vmatpush1.bf16.msra.mxu0 %v9966_v46  ;;  %3953 = vmatpush1.bf16.msra.mxu1 %v9967_v26 }
0x1072   :  { %3913 = vmatprep.subr.bf16.mxu0 %v9968_v8  ;;  %3954 = vmatprep.subr.bf16.mxu1 %v9969_v62 }
0x1075   :  { %3914 = vmatpush1.bf16.msra.mxu0 %v9970_v17  ;;  %3955 = vmatpush1.bf16.msra.mxu1 %v9971_v45 }
0x1076   :  { %4334 = vmatprep.subr.bf16.mxu0 %v5623_v54 }
0x110a   :  { %v3819_v55 = vpop.f32.mrb[104].mxu0  ;;  %v3860_v13 = vpop.f32.mrb[104].mxu1 }
0x110b   :  { %v3820_v60 = vadd.f32 %v3819_v55, %v9972_v15  ;;  %v3821_v24 = vpop.f32.mrb[105].mxu0  ;;  %v3862_v56 = vpop.f32.mrb[105].mxu1  ;;  %v3861_v50 = vadd.f32 %v3860_v13, %v9315_v19  ;;  %v4663_v19 = vld [vmem:[#allocation14] sm:$0xff]  }
0x110c   :  { %v3822_v59 = vadd.f32 %v3821_v24, %v9314_v4  ;;  %v3823_v1 = vpop.f32.mrb[106].mxu0  ;;  %v3864_v31 = vpop.f32.mrb[106].mxu1  ;;  %v3863_v44 = vadd.f32 %v3862_v56, %v6309_v52 }
0x110d   :  { %4891 = vtanh.f32 %v3820_v60  ;;  %v3824_v2 = vpop.f32.mrb[107].mxu0  ;;  %v3865_v16 = vpop.f32.mrb[107].mxu1 }
0x110e   :  { %4893 = vtanh.f32 %v3822_v59 }
0x110f   :  { %4895 = vtanh.f32 %v3863_v44 }
0x1110   :  { %4897 = vtanh.f32 %v3861_v50 }
0x1117   :  { %v4892_v36 = vpop.eup %4891 }
0x1118   :  { %v3870_v35 = vmul.f32 0.5, %v4892_v36  ;;  %v4894_v47 = vpop.eup %4893 }
0x1119   :  { %v3871_v9 = vmul.f32 0.5, %v4894_v47  ;;  %v4896_v18 = vpop.eup %4895 }
0x111a   :  { %v3873_v7 = vadd.f32 0.5, %v3870_v35  ;;  %v4898_v52 = vpop.eup %4897 }
0x111b   :  { %v3874_v21 = vadd.f32 0.5, %v3871_v9  ;;  %v3872_v25 = vmul.f32 0.5, %v4898_v52 }
0x111c   :  { %v3878_v4 = vmul.f32 %v4896_v18, %v3873_v7 }
0x111d   :  { %v3877_v51 = vmul.f32 %v3874_v21, %v8456_v39  ;;  %v3875_v28 = vadd.f32 0.5, %v3872_v25  ;;  %v4666_v39 = vld [vmem:[#allocation14 + $0x18] sm:$0xff]  }
0x111f   :  { %v3879_v33 = vadd.f32 %v3878_v4, %v3877_v51 }
0x1121   :  { %4899 = vtanh.f32 %v3879_v33 }
0x112b   :  { %v4900_v29 = vpop.eup %4899 }
0x112c   :  { %v3881_v30 = vmul.f32 %v4900_v29, %v3875_v28 }
0x112e   :  { %v3882_v53 = vpack.c.bf16 %v3881_v30, %v3881_v30 }
0x1130   :  { %3916 = vmatmul.mubr.bf16.vlgmr.msra.gmra.mrb[108].mxu0 %v3882_v53  ;;  %3957 = vmatmul.mubr.bf16.vlgmr.msra.gmra.mrb[108].mxu1 %v3882_v53 }
0x1131   :  { %4335 = vmatpush3.bf16.msra.mxu0 %v4663_v19  ;;  %4350 = vmatprep.mubr.msk.bf16.mxu0 %vm5624_vm0, %v5623_v54 }
0x1132   :  { %4336 = vmatprep.subr.bf16.mxu0 %v5623_v54 }
0x1135   :  { %4337 = vmatpush3.bf16.msra.mxu0 %v4664_v34 }
0x1136   :  { %4338 = vmatprep.subr.bf16.mxu0 %v5623_v54 }
0x1139   :  { %4339 = vmatpush3.bf16.msra.mxu0 %v4665_v12 }
0x113a   :  { %4340 = vmatprep.subr.bf16.mxu0 %v5623_v54 }
0x113d   :  { %4341 = vmatpush3.bf16.msra.mxu0 %v4666_v39 }
0x113e   :  { %4342 = vmatprep.subr.bf16.mxu0 %v5623_v54 }
0x1141   :  { %4343 = vmatpush3.bf16.msra.mxu0 %v4667_v14 }
0x1142   :  { %4344 = vmatprep.subr.bf16.mxu0 %v5623_v54 }
0x1145   :  { %4345 = vmatpush3.bf16.msra.mxu0 %v4668_v58 }
0x1146   :  { %4346 = vmatprep.subr.bf16.mxu0 %v5623_v54 }
0x1149   :  { %4347 = vmatpush3.bf16.msra.mxu0 %v4669_v22 }
0x114a   :  { %4348 = vmatprep.subr.bf16.mxu0 %v5623_v54 }
0x114d   :  { %4349 = vmatpush3.bf16.msra.mxu0 %v4670_v32 }
0x1203   :  { %v3917_v0 = vpop.f32.mrb[108].mxu0  ;;  %v3958_v3 = vpop.f32.mrb[108].mxu1 }
0x1204   :  { %v3918_v48 = vadd.f32 %v3917_v0, %v9907_v27  ;;  %v3919_v63 = vpop.f32.mrb[109].mxu0  ;;  %v3960_v43 = vpop.f32.mrb[109].mxu1  ;;  %v3959_v11 = vadd.f32 %v3958_v3, %v6509_v49  ;;  %v4316_v49 = vld [vmem:[%s8643_s8] ss:$0 sm:$0xff] }
0x1205   :  { %v3920_v20 = vadd.f32 %v3919_v63, %v9908_v38  ;;  %v3921_v6 = vpop.f32.mrb[110].mxu0  ;;  %v3962_v10 = vpop.f32.mrb[110].mxu1  ;;  %v3961_v37 = vadd.f32 %v3960_v43, %v9909_v40 }
0x1206   :  { %4901 = vtanh.f32 %v3918_v48  ;;  %v3922_v57 = vpop.f32.mrb[111].mxu0  ;;  %v3963_v41 = vpop.f32.mrb[111].mxu1 }
0x1207   :  { %4903 = vtanh.f32 %v3920_v20 }
0x1208   :  { %4905 = vtanh.f32 %v3961_v37 }
0x1209   :  { %4907 = vtanh.f32 %v3959_v11 }
0x1210   :  { %v4902_v5 = vpop.eup %4901 }
0x1211   :  { %v3968_v23 = vmul.f32 0.5, %v4902_v5  ;;  %v4904_v42 = vpop.eup %4903 }
0x1212   :  { %v3969_v27 = vmul.f32 0.5, %v4904_v42  ;;  %v4906_v26 = vpop.eup %4905 }
0x1213   :  { %v3971_v46 = vadd.f32 0.5, %v3968_v23  ;;  %v4908_v40 = vpop.eup %4907 }
0x1214   :  { %v3972_v8 = vadd.f32 0.5, %v3969_v27  ;;  %v3970_v45 = vmul.f32 0.5, %v4908_v40 }
0x1215   :  { %v3976_v38 = vmul.f32 %v4906_v26, %v3971_v46 }
0x1216   :  { %v3975_v62 = vmul.f32 %v3972_v8, %v8539_v61  ;;  %v3973_v55 = vadd.f32 0.5, %v3970_v45 }
0x1218   :  { %v3977_v17 = vadd.f32 %v3976_v38, %v3975_v62 }
0x121a   :  { %4909 = vtanh.f32 %v3977_v17 }
0x1224   :  { %v4910_v13 = vpop.eup %4909 }
0x1225   :  { %v3979_v15 = vmul.f32 %v4910_v13, %v3973_v55 }
0x1227   :  { %v3980_v60 = vpack.c.bf16 %v3979_v15, %v3979_v15 }
0x1229   :  { %4351 = vmatmul.mubr.bf16.vlgmr.msra.gmra.mrb[112].mxu0 %v3980_v60 }
0x12fc   :  { %v4086_v24 = vpop.f32.mrb[112].mxu0 }
0x12fd   :  { %v4087_v56 = vadd.f32 %v4316_v49, %v4086_v24  ;;  %v4352_v59 = vpop.f32.mrb[113].mxu0 }
0x12fe   :  { %v4089_v61 = vpop.f32.mrb[114].mxu0 }
0x12ff   :  { %4092 = vst [vmem:[#allocation15] sm:$0xff] %v4087_v56  ;;  %v4353_v1 = vpop.f32.mrb[115].mxu0 }
0x1300   :  { %5588 = shalt.err (!%p5585_p4)
}
0x1301   :  { %s5589_s8 = scalar_lea.hbm %s8644_s9, 128 }
0x1302   :  { %p5590_p5 = scmp.ne.s32.totalorder %s8644_s9, %s5589_s8  ;;  %p5593_p6 = scmp.lt.u32.totalorder %s5589_s8, %s8644_s9 }
0x1304   :  { %p5595_p7 = pnand %p5593_p6, %p5590_p5 }
0x1306   :  { %5598 = shalt.err (!%p5595_p7)
}
0x1307   :  { %4102 = dma.vmem_to_hbm [thread:$0]  %s4100_s17, 128, %s8644_s9, [#allocation5]  }
0x1308   :  { %5607 = dma.done.wait [#allocation5], 128  }
0x1309   :  { %5608 = vsyncadd [#allocation5], 4294967168 }
0x130a   :  { %4106 = vsyncpa [#allocation4], 1 }
0x130b   :  { %4107 = vsyncpa [#allocation7], 1 }
0x130c   :  { %4108 = vsyncpa [#allocation10], 1 }
0x130d   :  { %4109 = vsyncpa [#allocation13], 1 }
0x130e   :  { %4110 = vsyncpa [#allocation5], 1 }

</bundles_post_ra>
